<compile_context>
chip_gen: v6e
topology: v6e:2x2x1
jax: 0.10.0
libtpu: 0.0.40
codegen_flags: <defaults>
</compile_context>

<pallas_src>
import functools

import jax
import jax.numpy as jnp
from jax.experimental import pallas as pl
from jax.experimental.pallas import tpu as pltpu

NEG_SLOPE = 0.01   # nn.LeakyReLU default negative_slope
LANE = 128


def _round_up(x, m):
    return ((x + m - 1) // m) * m


def _leaky_relu(x):
    return jnp.where(x >= 0, x, NEG_SLOPE * x)


def make_fused_kernel(d_action, n_actor=5, n_critic=6):
    n_w = n_actor + n_critic

    def kernel(*refs):
        # inputs
        x_ref = refs[0]
        aw_hbm = refs[1:1 + n_actor]                     # actor weights, HBM (pl.ANY)
        ab_ref = refs[1 + n_actor]                        # packed actor biases (VMEM)
        cw_hbm = refs[2 + n_actor:2 + n_actor + n_critic]  # critic weights, HBM
        cb_ref = refs[2 + n_actor + n_critic]             # packed critic biases (VMEM)
        # outputs
        probs_ref = refs[3 + n_actor + n_critic]          # (B, 128) lane-dense
        value_ref = refs[4 + n_actor + n_critic]          # (B, 128) lane-dense
        # scratch
        wbufs = refs[5 + n_actor + n_critic:5 + n_actor + n_critic + n_w]
        sem = refs[5 + n_actor + n_critic + n_w]          # DMA semaphores, shape (n_w,)

        w_hbm = list(aw_hbm) + list(cw_hbm)

        # Kick off ALL weight DMAs up front (HBM -> VMEM, bf16).  Each layer
        # then waits only for its own weights, so later-layer DMA streams
        # behind earlier-layer compute.
        for i in range(n_w):
            pltpu.make_async_copy(w_hbm[i], wbufs[i], sem.at[i]).start()

        x = x_ref[...]

        def run_stack(base, n_layers, b_ref):
            h = x
            off = 0
            for l in range(n_layers):
                i = base + l
                pltpu.make_async_copy(w_hbm[i], wbufs[i], sem.at[i]).wait()
                w = wbufs[i][...].astype(jnp.float32)     # bf16 in VMEM, f32 math
                d = w.shape[1]                            # padded out-dim (×128)
                b = b_ref[:, off:off + d]                 # (1, d) packed bias slice
                h = jnp.dot(h, w, preferred_element_type=jnp.float32) + b
                if l < n_layers - 1:
                    h = _leaky_relu(h)
                off += d
            return h

        # ---- actor: 5 Linear (+LeakyReLU) then masked softmax over padded lanes ----
        logits = run_stack(0, n_actor, ab_ref)            # (B, 128)
        col = jax.lax.broadcasted_iota(jnp.int32, logits.shape, 1)
        valid = col < d_action
        masked = jnp.where(valid, logits, -1e30)
        m = jnp.max(masked, axis=1, keepdims=True)
        e = jnp.where(valid, jnp.exp(masked - m), 0.0)
        probs_ref[...] = e / jnp.sum(e, axis=1, keepdims=True)

        # ---- critic: 6 Linear (+LeakyReLU between), no activation after last ----
        value_ref[...] = run_stack(n_actor, n_critic, cb_ref)   # (B, 128)

    return kernel


def _full_spec(shape):
    nd = len(shape)
    return pl.BlockSpec(shape, lambda i, _nd=nd: (0,) * _nd)


@functools.partial(jax.jit, static_argnums=(2,))
def actor_critic_apply(x, packed_params, d_action):
    """Fused actor+critic forward. Returns (probs (B, d_action), values (B, 1))."""
    aw, ab, cw, cb = packed_params
    n_actor, n_critic = len(aw), len(cw)
    B = x.shape[0]
    args = [x] + list(aw) + [ab] + list(cw) + [cb]

    in_specs = ([_full_spec(x.shape)]
                + [pl.BlockSpec(memory_space=pl.ANY)] * n_actor
                + [_full_spec(ab.shape)]
                + [pl.BlockSpec(memory_space=pl.ANY)] * n_critic
                + [_full_spec(cb.shape)])

    scratch_shapes = ([pltpu.VMEM(w.shape, jnp.bfloat16) for w in aw]
                      + [pltpu.VMEM(w.shape, jnp.bfloat16) for w in cw]
                      + [pltpu.SemaphoreType.DMA((n_actor + n_critic,))])

    kernel = make_fused_kernel(d_action, n_actor, n_critic)
    probs_pad, vals_pad = pl.pallas_call(
        kernel,
        out_shape=(jax.ShapeDtypeStruct((B, LANE), jnp.float32),
                   jax.ShapeDtypeStruct((B, LANE), jnp.float32)),
        grid=(1,),
        in_specs=in_specs,
        out_specs=(_full_spec((B, LANE)), _full_spec((B, LANE))),
        scratch_shapes=scratch_shapes,
        compiler_params=pltpu.CompilerParams(
            dimension_semantics=("arbitrary",),
            vmem_limit_bytes=16 << 20,
        ),
    )(*args)
    return probs_pad[:, :d_action], vals_pad[:, :1]


# ----------------------------- parameters -----------------------------------

def init_linear(key, d_in, d_out):
    # PyTorch nn.Linear default: U(-1/sqrt(fan_in), 1/sqrt(fan_in)).
    kw, kb = jax.random.split(key)
    bound = 1.0 / (d_in ** 0.5)
    w = jax.random.uniform(kw, (d_in, d_out), jnp.float32, -bound, bound)
    b = jax.random.uniform(kb, (1, d_out), jnp.float32, -bound, bound)
    return w, b


def init_actor_critic(key, d_state, d_action):
    actor_dims = [d_state, 1024, 512, 256, 128, d_action]
    critic_dims = [d_state, 1024, 512, 256, 128, 64, 1]
    keys = jax.random.split(key, len(actor_dims) - 1 + len(critic_dims) - 1)
    actor_params = [init_linear(keys[i], actor_dims[i], actor_dims[i + 1])
                    for i in range(len(actor_dims) - 1)]
    critic_params = [init_linear(keys[len(actor_dims) - 1 + i],
                                 critic_dims[i], critic_dims[i + 1])
                     for i in range(len(critic_dims) - 1)]
    return actor_params, critic_params


def _pack_stack(params):
    """Zero-pad every layer to 128-lane multiples, cast weights to bf16, pack biases."""
    w_list, b_segs = [], []
    for i, (w, b) in enumerate(params):
        d_in, d_out = w.shape
        p_in = d_in if i == 0 else _round_up(d_in, LANE)   # layer-0 input = raw d_state
        p_out = _round_up(d_out, LANE)
        wp = jnp.zeros((p_in, p_out), jnp.float32).at[:d_in, :d_out].set(w)
        bp = jnp.zeros((1, p_out), jnp.float32).at[:, :d_out].set(b)
        w_list.append(wp.astype(jnp.bfloat16))
        b_segs.append(bp)
    return w_list, jnp.concatenate(b_segs, axis=1)


def pack_actor_critic(actor_params, critic_params):
    aw, ab = _pack_stack(actor_params)
    cw, cb = _pack_stack(critic_params)
    return aw, ab, cw, cb


def actor_critic_forward(x):
    """The PyTorch module's forward() is the identity; kept for completeness."""
    return x


# ----------------------------- reference ------------------------------------

def _ref_mlp(x, params, last_softmax):
    h = x
    for i, (w, b) in enumerate(params):
        w = w.astype(jnp.bfloat16).astype(jnp.float32)   # kernel stores weights as bf16
        h = h @ w + b
        if i < len(params) - 1:
            h = jnp.where(h >= 0, h, NEG_SLOPE * h)
    if last_softmax:
        h = jax.nn.softmax(h, axis=1)
    return h


if __name__ == "__main__":
    B, D_STATE, D_ACTION = 8, 32, 8

    key = jax.random.PRNGKey(0)
    k_params, k_x = jax.random.split(key)
    actor_params, critic_params = init_actor_critic(k_params, D_STATE, D_ACTION)
    packed = pack_actor_critic(actor_params, critic_params)
    state = jax.random.normal(k_x, (B, D_STATE), dtype=jnp.float32)

    # forward() is identity in the original module.
    y = actor_critic_forward(state)

    probs, values = jax.block_until_ready(actor_critic_apply(state, packed, D_ACTION))

    # Correctness check against a pure-JAX reference using the same bf16 weights.
    probs_ref = _ref_mlp(state, actor_params, last_softmax=True)
    values_ref = _ref_mlp(state, critic_params, last_softmax=False)

    assert probs.shape == (B, D_ACTION)
    assert values.shape == (B, 1)
    assert jnp.allclose(jnp.sum(probs, axis=1), 1.0, atol=1e-5)
    assert jnp.allclose(probs, probs_ref, atol=1e-3, rtol=1e-3)
    assert jnp.allclose(values, values_ref, atol=1e-3, rtol=1e-2)

    # TODO(synk): Categorical sampling in `action()` (dist.sample) is stochastic host-side
    # logic and is not implemented as a kernel; entropy/log_prob follow trivially from `probs`.
    # TODO(synk): on v7x the two networks could be split across the 2 TensorCores via a
    # core-parallel grid axis; skipped since per-layer weight shapes differ between stacks.

    print("KERNEL_OK")
</pallas_src>

<mosaic_0001>
module attributes {stable_mosaic.version = 11 : i64} {
  func.func @kernel(%arg0: i32, %arg1: memref<8x32xf32, #tpu.memory_space<vmem>>, %arg2: memref<32x1024xbf16, #tpu.memory_space<any>>, %arg3: memref<1024x512xbf16, #tpu.memory_space<any>>, %arg4: memref<512x256xbf16, #tpu.memory_space<any>>, %arg5: memref<256x128xbf16, #tpu.memory_space<any>>, %arg6: memref<128x128xbf16, #tpu.memory_space<any>>, %arg7: memref<1x2048xf32, #tpu.memory_space<vmem>>, %arg8: memref<32x1024xbf16, #tpu.memory_space<any>>, %arg9: memref<1024x512xbf16, #tpu.memory_space<any>>, %arg10: memref<512x256xbf16, #tpu.memory_space<any>>, %arg11: memref<256x128xbf16, #tpu.memory_space<any>>, %arg12: memref<128x128xbf16, #tpu.memory_space<any>>, %arg13: memref<128x128xbf16, #tpu.memory_space<any>>, %arg14: memref<1x2176xf32, #tpu.memory_space<vmem>>, %arg15: memref<8x128xf32, #tpu.memory_space<vmem>>, %arg16: memref<8x128xf32, #tpu.memory_space<vmem>>, %arg17: memref<32x1024xbf16, #tpu.memory_space<vmem>>, %arg18: memref<1024x512xbf16, #tpu.memory_space<vmem>>, %arg19: memref<512x256xbf16, #tpu.memory_space<vmem>>, %arg20: memref<256x128xbf16, #tpu.memory_space<vmem>>, %arg21: memref<128x128xbf16, #tpu.memory_space<vmem>>, %arg22: memref<32x1024xbf16, #tpu.memory_space<vmem>>, %arg23: memref<1024x512xbf16, #tpu.memory_space<vmem>>, %arg24: memref<512x256xbf16, #tpu.memory_space<vmem>>, %arg25: memref<256x128xbf16, #tpu.memory_space<vmem>>, %arg26: memref<128x128xbf16, #tpu.memory_space<vmem>>, %arg27: memref<128x128xbf16, #tpu.memory_space<vmem>>, %arg28: memref<11x!tpu.dma_semaphore, #tpu.memory_space<semaphore_mem>>) attributes {dimension_semantics = [#tpu.dimension_semantics<arbitrary>], iteration_bounds = array<i64: 1>, scalar_prefetch = 0 : i64, scratch_operands = 12 : i64, tpu.core_type = #tpu.core_type<tc>, window_params = [{pipeline_mode = #tpu.pipeline_mode<synchronous>, transform_indices = @transform_0, window_bounds = array<i64: 8, 32>}, {}, {}, {}, {}, {}, {pipeline_mode = #tpu.pipeline_mode<synchronous>, transform_indices = @transform_6, window_bounds = array<i64: 1, 2048>}, {}, {}, {}, {}, {}, {}, {pipeline_mode = #tpu.pipeline_mode<synchronous>, transform_indices = @transform_13, window_bounds = array<i64: 1, 2176>}, {pipeline_mode = #tpu.pipeline_mode<synchronous>, transform_indices = @transform_14, window_bounds = array<i64: 8, 128>}, {pipeline_mode = #tpu.pipeline_mode<synchronous>, transform_indices = @transform_15, window_bounds = array<i64: 8, 128>}]} {
    %c0_i32 = arith.constant 0 : i32
    %0 = tpu.memref_slice %arg28[%c0_i32] : memref<11x!tpu.dma_semaphore, #tpu.memory_space<semaphore_mem>> -> memref<1x!tpu.dma_semaphore, #tpu.memory_space<semaphore_mem>>
    %1 = tpu.memref_squeeze %0 : memref<1x!tpu.dma_semaphore, #tpu.memory_space<semaphore_mem>> -> memref<!tpu.dma_semaphore, #tpu.memory_space<semaphore_mem>>
    tpu.enqueue_dma source(%arg2 : memref<32x1024xbf16, #tpu.memory_space<any>>) target(%arg17 : memref<32x1024xbf16, #tpu.memory_space<vmem>>) target_semaphore(%1 : memref<!tpu.dma_semaphore, #tpu.memory_space<semaphore_mem>>)
    %c1_i32 = arith.constant 1 : i32
    %2 = tpu.memref_slice %arg28[%c1_i32] : memref<11x!tpu.dma_semaphore, #tpu.memory_space<semaphore_mem>> -> memref<1x!tpu.dma_semaphore, #tpu.memory_space<semaphore_mem>>
    %3 = tpu.memref_squeeze %2 : memref<1x!tpu.dma_semaphore, #tpu.memory_space<semaphore_mem>> -> memref<!tpu.dma_semaphore, #tpu.memory_space<semaphore_mem>>
    tpu.enqueue_dma source(%arg3 : memref<1024x512xbf16, #tpu.memory_space<any>>) target(%arg18 : memref<1024x512xbf16, #tpu.memory_space<vmem>>) target_semaphore(%3 : memref<!tpu.dma_semaphore, #tpu.memory_space<semaphore_mem>>)
    %c2_i32 = arith.constant 2 : i32
    %4 = tpu.memref_slice %arg28[%c2_i32] : memref<11x!tpu.dma_semaphore, #tpu.memory_space<semaphore_mem>> -> memref<1x!tpu.dma_semaphore, #tpu.memory_space<semaphore_mem>>
    %5 = tpu.memref_squeeze %4 : memref<1x!tpu.dma_semaphore, #tpu.memory_space<semaphore_mem>> -> memref<!tpu.dma_semaphore, #tpu.memory_space<semaphore_mem>>
    tpu.enqueue_dma source(%arg4 : memref<512x256xbf16, #tpu.memory_space<any>>) target(%arg19 : memref<512x256xbf16, #tpu.memory_space<vmem>>) target_semaphore(%5 : memref<!tpu.dma_semaphore, #tpu.memory_space<semaphore_mem>>)
    %c3_i32 = arith.constant 3 : i32
    %6 = tpu.memref_slice %arg28[%c3_i32] : memref<11x!tpu.dma_semaphore, #tpu.memory_space<semaphore_mem>> -> memref<1x!tpu.dma_semaphore, #tpu.memory_space<semaphore_mem>>
    %7 = tpu.memref_squeeze %6 : memref<1x!tpu.dma_semaphore, #tpu.memory_space<semaphore_mem>> -> memref<!tpu.dma_semaphore, #tpu.memory_space<semaphore_mem>>
    tpu.enqueue_dma source(%arg5 : memref<256x128xbf16, #tpu.memory_space<any>>) target(%arg20 : memref<256x128xbf16, #tpu.memory_space<vmem>>) target_semaphore(%7 : memref<!tpu.dma_semaphore, #tpu.memory_space<semaphore_mem>>)
    %c4_i32 = arith.constant 4 : i32
    %8 = tpu.memref_slice %arg28[%c4_i32] : memref<11x!tpu.dma_semaphore, #tpu.memory_space<semaphore_mem>> -> memref<1x!tpu.dma_semaphore, #tpu.memory_space<semaphore_mem>>
    %9 = tpu.memref_squeeze %8 : memref<1x!tpu.dma_semaphore, #tpu.memory_space<semaphore_mem>> -> memref<!tpu.dma_semaphore, #tpu.memory_space<semaphore_mem>>
    tpu.enqueue_dma source(%arg6 : memref<128x128xbf16, #tpu.memory_space<any>>) target(%arg21 : memref<128x128xbf16, #tpu.memory_space<vmem>>) target_semaphore(%9 : memref<!tpu.dma_semaphore, #tpu.memory_space<semaphore_mem>>)
    %c5_i32 = arith.constant 5 : i32
    %10 = tpu.memref_slice %arg28[%c5_i32] : memref<11x!tpu.dma_semaphore, #tpu.memory_space<semaphore_mem>> -> memref<1x!tpu.dma_semaphore, #tpu.memory_space<semaphore_mem>>
    %11 = tpu.memref_squeeze %10 : memref<1x!tpu.dma_semaphore, #tpu.memory_space<semaphore_mem>> -> memref<!tpu.dma_semaphore, #tpu.memory_space<semaphore_mem>>
    tpu.enqueue_dma source(%arg8 : memref<32x1024xbf16, #tpu.memory_space<any>>) target(%arg22 : memref<32x1024xbf16, #tpu.memory_space<vmem>>) target_semaphore(%11 : memref<!tpu.dma_semaphore, #tpu.memory_space<semaphore_mem>>)
    %c6_i32 = arith.constant 6 : i32
    %12 = tpu.memref_slice %arg28[%c6_i32] : memref<11x!tpu.dma_semaphore, #tpu.memory_space<semaphore_mem>> -> memref<1x!tpu.dma_semaphore, #tpu.memory_space<semaphore_mem>>
    %13 = tpu.memref_squeeze %12 : memref<1x!tpu.dma_semaphore, #tpu.memory_space<semaphore_mem>> -> memref<!tpu.dma_semaphore, #tpu.memory_space<semaphore_mem>>
    tpu.enqueue_dma source(%arg9 : memref<1024x512xbf16, #tpu.memory_space<any>>) target(%arg23 : memref<1024x512xbf16, #tpu.memory_space<vmem>>) target_semaphore(%13 : memref<!tpu.dma_semaphore, #tpu.memory_space<semaphore_mem>>)
    %c7_i32 = arith.constant 7 : i32
    %14 = tpu.memref_slice %arg28[%c7_i32] : memref<11x!tpu.dma_semaphore, #tpu.memory_space<semaphore_mem>> -> memref<1x!tpu.dma_semaphore, #tpu.memory_space<semaphore_mem>>
    %15 = tpu.memref_squeeze %14 : memref<1x!tpu.dma_semaphore, #tpu.memory_space<semaphore_mem>> -> memref<!tpu.dma_semaphore, #tpu.memory_space<semaphore_mem>>
    tpu.enqueue_dma source(%arg10 : memref<512x256xbf16, #tpu.memory_space<any>>) target(%arg24 : memref<512x256xbf16, #tpu.memory_space<vmem>>) target_semaphore(%15 : memref<!tpu.dma_semaphore, #tpu.memory_space<semaphore_mem>>)
    %c8_i32 = arith.constant 8 : i32
    %16 = tpu.memref_slice %arg28[%c8_i32] : memref<11x!tpu.dma_semaphore, #tpu.memory_space<semaphore_mem>> -> memref<1x!tpu.dma_semaphore, #tpu.memory_space<semaphore_mem>>
    %17 = tpu.memref_squeeze %16 : memref<1x!tpu.dma_semaphore, #tpu.memory_space<semaphore_mem>> -> memref<!tpu.dma_semaphore, #tpu.memory_space<semaphore_mem>>
    tpu.enqueue_dma source(%arg11 : memref<256x128xbf16, #tpu.memory_space<any>>) target(%arg25 : memref<256x128xbf16, #tpu.memory_space<vmem>>) target_semaphore(%17 : memref<!tpu.dma_semaphore, #tpu.memory_space<semaphore_mem>>)
    %c9_i32 = arith.constant 9 : i32
    %18 = tpu.memref_slice %arg28[%c9_i32] : memref<11x!tpu.dma_semaphore, #tpu.memory_space<semaphore_mem>> -> memref<1x!tpu.dma_semaphore, #tpu.memory_space<semaphore_mem>>
    %19 = tpu.memref_squeeze %18 : memref<1x!tpu.dma_semaphore, #tpu.memory_space<semaphore_mem>> -> memref<!tpu.dma_semaphore, #tpu.memory_space<semaphore_mem>>
    tpu.enqueue_dma source(%arg12 : memref<128x128xbf16, #tpu.memory_space<any>>) target(%arg26 : memref<128x128xbf16, #tpu.memory_space<vmem>>) target_semaphore(%19 : memref<!tpu.dma_semaphore, #tpu.memory_space<semaphore_mem>>)
    %c10_i32 = arith.constant 10 : i32
    %20 = tpu.memref_slice %arg28[%c10_i32] : memref<11x!tpu.dma_semaphore, #tpu.memory_space<semaphore_mem>> -> memref<1x!tpu.dma_semaphore, #tpu.memory_space<semaphore_mem>>
    %21 = tpu.memref_squeeze %20 : memref<1x!tpu.dma_semaphore, #tpu.memory_space<semaphore_mem>> -> memref<!tpu.dma_semaphore, #tpu.memory_space<semaphore_mem>>
    tpu.enqueue_dma source(%arg13 : memref<128x128xbf16, #tpu.memory_space<any>>) target(%arg27 : memref<128x128xbf16, #tpu.memory_space<vmem>>) target_semaphore(%21 : memref<!tpu.dma_semaphore, #tpu.memory_space<semaphore_mem>>)
    %c0 = arith.constant 0 : index
    %c0_0 = arith.constant 0 : index
    %22 = vector.load %arg1[%c0, %c0_0] : memref<8x32xf32, #tpu.memory_space<vmem>>, vector<8x32xf32>
    %c0_i32_1 = arith.constant 0 : i32
    %23 = tpu.memref_slice %arg28[%c0_i32_1] : memref<11x!tpu.dma_semaphore, #tpu.memory_space<semaphore_mem>> -> memref<1x!tpu.dma_semaphore, #tpu.memory_space<semaphore_mem>>
    %24 = tpu.memref_squeeze %23 : memref<1x!tpu.dma_semaphore, #tpu.memory_space<semaphore_mem>> -> memref<!tpu.dma_semaphore, #tpu.memory_space<semaphore_mem>>
    tpu.wait_dma2 semaphore(%24 : memref<!tpu.dma_semaphore, #tpu.memory_space<semaphore_mem>>) src(%arg2 : memref<32x1024xbf16, #tpu.memory_space<any>>) dst(%arg17 : memref<32x1024xbf16, #tpu.memory_space<vmem>>)
    %c0_2 = arith.constant 0 : index
    %c0_3 = arith.constant 0 : index
    %25 = vector.load %arg17[%c0_2, %c0_3] : memref<32x1024xbf16, #tpu.memory_space<vmem>>, vector<32x1024xbf16>
    %26 = arith.extf %25 : vector<32x1024xbf16> to vector<32x1024xf32>
    %c0_4 = arith.constant 0 : index
    %c0_5 = arith.constant 0 : index
    %27 = vector.load %arg7[%c0_4, %c0_5] : memref<1x2048xf32, #tpu.memory_space<vmem>>, vector<1x1024xf32>
    %cst = arith.constant dense<0.000000e+00> : vector<8x1024xf32>
    %28 = tpu.matmul %22, %26, %cst {dimension_numbers = #tpu.dot_dimension_numbers<[1], [0], [0], [1], [0, 0, 1, 1], [], []>} : vector<8x32xf32>, vector<32x1024xf32>, vector<8x1024xf32> -> vector<8x1024xf32>
    %29 = vector.broadcast %27 : vector<1x1024xf32> to vector<8x1024xf32>
    %30 = arith.addf %28, %29 : vector<8x1024xf32>
    %cst_6 = arith.constant 0.000000e+00 : f32
    %31 = vector.broadcast %cst_6 : f32 to vector<8x1024xf32>
    %32 = arith.cmpf oge, %30, %31 : vector<8x1024xf32>
    %cst_7 = arith.constant 0.00999999977 : f32
    %33 = vector.broadcast %cst_7 : f32 to vector<8x1024xf32>
    %34 = arith.mulf %33, %30 : vector<8x1024xf32>
    %35 = arith.select %32, %30, %34 : vector<8x1024xi1>, vector<8x1024xf32>
    %c1_i32_8 = arith.constant 1 : i32
    %36 = tpu.memref_slice %arg28[%c1_i32_8] : memref<11x!tpu.dma_semaphore, #tpu.memory_space<semaphore_mem>> -> memref<1x!tpu.dma_semaphore, #tpu.memory_space<semaphore_mem>>
    %37 = tpu.memref_squeeze %36 : memref<1x!tpu.dma_semaphore, #tpu.memory_space<semaphore_mem>> -> memref<!tpu.dma_semaphore, #tpu.memory_space<semaphore_mem>>
    tpu.wait_dma2 semaphore(%37 : memref<!tpu.dma_semaphore, #tpu.memory_space<semaphore_mem>>) src(%arg3 : memref<1024x512xbf16, #tpu.memory_space<any>>) dst(%arg18 : memref<1024x512xbf16, #tpu.memory_space<vmem>>)
    %c0_9 = arith.constant 0 : index
    %c0_10 = arith.constant 0 : index
    %38 = vector.load %arg18[%c0_9, %c0_10] : memref<1024x512xbf16, #tpu.memory_space<vmem>>, vector<1024x512xbf16>
    %39 = arith.extf %38 : vector<1024x512xbf16> to vector<1024x512xf32>
    %c0_11 = arith.constant 0 : index
    %c1024 = arith.constant 1024 : index
    %40 = vector.load %arg7[%c0_11, %c1024] : memref<1x2048xf32, #tpu.memory_space<vmem>>, vector<1x512xf32>
    %cst_12 = arith.constant dense<0.000000e+00> : vector<8x512xf32>
    %41 = tpu.matmul %35, %39, %cst_12 {dimension_numbers = #tpu.dot_dimension_numbers<[1], [0], [0], [1], [0, 0, 1, 1], [], []>} : vector<8x1024xf32>, vector<1024x512xf32>, vector<8x512xf32> -> vector<8x512xf32>
    %42 = vector.broadcast %40 : vector<1x512xf32> to vector<8x512xf32>
    %43 = arith.addf %41, %42 : vector<8x512xf32>
    %cst_13 = arith.constant 0.000000e+00 : f32
    %44 = vector.broadcast %cst_13 : f32 to vector<8x512xf32>
    %45 = arith.cmpf oge, %43, %44 : vector<8x512xf32>
    %cst_14 = arith.constant 0.00999999977 : f32
    %46 = vector.broadcast %cst_14 : f32 to vector<8x512xf32>
    %47 = arith.mulf %46, %43 : vector<8x512xf32>
    %48 = arith.select %45, %43, %47 : vector<8x512xi1>, vector<8x512xf32>
    %c2_i32_15 = arith.constant 2 : i32
    %49 = tpu.memref_slice %arg28[%c2_i32_15] : memref<11x!tpu.dma_semaphore, #tpu.memory_space<semaphore_mem>> -> memref<1x!tpu.dma_semaphore, #tpu.memory_space<semaphore_mem>>
    %50 = tpu.memref_squeeze %49 : memref<1x!tpu.dma_semaphore, #tpu.memory_space<semaphore_mem>> -> memref<!tpu.dma_semaphore, #tpu.memory_space<semaphore_mem>>
    tpu.wait_dma2 semaphore(%50 : memref<!tpu.dma_semaphore, #tpu.memory_space<semaphore_mem>>) src(%arg4 : memref<512x256xbf16, #tpu.memory_space<any>>) dst(%arg19 : memref<512x256xbf16, #tpu.memory_space<vmem>>)
    %c0_16 = arith.constant 0 : index
    %c0_17 = arith.constant 0 : index
    %51 = vector.load %arg19[%c0_16, %c0_17] : memref<512x256xbf16, #tpu.memory_space<vmem>>, vector<512x256xbf16>
    %52 = arith.extf %51 : vector<512x256xbf16> to vector<512x256xf32>
    %c0_18 = arith.constant 0 : index
    %c1536 = arith.constant 1536 : index
    %53 = vector.load %arg7[%c0_18, %c1536] : memref<1x2048xf32, #tpu.memory_space<vmem>>, vector<1x256xf32>
    %cst_19 = arith.constant dense<0.000000e+00> : vector<8x256xf32>
    %54 = tpu.matmul %48, %52, %cst_19 {dimension_numbers = #tpu.dot_dimension_numbers<[1], [0], [0], [1], [0, 0, 1, 1], [], []>} : vector<8x512xf32>, vector<512x256xf32>, vector<8x256xf32> -> vector<8x256xf32>
    %55 = vector.broadcast %53 : vector<1x256xf32> to vector<8x256xf32>
    %56 = arith.addf %54, %55 : vector<8x256xf32>
    %cst_20 = arith.constant 0.000000e+00 : f32
    %57 = vector.broadcast %cst_20 : f32 to vector<8x256xf32>
    %58 = arith.cmpf oge, %56, %57 : vector<8x256xf32>
    %cst_21 = arith.constant 0.00999999977 : f32
    %59 = vector.broadcast %cst_21 : f32 to vector<8x256xf32>
    %60 = arith.mulf %59, %56 : vector<8x256xf32>
    %61 = arith.select %58, %56, %60 : vector<8x256xi1>, vector<8x256xf32>
    %c3_i32_22 = arith.constant 3 : i32
    %62 = tpu.memref_slice %arg28[%c3_i32_22] : memref<11x!tpu.dma_semaphore, #tpu.memory_space<semaphore_mem>> -> memref<1x!tpu.dma_semaphore, #tpu.memory_space<semaphore_mem>>
    %63 = tpu.memref_squeeze %62 : memref<1x!tpu.dma_semaphore, #tpu.memory_space<semaphore_mem>> -> memref<!tpu.dma_semaphore, #tpu.memory_space<semaphore_mem>>
    tpu.wait_dma2 semaphore(%63 : memref<!tpu.dma_semaphore, #tpu.memory_space<semaphore_mem>>) src(%arg5 : memref<256x128xbf16, #tpu.memory_space<any>>) dst(%arg20 : memref<256x128xbf16, #tpu.memory_space<vmem>>)
    %c0_23 = arith.constant 0 : index
    %c0_24 = arith.constant 0 : index
    %64 = vector.load %arg20[%c0_23, %c0_24] : memref<256x128xbf16, #tpu.memory_space<vmem>>, vector<256x128xbf16>
    %65 = arith.extf %64 : vector<256x128xbf16> to vector<256x128xf32>
    %c0_25 = arith.constant 0 : index
    %c1792 = arith.constant 1792 : index
    %66 = vector.load %arg7[%c0_25, %c1792] : memref<1x2048xf32, #tpu.memory_space<vmem>>, vector<1x128xf32>
    %cst_26 = arith.constant dense<0.000000e+00> : vector<8x128xf32>
    %67 = tpu.matmul %61, %65, %cst_26 {dimension_numbers = #tpu.dot_dimension_numbers<[1], [0], [0], [1], [0, 0, 1, 1], [], []>} : vector<8x256xf32>, vector<256x128xf32>, vector<8x128xf32> -> vector<8x128xf32>
    %68 = vector.broadcast %66 : vector<1x128xf32> to vector<8x128xf32>
    %69 = arith.addf %67, %68 : vector<8x128xf32>
    %cst_27 = arith.constant 0.000000e+00 : f32
    %70 = vector.broadcast %cst_27 : f32 to vector<8x128xf32>
    %71 = arith.cmpf oge, %69, %70 : vector<8x128xf32>
    %cst_28 = arith.constant 0.00999999977 : f32
    %72 = vector.broadcast %cst_28 : f32 to vector<8x128xf32>
    %73 = arith.mulf %72, %69 : vector<8x128xf32>
    %74 = arith.select %71, %69, %73 : vector<8x128xi1>, vector<8x128xf32>
    %c4_i32_29 = arith.constant 4 : i32
    %75 = tpu.memref_slice %arg28[%c4_i32_29] : memref<11x!tpu.dma_semaphore, #tpu.memory_space<semaphore_mem>> -> memref<1x!tpu.dma_semaphore, #tpu.memory_space<semaphore_mem>>
    %76 = tpu.memref_squeeze %75 : memref<1x!tpu.dma_semaphore, #tpu.memory_space<semaphore_mem>> -> memref<!tpu.dma_semaphore, #tpu.memory_space<semaphore_mem>>
    tpu.wait_dma2 semaphore(%76 : memref<!tpu.dma_semaphore, #tpu.memory_space<semaphore_mem>>) src(%arg6 : memref<128x128xbf16, #tpu.memory_space<any>>) dst(%arg21 : memref<128x128xbf16, #tpu.memory_space<vmem>>)
    %c0_30 = arith.constant 0 : index
    %c0_31 = arith.constant 0 : index
    %77 = vector.load %arg21[%c0_30, %c0_31] : memref<128x128xbf16, #tpu.memory_space<vmem>>, vector<128x128xbf16>
    %78 = arith.extf %77 : vector<128x128xbf16> to vector<128x128xf32>
    %c0_32 = arith.constant 0 : index
    %c1920 = arith.constant 1920 : index
    %79 = vector.load %arg7[%c0_32, %c1920] : memref<1x2048xf32, #tpu.memory_space<vmem>>, vector<1x128xf32>
    %cst_33 = arith.constant dense<0.000000e+00> : vector<8x128xf32>
    %80 = tpu.matmul %74, %78, %cst_33 {dimension_numbers = #tpu.dot_dimension_numbers<[1], [0], [0], [1], [0, 0, 1, 1], [], []>} : vector<8x128xf32>, vector<128x128xf32>, vector<8x128xf32> -> vector<8x128xf32>
    %81 = vector.broadcast %79 : vector<1x128xf32> to vector<8x128xf32>
    %82 = arith.addf %80, %81 : vector<8x128xf32>
    %83 = tpu.iota {dimensions = array<i32: 1>} : vector<8x128xi32>
    %c8_i32_34 = arith.constant 8 : i32
    %84 = vector.broadcast %c8_i32_34 : i32 to vector<8x128xi32>
    %85 = arith.cmpi slt, %83, %84 : vector<8x128xi32>
    %cst_35 = arith.constant -1.000000e+30 : f32
    %86 = vector.broadcast %cst_35 : f32 to vector<8x128xf32>
    %87 = arith.select %85, %82, %86 : vector<8x128xi1>, vector<8x128xf32>
    %cst_36 = arith.constant dense<0xFF800000> : vector<8xf32>
    %88 = vector.multi_reduction <maximumf>, %87, %cst_36 [1] : vector<8x128xf32> to vector<8xf32>
    %89 = vector.shape_cast %88 : vector<8xf32> to vector<8x1xf32>
    %90 = vector.broadcast %89 : vector<8x1xf32> to vector<8x128xf32>
    %91 = arith.subf %87, %90 : vector<8x128xf32>
    %92 = math.exp %91 : vector<8x128xf32>
    %cst_37 = arith.constant 0.000000e+00 : f32
    %93 = vector.broadcast %cst_37 : f32 to vector<8x128xf32>
    %94 = arith.select %85, %92, %93 : vector<8x128xi1>, vector<8x128xf32>
    %cst_38 = arith.constant dense<0.000000e+00> : vector<8xf32>
    %95 = vector.multi_reduction <add>, %94, %cst_38 [1] : vector<8x128xf32> to vector<8xf32>
    %96 = vector.shape_cast %95 : vector<8xf32> to vector<8x1xf32>
    %97 = vector.broadcast %96 : vector<8x1xf32> to vector<8x128xf32>
    %98 = arith.divf %94, %97 : vector<8x128xf32>
    %c0_39 = arith.constant 0 : index
    %c0_40 = arith.constant 0 : index
    %99 = vector.load %arg15[%c0_39, %c0_40] : memref<8x128xf32, #tpu.memory_space<vmem>>, vector<8x128xf32>
    tpu.vector_store %arg15[%c0_39, %c0_40], %98 {strides = array<i32>} : memref<8x128xf32, #tpu.memory_space<vmem>>, vector<8x128xf32>,
    %c5_i32_41 = arith.constant 5 : i32
    %100 = tpu.memref_slice %arg28[%c5_i32_41] : memref<11x!tpu.dma_semaphore, #tpu.memory_space<semaphore_mem>> -> memref<1x!tpu.dma_semaphore, #tpu.memory_space<semaphore_mem>>
    %101 = tpu.memref_squeeze %100 : memref<1x!tpu.dma_semaphore, #tpu.memory_space<semaphore_mem>> -> memref<!tpu.dma_semaphore, #tpu.memory_space<semaphore_mem>>
    tpu.wait_dma2 semaphore(%101 : memref<!tpu.dma_semaphore, #tpu.memory_space<semaphore_mem>>) src(%arg8 : memref<32x1024xbf16, #tpu.memory_space<any>>) dst(%arg22 : memref<32x1024xbf16, #tpu.memory_space<vmem>>)
    %c0_42 = arith.constant 0 : index
    %c0_43 = arith.constant 0 : index
    %102 = vector.load %arg22[%c0_42, %c0_43] : memref<32x1024xbf16, #tpu.memory_space<vmem>>, vector<32x1024xbf16>
    %103 = arith.extf %102 : vector<32x1024xbf16> to vector<32x1024xf32>
    %c0_44 = arith.constant 0 : index
    %c0_45 = arith.constant 0 : index
    %104 = vector.load %arg14[%c0_44, %c0_45] : memref<1x2176xf32, #tpu.memory_space<vmem>>, vector<1x1024xf32>
    %cst_46 = arith.constant dense<0.000000e+00> : vector<8x1024xf32>
    %105 = tpu.matmul %22, %103, %cst_46 {dimension_numbers = #tpu.dot_dimension_numbers<[1], [0], [0], [1], [0, 0, 1, 1], [], []>} : vector<8x32xf32>, vector<32x1024xf32>, vector<8x1024xf32> -> vector<8x1024xf32>
    %106 = vector.broadcast %104 : vector<1x1024xf32> to vector<8x1024xf32>
    %107 = arith.addf %105, %106 : vector<8x1024xf32>
    %cst_47 = arith.constant 0.000000e+00 : f32
    %108 = vector.broadcast %cst_47 : f32 to vector<8x1024xf32>
    %109 = arith.cmpf oge, %107, %108 : vector<8x1024xf32>
    %cst_48 = arith.constant 0.00999999977 : f32
    %110 = vector.broadcast %cst_48 : f32 to vector<8x1024xf32>
    %111 = arith.mulf %110, %107 : vector<8x1024xf32>
    %112 = arith.select %109, %107, %111 : vector<8x1024xi1>, vector<8x1024xf32>
    %c6_i32_49 = arith.constant 6 : i32
    %113 = tpu.memref_slice %arg28[%c6_i32_49] : memref<11x!tpu.dma_semaphore, #tpu.memory_space<semaphore_mem>> -> memref<1x!tpu.dma_semaphore, #tpu.memory_space<semaphore_mem>>
    %114 = tpu.memref_squeeze %113 : memref<1x!tpu.dma_semaphore, #tpu.memory_space<semaphore_mem>> -> memref<!tpu.dma_semaphore, #tpu.memory_space<semaphore_mem>>
    tpu.wait_dma2 semaphore(%114 : memref<!tpu.dma_semaphore, #tpu.memory_space<semaphore_mem>>) src(%arg9 : memref<1024x512xbf16, #tpu.memory_space<any>>) dst(%arg23 : memref<1024x512xbf16, #tpu.memory_space<vmem>>)
    %c0_50 = arith.constant 0 : index
    %c0_51 = arith.constant 0 : index
    %115 = vector.load %arg23[%c0_50, %c0_51] : memref<1024x512xbf16, #tpu.memory_space<vmem>>, vector<1024x512xbf16>
    %116 = arith.extf %115 : vector<1024x512xbf16> to vector<1024x512xf32>
    %c0_52 = arith.constant 0 : index
    %c1024_53 = arith.constant 1024 : index
    %117 = vector.load %arg14[%c0_52, %c1024_53] : memref<1x2176xf32, #tpu.memory_space<vmem>>, vector<1x512xf32>
    %cst_54 = arith.constant dense<0.000000e+00> : vector<8x512xf32>
    %118 = tpu.matmul %112, %116, %cst_54 {dimension_numbers = #tpu.dot_dimension_numbers<[1], [0], [0], [1], [0, 0, 1, 1], [], []>} : vector<8x1024xf32>, vector<1024x512xf32>, vector<8x512xf32> -> vector<8x512xf32>
    %119 = vector.broadcast %117 : vector<1x512xf32> to vector<8x512xf32>
    %120 = arith.addf %118, %119 : vector<8x512xf32>
    %cst_55 = arith.constant 0.000000e+00 : f32
    %121 = vector.broadcast %cst_55 : f32 to vector<8x512xf32>
    %122 = arith.cmpf oge, %120, %121 : vector<8x512xf32>
    %cst_56 = arith.constant 0.00999999977 : f32
    %123 = vector.broadcast %cst_56 : f32 to vector<8x512xf32>
    %124 = arith.mulf %123, %120 : vector<8x512xf32>
    %125 = arith.select %122, %120, %124 : vector<8x512xi1>, vector<8x512xf32>
    %c7_i32_57 = arith.constant 7 : i32
    %126 = tpu.memref_slice %arg28[%c7_i32_57] : memref<11x!tpu.dma_semaphore, #tpu.memory_space<semaphore_mem>> -> memref<1x!tpu.dma_semaphore, #tpu.memory_space<semaphore_mem>>
    %127 = tpu.memref_squeeze %126 : memref<1x!tpu.dma_semaphore, #tpu.memory_space<semaphore_mem>> -> memref<!tpu.dma_semaphore, #tpu.memory_space<semaphore_mem>>
    tpu.wait_dma2 semaphore(%127 : memref<!tpu.dma_semaphore, #tpu.memory_space<semaphore_mem>>) src(%arg10 : memref<512x256xbf16, #tpu.memory_space<any>>) dst(%arg24 : memref<512x256xbf16, #tpu.memory_space<vmem>>)
    %c0_58 = arith.constant 0 : index
    %c0_59 = arith.constant 0 : index
    %128 = vector.load %arg24[%c0_58, %c0_59] : memref<512x256xbf16, #tpu.memory_space<vmem>>, vector<512x256xbf16>
    %129 = arith.extf %128 : vector<512x256xbf16> to vector<512x256xf32>
    %c0_60 = arith.constant 0 : index
    %c1536_61 = arith.constant 1536 : index
    %130 = vector.load %arg14[%c0_60, %c1536_61] : memref<1x2176xf32, #tpu.memory_space<vmem>>, vector<1x256xf32>
    %cst_62 = arith.constant dense<0.000000e+00> : vector<8x256xf32>
    %131 = tpu.matmul %125, %129, %cst_62 {dimension_numbers = #tpu.dot_dimension_numbers<[1], [0], [0], [1], [0, 0, 1, 1], [], []>} : vector<8x512xf32>, vector<512x256xf32>, vector<8x256xf32> -> vector<8x256xf32>
    %132 = vector.broadcast %130 : vector<1x256xf32> to vector<8x256xf32>
    %133 = arith.addf %131, %132 : vector<8x256xf32>
    %cst_63 = arith.constant 0.000000e+00 : f32
    %134 = vector.broadcast %cst_63 : f32 to vector<8x256xf32>
    %135 = arith.cmpf oge, %133, %134 : vector<8x256xf32>
    %cst_64 = arith.constant 0.00999999977 : f32
    %136 = vector.broadcast %cst_64 : f32 to vector<8x256xf32>
    %137 = arith.mulf %136, %133 : vector<8x256xf32>
    %138 = arith.select %135, %133, %137 : vector<8x256xi1>, vector<8x256xf32>
    %c8_i32_65 = arith.constant 8 : i32
    %139 = tpu.memref_slice %arg28[%c8_i32_65] : memref<11x!tpu.dma_semaphore, #tpu.memory_space<semaphore_mem>> -> memref<1x!tpu.dma_semaphore, #tpu.memory_space<semaphore_mem>>
    %140 = tpu.memref_squeeze %139 : memref<1x!tpu.dma_semaphore, #tpu.memory_space<semaphore_mem>> -> memref<!tpu.dma_semaphore, #tpu.memory_space<semaphore_mem>>
    tpu.wait_dma2 semaphore(%140 : memref<!tpu.dma_semaphore, #tpu.memory_space<semaphore_mem>>) src(%arg11 : memref<256x128xbf16, #tpu.memory_space<any>>) dst(%arg25 : memref<256x128xbf16, #tpu.memory_space<vmem>>)
    %c0_66 = arith.constant 0 : index
    %c0_67 = arith.constant 0 : index
    %141 = vector.load %arg25[%c0_66, %c0_67] : memref<256x128xbf16, #tpu.memory_space<vmem>>, vector<256x128xbf16>
    %142 = arith.extf %141 : vector<256x128xbf16> to vector<256x128xf32>
    %c0_68 = arith.constant 0 : index
    %c1792_69 = arith.constant 1792 : index
    %143 = vector.load %arg14[%c0_68, %c1792_69] : memref<1x2176xf32, #tpu.memory_space<vmem>>, vector<1x128xf32>
    %cst_70 = arith.constant dense<0.000000e+00> : vector<8x128xf32>
    %144 = tpu.matmul %138, %142, %cst_70 {dimension_numbers = #tpu.dot_dimension_numbers<[1], [0], [0], [1], [0, 0, 1, 1], [], []>} : vector<8x256xf32>, vector<256x128xf32>, vector<8x128xf32> -> vector<8x128xf32>
    %145 = vector.broadcast %143 : vector<1x128xf32> to vector<8x128xf32>
    %146 = arith.addf %144, %145 : vector<8x128xf32>
    %cst_71 = arith.constant 0.000000e+00 : f32
    %147 = vector.broadcast %cst_71 : f32 to vector<8x128xf32>
    %148 = arith.cmpf oge, %146, %147 : vector<8x128xf32>
    %cst_72 = arith.constant 0.00999999977 : f32
    %149 = vector.broadcast %cst_72 : f32 to vector<8x128xf32>
    %150 = arith.mulf %149, %146 : vector<8x128xf32>
    %151 = arith.select %148, %146, %150 : vector<8x128xi1>, vector<8x128xf32>
    %c9_i32_73 = arith.constant 9 : i32
    %152 = tpu.memref_slice %arg28[%c9_i32_73] : memref<11x!tpu.dma_semaphore, #tpu.memory_space<semaphore_mem>> -> memref<1x!tpu.dma_semaphore, #tpu.memory_space<semaphore_mem>>
    %153 = tpu.memref_squeeze %152 : memref<1x!tpu.dma_semaphore, #tpu.memory_space<semaphore_mem>> -> memref<!tpu.dma_semaphore, #tpu.memory_space<semaphore_mem>>
    tpu.wait_dma2 semaphore(%153 : memref<!tpu.dma_semaphore, #tpu.memory_space<semaphore_mem>>) src(%arg12 : memref<128x128xbf16, #tpu.memory_space<any>>) dst(%arg26 : memref<128x128xbf16, #tpu.memory_space<vmem>>)
    %c0_74 = arith.constant 0 : index
    %c0_75 = arith.constant 0 : index
    %154 = vector.load %arg26[%c0_74, %c0_75] : memref<128x128xbf16, #tpu.memory_space<vmem>>, vector<128x128xbf16>
    %155 = arith.extf %154 : vector<128x128xbf16> to vector<128x128xf32>
    %c0_76 = arith.constant 0 : index
    %c1920_77 = arith.constant 1920 : index
    %156 = vector.load %arg14[%c0_76, %c1920_77] : memref<1x2176xf32, #tpu.memory_space<vmem>>, vector<1x128xf32>
    %cst_78 = arith.constant dense<0.000000e+00> : vector<8x128xf32>
    %157 = tpu.matmul %151, %155, %cst_78 {dimension_numbers = #tpu.dot_dimension_numbers<[1], [0], [0], [1], [0, 0, 1, 1], [], []>} : vector<8x128xf32>, vector<128x128xf32>, vector<8x128xf32> -> vector<8x128xf32>
    %158 = vector.broadcast %156 : vector<1x128xf32> to vector<8x128xf32>
    %159 = arith.addf %157, %158 : vector<8x128xf32>
    %cst_79 = arith.constant 0.000000e+00 : f32
    %160 = vector.broadcast %cst_79 : f32 to vector<8x128xf32>
    %161 = arith.cmpf oge, %159, %160 : vector<8x128xf32>
    %cst_80 = arith.constant 0.00999999977 : f32
    %162 = vector.broadcast %cst_80 : f32 to vector<8x128xf32>
    %163 = arith.mulf %162, %159 : vector<8x128xf32>
    %164 = arith.select %161, %159, %163 : vector<8x128xi1>, vector<8x128xf32>
    %c10_i32_81 = arith.constant 10 : i32
    %165 = tpu.memref_slice %arg28[%c10_i32_81] : memref<11x!tpu.dma_semaphore, #tpu.memory_space<semaphore_mem>> -> memref<1x!tpu.dma_semaphore, #tpu.memory_space<semaphore_mem>>
    %166 = tpu.memref_squeeze %165 : memref<1x!tpu.dma_semaphore, #tpu.memory_space<semaphore_mem>> -> memref<!tpu.dma_semaphore, #tpu.memory_space<semaphore_mem>>
    tpu.wait_dma2 semaphore(%166 : memref<!tpu.dma_semaphore, #tpu.memory_space<semaphore_mem>>) src(%arg13 : memref<128x128xbf16, #tpu.memory_space<any>>) dst(%arg27 : memref<128x128xbf16, #tpu.memory_space<vmem>>)
    %c0_82 = arith.constant 0 : index
    %c0_83 = arith.constant 0 : index
    %167 = vector.load %arg27[%c0_82, %c0_83] : memref<128x128xbf16, #tpu.memory_space<vmem>>, vector<128x128xbf16>
    %168 = arith.extf %167 : vector<128x128xbf16> to vector<128x128xf32>
    %c0_84 = arith.constant 0 : index
    %c2048 = arith.constant 2048 : index
    %169 = vector.load %arg14[%c0_84, %c2048] : memref<1x2176xf32, #tpu.memory_space<vmem>>, vector<1x128xf32>
    %cst_85 = arith.constant dense<0.000000e+00> : vector<8x128xf32>
    %170 = tpu.matmul %164, %168, %cst_85 {dimension_numbers = #tpu.dot_dimension_numbers<[1], [0], [0], [1], [0, 0, 1, 1], [], []>} : vector<8x128xf32>, vector<128x128xf32>, vector<8x128xf32> -> vector<8x128xf32>
    %171 = vector.broadcast %169 : vector<1x128xf32> to vector<8x128xf32>
    %172 = arith.addf %170, %171 : vector<8x128xf32>
    %c0_86 = arith.constant 0 : index
    %c0_87 = arith.constant 0 : index
    %173 = vector.load %arg16[%c0_86, %c0_87] : memref<8x128xf32, #tpu.memory_space<vmem>>, vector<8x128xf32>
    tpu.vector_store %arg16[%c0_86, %c0_87], %172 {strides = array<i32>} : memref<8x128xf32, #tpu.memory_space<vmem>>, vector<8x128xf32>,
    return
  }
  func.func @transform_0(%arg0: i32) -> (i32, i32) {
    %c0_i32 = arith.constant 0 : i32
    %c0_i32_0 = arith.constant 0 : i32
    %c0_i32_1 = arith.constant 0 : i32
    return %c0_i32, %c0_i32_0 : i32, i32
  }
  func.func @transform_6(%arg0: i32) -> (i32, i32) {
    %c0_i32 = arith.constant 0 : i32
    %c0_i32_0 = arith.constant 0 : i32
    %c0_i32_1 = arith.constant 0 : i32
    return %c0_i32, %c0_i32_0 : i32, i32
  }
  func.func @transform_13(%arg0: i32) -> (i32, i32) {
    %c0_i32 = arith.constant 0 : i32
    %c0_i32_0 = arith.constant 0 : i32
    %c0_i32_1 = arith.constant 0 : i32
    return %c0_i32, %c0_i32_0 : i32, i32
  }
  func.func @transform_14(%arg0: i32) -> (i32, i32) {
    %c0_i32 = arith.constant 0 : i32
    %c0_i32_0 = arith.constant 0 : i32
    %c0_i32_1 = arith.constant 0 : i32
    return %c0_i32, %c0_i32_0 : i32, i32
  }
  func.func @transform_15(%arg0: i32) -> (i32, i32) {
    %c0_i32 = arith.constant 0 : i32
    %c0_i32_0 = arith.constant 0 : i32
    %c0_i32_1 = arith.constant 0 : i32
    return %c0_i32, %c0_i32_0 : i32, i32
  }
}

</mosaic_0001>

<bundles_post_ra>
// kernel: actor_critic_apply.1
= control target key start
LH: loop header
LB: loop body
LE: loop exit
PB: predicated region body
PF: predicated region fallthrough
CT: control target
= control target key end

     0   :  { %21 = vsyncpa [#allocation15], 0  ;;  %s6420_s0 = inlined_call_operand.hbm [shape: f32[8,32], index: 0, kind: input, shape index: {}]   ;;  %s6421_s1 = inlined_call_operand.hbm [shape: bf16[32,1024], index: 1, kind: input, shape index: {}]   ;;  %s6422_s2 = inlined_call_operand.hbm [shape: bf16[1024,512], index: 2, kind: input, shape index: {}]   ;;  %s6423_s3 = inlined_call_operand.hbm [shape: bf16[512,256], index: 3, kind: input, shape index: {}]   ;;  %s6424_s4 = inlined_call_operand.hbm [shape: bf16[256,128], index: 4, kind: input, shape index: {}]   ;;  %s6425_s5 = inlined_call_operand.hbm [shape: bf16[128,128], index: 5, kind: input, shape index: {}]   ;;  %s6426_s6 = inlined_call_operand.hbm [shape: f32[1,2048], index: 6, kind: input, shape index: {}]   ;;  %s6427_s7 = inlined_call_operand.hbm [shape: bf16[32,1024], index: 7, kind: input, shape index: {}]   ;;  %s6428_s8 = inlined_call_operand.hbm [shape: bf16[1024,512], index: 8, kind: input, shape index: {}]   ;;  %s6429_s9 = inlined_call_operand.hbm [shape: bf16[512,256], index: 9, kind: input, shape index: {}]   ;;  %s6430_s10 = inlined_call_operand.hbm [shape: bf16[256,128], index: 10, kind: input, shape index: {}]   ;;  %s6431_s11 = inlined_call_operand.hbm [shape: bf16[128,128], index: 11, kind: input, shape index: {}]   ;;  %s6432_s12 = inlined_call_operand.hbm [shape: bf16[128,128], index: 12, kind: input, shape index: {}]   ;;  %s6433_s13 = inlined_call_operand.vmem [shape: f32[1,2176], index: 13, kind: input, shape index: {}]   ;;  %s6434_s14 = inlined_call_operand.hbm [shape: f32[8,128], index: 14, kind: output, shape index: {0}]   ;;  %s6435_s15 = inlined_call_operand.vmem [shape: f32[8,128], index: 15, kind: output, shape index: {1}]  }
   0x1   :  { %22 = vsyncpa [#allocation18], 0 }
   0x2   :  { %23 = vsyncpa [#allocation16], 0  ;;  %s6043_s18 = smov [#allocation14]   ;;  %s6044_s20 = smov [#allocation17]  }
   0x3   :  { %s30_s19 = sshll.u32 %s6043_s18, 4  ;;  %s40_s21 = sshll.u32 %s6044_s20, 4  ;;  %s31_s19 = int_to_ptr.vmem [resolvable:$true] %s30_s19  ;;  %s41_s21 = int_to_ptr.vmem [resolvable:$true] %s40_s21 }
   0x4   :  { %s5743_s22 = scalar_lea.vmem %s31_s19, 128  ;;  %p5748_p1 = scmp.lt.s32.totalorder %s31_s19, %s31_s19 }
   0x5   :  { %p5744_p0 = scmp.ne.s32.totalorder %s31_s19, %s5743_s22  ;;  %p5749_p2 = scmp.lt.s32.totalorder %s5743_s22, %s5743_s22 }
   0x7   :  { %p5750_p3 = por %p5749_p2, %p5748_p1 }
   0x9   :  { %p5751_p4 = pnand %p5750_p3, %p5744_p0 }
   0xb   :  { %5754 = shalt.err (!%p5751_p4)
}
   0xc   :  { %33 = dma.hbm_to_vmem [thread:$0]  %s6420_s0, 128, %s31_s19, [#allocation15]  }
   0xd   :  { %s5763_s25 = scalar_lea.vmem %s41_s21, 256  ;;  %p5768_p6 = scmp.lt.s32.totalorder %s41_s21, %s41_s21 }
   0xe   :  { %p5764_p5 = scmp.ne.s32.totalorder %s41_s21, %s5763_s25  ;;  %p5769_p7 = scmp.lt.s32.totalorder %s5763_s25, %s5763_s25 }
  0x10   :  { %p5770_p8 = por %p5769_p7, %p5768_p6 }
  0x12   :  { %p5771_p9 = pnand %p5770_p8, %p5764_p5 }
  0x14   :  { %5774 = shalt.err (!%p5771_p9)
}
  0x15   :  { %43 = dma.hbm_to_vmem [thread:$0]  %s6426_s6, 256, %s41_s21, [#allocation18]  }
  0x16   :  { %6015 = dma.done.wait [#allocation15], 128  }
  0x17   :  { %6016 = vsyncadd [#allocation15], 4294967168 }
  0x18   :  { %6017 = dma.done.wait [#allocation18], 256  }
  0x19   :  { %6018 = vsyncadd [#allocation18], 4294967040  ;;  %s6045_s28 = smov [#allocation2]   ;;  %s6046_s30 = smov [#allocation3]  }
  0x1a   :  { %s59_s29 = sshll.u32 %s6045_s28, 4  ;;  %s71_s16 = sshll.u32 %s6046_s30, 4  ;;  %s60_s29 = int_to_ptr.vmem [resolvable:$true] %s59_s29  ;;  %s72_s16 = int_to_ptr.vmem [resolvable:$true] %s71_s16 }
  0x1b   :  { %s5783_s0 = scalar_lea.vmem %s60_s29, 2048  ;;  %p5788_p11 = scmp.lt.s32.totalorder %s60_s29, %s60_s29 }
  0x1c   :  { %p5784_p10 = scmp.ne.s32.totalorder %s60_s29, %s5783_s0  ;;  %p5789_p12 = scmp.lt.s32.totalorder %s5783_s0, %s5783_s0 }
  0x1e   :  { %p5790_p13 = por %p5789_p12, %p5788_p11 }
  0x20   :  { %p5791_p0 = pnand %p5790_p13, %p5784_p10 }
  0x22   :  { %5794 = shalt.err (!%p5791_p0)  }
  0x23   :  { %62 = dma.hbm_to_vmem [thread:$0]  %s6421_s1, 2048, %s60_s29, [#allocation13] }
  0x24   :  { %s5803_s6 = scalar_lea.vmem %s72_s16, 32768  ;;  %p5808_p2 = scmp.lt.s32.totalorder %s72_s16, %s72_s16 }
  0x25   :  { %p5804_p1 = scmp.ne.s32.totalorder %s72_s16, %s5803_s6  ;;  %p5809_p3 = scmp.lt.s32.totalorder %s5803_s6, %s5803_s6 }
  0x27   :  { %p5810_p4 = por %p5809_p3, %p5808_p2 }
  0x29   :  { %p5811_p5 = pnand %p5810_p4, %p5804_p1 }
  0x2b   :  { %5814 = shalt.err (!%p5811_p5)  }
  0x2c   :  { %74 = dma.hbm_to_vmem [thread:$0]  %s6422_s2, 32768, %s72_s16, [#allocation13 + $0x1]  ;;  %v6151_v0 = vld [vmem:[#allocation14] sm:$0xff] }
  0x2d   :  { %s6047_s21 = smov [#allocation4]   ;;  %s6048_s23 = smov [#allocation5]  }
  0x2e   :  { %s83_s22 = sshll.u32 %s6047_s21, 4  ;;  %s95_s24 = sshll.u32 %s6048_s23, 4  ;;  %s84_s22 = int_to_ptr.vmem [resolvable:$true] %s83_s22  ;;  %s96_s24 = int_to_ptr.vmem [resolvable:$true] %s95_s24 }
  0x2f   :  { %s5823_s1 = scalar_lea.vmem %s84_s22, 8192  ;;  %p5828_p7 = scmp.lt.s32.totalorder %s84_s22, %s84_s22 }
  0x30   :  { %p5824_p6 = scmp.ne.s32.totalorder %s84_s22, %s5823_s1  ;;  %p5829_p8 = scmp.lt.s32.totalorder %s5823_s1, %s5823_s1 }
  0x32   :  { %p5830_p9 = por %p5829_p8, %p5828_p7 }
  0x34   :  { %p5831_p10 = pnand %p5830_p9, %p5824_p6 }
  0x36   :  { %5834 = shalt.err (!%p5831_p10)  }
  0x37   :  { %86 = dma.hbm_to_vmem [thread:$0]  %s6423_s3, 8192, %s84_s22, [#allocation13 + $0x2] }
  0x38   :  { %s5843_s2 = scalar_lea.vmem %s96_s24, 2048  ;;  %p5848_p12 = scmp.lt.s32.totalorder %s96_s24, %s96_s24 }
  0x39   :  { %p5844_p11 = scmp.ne.s32.totalorder %s96_s24, %s5843_s2  ;;  %p5849_p13 = scmp.lt.s32.totalorder %s5843_s2, %s5843_s2 }
  0x3b   :  { %p5850_p0 = por %p5849_p13, %p5848_p12 }
  0x3d   :  { %p5851_p1 = pnand %p5850_p0, %p5844_p11 }
  0x3f   :  { %5854 = shalt.err (!%p5851_p1)  }
  0x40   :  { %98 = dma.hbm_to_vmem [thread:$0]  %s6424_s4, 2048, %s96_s24, [#allocation13 + $0x3] }
  0x41   :  { %s6049_s29 = smov [#allocation6]   ;;  %s6050_s16 = smov [#allocation7]  }
  0x42   :  { %s107_s30 = sshll.u32 %s6049_s29, 4  ;;  %s119_s0 = sshll.u32 %s6050_s16, 4  ;;  %s108_s30 = int_to_ptr.vmem [resolvable:$true] %s107_s30  ;;  %s120_s0 = int_to_ptr.vmem [resolvable:$true] %s119_s0 }
  0x43   :  { %s5863_s17 = scalar_lea.vmem %s108_s30, 1024  ;;  %p5868_p3 = scmp.lt.s32.totalorder %s108_s30, %s108_s30 }
  0x44   :  { %p5864_p2 = scmp.ne.s32.totalorder %s108_s30, %s5863_s17  ;;  %p5869_p4 = scmp.lt.s32.totalorder %s5863_s17, %s5863_s17 }
  0x46   :  { %p5870_p5 = por %p5869_p4, %p5868_p3 }
  0x48   :  { %p5871_p6 = pnand %p5870_p5, %p5864_p2 }
  0x4a   :  { %5874 = shalt.err (!%p5871_p6)  }
  0x4b   :  { %110 = dma.hbm_to_vmem [thread:$0]  %s6425_s5, 1024, %s108_s30, [#allocation13 + $0x4] }
  0x4c   :  { %s5883_s6 = scalar_lea.vmem %s120_s0, 2048  ;;  %p5888_p8 = scmp.lt.s32.totalorder %s120_s0, %s120_s0 }
  0x4d   :  { %p5884_p7 = scmp.ne.s32.totalorder %s120_s0, %s5883_s6  ;;  %p5889_p9 = scmp.lt.s32.totalorder %s5883_s6, %s5883_s6 }
  0x4f   :  { %p5890_p10 = por %p5889_p9, %p5888_p8 }
  0x51   :  { %p5891_p11 = pnand %p5890_p10, %p5884_p7 }
  0x53   :  { %5894 = shalt.err (!%p5891_p11)  }
  0x54   :  { %122 = dma.hbm_to_vmem [thread:$0]  %s6427_s7, 2048, %s120_s0, [#allocation13 + $0x5] }
  0x55   :  { %s6051_s20 = smov [#allocation8]   ;;  %s6052_s22 = smov [#allocation9]  }
  0x56   :  { %s131_s21 = sshll.u32 %s6051_s20, 4  ;;  %s143_s23 = sshll.u32 %s6052_s22, 4  ;;  %s132_s21 = int_to_ptr.vmem [resolvable:$true] %s131_s21  ;;  %s144_s23 = int_to_ptr.vmem [resolvable:$true] %s143_s23 }
  0x57   :  { %s5903_s24 = scalar_lea.vmem %s132_s21, 32768  ;;  %p5908_p13 = scmp.lt.s32.totalorder %s132_s21, %s132_s21 }
  0x58   :  { %p5904_p12 = scmp.ne.s32.totalorder %s132_s21, %s5903_s24  ;;  %p5909_p0 = scmp.lt.s32.totalorder %s5903_s24, %s5903_s24 }
  0x5a   :  { %p5910_p1 = por %p5909_p0, %p5908_p13 }
  0x5c   :  { %p5911_p2 = pnand %p5910_p1, %p5904_p12 }
  0x5e   :  { %5914 = shalt.err (!%p5911_p2)  }
  0x5f   :  { %134 = dma.hbm_to_vmem [thread:$0]  %s6428_s8, 32768, %s132_s21, [#allocation13 + $0x6] }
  0x60   :  { %s5923_s25 = scalar_lea.vmem %s144_s23, 8192  ;;  %p5928_p4 = scmp.lt.s32.totalorder %s144_s23, %s144_s23 }
  0x61   :  { %p5924_p3 = scmp.ne.s32.totalorder %s144_s23, %s5923_s25  ;;  %p5929_p5 = scmp.lt.s32.totalorder %s5923_s25, %s5923_s25 }
  0x63   :  { %p5930_p6 = por %p5929_p5, %p5928_p4 }
  0x65   :  { %p5931_p7 = pnand %p5930_p6, %p5924_p3 }
  0x67   :  { %5934 = shalt.err (!%p5931_p7)  }
  0x68   :  { %146 = dma.hbm_to_vmem [thread:$0]  %s6429_s9, 8192, %s144_s23, [#allocation13 + $0x7] }
  0x69   :  { %s6053_s2 = smov [#allocation10]   ;;  %s6054_s28 = smov [#allocation11]  }
  0x6a   :  { %s155_s27 = sshll.u32 %s6053_s2, 4  ;;  %s167_s29 = sshll.u32 %s6054_s28, 4  ;;  %s156_s27 = int_to_ptr.vmem [resolvable:$true] %s155_s27  ;;  %s168_s29 = int_to_ptr.vmem [resolvable:$true] %s167_s29 }
  0x6b   :  { %s5943_s30 = scalar_lea.vmem %s156_s27, 2048  ;;  %p5948_p9 = scmp.lt.s32.totalorder %s156_s27, %s156_s27 }
  0x6c   :  { %p5944_p8 = scmp.ne.s32.totalorder %s156_s27, %s5943_s30  ;;  %p5949_p10 = scmp.lt.s32.totalorder %s5943_s30, %s5943_s30 }
  0x6e   :  { %p5950_p11 = por %p5949_p10, %p5948_p9 }
  0x70   :  { %p5951_p12 = pnand %p5950_p11, %p5944_p8 }
  0x72   :  { %5954 = shalt.err (!%p5951_p12)  }
  0x73   :  { %158 = dma.hbm_to_vmem [thread:$0]  %s6430_s10, 2048, %s156_s27, [#allocation13 + $0x8] }
  0x74   :  { %s5963_s0 = scalar_lea.vmem %s168_s29, 1024  ;;  %p5968_p0 = scmp.lt.s32.totalorder %s168_s29, %s168_s29 }
  0x75   :  { %p5964_p13 = scmp.ne.s32.totalorder %s168_s29, %s5963_s0  ;;  %p5969_p1 = scmp.lt.s32.totalorder %s5963_s0, %s5963_s0 }
  0x77   :  { %p5970_p2 = por %p5969_p1, %p5968_p0 }
  0x79   :  { %p5971_p3 = pnand %p5970_p2, %p5964_p13 }
  0x7b   :  { %5974 = shalt.err (!%p5971_p3)  }
  0x7c   :  { %170 = dma.hbm_to_vmem [thread:$0]  %s6431_s11, 1024, %s168_s29, [#allocation13 + $0x9] }
  0x7d   :  { %s6055_s3 = smov [#allocation12]  }
  0x7e   :  { %s179_s18 = sshll.u32 %s6055_s3, 4  ;;  %s180_s18 = int_to_ptr.vmem [resolvable:$true] %s179_s18 }
  0x7f   :  { %s5983_s6 = scalar_lea.vmem %s180_s18, 1024  ;;  %p5988_p5 = scmp.lt.s32.totalorder %s180_s18, %s180_s18 }
  0x80   :  { %p5984_p4 = scmp.ne.s32.totalorder %s180_s18, %s5983_s6  ;;  %p5989_p6 = scmp.lt.s32.totalorder %s5983_s6, %s5983_s6 }
  0x82   :  { %p5990_p7 = por %p5989_p6, %p5988_p5 }
  0x84   :  { %p5991_p8 = pnand %p5990_p7, %p5984_p4 }
  0x86   :  { %5994 = shalt.err (!%p5991_p8)  }
  0x87   :  { %182 = dma.hbm_to_vmem [thread:$0]  %s6432_s12, 1024, %s180_s18, [#allocation13 + $0xa] }
  0x88   :  { %6019 = dma.done.wait [#allocation13], 2048 }
  0x89   :  { %6020 = vsyncadd [#allocation13], 4294965248  ;;  %v6056_v1 = vmov 0.0   ;;  %v200_v2 = vld [vmem:[#allocation2 + $0x60] sm:$0xff]  ;;  %v201_v12 = vld [vmem:[#allocation2 + $0x68] sm:$0xff]  ;;  %vm278_vm0 = vcmask 261120   ;;  %v238_v50 = vlaneseq }
  0x8a   :  { %346 = vmatprep.mubr.f32.mxu1 %v6056_v1  ;;  %v196_v3 = vld [vmem:[#allocation2 + $0x40] sm:$0xff]  ;;  %v229_v5 = vunpack.c.h.bf16 %v200_v2  ;;  %v228_v6 = vunpack.c.l.bf16 %v200_v2  ;;  %v197_v15 = vld [vmem:[#allocation2 + $0x48] sm:$0xff]  ;;  %v231_v16 = vunpack.c.h.bf16 %v201_v12  ;;  %v230_v17 = vunpack.c.l.bf16 %v201_v12  ;;  %v202_v24 = vld [vmem:[#allocation2 + $0x70] sm:$0xff] }
  0x8b   :  { %v192_v4 = vld [vmem:[#allocation2 + $0x20] sm:$0xff]  ;;  %v221_v7 = vunpack.c.h.bf16 %v196_v3  ;;  %v220_v8 = vunpack.c.l.bf16 %v196_v3  ;;  %v193_v18 = vld [vmem:[#allocation2 + $0x28] sm:$0xff]  ;;  %v223_v19 = vunpack.c.h.bf16 %v197_v15  ;;  %v222_v20 = vunpack.c.l.bf16 %v197_v15  ;;  %v198_v27 = vld [vmem:[#allocation2 + $0x50] sm:$0xff] }
  0x8c   :  { %v188_v9 = vld [vmem:[#allocation2] sm:$0xff]  ;;  %306 = vmatprep.subr.mxu1 %v229_v5  ;;  %v213_v10 = vunpack.c.h.bf16 %v192_v4  ;;  %v212_v11 = vunpack.c.l.bf16 %v192_v4  ;;  %v189_v21 = vld [vmem:[#allocation2 + $0x8] sm:$0xff]  ;;  %v215_v22 = vunpack.c.h.bf16 %v193_v18  ;;  %v214_v23 = vunpack.c.l.bf16 %v193_v18  ;;  %v194_v30 = vld [vmem:[#allocation2 + $0x30] sm:$0xff] }
  0x8d   :  { %307 = vmatpush1.msra.mxu1 %v228_v6  ;;  %v205_v13 = vunpack.c.h.bf16 %v188_v9  ;;  %v204_v14 = vunpack.c.l.bf16 %v188_v9  ;;  %v207_v25 = vunpack.c.h.bf16 %v189_v21  ;;  %v206_v26 = vunpack.c.l.bf16 %v189_v21  ;;  %v190_v33 = vld [vmem:[#allocation2 + $0x10] sm:$0xff]  ;;  %v203_v36 = vld [vmem:[#allocation2 + $0x78] sm:$0xff]  ;;  %v236_v53 = vld [vmem:[#allocation17] sm:$0xff] }
  0x8e   :  { %308 = vmatprep.subr.mxu1 %v221_v7  ;;  %v233_v28 = vunpack.c.h.bf16 %v202_v24  ;;  %v232_v29 = vunpack.c.l.bf16 %v202_v24  ;;  %v225_v31 = vunpack.c.h.bf16 %v198_v27  ;;  %v224_v32 = vunpack.c.l.bf16 %v198_v27  ;;  %v199_v39 = vld [vmem:[#allocation2 + $0x58] sm:$0xff] }
  0x8f   :  { %309 = vmatpush1.msra.mxu1 %v220_v8  ;;  %v217_v34 = vunpack.c.h.bf16 %v194_v30  ;;  %v216_v35 = vunpack.c.l.bf16 %v194_v30  ;;  %v209_v37 = vunpack.c.h.bf16 %v190_v33  ;;  %v208_v38 = vunpack.c.l.bf16 %v190_v33  ;;  %v195_v42 = vld [vmem:[#allocation2 + $0x38] sm:$0xff] }
  0x90   :  { %310 = vmatprep.subr.mxu1 %v213_v10  ;;  %v235_v40 = vunpack.c.h.bf16 %v203_v36  ;;  %v234_v41 = vunpack.c.l.bf16 %v203_v36  ;;  %v227_v43 = vunpack.c.h.bf16 %v199_v39  ;;  %v226_v44 = vunpack.c.l.bf16 %v199_v39  ;;  %v191_v45 = vld [vmem:[#allocation2 + $0x18] sm:$0xff] }
  0x91   :  { %311 = vmatpush1.msra.mxu1 %v212_v11  ;;  %v219_v46 = vunpack.c.h.bf16 %v195_v42  ;;  %v218_v47 = vunpack.c.l.bf16 %v195_v42  ;;  %v211_v48 = vunpack.c.h.bf16 %v191_v45  ;;  %v210_v49 = vunpack.c.l.bf16 %v191_v45 }
  0x92   :  { %312 = vmatprep.subr.mxu1 %v205_v13  ;;  %v6193_v51 = vshrl.u32 %v238_v50, 7 }
  0x93   :  { %313 = vmatpush1.msra.mxu1 %v204_v14 }
  0x94   :  { %5190 = vmatmul.mubr.msk.f32.vlgmr.msra.gmra.mxu1 %vm278_vm0, %v6151_v0  ;;  %377 = vmatprep.subr.mxu1 %v231_v16  ;;  %v6196_v52 = vsub.s32 0, %v6193_v51  ;;  %v6199_v54 = vsub.s32 1, %v6193_v51  ;;  %v6204_v59 = vsub.s32 2, %v6193_v51  ;;  %v6207_v63 = vsub.s32 3, %v6193_v51 }
  0x95   :  { %378 = vmatpush1.msra.mxu1 %v230_v17  ;;  %417 = vmatprep.mubr.f32.mxu1 %v6056_v1  ;;  %v256_v9 = vsub.s32 4, %v6193_v51  ;;  %v260_v13 = vsub.s32 5, %v6193_v51  ;;  %v264_v21 = vsub.s32 6, %v6193_v51 }
  0x96   :  { %379 = vmatprep.subr.mxu1 %v223_v19  ;;  %v241_v55 = vrot.slane %v236_v53, %v6196_v52  ;;  %v245_v56 = vrot.slane %v236_v53, %v6199_v54  ;;  %v249_v4 = vrot.slane %v236_v53, %v6204_v59  ;;  %v253_v6 = vrot.slane %v236_v53, %v6207_v63 }
  0x97   :  { %380 = vmatpush1.msra.mxu1 %v222_v20  ;;  %v257_v16 = vrot.slane %v236_v53, %v256_v9  ;;  %v261_v18 = vrot.slane %v236_v53, %v260_v13 }
  0x98   :  { %381 = vmatprep.subr.mxu1 %v215_v22 }
  0x99   :  { %382 = vmatpush1.msra.mxu1 %v214_v23 }
  0x9a   :  { %383 = vmatprep.subr.mxu1 %v207_v25  ;;  %v268_v25 = vsub.s32 7, %v6193_v51 }
  0x9b   :  { %384 = vmatpush1.msra.mxu1 %v206_v26 }
  0x9c   :  { %5191 = vmatmul.mubr.msk.f32.vlgmr.msra.gmra.mxu1 %vm278_vm0, %v6151_v0  ;;  %448 = vmatprep.subr.mxu1 %v233_v28  ;;  %v265_v28 = vrot.slane %v236_v53, %v264_v21  ;;  %v269_v30 = vrot.slane %v236_v53, %v268_v25 }
  0x9d   :  { %449 = vmatpush1.msra.mxu1 %v232_v29  ;;  %488 = vmatprep.mubr.f32.mxu1 %v6056_v1 }
  0x9e   :  { %450 = vmatprep.subr.mxu1 %v225_v31 }
  0x9f   :  { %451 = vmatpush1.msra.mxu1 %v224_v32 }
  0xa0   :  { %452 = vmatprep.subr.mxu1 %v217_v34 }
  0xa1   :  { %453 = vmatpush1.msra.mxu1 %v216_v35 }
  0xa2   :  { %454 = vmatprep.subr.mxu1 %v209_v37 }
  0xa3   :  { %455 = vmatpush1.msra.mxu1 %v208_v38 }
  0xa4   :  { %5192 = vmatmul.mubr.msk.f32.vlgmr.msra.gmra.mxu1 %vm278_vm0, %v6151_v0  ;;  %519 = vmatprep.subr.mxu1 %v235_v40 }
  0xa5   :  { %520 = vmatpush1.msra.mxu1 %v234_v41  ;;  %559 = vmatprep.mubr.f32.mxu1 %v6056_v1 }
  0xa6   :  { %521 = vmatprep.subr.mxu1 %v227_v43 }
  0xa7   :  { %522 = vmatpush1.msra.mxu1 %v226_v44 }
  0xa8   :  { %523 = vmatprep.subr.mxu1 %v219_v46 }
  0xa9   :  { %524 = vmatpush1.msra.mxu1 %v218_v47 }
  0xaa   :  { %525 = vmatprep.subr.mxu1 %v211_v48 }
  0xab   :  { %526 = vmatpush1.msra.mxu1 %v210_v49 }
  0xac   :  { %5193 = vmatmul.mubr.msk.f32.vlgmr.msra.gmra.mxu1 %vm278_vm0, %v6151_v0 }
 0x154   :  { %v348_v57 = vpop.f32.mrf.mxu1 }
 0x155   :  { %v349_v58 = vadd.f32 %v348_v57, %v241_v55 }
 0x156   :  { %v350_v60 = vpop.f32.mrf.mxu1 }
 0x157   :  { %vm566_vm1 = vcmp.ge.f32.partialorder %v349_v58, 0.0  ;;  %v574_v61 = vmul.f32 0.01, %v349_v58  ;;  %v351_v62 = vadd.f32 %v350_v60, %v245_v56 }
 0x159   :  { %v6209_v2 = vsel %vm566_vm1, %v349_v58, %v574_v61  ;;  %vm567_vm2 = vcmp.ge.f32.partialorder %v351_v62, 0.0  ;;  %v575_v3 = vmul.f32 0.01, %v351_v62 }
 0x15b   :  { %v6212_v5 = vsel %vm567_vm2, %v351_v62, %v575_v3 }
 0x15c   :  { %v419_v7 = vpop.f32.mrf.mxu1 }
 0x15d   :  { %v420_v8 = vadd.f32 %v419_v7, %v249_v4 }
 0x15e   :  { %v421_v10 = vpop.f32.mrf.mxu1 }
 0x15f   :  { %vm568_vm3 = vcmp.ge.f32.partialorder %v420_v8, 0.0  ;;  %v576_v11 = vmul.f32 0.01, %v420_v8  ;;  %v422_v12 = vadd.f32 %v421_v10, %v253_v6 }
 0x161   :  { %v6217_v14 = vsel %vm568_vm3, %v420_v8, %v576_v11  ;;  %vm569_vm4 = vcmp.ge.f32.partialorder %v422_v12, 0.0  ;;  %v577_v15 = vmul.f32 0.01, %v422_v12 }
 0x163   :  { %v6221_v17 = vsel %vm569_vm4, %v422_v12, %v577_v15 }
 0x164   :  { %v490_v19 = vpop.f32.mrf.mxu1 }
 0x165   :  { %v491_v20 = vadd.f32 %v490_v19, %v257_v16 }
 0x166   :  { %v492_v22 = vpop.f32.mrf.mxu1 }
 0x167   :  { %vm570_vm5 = vcmp.ge.f32.partialorder %v491_v20, 0.0  ;;  %v578_v23 = vmul.f32 0.01, %v491_v20  ;;  %v493_v24 = vadd.f32 %v492_v22, %v261_v18 }
 0x169   :  { %v6227_v26 = vsel %vm570_vm5, %v491_v20, %v578_v23  ;;  %vm571_vm6 = vcmp.ge.f32.partialorder %v493_v24, 0.0  ;;  %v579_v27 = vmul.f32 0.01, %v493_v24 }
 0x16b   :  { %v6231_v29 = vsel %vm571_vm6, %v493_v24, %v579_v27 }
 0x16c   :  { %v561_v31 = vpop.f32.mrf.mxu1 }
 0x16d   :  { %v562_v32 = vadd.f32 %v561_v31, %v265_v28 }
 0x16e   :  { %v563_v33 = vpop.f32.mrf.mxu1 }
 0x16f   :  { %vm572_vm7 = vcmp.ge.f32.partialorder %v562_v32, 0.0  ;;  %v580_v34 = vmul.f32 0.01, %v562_v32  ;;  %v564_v35 = vadd.f32 %v563_v33, %v269_v30 }
 0x171   :  { %v6235_v36 = vsel %vm572_vm7, %v562_v32, %v580_v34  ;;  %vm573_vm8 = vcmp.ge.f32.partialorder %v564_v35, 0.0  ;;  %v581_v37 = vmul.f32 0.01, %v564_v35 }
 0x173   :  { %v6237_v38 = vsel %vm573_vm8, %v564_v35, %v581_v37 }
 0x174   :  { %6021 = dma.done.wait [#allocation13 + $0x1], 32768 }
 0x175   :  { %6022 = vsyncadd [#allocation13 + $0x1], 4294934528  ;;  %1448 = vmatprep.mubr.f32.mxu0 %v6212_v5  ;;  %1519 = vmatprep.mubr.f32.mxu1 %v6221_v17  ;;  %v624_v39 = vld [vmem:[#allocation3 + $0xf0] sm:$0xff]  ;;  %v622_v41 = vld [vmem:[#allocation3 + $0xe0] sm:$0xff] }
 0x176   :  { %v688_v40 = vld [vmem:[#allocation3 + $0x2f0] sm:$0xff]  ;;  %v911_v42 = vunpack.c.h.bf16 %v624_v39  ;;  %v910_v44 = vunpack.c.l.bf16 %v624_v39  ;;  %v686_v46 = vld [vmem:[#allocation3 + $0x2e0] sm:$0xff]  ;;  %v907_v49 = vunpack.c.h.bf16 %v622_v41  ;;  %v906_v55 = vunpack.c.l.bf16 %v622_v41 }
 0x177   :  { %v1039_v43 = vunpack.c.h.bf16 %v688_v40  ;;  %v1038_v45 = vunpack.c.l.bf16 %v688_v40  ;;  %v620_v47 = vld [vmem:[#allocation3 + $0xd0] sm:$0xff]  ;;  %v1035_v53 = vunpack.c.h.bf16 %v686_v46  ;;  %v1034_v56 = vunpack.c.l.bf16 %v686_v46  ;;  %v618_v57 = vld [vmem:[#allocation3 + $0xc0] sm:$0xff] }
 0x178   :  { %v684_v48 = vld [vmem:[#allocation3 + $0x2d0] sm:$0xff]  ;;  %v682_v58 = vld [vmem:[#allocation3 + $0x2c0] sm:$0xff]  ;;  %1384 = vmatprep.subr.mxu0 %v911_v42  ;;  %v903_v60 = vunpack.c.h.bf16 %v620_v47  ;;  %v902_v62 = vunpack.c.l.bf16 %v620_v47  ;;  %v899_v7 = vunpack.c.h.bf16 %v618_v57  ;;  %v898_v10 = vunpack.c.l.bf16 %v618_v57 }
 0x179   :  { %1455 = vmatprep.subr.mxu1 %v1039_v43  ;;  %v1031_v61 = vunpack.c.h.bf16 %v684_v48  ;;  %1385 = vmatpush1.msra.mxu0 %v910_v44  ;;  %v1030_v3 = vunpack.c.l.bf16 %v684_v48  ;;  %v616_v4 = vld [vmem:[#allocation3 + $0xb0] sm:$0xff]  ;;  %v1027_v8 = vunpack.c.h.bf16 %v682_v58  ;;  %v1026_v11 = vunpack.c.l.bf16 %v682_v58  ;;  %v614_v12 = vld [vmem:[#allocation3 + $0xa0] sm:$0xff] }
 0x17a   :  { %1456 = vmatpush1.msra.mxu1 %v1038_v45  ;;  %v680_v6 = vld [vmem:[#allocation3 + $0x2b0] sm:$0xff]  ;;  %1386 = vmatprep.subr.mxu0 %v907_v49  ;;  %v678_v15 = vld [vmem:[#allocation3 + $0x2a0] sm:$0xff]  ;;  %v895_v16 = vunpack.c.h.bf16 %v616_v4  ;;  %v894_v19 = vunpack.c.l.bf16 %v616_v4  ;;  %v891_v24 = vunpack.c.h.bf16 %v614_v12  ;;  %v890_v28 = vunpack.c.l.bf16 %v614_v12 }
 0x17b   :  { %1457 = vmatprep.subr.mxu1 %v1035_v53  ;;  %1387 = vmatpush1.msra.mxu0 %v906_v55  ;;  %v1023_v18 = vunpack.c.h.bf16 %v680_v6  ;;  %v1022_v20 = vunpack.c.l.bf16 %v680_v6  ;;  %v612_v22 = vld [vmem:[#allocation3 + $0x90] sm:$0xff]  ;;  %v1019_v27 = vunpack.c.h.bf16 %v678_v15  ;;  %v1018_v30 = vunpack.c.l.bf16 %v678_v15  ;;  %v610_v31 = vld [vmem:[#allocation3 + $0x80] sm:$0xff] }
 0x17c   :  { %1458 = vmatpush1.msra.mxu1 %v1034_v56  ;;  %1388 = vmatprep.subr.mxu0 %v903_v60  ;;  %v676_v23 = vld [vmem:[#allocation3 + $0x290] sm:$0xff]  ;;  %v674_v32 = vld [vmem:[#allocation3 + $0x280] sm:$0xff]  ;;  %v887_v33 = vunpack.c.h.bf16 %v612_v22  ;;  %v886_v35 = vunpack.c.l.bf16 %v612_v22  ;;  %v883_v41 = vunpack.c.h.bf16 %v610_v31  ;;  %v882_v43 = vunpack.c.l.bf16 %v610_v31 }
 0x17d   :  { %1459 = vmatprep.subr.mxu1 %v1031_v61  ;;  %1389 = vmatpush1.msra.mxu0 %v902_v62  ;;  %v1015_v34 = vunpack.c.h.bf16 %v676_v23  ;;  %v1014_v37 = vunpack.c.l.bf16 %v676_v23  ;;  %v608_v39 = vld [vmem:[#allocation3 + $0x70] sm:$0xff]  ;;  %v1011_v42 = vunpack.c.h.bf16 %v674_v32  ;;  %v1010_v44 = vunpack.c.l.bf16 %v674_v32  ;;  %v606_v45 = vld [vmem:[#allocation3 + $0x60] sm:$0xff] }
 0x17e   :  { %1460 = vmatpush1.msra.mxu1 %v1030_v3  ;;  %1390 = vmatprep.subr.mxu0 %v899_v7  ;;  %v672_v40 = vld [vmem:[#allocation3 + $0x270] sm:$0xff]  ;;  %v670_v46 = vld [vmem:[#allocation3 + $0x260] sm:$0xff]  ;;  %v879_v47 = vunpack.c.h.bf16 %v608_v39  ;;  %v878_v49 = vunpack.c.l.bf16 %v608_v39  ;;  %v875_v57 = vunpack.c.h.bf16 %v606_v45  ;;  %v874_v60 = vunpack.c.l.bf16 %v606_v45 }
 0x17f   :  { %1461 = vmatprep.subr.mxu1 %v1027_v8  ;;  %1391 = vmatpush1.msra.mxu0 %v898_v10  ;;  %v1007_v48 = vunpack.c.h.bf16 %v672_v40  ;;  %v1006_v53 = vunpack.c.l.bf16 %v672_v40  ;;  %v604_v55 = vld [vmem:[#allocation3 + $0x50] sm:$0xff]  ;;  %v1003_v58 = vunpack.c.h.bf16 %v670_v46  ;;  %v1002_v61 = vunpack.c.l.bf16 %v670_v46  ;;  %v602_v62 = vld [vmem:[#allocation3 + $0x40] sm:$0xff] }
 0x180   :  { %1462 = vmatpush1.msra.mxu1 %v1026_v11  ;;  %1392 = vmatprep.subr.mxu0 %v895_v16  ;;  %v668_v56 = vld [vmem:[#allocation3 + $0x250] sm:$0xff]  ;;  %v666_v3 = vld [vmem:[#allocation3 + $0x240] sm:$0xff]  ;;  %v871_v4 = vunpack.c.h.bf16 %v604_v55  ;;  %v870_v7 = vunpack.c.l.bf16 %v604_v55  ;;  %v867_v12 = vunpack.c.h.bf16 %v602_v62  ;;  %v866_v16 = vunpack.c.l.bf16 %v602_v62 }
 0x181   :  { %1463 = vmatprep.subr.mxu1 %v1023_v18  ;;  %1393 = vmatpush1.msra.mxu0 %v894_v19  ;;  %v999_v6 = vunpack.c.h.bf16 %v668_v56  ;;  %v998_v8 = vunpack.c.l.bf16 %v668_v56  ;;  %v600_v10 = vld [vmem:[#allocation3 + $0x30] sm:$0xff]  ;;  %v995_v15 = vunpack.c.h.bf16 %v666_v3  ;;  %v994_v18 = vunpack.c.l.bf16 %v666_v3  ;;  %v598_v19 = vld [vmem:[#allocation3 + $0x20] sm:$0xff] }
 0x182   :  { %1464 = vmatpush1.msra.mxu1 %v1022_v20  ;;  %1394 = vmatprep.subr.mxu0 %v891_v24  ;;  %v664_v11 = vld [vmem:[#allocation3 + $0x230] sm:$0xff]  ;;  %v662_v20 = vld [vmem:[#allocation3 + $0x220] sm:$0xff]  ;;  %v863_v22 = vunpack.c.h.bf16 %v600_v10  ;;  %v862_v24 = vunpack.c.l.bf16 %v600_v10  ;;  %v859_v31 = vunpack.c.h.bf16 %v598_v19 }
 0x183   :  { %1465 = vmatprep.subr.mxu1 %v1019_v27  ;;  %1395 = vmatpush1.msra.mxu0 %v890_v28  ;;  %v991_v23 = vunpack.c.h.bf16 %v664_v11  ;;  %v990_v27 = vunpack.c.l.bf16 %v664_v11  ;;  %v596_v28 = vld [vmem:[#allocation3 + $0x10] sm:$0xff]  ;;  %v987_v32 = vunpack.c.h.bf16 %v662_v20 }
 0x184   :  { %1466 = vmatpush1.msra.mxu1 %v1018_v30  ;;  %1396 = vmatprep.subr.mxu0 %v887_v33  ;;  %v660_v30 = vld [vmem:[#allocation3 + $0x210] sm:$0xff]  ;;  %v858_v33 = vunpack.c.l.bf16 %v598_v19  ;;  %v855_v39 = vunpack.c.h.bf16 %v596_v28 }
 0x185   :  { %1467 = vmatprep.subr.mxu1 %v1015_v34  ;;  %1397 = vmatpush1.msra.mxu0 %v886_v35  ;;  %v986_v34 = vunpack.c.l.bf16 %v662_v20  ;;  %v594_v35 = vld [vmem:[#allocation3] sm:$0xff]  ;;  %v983_v40 = vunpack.c.h.bf16 %v660_v30 }
 0x186   :  { %1468 = vmatpush1.msra.mxu1 %v1014_v37  ;;  %1398 = vmatprep.subr.mxu0 %v883_v41  ;;  %v658_v37 = vld [vmem:[#allocation3 + $0x200] sm:$0xff]  ;;  %v854_v41 = vunpack.c.l.bf16 %v596_v28  ;;  %v851_v45 = vunpack.c.h.bf16 %v594_v35 }
 0x187   :  { %1469 = vmatprep.subr.mxu1 %v1011_v42  ;;  %1399 = vmatpush1.msra.mxu0 %v882_v43  ;;  %v982_v42 = vunpack.c.l.bf16 %v660_v30  ;;  %v656_v43 = vld [vmem:[#allocation3 + $0x1f0] sm:$0xff]  ;;  %v979_v46 = vunpack.c.h.bf16 %v658_v37 }
 0x188   :  { %1470 = vmatpush1.msra.mxu1 %v1010_v44  ;;  %1400 = vmatprep.subr.mxu0 %v879_v47  ;;  %v720_v44 = vld [vmem:[#allocation3 + $0x3f0] sm:$0xff]  ;;  %v850_v47 = vunpack.c.l.bf16 %v594_v35  ;;  %v975_v55 = vunpack.c.h.bf16 %v656_v43 }
 0x189   :  { %1471 = vmatprep.subr.mxu1 %v1007_v48  ;;  %1401 = vmatpush1.msra.mxu0 %v878_v49  ;;  %v978_v48 = vunpack.c.l.bf16 %v658_v37  ;;  %v654_v49 = vld [vmem:[#allocation3 + $0x1e0] sm:$0xff]  ;;  %v1103_v56 = vunpack.c.h.bf16 %v720_v44 }
 0x18a   :  { %1472 = vmatpush1.msra.mxu1 %v1006_v53  ;;  %1402 = vmatprep.subr.mxu0 %v875_v57  ;;  %v718_v53 = vld [vmem:[#allocation3 + $0x3e0] sm:$0xff]  ;;  %v974_v57 = vunpack.c.l.bf16 %v656_v43  ;;  %v971_v62 = vunpack.c.h.bf16 %v654_v49 }
 0x18b   :  { %1473 = vmatprep.subr.mxu1 %v1003_v58  ;;  %1403 = vmatpush1.msra.mxu0 %v874_v60  ;;  %v1102_v58 = vunpack.c.l.bf16 %v720_v44  ;;  %v652_v60 = vld [vmem:[#allocation3 + $0x1d0] sm:$0xff]  ;;  %v1099_v3 = vunpack.c.h.bf16 %v718_v53 }
 0x18c   :  { %1474 = vmatpush1.msra.mxu1 %v1002_v61  ;;  %1404 = vmatprep.subr.mxu0 %v871_v4  ;;  %v716_v61 = vld [vmem:[#allocation3 + $0x3d0] sm:$0xff]  ;;  %v970_v4 = vunpack.c.l.bf16 %v654_v49  ;;  %v967_v10 = vunpack.c.h.bf16 %v652_v60 }
 0x18d   :  { %1475 = vmatprep.subr.mxu1 %v999_v6  ;;  %1405 = vmatpush1.msra.mxu0 %v870_v7  ;;  %v1098_v6 = vunpack.c.l.bf16 %v718_v53  ;;  %v650_v7 = vld [vmem:[#allocation3 + $0x1c0] sm:$0xff]  ;;  %v1095_v11 = vunpack.c.h.bf16 %v716_v61 }
 0x18e   :  { %1476 = vmatpush1.msra.mxu1 %v998_v8  ;;  %1406 = vmatprep.subr.mxu0 %v867_v12  ;;  %v714_v8 = vld [vmem:[#allocation3 + $0x3c0] sm:$0xff]  ;;  %v966_v12 = vunpack.c.l.bf16 %v652_v60  ;;  %v963_v19 = vunpack.c.h.bf16 %v650_v7 }
 0x18f   :  { %1477 = vmatprep.subr.mxu1 %v995_v15  ;;  %1407 = vmatpush1.msra.mxu0 %v866_v16  ;;  %v1094_v15 = vunpack.c.l.bf16 %v716_v61  ;;  %v648_v16 = vld [vmem:[#allocation3 + $0x1b0] sm:$0xff]  ;;  %v1091_v20 = vunpack.c.h.bf16 %v714_v8 }
 0x190   :  { %1478 = vmatpush1.msra.mxu1 %v994_v18  ;;  %1408 = vmatprep.subr.mxu0 %v863_v22  ;;  %v712_v18 = vld [vmem:[#allocation3 + $0x3b0] sm:$0xff]  ;;  %v962_v22 = vunpack.c.l.bf16 %v650_v7  ;;  %v959_v28 = vunpack.c.h.bf16 %v648_v16 }
 0x191   :  { %1479 = vmatprep.subr.mxu1 %v991_v23  ;;  %1409 = vmatpush1.msra.mxu0 %v862_v24  ;;  %v1090_v23 = vunpack.c.l.bf16 %v714_v8  ;;  %v646_v24 = vld [vmem:[#allocation3 + $0x1a0] sm:$0xff]  ;;  %v1087_v30 = vunpack.c.h.bf16 %v712_v18 }
 0x192   :  { %1480 = vmatpush1.msra.mxu1 %v990_v27  ;;  %1410 = vmatprep.subr.mxu0 %v859_v31  ;;  %v710_v27 = vld [vmem:[#allocation3 + $0x3a0] sm:$0xff]  ;;  %v958_v31 = vunpack.c.l.bf16 %v648_v16  ;;  %v955_v35 = vunpack.c.h.bf16 %v646_v24 }
 0x193   :  { %1481 = vmatprep.subr.mxu1 %v987_v32  ;;  %1411 = vmatpush1.msra.mxu0 %v858_v33  ;;  %v1086_v32 = vunpack.c.l.bf16 %v712_v18  ;;  %v644_v33 = vld [vmem:[#allocation3 + $0x190] sm:$0xff]  ;;  %v1083_v37 = vunpack.c.h.bf16 %v710_v27 }
 0x194   :  { %1482 = vmatpush1.msra.mxu1 %v986_v34  ;;  %1412 = vmatprep.subr.mxu0 %v855_v39  ;;  %v708_v34 = vld [vmem:[#allocation3 + $0x390] sm:$0xff]  ;;  %v954_v39 = vunpack.c.l.bf16 %v646_v24  ;;  %v951_v43 = vunpack.c.h.bf16 %v644_v33 }
 0x195   :  { %1483 = vmatprep.subr.mxu1 %v983_v40  ;;  %1413 = vmatpush1.msra.mxu0 %v854_v41  ;;  %v1082_v40 = vunpack.c.l.bf16 %v710_v27  ;;  %v642_v41 = vld [vmem:[#allocation3 + $0x180] sm:$0xff]  ;;  %v1079_v44 = vunpack.c.h.bf16 %v708_v34 }
 0x196   :  { %1484 = vmatpush1.msra.mxu1 %v982_v42  ;;  %1414 = vmatprep.subr.mxu0 %v851_v45  ;;  %v706_v42 = vld [vmem:[#allocation3 + $0x380] sm:$0xff]  ;;  %v950_v45 = vunpack.c.l.bf16 %v644_v33  ;;  %v947_v49 = vunpack.c.h.bf16 %v642_v41 }
 0x197   :  { %1485 = vmatprep.subr.mxu1 %v979_v46  ;;  %1415 = vmatpush1.msra.mxu0 %v850_v47  ;;  %v1078_v46 = vunpack.c.l.bf16 %v708_v34  ;;  %v640_v47 = vld [vmem:[#allocation3 + $0x170] sm:$0xff]  ;;  %v1075_v53 = vunpack.c.h.bf16 %v706_v42 }
 0x198   :  { %1486 = vmatpush1.msra.mxu1 %v978_v48  ;;  %1416 = vmatprep.subr.mxu0 %v975_v55  ;;  %v704_v48 = vld [vmem:[#allocation3 + $0x370] sm:$0xff]  ;;  %v946_v55 = vunpack.c.l.bf16 %v642_v41  ;;  %v943_v60 = vunpack.c.h.bf16 %v640_v47 }
 0x199   :  { %1487 = vmatprep.subr.mxu1 %v1103_v56  ;;  %1417 = vmatpush2.msra.mxu0 %v974_v57  ;;  %v1074_v56 = vunpack.c.l.bf16 %v706_v42  ;;  %v638_v57 = vld [vmem:[#allocation3 + $0x160] sm:$0xff]  ;;  %v1071_v61 = vunpack.c.h.bf16 %v704_v48 }
 0x19a   :  { %1488 = vmatpush2.msra.mxu1 %v1102_v58  ;;  %1418 = vmatprep.subr.mxu0 %v971_v62  ;;  %v702_v58 = vld [vmem:[#allocation3 + $0x360] sm:$0xff]  ;;  %v942_v62 = vunpack.c.l.bf16 %v640_v47  ;;  %v939_v7 = vunpack.c.h.bf16 %v638_v57 }
 0x19b   :  { %1489 = vmatprep.subr.mxu1 %v1099_v3  ;;  %1419 = vmatpush2.msra.mxu0 %v970_v4  ;;  %v1070_v3 = vunpack.c.l.bf16 %v704_v48  ;;  %v636_v4 = vld [vmem:[#allocation3 + $0x150] sm:$0xff]  ;;  %v1067_v8 = vunpack.c.h.bf16 %v702_v58 }
 0x19c   :  { %1490 = vmatpush2.msra.mxu1 %v1098_v6  ;;  %1420 = vmatprep.subr.mxu0 %v967_v10  ;;  %v700_v6 = vld [vmem:[#allocation3 + $0x350] sm:$0xff]  ;;  %v938_v10 = vunpack.c.l.bf16 %v638_v57  ;;  %v935_v16 = vunpack.c.h.bf16 %v636_v4 }
 0x19d   :  { %1491 = vmatprep.subr.mxu1 %v1095_v11  ;;  %1421 = vmatpush2.msra.mxu0 %v966_v12  ;;  %v1066_v11 = vunpack.c.l.bf16 %v702_v58  ;;  %v634_v12 = vld [vmem:[#allocation3 + $0x140] sm:$0xff]  ;;  %v1063_v18 = vunpack.c.h.bf16 %v700_v6  ;;  %v816_v58 = vld [vmem:[#allocation3 + $0x6f0] sm:$0xff] }
 0x19e   :  { %1492 = vmatpush2.msra.mxu1 %v1094_v15  ;;  %1422 = vmatprep.subr.mxu0 %v963_v19  ;;  %v698_v15 = vld [vmem:[#allocation3 + $0x340] sm:$0xff]  ;;  %v934_v19 = vunpack.c.l.bf16 %v636_v4  ;;  %v931_v24 = vunpack.c.h.bf16 %v634_v12 }
 0x19f   :  { %1493 = vmatprep.subr.mxu1 %v1091_v20  ;;  %1423 = vmatpush2.msra.mxu0 %v962_v22  ;;  %v1062_v20 = vunpack.c.l.bf16 %v700_v6  ;;  %v632_v22 = vld [vmem:[#allocation3 + $0x130] sm:$0xff]  ;;  %v1059_v27 = vunpack.c.h.bf16 %v698_v15  ;;  %v814_v4 = vld [vmem:[#allocation3 + $0x6e0] sm:$0xff]  ;;  %v1295_v6 = vunpack.c.h.bf16 %v816_v58 }
 0x1a0   :  { %1494 = vmatpush2.msra.mxu1 %v1090_v23  ;;  %1424 = vmatprep.subr.mxu0 %v959_v28  ;;  %v696_v23 = vld [vmem:[#allocation3 + $0x330] sm:$0xff]  ;;  %v930_v28 = vunpack.c.l.bf16 %v634_v12  ;;  %v927_v33 = vunpack.c.h.bf16 %v632_v22 }
 0x1a1   :  { %1495 = vmatprep.subr.mxu1 %v1087_v30  ;;  %1425 = vmatpush2.msra.mxu0 %v958_v31  ;;  %v1058_v30 = vunpack.c.l.bf16 %v698_v15  ;;  %v630_v31 = vld [vmem:[#allocation3 + $0x120] sm:$0xff]  ;;  %v1055_v34 = vunpack.c.h.bf16 %v696_v23  ;;  %v1291_v15 = vunpack.c.h.bf16 %v814_v4 }
 0x1a2   :  { %1496 = vmatpush2.msra.mxu1 %v1086_v32  ;;  %1426 = vmatprep.subr.mxu0 %v955_v35  ;;  %v694_v32 = vld [vmem:[#allocation3 + $0x320] sm:$0xff]  ;;  %v926_v35 = vunpack.c.l.bf16 %v632_v22  ;;  %v923_v41 = vunpack.c.h.bf16 %v630_v31 }
 0x1a3   :  { %1497 = vmatprep.subr.mxu1 %v1083_v37  ;;  %1427 = vmatpush2.msra.mxu0 %v954_v39  ;;  %v1054_v37 = vunpack.c.l.bf16 %v696_v23  ;;  %v628_v39 = vld [vmem:[#allocation3 + $0x110] sm:$0xff]  ;;  %v1051_v42 = vunpack.c.h.bf16 %v694_v32 }
 0x1a4   :  { %1498 = vmatpush2.msra.mxu1 %v1082_v40  ;;  %1428 = vmatprep.subr.mxu0 %v951_v43  ;;  %v692_v40 = vld [vmem:[#allocation3 + $0x310] sm:$0xff]  ;;  %v922_v43 = vunpack.c.l.bf16 %v630_v31  ;;  %v919_v47 = vunpack.c.h.bf16 %v628_v39 }
 0x1a5   :  { %1499 = vmatprep.subr.mxu1 %v1079_v44  ;;  %1429 = vmatpush2.msra.mxu0 %v950_v45  ;;  %v1050_v44 = vunpack.c.l.bf16 %v694_v32  ;;  %v626_v45 = vld [vmem:[#allocation3 + $0x100] sm:$0xff]  ;;  %v1047_v48 = vunpack.c.h.bf16 %v692_v40 }
 0x1a6   :  { %1500 = vmatpush2.msra.mxu1 %v1078_v46  ;;  %1430 = vmatprep.subr.mxu0 %v947_v49  ;;  %v690_v46 = vld [vmem:[#allocation3 + $0x300] sm:$0xff]  ;;  %v918_v49 = vunpack.c.l.bf16 %v628_v39 }
 0x1a7   :  { %1501 = vmatprep.subr.mxu1 %v1075_v53  ;;  %1431 = vmatpush2.msra.mxu0 %v946_v55  ;;  %v1046_v53 = vunpack.c.l.bf16 %v692_v40  ;;  %v752_v55 = vld [vmem:[#allocation3 + $0x4f0] sm:$0xff]  ;;  %v1043_v57 = vunpack.c.h.bf16 %v690_v46 }
 0x1a8   :  { %1502 = vmatpush2.msra.mxu1 %v1074_v56  ;;  %1432 = vmatprep.subr.mxu0 %v943_v60  ;;  %v915_v56 = vunpack.c.h.bf16 %v626_v45  ;;  %v914_v60 = vunpack.c.l.bf16 %v626_v45 }
 0x1a9   :  { %1503 = vmatprep.subr.mxu1 %v1071_v61  ;;  %1433 = vmatpush2.msra.mxu0 %v942_v62  ;;  %v1042_v61 = vunpack.c.l.bf16 %v690_v46  ;;  %v1167_v62 = vunpack.c.h.bf16 %v752_v55 }
 0x1aa   :  { %1504 = vmatpush2.msra.mxu1 %v1070_v3  ;;  %1434 = vmatprep.subr.mxu0 %v939_v7  ;;  %v750_v3 = vld [vmem:[#allocation3 + $0x4e0] sm:$0xff]  ;;  %v1166_v7 = vunpack.c.l.bf16 %v752_v55 }
 0x1ab   :  { %1505 = vmatprep.subr.mxu1 %v1067_v8  ;;  %1435 = vmatpush2.msra.mxu0 %v938_v10  ;;  %v1294_v8 = vunpack.c.l.bf16 %v816_v58  ;;  %v748_v10 = vld [vmem:[#allocation3 + $0x4d0] sm:$0xff]  ;;  %v1163_v12 = vunpack.c.h.bf16 %v750_v3 }
 0x1ac   :  { %1506 = vmatpush2.msra.mxu1 %v1066_v11  ;;  %1436 = vmatprep.subr.mxu0 %v935_v16  ;;  %v812_v11 = vld [vmem:[#allocation3 + $0x6d0] sm:$0xff]  ;;  %v1162_v16 = vunpack.c.l.bf16 %v750_v3  ;;  %v1159_v22 = vunpack.c.h.bf16 %v748_v10 }
 0x1ad   :  { %1507 = vmatprep.subr.mxu1 %v1063_v18  ;;  %1437 = vmatpush2.msra.mxu0 %v934_v19  ;;  %v1290_v18 = vunpack.c.l.bf16 %v814_v4  ;;  %v746_v19 = vld [vmem:[#allocation3 + $0x4c0] sm:$0xff]  ;;  %v1287_v23 = vunpack.c.h.bf16 %v812_v11 }
 0x1ae   :  { %1508 = vmatpush2.msra.mxu1 %v1062_v20  ;;  %1438 = vmatprep.subr.mxu0 %v931_v24  ;;  %v810_v20 = vld [vmem:[#allocation3 + $0x6c0] sm:$0xff]  ;;  %v1158_v24 = vunpack.c.l.bf16 %v748_v10  ;;  %v1155_v31 = vunpack.c.h.bf16 %v746_v19 }
 0x1af   :  { %1509 = vmatprep.subr.mxu1 %v1059_v27  ;;  %1439 = vmatpush2.msra.mxu0 %v930_v28  ;;  %v1286_v27 = vunpack.c.l.bf16 %v812_v11  ;;  %v744_v28 = vld [vmem:[#allocation3 + $0x4b0] sm:$0xff]  ;;  %v1283_v32 = vunpack.c.h.bf16 %v810_v20 }
 0x1b0   :  { %1510 = vmatpush2.msra.mxu1 %v1058_v30  ;;  %1440 = vmatprep.subr.mxu0 %v927_v33  ;;  %v808_v30 = vld [vmem:[#allocation3 + $0x6b0] sm:$0xff]  ;;  %v1154_v33 = vunpack.c.l.bf16 %v746_v19  ;;  %v1151_v39 = vunpack.c.h.bf16 %v744_v28 }
 0x1b1   :  { %1511 = vmatprep.subr.mxu1 %v1055_v34  ;;  %1441 = vmatpush2.msra.mxu0 %v926_v35  ;;  %v1282_v34 = vunpack.c.l.bf16 %v810_v20  ;;  %v742_v35 = vld [vmem:[#allocation3 + $0x4a0] sm:$0xff]  ;;  %v1279_v40 = vunpack.c.h.bf16 %v808_v30 }
 0x1b2   :  { %1512 = vmatpush2.msra.mxu1 %v1054_v37  ;;  %1442 = vmatprep.subr.mxu0 %v923_v41  ;;  %v806_v37 = vld [vmem:[#allocation3 + $0x6a0] sm:$0xff]  ;;  %v1150_v41 = vunpack.c.l.bf16 %v744_v28  ;;  %v1147_v45 = vunpack.c.h.bf16 %v742_v35 }
 0x1b3   :  { %1513 = vmatprep.subr.mxu1 %v1051_v42  ;;  %1443 = vmatpush2.msra.mxu0 %v922_v43  ;;  %v1278_v42 = vunpack.c.l.bf16 %v808_v30  ;;  %v740_v43 = vld [vmem:[#allocation3 + $0x490] sm:$0xff]  ;;  %v1275_v46 = vunpack.c.h.bf16 %v806_v37 }
 0x1b4   :  { %1514 = vmatpush2.msra.mxu1 %v1050_v44  ;;  %1444 = vmatprep.subr.mxu0 %v919_v47  ;;  %v804_v44 = vld [vmem:[#allocation3 + $0x690] sm:$0xff]  ;;  %v1146_v47 = vunpack.c.l.bf16 %v742_v35  ;;  %v1143_v55 = vunpack.c.h.bf16 %v740_v43 }
 0x1b5   :  { %1515 = vmatprep.subr.mxu1 %v1047_v48  ;;  %1445 = vmatpush2.msra.mxu0 %v918_v49  ;;  %v1274_v48 = vunpack.c.l.bf16 %v806_v37  ;;  %v738_v49 = vld [vmem:[#allocation3 + $0x480] sm:$0xff]  ;;  %v1270_v58 = vunpack.c.l.bf16 %v804_v44 }
 0x1b6   :  { %1516 = vmatpush2.msra.mxu1 %v1046_v53  ;;  %1446 = vmatprep.subr.mxu0 %v915_v56  ;;  %v802_v53 = vld [vmem:[#allocation3 + $0x680] sm:$0xff]  ;;  %v1271_v56 = vunpack.c.h.bf16 %v804_v44  ;;  %v1138_v4 = vunpack.c.l.bf16 %v738_v49 }
 0x1b7   :  { %1517 = vmatprep.subr.mxu1 %v1043_v57  ;;  %1447 = vmatpush2.msra.mxu0 %v914_v60  ;;  %v1142_v57 = vunpack.c.l.bf16 %v740_v43  ;;  %v736_v60 = vld [vmem:[#allocation3 + $0x470] sm:$0xff]  ;;  %v1267_v3 = vunpack.c.h.bf16 %v802_v53 }
 0x1b8   :  { %1518 = vmatpush2.msra.mxu1 %v1042_v61  ;;  %1449 = vmatmul.mubr.f32.vlgmr.msra.gmra.mxu0 %v6209_v2  ;;  %v800_v61 = vld [vmem:[#allocation3 + $0x670] sm:$0xff]  ;;  %v1135_v10 = vunpack.c.h.bf16 %v736_v60 }
 0x1b9   :  { %1526 = vmatprep.subr.mxu0 %v1167_v62  ;;  %1597 = vmatprep.subr.mxu1 %v1295_v6  ;;  %v1139_v62 = vunpack.c.h.bf16 %v738_v49  ;;  %v1266_v6 = vunpack.c.l.bf16 %v802_v53  ;;  %v1263_v11 = vunpack.c.h.bf16 %v800_v61 }
 0x1ba   :  { %1520 = vmatmul.mubr.f32.vlgmr.msra.gmra.mxu1 %v6217_v14  ;;  %1527 = vmatpush1.msra.mxu0 %v1166_v7  ;;  %v734_v7 = vld [vmem:[#allocation3 + $0x460] sm:$0xff] }
 0x1bb   :  { %1598 = vmatpush1.msra.mxu1 %v1294_v8  ;;  %1528 = vmatprep.subr.mxu0 %v1163_v12  ;;  %v798_v8 = vld [vmem:[#allocation3 + $0x660] sm:$0xff]  ;;  %v1134_v12 = vunpack.c.l.bf16 %v736_v60  ;;  %v1131_v19 = vunpack.c.h.bf16 %v734_v7 }
 0x1bc   :  { %1599 = vmatprep.subr.mxu1 %v1291_v15  ;;  %1529 = vmatpush1.msra.mxu0 %v1162_v16  ;;  %v1262_v15 = vunpack.c.l.bf16 %v800_v61  ;;  %v732_v16 = vld [vmem:[#allocation3 + $0x450] sm:$0xff]  ;;  %v1259_v20 = vunpack.c.h.bf16 %v798_v8 }
 0x1bd   :  { %1600 = vmatpush1.msra.mxu1 %v1290_v18  ;;  %1530 = vmatprep.subr.mxu0 %v1159_v22  ;;  %v796_v18 = vld [vmem:[#allocation3 + $0x650] sm:$0xff]  ;;  %v1130_v22 = vunpack.c.l.bf16 %v734_v7  ;;  %v1127_v28 = vunpack.c.h.bf16 %v732_v16 }
 0x1be   :  { %1601 = vmatprep.subr.mxu1 %v1287_v23  ;;  %1531 = vmatpush1.msra.mxu0 %v1158_v24  ;;  %v1258_v23 = vunpack.c.l.bf16 %v798_v8  ;;  %v730_v24 = vld [vmem:[#allocation3 + $0x440] sm:$0xff]  ;;  %v1255_v30 = vunpack.c.h.bf16 %v796_v18 }
 0x1bf   :  { %1602 = vmatpush1.msra.mxu1 %v1286_v27  ;;  %1532 = vmatprep.subr.mxu0 %v1155_v31  ;;  %v794_v27 = vld [vmem:[#allocation3 + $0x640] sm:$0xff]  ;;  %v1126_v31 = vunpack.c.l.bf16 %v732_v16  ;;  %v1123_v35 = vunpack.c.h.bf16 %v730_v24 }
 0x1c0   :  { %1603 = vmatprep.subr.mxu1 %v1283_v32  ;;  %1533 = vmatpush1.msra.mxu0 %v1154_v33  ;;  %v1254_v32 = vunpack.c.l.bf16 %v796_v18  ;;  %v728_v33 = vld [vmem:[#allocation3 + $0x430] sm:$0xff]  ;;  %v1251_v37 = vunpack.c.h.bf16 %v794_v27 }
 0x1c1   :  { %1604 = vmatpush1.msra.mxu1 %v1282_v34  ;;  %1534 = vmatprep.subr.mxu0 %v1151_v39  ;;  %v792_v34 = vld [vmem:[#allocation3 + $0x630] sm:$0xff]  ;;  %v1122_v39 = vunpack.c.l.bf16 %v730_v24  ;;  %v1119_v43 = vunpack.c.h.bf16 %v728_v33 }
 0x1c2   :  { %1605 = vmatprep.subr.mxu1 %v1279_v40  ;;  %1535 = vmatpush1.msra.mxu0 %v1150_v41  ;;  %v1250_v40 = vunpack.c.l.bf16 %v794_v27  ;;  %v726_v41 = vld [vmem:[#allocation3 + $0x420] sm:$0xff]  ;;  %v1247_v44 = vunpack.c.h.bf16 %v792_v34 }
 0x1c3   :  { %1606 = vmatpush1.msra.mxu1 %v1278_v42  ;;  %1536 = vmatprep.subr.mxu0 %v1147_v45  ;;  %v790_v42 = vld [vmem:[#allocation3 + $0x620] sm:$0xff]  ;;  %v1118_v45 = vunpack.c.l.bf16 %v728_v33  ;;  %v1115_v49 = vunpack.c.h.bf16 %v726_v41 }
 0x1c4   :  { %1607 = vmatprep.subr.mxu1 %v1275_v46  ;;  %1537 = vmatpush1.msra.mxu0 %v1146_v47  ;;  %v1246_v46 = vunpack.c.l.bf16 %v792_v34  ;;  %v724_v47 = vld [vmem:[#allocation3 + $0x410] sm:$0xff]  ;;  %v1243_v53 = vunpack.c.h.bf16 %v790_v42 }
 0x1c5   :  { %1608 = vmatpush1.msra.mxu1 %v1274_v48  ;;  %1538 = vmatprep.subr.mxu0 %v1143_v55  ;;  %v788_v48 = vld [vmem:[#allocation3 + $0x610] sm:$0xff]  ;;  %v1114_v55 = vunpack.c.l.bf16 %v726_v41  ;;  %v1111_v60 = vunpack.c.h.bf16 %v724_v47 }
 0x1c6   :  { %1609 = vmatprep.subr.mxu1 %v1271_v56  ;;  %1539 = vmatpush1.msra.mxu0 %v1142_v57  ;;  %v1242_v56 = vunpack.c.l.bf16 %v790_v42  ;;  %v722_v57 = vld [vmem:[#allocation3 + $0x400] sm:$0xff]  ;;  %v1239_v61 = vunpack.c.h.bf16 %v788_v48 }
 0x1c7   :  { %1610 = vmatpush1.msra.mxu1 %v1270_v58  ;;  %1540 = vmatprep.subr.mxu0 %v1139_v62  ;;  %v786_v58 = vld [vmem:[#allocation3 + $0x600] sm:$0xff]  ;;  %v1110_v62 = vunpack.c.l.bf16 %v724_v47  ;;  %v1107_v7 = vunpack.c.h.bf16 %v722_v57 }
 0x1c8   :  { %1611 = vmatprep.subr.mxu1 %v1267_v3  ;;  %1541 = vmatpush1.msra.mxu0 %v1138_v4  ;;  %v1238_v3 = vunpack.c.l.bf16 %v788_v48  ;;  %v784_v4 = vld [vmem:[#allocation3 + $0x5f0] sm:$0xff]  ;;  %v1235_v8 = vunpack.c.h.bf16 %v786_v58 }
 0x1c9   :  { %1612 = vmatpush1.msra.mxu1 %v1266_v6  ;;  %1542 = vmatprep.subr.mxu0 %v1135_v10  ;;  %v848_v6 = vld [vmem:[#allocation3 + $0x7f0] sm:$0xff]  ;;  %v1106_v10 = vunpack.c.l.bf16 %v722_v57  ;;  %v1231_v16 = vunpack.c.h.bf16 %v784_v4 }
 0x1ca   :  { %1613 = vmatprep.subr.mxu1 %v1263_v11  ;;  %1543 = vmatpush1.msra.mxu0 %v1134_v12  ;;  %v1234_v11 = vunpack.c.l.bf16 %v786_v58  ;;  %v782_v12 = vld [vmem:[#allocation3 + $0x5e0] sm:$0xff]  ;;  %v1359_v18 = vunpack.c.h.bf16 %v848_v6 }
 0x1cb   :  { %1614 = vmatpush1.msra.mxu1 %v1262_v15  ;;  %1544 = vmatprep.subr.mxu0 %v1131_v19  ;;  %v846_v15 = vld [vmem:[#allocation3 + $0x7e0] sm:$0xff]  ;;  %v1230_v19 = vunpack.c.l.bf16 %v784_v4  ;;  %v1227_v24 = vunpack.c.h.bf16 %v782_v12 }
 0x1cc   :  { %1615 = vmatprep.subr.mxu1 %v1259_v20  ;;  %1545 = vmatpush1.msra.mxu0 %v1130_v22  ;;  %v1358_v20 = vunpack.c.l.bf16 %v848_v6  ;;  %v780_v22 = vld [vmem:[#allocation3 + $0x5d0] sm:$0xff]  ;;  %v1355_v27 = vunpack.c.h.bf16 %v846_v15 }
 0x1cd   :  { %1616 = vmatpush1.msra.mxu1 %v1258_v23  ;;  %1546 = vmatprep.subr.mxu0 %v1127_v28  ;;  %v844_v23 = vld [vmem:[#allocation3 + $0x7d0] sm:$0xff]  ;;  %v1226_v28 = vunpack.c.l.bf16 %v782_v12  ;;  %v1223_v33 = vunpack.c.h.bf16 %v780_v22 }
 0x1ce   :  { %1617 = vmatprep.subr.mxu1 %v1255_v30  ;;  %1547 = vmatpush1.msra.mxu0 %v1126_v31  ;;  %v1354_v30 = vunpack.c.l.bf16 %v846_v15  ;;  %v778_v31 = vld [vmem:[#allocation3 + $0x5c0] sm:$0xff]  ;;  %v1351_v34 = vunpack.c.h.bf16 %v844_v23 }
 0x1cf   :  { %1618 = vmatpush1.msra.mxu1 %v1254_v32  ;;  %1548 = vmatprep.subr.mxu0 %v1123_v35  ;;  %v842_v32 = vld [vmem:[#allocation3 + $0x7c0] sm:$0xff]  ;;  %v1222_v35 = vunpack.c.l.bf16 %v780_v22  ;;  %v1219_v41 = vunpack.c.h.bf16 %v778_v31 }
 0x1d0   :  { %1619 = vmatprep.subr.mxu1 %v1251_v37  ;;  %1549 = vmatpush1.msra.mxu0 %v1122_v39  ;;  %v1350_v37 = vunpack.c.l.bf16 %v844_v23  ;;  %v776_v39 = vld [vmem:[#allocation3 + $0x5b0] sm:$0xff]  ;;  %v1347_v42 = vunpack.c.h.bf16 %v842_v32 }
 0x1d1   :  { %1620 = vmatpush1.msra.mxu1 %v1250_v40  ;;  %1550 = vmatprep.subr.mxu0 %v1119_v43  ;;  %v840_v40 = vld [vmem:[#allocation3 + $0x7b0] sm:$0xff]  ;;  %v1218_v43 = vunpack.c.l.bf16 %v778_v31  ;;  %v1215_v47 = vunpack.c.h.bf16 %v776_v39 }
 0x1d2   :  { %1621 = vmatprep.subr.mxu1 %v1247_v44  ;;  %1551 = vmatpush1.msra.mxu0 %v1118_v45  ;;  %v1346_v44 = vunpack.c.l.bf16 %v842_v32  ;;  %v774_v45 = vld [vmem:[#allocation3 + $0x5a0] sm:$0xff]  ;;  %v1343_v48 = vunpack.c.h.bf16 %v840_v40 }
 0x1d3   :  { %1622 = vmatpush1.msra.mxu1 %v1246_v46  ;;  %1552 = vmatprep.subr.mxu0 %v1115_v49  ;;  %v838_v46 = vld [vmem:[#allocation3 + $0x7a0] sm:$0xff]  ;;  %v1214_v49 = vunpack.c.l.bf16 %v776_v39  ;;  %v1211_v57 = vunpack.c.h.bf16 %v774_v45 }
 0x1d4   :  { %1623 = vmatprep.subr.mxu1 %v1243_v53  ;;  %1553 = vmatpush1.msra.mxu0 %v1114_v55  ;;  %v1342_v53 = vunpack.c.l.bf16 %v840_v40  ;;  %v772_v55 = vld [vmem:[#allocation3 + $0x590] sm:$0xff]  ;;  %v1339_v58 = vunpack.c.h.bf16 %v838_v46 }
 0x1d5   :  { %1624 = vmatpush1.msra.mxu1 %v1242_v56  ;;  %1554 = vmatprep.subr.mxu0 %v1111_v60  ;;  %v836_v56 = vld [vmem:[#allocation3 + $0x790] sm:$0xff]  ;;  %v1210_v60 = vunpack.c.l.bf16 %v774_v45  ;;  %v1207_v4 = vunpack.c.h.bf16 %v772_v55 }
 0x1d6   :  { %1625 = vmatprep.subr.mxu1 %v1239_v61  ;;  %1555 = vmatpush1.msra.mxu0 %v1110_v62  ;;  %v1338_v61 = vunpack.c.l.bf16 %v838_v46  ;;  %v770_v62 = vld [vmem:[#allocation3 + $0x580] sm:$0xff]  ;;  %v1335_v6 = vunpack.c.h.bf16 %v836_v56 }
 0x1d7   :  { %1626 = vmatpush1.msra.mxu1 %v1238_v3  ;;  %1556 = vmatprep.subr.mxu0 %v1107_v7  ;;  %v834_v3 = vld [vmem:[#allocation3 + $0x780] sm:$0xff]  ;;  %v1206_v7 = vunpack.c.l.bf16 %v772_v55  ;;  %v1203_v12 = vunpack.c.h.bf16 %v770_v62 }
 0x1d8   :  { %1627 = vmatprep.subr.mxu1 %v1235_v8  ;;  %1557 = vmatpush1.msra.mxu0 %v1106_v10  ;;  %v1334_v8 = vunpack.c.l.bf16 %v836_v56  ;;  %v768_v10 = vld [vmem:[#allocation3 + $0x570] sm:$0xff]  ;;  %v1331_v15 = vunpack.c.h.bf16 %v834_v3 }
 0x1d9   :  { %1628 = vmatpush1.msra.mxu1 %v1234_v11  ;;  %1558 = vmatprep.subr.mxu0 %v1231_v16  ;;  %v832_v11 = vld [vmem:[#allocation3 + $0x770] sm:$0xff]  ;;  %v1202_v16 = vunpack.c.l.bf16 %v770_v62  ;;  %v1199_v22 = vunpack.c.h.bf16 %v768_v10 }
 0x1da   :  { %1629 = vmatprep.subr.mxu1 %v1359_v18  ;;  %1559 = vmatpush2.msra.mxu0 %v1230_v19  ;;  %v1330_v18 = vunpack.c.l.bf16 %v834_v3  ;;  %v766_v19 = vld [vmem:[#allocation3 + $0x560] sm:$0xff]  ;;  %v1327_v23 = vunpack.c.h.bf16 %v832_v11 }
 0x1db   :  { %1630 = vmatpush2.msra.mxu1 %v1358_v20  ;;  %1560 = vmatprep.subr.mxu0 %v1227_v24  ;;  %v830_v20 = vld [vmem:[#allocation3 + $0x760] sm:$0xff]  ;;  %v1198_v24 = vunpack.c.l.bf16 %v768_v10  ;;  %v1195_v31 = vunpack.c.h.bf16 %v766_v19 }
 0x1dc   :  { %1631 = vmatprep.subr.mxu1 %v1355_v27  ;;  %1561 = vmatpush2.msra.mxu0 %v1226_v28  ;;  %v1326_v27 = vunpack.c.l.bf16 %v832_v11  ;;  %v764_v28 = vld [vmem:[#allocation3 + $0x550] sm:$0xff]  ;;  %v1323_v32 = vunpack.c.h.bf16 %v830_v20 }
 0x1dd   :  { %1632 = vmatpush2.msra.mxu1 %v1354_v30  ;;  %1562 = vmatprep.subr.mxu0 %v1223_v33  ;;  %v828_v30 = vld [vmem:[#allocation3 + $0x750] sm:$0xff]  ;;  %v1194_v33 = vunpack.c.l.bf16 %v766_v19  ;;  %v1191_v39 = vunpack.c.h.bf16 %v764_v28  ;;  %v625_v19 = vld [vmem:[#allocation3 + $0xf8] sm:$0xff] }
 0x1de   :  { %1633 = vmatprep.subr.mxu1 %v1351_v34  ;;  %1563 = vmatpush2.msra.mxu0 %v1222_v35  ;;  %v1322_v34 = vunpack.c.l.bf16 %v830_v20  ;;  %v762_v35 = vld [vmem:[#allocation3 + $0x540] sm:$0xff]  ;;  %v1319_v40 = vunpack.c.h.bf16 %v828_v30 }
 0x1df   :  { %1634 = vmatpush2.msra.mxu1 %v1350_v37  ;;  %1564 = vmatprep.subr.mxu0 %v1219_v41  ;;  %v826_v37 = vld [vmem:[#allocation3 + $0x740] sm:$0xff]  ;;  %v1190_v41 = vunpack.c.l.bf16 %v764_v28  ;;  %v1187_v45 = vunpack.c.h.bf16 %v762_v35  ;;  %v687_v28 = vld [vmem:[#allocation3 + $0x2e8] sm:$0xff] }
 0x1e0   :  { %1635 = vmatprep.subr.mxu1 %v1347_v42  ;;  %1565 = vmatpush2.msra.mxu0 %v1218_v43  ;;  %v1318_v42 = vunpack.c.l.bf16 %v828_v30  ;;  %v760_v43 = vld [vmem:[#allocation3 + $0x530] sm:$0xff]  ;;  %v1315_v46 = vunpack.c.h.bf16 %v826_v37 }
 0x1e1   :  { %1636 = vmatpush2.msra.mxu1 %v1346_v44  ;;  %1566 = vmatprep.subr.mxu0 %v1215_v47  ;;  %v824_v44 = vld [vmem:[#allocation3 + $0x730] sm:$0xff]  ;;  %v1186_v47 = vunpack.c.l.bf16 %v762_v35  ;;  %v1183_v55 = vunpack.c.h.bf16 %v760_v43 }
 0x1e2   :  { %1637 = vmatprep.subr.mxu1 %v1343_v48  ;;  %1567 = vmatpush2.msra.mxu0 %v1214_v49  ;;  %v1314_v48 = vunpack.c.l.bf16 %v826_v37  ;;  %v758_v49 = vld [vmem:[#allocation3 + $0x520] sm:$0xff]  ;;  %v1311_v56 = vunpack.c.h.bf16 %v824_v44  ;;  %v1037_v37 = vunpack.c.h.bf16 %v687_v28 }
 0x1e3   :  { %1638 = vmatpush2.msra.mxu1 %v1342_v53  ;;  %1568 = vmatprep.subr.mxu0 %v1211_v57  ;;  %v822_v53 = vld [vmem:[#allocation3 + $0x720] sm:$0xff]  ;;  %v1182_v57 = vunpack.c.l.bf16 %v760_v43  ;;  %v1179_v62 = vunpack.c.h.bf16 %v758_v49 }
 0x1e4   :  { %1639 = vmatprep.subr.mxu1 %v1339_v58  ;;  %1569 = vmatpush2.msra.mxu0 %v1210_v60  ;;  %v1310_v58 = vunpack.c.l.bf16 %v824_v44  ;;  %v756_v60 = vld [vmem:[#allocation3 + $0x510] sm:$0xff]  ;;  %v1307_v3 = vunpack.c.h.bf16 %v822_v53 }
 0x1e5   :  { %1640 = vmatpush2.msra.mxu1 %v1338_v61  ;;  %1570 = vmatprep.subr.mxu0 %v1207_v4  ;;  %v820_v61 = vld [vmem:[#allocation3 + $0x710] sm:$0xff]  ;;  %v1178_v4 = vunpack.c.l.bf16 %v758_v49  ;;  %v1175_v10 = vunpack.c.h.bf16 %v756_v60 }
 0x1e6   :  { %1641 = vmatprep.subr.mxu1 %v1335_v6  ;;  %1571 = vmatpush2.msra.mxu0 %v1206_v7  ;;  %v1306_v6 = vunpack.c.l.bf16 %v822_v53  ;;  %v754_v7 = vld [vmem:[#allocation3 + $0x500] sm:$0xff]  ;;  %v1303_v11 = vunpack.c.h.bf16 %v820_v61 }
 0x1e7   :  { %1642 = vmatpush2.msra.mxu1 %v1334_v8  ;;  %1572 = vmatprep.subr.mxu0 %v1203_v12  ;;  %v818_v8 = vld [vmem:[#allocation3 + $0x700] sm:$0xff]  ;;  %v1174_v12 = vunpack.c.l.bf16 %v756_v60  ;;  %v1170_v20 = vunpack.c.l.bf16 %v754_v7 }
 0x1e8   :  { %1643 = vmatprep.subr.mxu1 %v1331_v15  ;;  %1573 = vmatpush2.msra.mxu0 %v1202_v16  ;;  %v1302_v15 = vunpack.c.l.bf16 %v820_v61  ;;  %v1171_v16 = vunpack.c.h.bf16 %v754_v7 }
 0x1e9   :  { %1644 = vmatpush2.msra.mxu1 %v1330_v18  ;;  %1574 = vmatprep.subr.mxu0 %v1199_v22  ;;  %v1299_v18 = vunpack.c.h.bf16 %v818_v8  ;;  %v689_v22 = vld [vmem:[#allocation3 + $0x2f8] sm:$0xff] }
 0x1ea   :  { %1645 = vmatprep.subr.mxu1 %v1327_v23  ;;  %1575 = vmatpush2.msra.mxu0 %v1198_v24  ;;  %v1298_v23 = vunpack.c.l.bf16 %v818_v8  ;;  %v913_v24 = vunpack.c.h.bf16 %v625_v19  ;;  %v1041_v30 = vunpack.c.h.bf16 %v689_v22 }
 0x1eb   :  { %1646 = vmatpush2.msra.mxu1 %v1326_v27  ;;  %1576 = vmatprep.subr.mxu0 %v1195_v31  ;;  %v623_v27 = vld [vmem:[#allocation3 + $0xe8] sm:$0xff]  ;;  %v912_v31 = vunpack.c.l.bf16 %v625_v19 }
 0x1ec   :  { %1647 = vmatprep.subr.mxu1 %v1323_v32  ;;  %1577 = vmatpush2.msra.mxu0 %v1194_v33  ;;  %v1040_v32 = vunpack.c.l.bf16 %v689_v22  ;;  %v621_v33 = vld [vmem:[#allocation3 + $0xd8] sm:$0xff]  ;;  %v909_v35 = vunpack.c.h.bf16 %v623_v27 }
 0x1ed   :  { %1648 = vmatpush2.msra.mxu1 %v1322_v34  ;;  %1578 = vmatprep.subr.mxu0 %v1191_v39  ;;  %v685_v34 = vld [vmem:[#allocation3 + $0x2d8] sm:$0xff]  ;;  %v908_v39 = vunpack.c.l.bf16 %v623_v27  ;;  %v905_v43 = vunpack.c.h.bf16 %v621_v33 }
 0x1ee   :  { %1649 = vmatprep.subr.mxu1 %v1319_v40  ;;  %1579 = vmatpush2.msra.mxu0 %v1190_v41  ;;  %v1036_v40 = vunpack.c.l.bf16 %v687_v28  ;;  %v619_v41 = vld [vmem:[#allocation3 + $0xc8] sm:$0xff]  ;;  %v1033_v44 = vunpack.c.h.bf16 %v685_v34  ;;  %v609_v22 = vld [vmem:[#allocation3 + $0x78] sm:$0xff] }
 0x1ef   :  { %1650 = vmatpush2.msra.mxu1 %v1318_v42  ;;  %1580 = vmatprep.subr.mxu0 %v1187_v45  ;;  %v683_v42 = vld [vmem:[#allocation3 + $0x2c8] sm:$0xff]  ;;  %v904_v45 = vunpack.c.l.bf16 %v621_v33  ;;  %v901_v49 = vunpack.c.h.bf16 %v619_v41  ;;  %v881_v33 = vunpack.c.h.bf16 %v609_v22 }
 0x1f0   :  { %1651 = vmatprep.subr.mxu1 %v1315_v46  ;;  %1581 = vmatpush2.msra.mxu0 %v1186_v47  ;;  %v1032_v46 = vunpack.c.l.bf16 %v685_v34  ;;  %v617_v47 = vld [vmem:[#allocation3 + $0xb8] sm:$0xff]  ;;  %v1029_v53 = vunpack.c.h.bf16 %v683_v42 }
 0x1f1   :  { %1652 = vmatpush2.msra.mxu1 %v1314_v48  ;;  %1582 = vmatprep.subr.mxu0 %v1183_v55  ;;  %v681_v48 = vld [vmem:[#allocation3 + $0x2b8] sm:$0xff]  ;;  %v900_v55 = vunpack.c.l.bf16 %v619_v41  ;;  %v897_v60 = vunpack.c.h.bf16 %v617_v47 }
 0x1f2   :  { %1653 = vmatprep.subr.mxu1 %v1311_v56  ;;  %1583 = vmatpush2.msra.mxu0 %v1182_v57  ;;  %v1028_v56 = vunpack.c.l.bf16 %v683_v42  ;;  %v615_v57 = vld [vmem:[#allocation3 + $0xa8] sm:$0xff]  ;;  %v1025_v61 = vunpack.c.h.bf16 %v681_v48 }
 0x1f3   :  { %1654 = vmatpush2.msra.mxu1 %v1310_v58  ;;  %1584 = vmatprep.subr.mxu0 %v1179_v62  ;;  %v679_v58 = vld [vmem:[#allocation3 + $0x2a8] sm:$0xff]  ;;  %v896_v62 = vunpack.c.l.bf16 %v617_v47  ;;  %v893_v7 = vunpack.c.h.bf16 %v615_v57 }
 0x1f4   :  { %1655 = vmatprep.subr.mxu1 %v1307_v3  ;;  %1585 = vmatpush2.msra.mxu0 %v1178_v4  ;;  %v1024_v3 = vunpack.c.l.bf16 %v681_v48  ;;  %v613_v4 = vld [vmem:[#allocation3 + $0x98] sm:$0xff]  ;;  %v1021_v8 = vunpack.c.h.bf16 %v679_v58 }
 0x1f5   :  { %1656 = vmatpush2.msra.mxu1 %v1306_v6  ;;  %1586 = vmatprep.subr.mxu0 %v1175_v10  ;;  %v677_v6 = vld [vmem:[#allocation3 + $0x298] sm:$0xff]  ;;  %v892_v10 = vunpack.c.l.bf16 %v615_v57  ;;  %v888_v19 = vunpack.c.l.bf16 %v613_v4 }
 0x1f6   :  { %1657 = vmatprep.subr.mxu1 %v1303_v11  ;;  %1587 = vmatpush2.msra.mxu0 %v1174_v12  ;;  %v1020_v11 = vunpack.c.l.bf16 %v679_v58  ;;  %v611_v12 = vld [vmem:[#allocation3 + $0x88] sm:$0xff] }
 0x1f7   :  { %1658 = vmatpush2.msra.mxu1 %v1302_v15  ;;  %1588 = vmatprep.subr.mxu0 %v1171_v16  ;;  %v675_v15 = vld [vmem:[#allocation3 + $0x288] sm:$0xff]  ;;  %v889_v16 = vunpack.c.h.bf16 %v613_v4  ;;  %v884_v28 = vunpack.c.l.bf16 %v611_v12 }
 0x1f8   :  { %1659 = vmatprep.subr.mxu1 %v1299_v18  ;;  %1589 = vmatpush2.msra.mxu0 %v1170_v20  ;;  %v1017_v18 = vunpack.c.h.bf16 %v677_v6  ;;  %v1016_v20 = vunpack.c.l.bf16 %v677_v6  ;;  %v1013_v27 = vunpack.c.h.bf16 %v675_v15 }
 0x1f9   :  { %1590 = vmatprep.mubr.f32.mxu0 %v6231_v29  ;;  %1660 = vmatpush2.msra.mxu1 %v1298_v23  ;;  %v673_v23 = vld [vmem:[#allocation3 + $0x278] sm:$0xff] }
 0x1fa   :  { %1591 = vmatmul.mubr.f32.vlgmr.msra.gmra.mxu0 %v6227_v26  ;;  %1661 = vmatprep.mubr.f32.mxu1 %v6237_v38  ;;  %v1009_v34 = vunpack.c.h.bf16 %v673_v23 }
 0x1fb   :  { %1668 = vmatprep.subr.mxu0 %v913_v24  ;;  %1739 = vmatprep.subr.mxu1 %v1041_v30  ;;  %v885_v24 = vunpack.c.h.bf16 %v611_v12  ;;  %v1012_v30 = vunpack.c.l.bf16 %v675_v15 }
 0x1fc   :  { %1662 = vmatmul.mubr.f32.vlgmr.msra.gmra.mxu1 %v6235_v36  ;;  %1669 = vmatpush1.msra.mxu0 %v912_v31  ;;  %v607_v31 = vld [vmem:[#allocation3 + $0x68] sm:$0xff] }
 0x1fd   :  { %1740 = vmatpush1.msra.mxu1 %v1040_v32  ;;  %1670 = vmatprep.subr.mxu0 %v909_v35  ;;  %v671_v32 = vld [vmem:[#allocation3 + $0x268] sm:$0xff]  ;;  %v880_v35 = vunpack.c.l.bf16 %v609_v22  ;;  %v877_v41 = vunpack.c.h.bf16 %v607_v31 }
 0x1fe   :  { %1741 = vmatprep.subr.mxu1 %v1037_v37  ;;  %1671 = vmatpush1.msra.mxu0 %v908_v39  ;;  %v1008_v37 = vunpack.c.l.bf16 %v673_v23  ;;  %v605_v39 = vld [vmem:[#allocation3 + $0x58] sm:$0xff]  ;;  %v1005_v42 = vunpack.c.h.bf16 %v671_v32 }
 0x1ff   :  { %1742 = vmatpush1.msra.mxu1 %v1036_v40  ;;  %1672 = vmatprep.subr.mxu0 %v905_v43  ;;  %v669_v40 = vld [vmem:[#allocation3 + $0x258] sm:$0xff]  ;;  %v876_v43 = vunpack.c.l.bf16 %v607_v31  ;;  %v873_v47 = vunpack.c.h.bf16 %v605_v39 }
 0x200   :  { %1743 = vmatprep.subr.mxu1 %v1033_v44  ;;  %1673 = vmatpush1.msra.mxu0 %v904_v45  ;;  %v1004_v44 = vunpack.c.l.bf16 %v671_v32  ;;  %v603_v45 = vld [vmem:[#allocation3 + $0x48] sm:$0xff]  ;;  %v1001_v48 = vunpack.c.h.bf16 %v669_v40 }
 0x201   :  { %1744 = vmatpush1.msra.mxu1 %v1032_v46  ;;  %1674 = vmatprep.subr.mxu0 %v901_v49  ;;  %v667_v46 = vld [vmem:[#allocation3 + $0x248] sm:$0xff]  ;;  %v872_v49 = vunpack.c.l.bf16 %v605_v39  ;;  %v869_v57 = vunpack.c.h.bf16 %v603_v45 }
 0x202   :  { %1745 = vmatprep.subr.mxu1 %v1029_v53  ;;  %1675 = vmatpush1.msra.mxu0 %v900_v55  ;;  %v1000_v53 = vunpack.c.l.bf16 %v669_v40  ;;  %v601_v55 = vld [vmem:[#allocation3 + $0x38] sm:$0xff]  ;;  %v997_v58 = vunpack.c.h.bf16 %v667_v46 }
 0x203   :  { %1746 = vmatpush1.msra.mxu1 %v1028_v56  ;;  %1676 = vmatprep.subr.mxu0 %v897_v60  ;;  %v665_v56 = vld [vmem:[#allocation3 + $0x238] sm:$0xff]  ;;  %v868_v60 = vunpack.c.l.bf16 %v603_v45  ;;  %v865_v4 = vunpack.c.h.bf16 %v601_v55 }
 0x204   :  { %1747 = vmatprep.subr.mxu1 %v1025_v61  ;;  %1677 = vmatpush1.msra.mxu0 %v896_v62  ;;  %v996_v61 = vunpack.c.l.bf16 %v667_v46  ;;  %v599_v62 = vld [vmem:[#allocation3 + $0x28] sm:$0xff]  ;;  %v993_v6 = vunpack.c.h.bf16 %v665_v56 }
 0x205   :  { %1748 = vmatpush1.msra.mxu1 %v1024_v3  ;;  %1678 = vmatprep.subr.mxu0 %v893_v7  ;;  %v663_v3 = vld [vmem:[#allocation3 + $0x228] sm:$0xff]  ;;  %v864_v7 = vunpack.c.l.bf16 %v601_v55  ;;  %v861_v12 = vunpack.c.h.bf16 %v599_v62 }
 0x206   :  { %1749 = vmatprep.subr.mxu1 %v1021_v8  ;;  %1679 = vmatpush1.msra.mxu0 %v892_v10  ;;  %v992_v8 = vunpack.c.l.bf16 %v665_v56  ;;  %v597_v10 = vld [vmem:[#allocation3 + $0x18] sm:$0xff]  ;;  %v989_v15 = vunpack.c.h.bf16 %v663_v3 }
 0x207   :  { %1750 = vmatpush1.msra.mxu1 %v1020_v11  ;;  %1680 = vmatprep.subr.mxu0 %v889_v16  ;;  %v661_v11 = vld [vmem:[#allocation3 + $0x218] sm:$0xff]  ;;  %v860_v16 = vunpack.c.l.bf16 %v599_v62  ;;  %v857_v22 = vunpack.c.h.bf16 %v597_v10 }
 0x208   :  { %1751 = vmatprep.subr.mxu1 %v1017_v18  ;;  %1681 = vmatpush1.msra.mxu0 %v888_v19  ;;  %v988_v18 = vunpack.c.l.bf16 %v663_v3  ;;  %v595_v19 = vld [vmem:[#allocation3 + $0x8] sm:$0xff]  ;;  %v985_v23 = vunpack.c.h.bf16 %v661_v11 }
 0x209   :  { %1752 = vmatpush1.msra.mxu1 %v1016_v20  ;;  %1682 = vmatprep.subr.mxu0 %v885_v24  ;;  %v659_v20 = vld [vmem:[#allocation3 + $0x208] sm:$0xff]  ;;  %v856_v24 = vunpack.c.l.bf16 %v597_v10  ;;  %v853_v31 = vunpack.c.h.bf16 %v595_v19 }
 0x20a   :  { %1753 = vmatprep.subr.mxu1 %v1013_v27  ;;  %1683 = vmatpush1.msra.mxu0 %v884_v28  ;;  %v984_v27 = vunpack.c.l.bf16 %v661_v11  ;;  %v657_v28 = vld [vmem:[#allocation3 + $0x1f8] sm:$0xff]  ;;  %v981_v32 = vunpack.c.h.bf16 %v659_v20 }
 0x20b   :  { %1754 = vmatpush1.msra.mxu1 %v1012_v30  ;;  %1684 = vmatprep.subr.mxu0 %v881_v33  ;;  %v721_v30 = vld [vmem:[#allocation3 + $0x3f8] sm:$0xff]  ;;  %v852_v33 = vunpack.c.l.bf16 %v595_v19  ;;  %v977_v39 = vunpack.c.h.bf16 %v657_v28 }
 0x20c   :  { %1755 = vmatprep.subr.mxu1 %v1009_v34  ;;  %1685 = vmatpush1.msra.mxu0 %v880_v35  ;;  %v980_v34 = vunpack.c.l.bf16 %v659_v20  ;;  %v655_v35 = vld [vmem:[#allocation3 + $0x1e8] sm:$0xff]  ;;  %v1105_v40 = vunpack.c.h.bf16 %v721_v30 }
 0x20d   :  { %1756 = vmatpush1.msra.mxu1 %v1008_v37  ;;  %1686 = vmatprep.subr.mxu0 %v877_v41  ;;  %v719_v37 = vld [vmem:[#allocation3 + $0x3e8] sm:$0xff]  ;;  %v976_v41 = vunpack.c.l.bf16 %v657_v28  ;;  %v973_v45 = vunpack.c.h.bf16 %v655_v35 }
 0x20e   :  { %1757 = vmatprep.subr.mxu1 %v1005_v42  ;;  %1687 = vmatpush1.msra.mxu0 %v876_v43  ;;  %v1104_v42 = vunpack.c.l.bf16 %v721_v30  ;;  %v653_v43 = vld [vmem:[#allocation3 + $0x1d8] sm:$0xff]  ;;  %v1101_v46 = vunpack.c.h.bf16 %v719_v37 }
 0x20f   :  { %1758 = vmatpush1.msra.mxu1 %v1004_v44  ;;  %1688 = vmatprep.subr.mxu0 %v873_v47  ;;  %v717_v44 = vld [vmem:[#allocation3 + $0x3d8] sm:$0xff]  ;;  %v972_v47 = vunpack.c.l.bf16 %v655_v35  ;;  %v969_v55 = vunpack.c.h.bf16 %v653_v43 }
 0x210   :  { %1759 = vmatprep.subr.mxu1 %v1001_v48  ;;  %1689 = vmatpush1.msra.mxu0 %v872_v49  ;;  %v1100_v48 = vunpack.c.l.bf16 %v719_v37  ;;  %v651_v49 = vld [vmem:[#allocation3 + $0x1c8] sm:$0xff]  ;;  %v1097_v56 = vunpack.c.h.bf16 %v717_v44 }
 0x211   :  { %1760 = vmatpush1.msra.mxu1 %v1000_v53  ;;  %1690 = vmatprep.subr.mxu0 %v869_v57  ;;  %v715_v53 = vld [vmem:[#allocation3 + $0x3c8] sm:$0xff]  ;;  %v968_v57 = vunpack.c.l.bf16 %v653_v43  ;;  %v965_v62 = vunpack.c.h.bf16 %v651_v49 }
 0x212   :  { %1761 = vmatprep.subr.mxu1 %v997_v58  ;;  %1691 = vmatpush1.msra.mxu0 %v868_v60  ;;  %v1096_v58 = vunpack.c.l.bf16 %v717_v44  ;;  %v649_v60 = vld [vmem:[#allocation3 + $0x1b8] sm:$0xff]  ;;  %v1093_v3 = vunpack.c.h.bf16 %v715_v53 }
 0x213   :  { %1762 = vmatpush1.msra.mxu1 %v996_v61  ;;  %1692 = vmatprep.subr.mxu0 %v865_v4  ;;  %v713_v61 = vld [vmem:[#allocation3 + $0x3b8] sm:$0xff]  ;;  %v964_v4 = vunpack.c.l.bf16 %v651_v49  ;;  %v961_v10 = vunpack.c.h.bf16 %v649_v60 }
 0x214   :  { %1763 = vmatprep.subr.mxu1 %v993_v6  ;;  %1693 = vmatpush1.msra.mxu0 %v864_v7  ;;  %v1092_v6 = vunpack.c.l.bf16 %v715_v53  ;;  %v647_v7 = vld [vmem:[#allocation3 + $0x1a8] sm:$0xff]  ;;  %v1089_v11 = vunpack.c.h.bf16 %v713_v61 }
 0x215   :  { %1764 = vmatpush1.msra.mxu1 %v992_v8  ;;  %1694 = vmatprep.subr.mxu0 %v861_v12  ;;  %v711_v8 = vld [vmem:[#allocation3 + $0x3a8] sm:$0xff]  ;;  %v960_v12 = vunpack.c.l.bf16 %v649_v60  ;;  %v957_v19 = vunpack.c.h.bf16 %v647_v7 }
 0x216   :  { %1765 = vmatprep.subr.mxu1 %v989_v15  ;;  %1695 = vmatpush1.msra.mxu0 %v860_v16  ;;  %v1088_v15 = vunpack.c.l.bf16 %v713_v61  ;;  %v645_v16 = vld [vmem:[#allocation3 + $0x198] sm:$0xff]  ;;  %v1085_v20 = vunpack.c.h.bf16 %v711_v8 }
 0x217   :  { %1766 = vmatpush1.msra.mxu1 %v988_v18  ;;  %1696 = vmatprep.subr.mxu0 %v857_v22  ;;  %v709_v18 = vld [vmem:[#allocation3 + $0x398] sm:$0xff]  ;;  %v956_v22 = vunpack.c.l.bf16 %v647_v7  ;;  %v953_v28 = vunpack.c.h.bf16 %v645_v16 }
 0x218   :  { %1767 = vmatprep.subr.mxu1 %v985_v23  ;;  %1697 = vmatpush1.msra.mxu0 %v856_v24  ;;  %v1084_v23 = vunpack.c.l.bf16 %v711_v8  ;;  %v643_v24 = vld [vmem:[#allocation3 + $0x188] sm:$0xff]  ;;  %v1081_v30 = vunpack.c.h.bf16 %v709_v18 }
 0x219   :  { %1768 = vmatpush1.msra.mxu1 %v984_v27  ;;  %1698 = vmatprep.subr.mxu0 %v853_v31  ;;  %v707_v27 = vld [vmem:[#allocation3 + $0x388] sm:$0xff]  ;;  %v952_v31 = vunpack.c.l.bf16 %v645_v16  ;;  %v949_v35 = vunpack.c.h.bf16 %v643_v24 }
 0x21a   :  { %1769 = vmatprep.subr.mxu1 %v981_v32  ;;  %1699 = vmatpush1.msra.mxu0 %v852_v33  ;;  %v1080_v32 = vunpack.c.l.bf16 %v709_v18  ;;  %v641_v33 = vld [vmem:[#allocation3 + $0x178] sm:$0xff]  ;;  %v1077_v37 = vunpack.c.h.bf16 %v707_v27 }
 0x21b   :  { %1770 = vmatpush1.msra.mxu1 %v980_v34  ;;  %1700 = vmatprep.subr.mxu0 %v977_v39  ;;  %v705_v34 = vld [vmem:[#allocation3 + $0x378] sm:$0xff]  ;;  %v948_v39 = vunpack.c.l.bf16 %v643_v24  ;;  %v945_v43 = vunpack.c.h.bf16 %v641_v33 }
 0x21c   :  { %1771 = vmatprep.subr.mxu1 %v1105_v40  ;;  %1701 = vmatpush2.msra.mxu0 %v976_v41  ;;  %v1076_v40 = vunpack.c.l.bf16 %v707_v27  ;;  %v639_v41 = vld [vmem:[#allocation3 + $0x168] sm:$0xff]  ;;  %v1073_v44 = vunpack.c.h.bf16 %v705_v34 }
 0x21d   :  { %1772 = vmatpush2.msra.mxu1 %v1104_v42  ;;  %1702 = vmatprep.subr.mxu0 %v973_v45  ;;  %v703_v42 = vld [vmem:[#allocation3 + $0x368] sm:$0xff]  ;;  %v944_v45 = vunpack.c.l.bf16 %v641_v33  ;;  %v941_v49 = vunpack.c.h.bf16 %v639_v41 }
 0x21e   :  { %1773 = vmatprep.subr.mxu1 %v1101_v46  ;;  %1703 = vmatpush2.msra.mxu0 %v972_v47  ;;  %v1072_v46 = vunpack.c.l.bf16 %v705_v34  ;;  %v637_v47 = vld [vmem:[#allocation3 + $0x158] sm:$0xff]  ;;  %v1069_v53 = vunpack.c.h.bf16 %v703_v42 }
 0x21f   :  { %1774 = vmatpush2.msra.mxu1 %v1100_v48  ;;  %1704 = vmatprep.subr.mxu0 %v969_v55  ;;  %v701_v48 = vld [vmem:[#allocation3 + $0x358] sm:$0xff]  ;;  %v940_v55 = vunpack.c.l.bf16 %v639_v41  ;;  %v937_v60 = vunpack.c.h.bf16 %v637_v47 }
 0x220   :  { %1775 = vmatprep.subr.mxu1 %v1097_v56  ;;  %1705 = vmatpush2.msra.mxu0 %v968_v57  ;;  %v1068_v56 = vunpack.c.l.bf16 %v703_v42  ;;  %v635_v57 = vld [vmem:[#allocation3 + $0x148] sm:$0xff]  ;;  %v1065_v61 = vunpack.c.h.bf16 %v701_v48  ;;  %v753_v41 = vld [vmem:[#allocation3 + $0x4f8] sm:$0xff] }
 0x221   :  { %1776 = vmatpush2.msra.mxu1 %v1096_v58  ;;  %1706 = vmatprep.subr.mxu0 %v965_v62  ;;  %v699_v58 = vld [vmem:[#allocation3 + $0x348] sm:$0xff]  ;;  %v936_v62 = vunpack.c.l.bf16 %v637_v47  ;;  %v933_v7 = vunpack.c.h.bf16 %v635_v57 }
 0x222   :  { %1777 = vmatprep.subr.mxu1 %v1093_v3  ;;  %1707 = vmatpush2.msra.mxu0 %v964_v4  ;;  %v1064_v3 = vunpack.c.l.bf16 %v701_v48  ;;  %v633_v4 = vld [vmem:[#allocation3 + $0x138] sm:$0xff]  ;;  %v1061_v8 = vunpack.c.h.bf16 %v699_v58  ;;  %v815_v47 = vld [vmem:[#allocation3 + $0x6e8] sm:$0xff] }
 0x223   :  { %1778 = vmatpush2.msra.mxu1 %v1092_v6  ;;  %1708 = vmatprep.subr.mxu0 %v961_v10  ;;  %v697_v6 = vld [vmem:[#allocation3 + $0x338] sm:$0xff]  ;;  %v932_v10 = vunpack.c.l.bf16 %v635_v57  ;;  %v929_v16 = vunpack.c.h.bf16 %v633_v4 }
 0x224   :  { %1779 = vmatprep.subr.mxu1 %v1089_v11  ;;  %1709 = vmatpush2.msra.mxu0 %v960_v12  ;;  %v1060_v11 = vunpack.c.l.bf16 %v699_v58  ;;  %v631_v12 = vld [vmem:[#allocation3 + $0x128] sm:$0xff]  ;;  %v1057_v18 = vunpack.c.h.bf16 %v697_v6  ;;  %v1293_v58 = vunpack.c.h.bf16 %v815_v47 }
 0x225   :  { %1780 = vmatpush2.msra.mxu1 %v1088_v15  ;;  %1710 = vmatprep.subr.mxu0 %v957_v19  ;;  %v695_v15 = vld [vmem:[#allocation3 + $0x328] sm:$0xff]  ;;  %v928_v19 = vunpack.c.l.bf16 %v633_v4  ;;  %v925_v24 = vunpack.c.h.bf16 %v631_v12 }
 0x226   :  { %1781 = vmatprep.subr.mxu1 %v1085_v20  ;;  %1711 = vmatpush2.msra.mxu0 %v956_v22  ;;  %v1056_v20 = vunpack.c.l.bf16 %v697_v6  ;;  %v629_v22 = vld [vmem:[#allocation3 + $0x118] sm:$0xff]  ;;  %v1053_v27 = vunpack.c.h.bf16 %v695_v15 }
 0x227   :  { %1782 = vmatpush2.msra.mxu1 %v1084_v23  ;;  %1712 = vmatprep.subr.mxu0 %v953_v28  ;;  %v693_v23 = vld [vmem:[#allocation3 + $0x318] sm:$0xff]  ;;  %v924_v28 = vunpack.c.l.bf16 %v631_v12  ;;  %v921_v33 = vunpack.c.h.bf16 %v629_v22 }
 0x228   :  { %1783 = vmatprep.subr.mxu1 %v1081_v30  ;;  %1713 = vmatpush2.msra.mxu0 %v952_v31  ;;  %v1052_v30 = vunpack.c.l.bf16 %v695_v15  ;;  %v627_v31 = vld [vmem:[#allocation3 + $0x108] sm:$0xff]  ;;  %v1049_v34 = vunpack.c.h.bf16 %v693_v23 }
 0x229   :  { %1784 = vmatpush2.msra.mxu1 %v1080_v32  ;;  %1714 = vmatprep.subr.mxu0 %v949_v35  ;;  %v691_v32 = vld [vmem:[#allocation3 + $0x308] sm:$0xff]  ;;  %v920_v35 = vunpack.c.l.bf16 %v629_v22  ;;  %v916_v42 = vunpack.c.l.bf16 %v627_v31  ;;  %v741_v22 = vld [vmem:[#allocation3 + $0x498] sm:$0xff] }
 0x22a   :  { %1785 = vmatprep.subr.mxu1 %v1077_v37  ;;  %1715 = vmatpush2.msra.mxu0 %v948_v39  ;;  %v1048_v37 = vunpack.c.l.bf16 %v693_v23  ;;  %v917_v39 = vunpack.c.h.bf16 %v627_v31  ;;  %v743_v15 = vld [vmem:[#allocation3 + $0x4a8] sm:$0xff]  ;;  %v805_v23 = vld [vmem:[#allocation3 + $0x698] sm:$0xff] }
 0x22b   :  { %1786 = vmatpush2.msra.mxu1 %v1076_v40  ;;  %1716 = vmatprep.subr.mxu0 %v945_v43  ;;  %v1045_v40 = vunpack.c.h.bf16 %v691_v32  ;;  %v817_v43 = vld [vmem:[#allocation3 + $0x6f8] sm:$0xff]  ;;  %v739_v31 = vld [vmem:[#allocation3 + $0x488] sm:$0xff] }
 0x22c   :  { %1787 = vmatprep.subr.mxu1 %v1073_v44  ;;  %1717 = vmatpush2.msra.mxu0 %v944_v45  ;;  %v1044_v44 = vunpack.c.l.bf16 %v691_v32  ;;  %v1169_v45 = vunpack.c.h.bf16 %v753_v41  ;;  %v1297_v48 = vunpack.c.h.bf16 %v817_v43  ;;  %v803_v32 = vld [vmem:[#allocation3 + $0x688] sm:$0xff] }
 0x22d   :  { %1788 = vmatpush2.msra.mxu1 %v1072_v46  ;;  %1718 = vmatprep.subr.mxu0 %v941_v49  ;;  %v751_v46 = vld [vmem:[#allocation3 + $0x4e8] sm:$0xff]  ;;  %v1168_v49 = vunpack.c.l.bf16 %v753_v41  ;;  %v1141_v41 = vunpack.c.h.bf16 %v739_v31 }
 0x22e   :  { %1789 = vmatprep.subr.mxu1 %v1069_v53  ;;  %1719 = vmatpush2.msra.mxu0 %v940_v55  ;;  %v1296_v53 = vunpack.c.l.bf16 %v817_v43  ;;  %v749_v55 = vld [vmem:[#allocation3 + $0x4d8] sm:$0xff]  ;;  %v1165_v57 = vunpack.c.h.bf16 %v751_v46  ;;  %v1140_v43 = vunpack.c.l.bf16 %v739_v31  ;;  %v723_v31 = vld [vmem:[#allocation3 + $0x408] sm:$0xff] }
 0x22f   :  { %1790 = vmatpush2.msra.mxu1 %v1068_v56  ;;  %1720 = vmatprep.subr.mxu0 %v937_v60  ;;  %v813_v56 = vld [vmem:[#allocation3 + $0x6d8] sm:$0xff]  ;;  %v1164_v60 = vunpack.c.l.bf16 %v751_v46  ;;  %v1160_v6 = vunpack.c.l.bf16 %v749_v55  ;;  %v799_v46 = vld [vmem:[#allocation3 + $0x668] sm:$0xff] }
 0x230   :  { %1791 = vmatprep.subr.mxu1 %v1065_v61  ;;  %1721 = vmatpush2.msra.mxu0 %v936_v62  ;;  %v1292_v61 = vunpack.c.l.bf16 %v815_v47  ;;  %v747_v62 = vld [vmem:[#allocation3 + $0x4c8] sm:$0xff]  ;;  %v1289_v4 = vunpack.c.h.bf16 %v813_v56 }
 0x231   :  { %1792 = vmatpush2.msra.mxu1 %v1064_v3  ;;  %1722 = vmatprep.subr.mxu0 %v933_v7  ;;  %v811_v3 = vld [vmem:[#allocation3 + $0x6c8] sm:$0xff]  ;;  %v1288_v7 = vunpack.c.l.bf16 %v813_v56  ;;  %v797_v56 = vld [vmem:[#allocation3 + $0x658] sm:$0xff] }
 0x232   :  { %1793 = vmatprep.subr.mxu1 %v1061_v8  ;;  %1723 = vmatpush2.msra.mxu0 %v932_v10  ;;  %v745_v8 = vld [vmem:[#allocation3 + $0x4b8] sm:$0xff]  ;;  %v1157_v10 = vunpack.c.h.bf16 %v747_v62  ;;  %v1284_v12 = vunpack.c.l.bf16 %v811_v3 }
 0x233   :  { %1794 = vmatpush2.msra.mxu1 %v1060_v11  ;;  %1724 = vmatprep.subr.mxu0 %v929_v16  ;;  %v1156_v11 = vunpack.c.l.bf16 %v747_v62  ;;  %v807_v16 = vld [vmem:[#allocation3 + $0x6a8] sm:$0xff] }
 0x234   :  { %1795 = vmatprep.subr.mxu1 %v1057_v18  ;;  %1725 = vmatpush2.msra.mxu0 %v928_v19  ;;  %v1152_v19 = vunpack.c.l.bf16 %v745_v8  ;;  %v731_v62 = vld [vmem:[#allocation3 + $0x448] sm:$0xff] }
 0x235   :  { %1796 = vmatpush2.msra.mxu1 %v1056_v20  ;;  %1726 = vmatprep.subr.mxu0 %v925_v24  ;;  %v1149_v24 = vunpack.c.h.bf16 %v743_v15 }
 0x236   :  { %1797 = vmatprep.subr.mxu1 %v1053_v27  ;;  %1727 = vmatpush2.msra.mxu0 %v924_v28  ;;  %v1277_v27 = vunpack.c.h.bf16 %v807_v16  ;;  %v1148_v28 = vunpack.c.l.bf16 %v743_v15  ;;  %v727_v15 = vld [vmem:[#allocation3 + $0x428] sm:$0xff] }
 0x237   :  { %1798 = vmatpush2.msra.mxu1 %v1052_v30  ;;  %1728 = vmatprep.subr.mxu0 %v921_v33  ;;  %v1276_v30 = vunpack.c.l.bf16 %v807_v16  ;;  %v1145_v33 = vunpack.c.h.bf16 %v741_v22  ;;  %v791_v16 = vld [vmem:[#allocation3 + $0x628] sm:$0xff] }
 0x238   :  { %1799 = vmatprep.subr.mxu1 %v1049_v34  ;;  %1729 = vmatpush2.msra.mxu0 %v920_v35  ;;  %v1273_v34 = vunpack.c.h.bf16 %v805_v23  ;;  %v1144_v35 = vunpack.c.l.bf16 %v741_v22  ;;  %v725_v22 = vld [vmem:[#allocation3 + $0x418] sm:$0xff] }
 0x239   :  { %1800 = vmatpush2.msra.mxu1 %v1048_v37  ;;  %1730 = vmatprep.subr.mxu0 %v917_v39  ;;  %v1272_v37 = vunpack.c.l.bf16 %v805_v23  ;;  %v737_v39 = vld [vmem:[#allocation3 + $0x478] sm:$0xff] }
 0x23a   :  { %1801 = vmatprep.subr.mxu1 %v1045_v40  ;;  %1731 = vmatpush2.msra.mxu0 %v916_v42  ;;  %v801_v40 = vld [vmem:[#allocation3 + $0x678] sm:$0xff]  ;;  %v1269_v42 = vunpack.c.h.bf16 %v803_v32  ;;  %v1137_v47 = vunpack.c.h.bf16 %v737_v39 }
 0x23b   :  { %1732 = vmatprep.mubr.f32.mxu0 %v6212_v5  ;;  %1802 = vmatpush2.msra.mxu1 %v1044_v44  ;;  %v1161_v5 = vunpack.c.h.bf16 %v749_v55  ;;  %v1268_v44 = vunpack.c.l.bf16 %v803_v32  ;;  %v733_v55 = vld [vmem:[#allocation3 + $0x458] sm:$0xff]  ;;  %v787_v32 = vld [vmem:[#allocation3 + $0x608] sm:$0xff] }
 0x23c   :  { %1733 = vmatmul.mubr.f32.vlgmr.msra.gmra.mxu0 %v6209_v2  ;;  %1803 = vmatprep.mubr.f32.mxu1 %v6221_v17  ;;  %v809_v2 = vld [vmem:[#allocation3 + $0x6b8] sm:$0xff]  ;;  %v1285_v17 = vunpack.c.h.bf16 %v811_v3  ;;  %v795_v3 = vld [vmem:[#allocation3 + $0x648] sm:$0xff] }
 0x23d   :  { %1810 = vmatprep.subr.mxu0 %v1169_v45  ;;  %1881 = vmatprep.subr.mxu1 %v1297_v48  ;;  %v1281_v18 = vunpack.c.h.bf16 %v809_v2  ;;  %v1280_v20 = vunpack.c.l.bf16 %v809_v2  ;;  %v735_v45 = vld [vmem:[#allocation3 + $0x468] sm:$0xff]  ;;  %v1265_v48 = vunpack.c.h.bf16 %v801_v40  ;;  %v793_v2 = vld [vmem:[#allocation3 + $0x638] sm:$0xff] }
 0x23e   :  { %1804 = vmatmul.mubr.f32.vlgmr.msra.gmra.mxu1 %v6217_v14  ;;  %1811 = vmatpush1.msra.mxu0 %v1168_v49  ;;  %v1153_v14 = vunpack.c.h.bf16 %v745_v8  ;;  %v1136_v49 = vunpack.c.l.bf16 %v737_v39  ;;  %v729_v8 = vld [vmem:[#allocation3 + $0x438] sm:$0xff] }
 0x23f   :  { %1882 = vmatpush1.msra.mxu1 %v1296_v53  ;;  %1812 = vmatprep.subr.mxu0 %v1165_v57  ;;  %v1264_v53 = vunpack.c.l.bf16 %v801_v40  ;;  %v1133_v57 = vunpack.c.h.bf16 %v735_v45  ;;  %v789_v23 = vld [vmem:[#allocation3 + $0x618] sm:$0xff] }
 0x240   :  { %1883 = vmatprep.subr.mxu1 %v1293_v58  ;;  %1813 = vmatpush1.msra.mxu0 %v1164_v60  ;;  %v1261_v58 = vunpack.c.h.bf16 %v799_v46  ;;  %v1132_v60 = vunpack.c.l.bf16 %v735_v45  ;;  %v785_v39 = vld [vmem:[#allocation3 + $0x5f8] sm:$0xff]  ;;  %v783_v45 = vld [vmem:[#allocation3 + $0x5e8] sm:$0xff] }
 0x241   :  { %1884 = vmatpush1.msra.mxu1 %v1292_v61  ;;  %1814 = vmatprep.subr.mxu0 %v1161_v5  ;;  %v1260_v61 = vunpack.c.l.bf16 %v799_v46  ;;  %v1129_v5 = vunpack.c.h.bf16 %v733_v55  ;;  %v849_v40 = vld [vmem:[#allocation3 + $0x7f8] sm:$0xff]  ;;  %v847_v46 = vld [vmem:[#allocation3 + $0x7e8] sm:$0xff] }
 0x242   :  { %1885 = vmatprep.subr.mxu1 %v1289_v4  ;;  %1815 = vmatpush1.msra.mxu0 %v1160_v6  ;;  %v1257_v4 = vunpack.c.h.bf16 %v797_v56  ;;  %v1128_v6 = vunpack.c.l.bf16 %v733_v55  ;;  %v781_v55 = vld [vmem:[#allocation3 + $0x5d8] sm:$0xff] }
 0x243   :  { %1886 = vmatpush1.msra.mxu1 %v1288_v7  ;;  %1816 = vmatprep.subr.mxu0 %v1157_v10  ;;  %v1256_v7 = vunpack.c.l.bf16 %v797_v56  ;;  %v1125_v10 = vunpack.c.h.bf16 %v731_v62  ;;  %v845_v56 = vld [vmem:[#allocation3 + $0x7d8] sm:$0xff] }
 0x244   :  { %1887 = vmatprep.subr.mxu1 %v1285_v17  ;;  %1817 = vmatpush1.msra.mxu0 %v1156_v11  ;;  %v1253_v17 = vunpack.c.h.bf16 %v795_v3  ;;  %v1124_v11 = vunpack.c.l.bf16 %v731_v62  ;;  %v779_v62 = vld [vmem:[#allocation3 + $0x5c8] sm:$0xff] }
 0x245   :  { %1888 = vmatpush1.msra.mxu1 %v1284_v12  ;;  %1818 = vmatprep.subr.mxu0 %v1153_v14  ;;  %v1252_v12 = vunpack.c.l.bf16 %v795_v3  ;;  %v1121_v14 = vunpack.c.h.bf16 %v729_v8  ;;  %v843_v3 = vld [vmem:[#allocation3 + $0x7c8] sm:$0xff] }
 0x246   :  { %1889 = vmatprep.subr.mxu1 %v1281_v18  ;;  %1819 = vmatpush1.msra.mxu0 %v1152_v19  ;;  %v1249_v18 = vunpack.c.h.bf16 %v793_v2  ;;  %v1120_v19 = vunpack.c.l.bf16 %v729_v8  ;;  %v777_v8 = vld [vmem:[#allocation3 + $0x5b8] sm:$0xff] }
 0x247   :  { %1890 = vmatpush1.msra.mxu1 %v1280_v20  ;;  %1820 = vmatprep.subr.mxu0 %v1149_v24  ;;  %v1248_v20 = vunpack.c.l.bf16 %v793_v2  ;;  %v1117_v24 = vunpack.c.h.bf16 %v727_v15  ;;  %v841_v2 = vld [vmem:[#allocation3 + $0x7b8] sm:$0xff] }
 0x248   :  { %1891 = vmatprep.subr.mxu1 %v1277_v27  ;;  %1821 = vmatpush1.msra.mxu0 %v1148_v28  ;;  %v1245_v27 = vunpack.c.h.bf16 %v791_v16  ;;  %v1116_v28 = vunpack.c.l.bf16 %v727_v15  ;;  %v775_v15 = vld [vmem:[#allocation3 + $0x5a8] sm:$0xff] }
 0x249   :  { %1892 = vmatpush1.msra.mxu1 %v1276_v30  ;;  %1822 = vmatprep.subr.mxu0 %v1145_v33  ;;  %v1244_v30 = vunpack.c.l.bf16 %v791_v16  ;;  %v1113_v33 = vunpack.c.h.bf16 %v725_v22  ;;  %v839_v16 = vld [vmem:[#allocation3 + $0x7a8] sm:$0xff] }
 0x24a   :  { %1893 = vmatprep.subr.mxu1 %v1273_v34  ;;  %1823 = vmatpush1.msra.mxu0 %v1144_v35  ;;  %v1241_v34 = vunpack.c.h.bf16 %v789_v23  ;;  %v1112_v35 = vunpack.c.l.bf16 %v725_v22  ;;  %v773_v22 = vld [vmem:[#allocation3 + $0x598] sm:$0xff] }
 0x24b   :  { %1894 = vmatpush1.msra.mxu1 %v1272_v37  ;;  %1824 = vmatprep.subr.mxu0 %v1141_v41  ;;  %v1240_v37 = vunpack.c.l.bf16 %v789_v23  ;;  %v1109_v41 = vunpack.c.h.bf16 %v723_v31  ;;  %v837_v23 = vld [vmem:[#allocation3 + $0x798] sm:$0xff] }
 0x24c   :  { %1895 = vmatprep.subr.mxu1 %v1269_v42  ;;  %1825 = vmatpush1.msra.mxu0 %v1140_v43  ;;  %v1237_v42 = vunpack.c.h.bf16 %v787_v32  ;;  %v1108_v43 = vunpack.c.l.bf16 %v723_v31  ;;  %v771_v31 = vld [vmem:[#allocation3 + $0x588] sm:$0xff] }
 0x24d   :  { %1896 = vmatpush1.msra.mxu1 %v1268_v44  ;;  %1826 = vmatprep.subr.mxu0 %v1137_v47  ;;  %v1236_v44 = vunpack.c.l.bf16 %v787_v32  ;;  %v1233_v47 = vunpack.c.h.bf16 %v785_v39  ;;  %v835_v32 = vld [vmem:[#allocation3 + $0x788] sm:$0xff] }
 0x24e   :  { %1897 = vmatprep.subr.mxu1 %v1265_v48  ;;  %1827 = vmatpush1.msra.mxu0 %v1136_v49  ;;  %v1361_v48 = vunpack.c.h.bf16 %v849_v40  ;;  %v1232_v49 = vunpack.c.l.bf16 %v785_v39  ;;  %v769_v39 = vld [vmem:[#allocation3 + $0x578] sm:$0xff] }
 0x24f   :  { %1898 = vmatpush1.msra.mxu1 %v1264_v53  ;;  %1828 = vmatprep.subr.mxu0 %v1133_v57  ;;  %v1360_v53 = vunpack.c.l.bf16 %v849_v40  ;;  %v1229_v57 = vunpack.c.h.bf16 %v783_v45  ;;  %v833_v40 = vld [vmem:[#allocation3 + $0x778] sm:$0xff] }
 0x250   :  { %1899 = vmatprep.subr.mxu1 %v1261_v58  ;;  %1829 = vmatpush1.msra.mxu0 %v1132_v60  ;;  %v1357_v58 = vunpack.c.h.bf16 %v847_v46  ;;  %v1228_v60 = vunpack.c.l.bf16 %v783_v45  ;;  %v767_v45 = vld [vmem:[#allocation3 + $0x568] sm:$0xff] }
 0x251   :  { %1900 = vmatpush1.msra.mxu1 %v1260_v61  ;;  %1830 = vmatprep.subr.mxu0 %v1129_v5  ;;  %v1356_v61 = vunpack.c.l.bf16 %v847_v46  ;;  %v1225_v5 = vunpack.c.h.bf16 %v781_v55  ;;  %v831_v46 = vld [vmem:[#allocation3 + $0x768] sm:$0xff] }
 0x252   :  { %1901 = vmatprep.subr.mxu1 %v1257_v4  ;;  %1831 = vmatpush1.msra.mxu0 %v1128_v6  ;;  %v1353_v4 = vunpack.c.h.bf16 %v845_v56  ;;  %v1224_v6 = vunpack.c.l.bf16 %v781_v55  ;;  %v765_v55 = vld [vmem:[#allocation3 + $0x558] sm:$0xff] }
 0x253   :  { %1902 = vmatpush1.msra.mxu1 %v1256_v7  ;;  %1832 = vmatprep.subr.mxu0 %v1125_v10  ;;  %v1352_v7 = vunpack.c.l.bf16 %v845_v56  ;;  %v1221_v10 = vunpack.c.h.bf16 %v779_v62  ;;  %v829_v56 = vld [vmem:[#allocation3 + $0x758] sm:$0xff] }
 0x254   :  { %1903 = vmatprep.subr.mxu1 %v1253_v17  ;;  %1833 = vmatpush1.msra.mxu0 %v1124_v11  ;;  %v1349_v17 = vunpack.c.h.bf16 %v843_v3  ;;  %v1220_v11 = vunpack.c.l.bf16 %v779_v62  ;;  %v763_v62 = vld [vmem:[#allocation3 + $0x548] sm:$0xff] }
 0x255   :  { %1904 = vmatpush1.msra.mxu1 %v1252_v12  ;;  %1834 = vmatprep.subr.mxu0 %v1121_v14  ;;  %v1348_v12 = vunpack.c.l.bf16 %v843_v3  ;;  %v1217_v14 = vunpack.c.h.bf16 %v777_v8  ;;  %v827_v3 = vld [vmem:[#allocation3 + $0x748] sm:$0xff] }
 0x256   :  { %1905 = vmatprep.subr.mxu1 %v1249_v18  ;;  %1835 = vmatpush1.msra.mxu0 %v1120_v19  ;;  %v1345_v18 = vunpack.c.h.bf16 %v841_v2  ;;  %v1216_v19 = vunpack.c.l.bf16 %v777_v8  ;;  %v761_v8 = vld [vmem:[#allocation3 + $0x538] sm:$0xff] }
 0x257   :  { %1906 = vmatpush1.msra.mxu1 %v1248_v20  ;;  %1836 = vmatprep.subr.mxu0 %v1117_v24  ;;  %v1344_v20 = vunpack.c.l.bf16 %v841_v2  ;;  %v1213_v24 = vunpack.c.h.bf16 %v775_v15  ;;  %v825_v2 = vld [vmem:[#allocation3 + $0x738] sm:$0xff] }
 0x258   :  { %1907 = vmatprep.subr.mxu1 %v1245_v27  ;;  %1837 = vmatpush1.msra.mxu0 %v1116_v28  ;;  %v1341_v27 = vunpack.c.h.bf16 %v839_v16  ;;  %v1212_v28 = vunpack.c.l.bf16 %v775_v15  ;;  %v759_v15 = vld [vmem:[#allocation3 + $0x528] sm:$0xff] }
 0x259   :  { %1908 = vmatpush1.msra.mxu1 %v1244_v30  ;;  %1838 = vmatprep.subr.mxu0 %v1113_v33  ;;  %v1340_v30 = vunpack.c.l.bf16 %v839_v16  ;;  %v1209_v33 = vunpack.c.h.bf16 %v773_v22  ;;  %v823_v16 = vld [vmem:[#allocation3 + $0x728] sm:$0xff] }
 0x25a   :  { %1909 = vmatprep.subr.mxu1 %v1241_v34  ;;  %1839 = vmatpush1.msra.mxu0 %v1112_v35  ;;  %v1337_v34 = vunpack.c.h.bf16 %v837_v23  ;;  %v1208_v35 = vunpack.c.l.bf16 %v773_v22  ;;  %v757_v22 = vld [vmem:[#allocation3 + $0x518] sm:$0xff] }
 0x25b   :  { %1910 = vmatpush1.msra.mxu1 %v1240_v37  ;;  %1840 = vmatprep.subr.mxu0 %v1109_v41  ;;  %v1336_v37 = vunpack.c.l.bf16 %v837_v23  ;;  %v1205_v41 = vunpack.c.h.bf16 %v771_v31  ;;  %v821_v23 = vld [vmem:[#allocation3 + $0x718] sm:$0xff] }
 0x25c   :  { %1911 = vmatprep.subr.mxu1 %v1237_v42  ;;  %1841 = vmatpush1.msra.mxu0 %v1108_v43  ;;  %v1333_v42 = vunpack.c.h.bf16 %v835_v32  ;;  %v1204_v43 = vunpack.c.l.bf16 %v771_v31  ;;  %v755_v31 = vld [vmem:[#allocation3 + $0x508] sm:$0xff] }
 0x25d   :  { %1912 = vmatpush1.msra.mxu1 %v1236_v44  ;;  %1842 = vmatprep.subr.mxu0 %v1233_v47  ;;  %v1332_v44 = vunpack.c.l.bf16 %v835_v32  ;;  %v1201_v47 = vunpack.c.h.bf16 %v769_v39  ;;  %v819_v32 = vld [vmem:[#allocation3 + $0x708] sm:$0xff] }
 0x25e   :  { %1913 = vmatprep.subr.mxu1 %v1361_v48  ;;  %1843 = vmatpush2.msra.mxu0 %v1232_v49  ;;  %v1329_v48 = vunpack.c.h.bf16 %v833_v40  ;;  %v1200_v49 = vunpack.c.l.bf16 %v769_v39  ;;  %v1173_v39 = vunpack.c.h.bf16 %v755_v31 }
 0x25f   :  { %1914 = vmatpush2.msra.mxu1 %v1360_v53  ;;  %1844 = vmatprep.subr.mxu0 %v1229_v57  ;;  %v1328_v53 = vunpack.c.l.bf16 %v833_v40  ;;  %v1197_v57 = vunpack.c.h.bf16 %v767_v45  ;;  %v1301_v40 = vunpack.c.h.bf16 %v819_v32 }
 0x260   :  { %1915 = vmatprep.subr.mxu1 %v1357_v58  ;;  %1845 = vmatpush2.msra.mxu0 %v1228_v60  ;;  %v1325_v58 = vunpack.c.h.bf16 %v831_v46  ;;  %v1196_v60 = vunpack.c.l.bf16 %v767_v45 }
 0x261   :  { %1916 = vmatpush2.msra.mxu1 %v1356_v61  ;;  %1846 = vmatprep.subr.mxu0 %v1225_v5  ;;  %v1324_v61 = vunpack.c.l.bf16 %v831_v46  ;;  %v1193_v5 = vunpack.c.h.bf16 %v765_v55 }
 0x262   :  { %1917 = vmatprep.subr.mxu1 %v1353_v4  ;;  %1847 = vmatpush2.msra.mxu0 %v1224_v6  ;;  %v1321_v4 = vunpack.c.h.bf16 %v829_v56  ;;  %v1192_v6 = vunpack.c.l.bf16 %v765_v55 }
 0x263   :  { %1918 = vmatpush2.msra.mxu1 %v1352_v7  ;;  %1848 = vmatprep.subr.mxu0 %v1221_v10  ;;  %v1320_v7 = vunpack.c.l.bf16 %v829_v56  ;;  %v1189_v10 = vunpack.c.h.bf16 %v763_v62 }
 0x264   :  { %1919 = vmatprep.subr.mxu1 %v1349_v17  ;;  %1849 = vmatpush2.msra.mxu0 %v1220_v11  ;;  %v1317_v17 = vunpack.c.h.bf16 %v827_v3  ;;  %v1188_v11 = vunpack.c.l.bf16 %v763_v62 }
 0x265   :  { %1920 = vmatpush2.msra.mxu1 %v1348_v12  ;;  %1850 = vmatprep.subr.mxu0 %v1217_v14  ;;  %v1316_v12 = vunpack.c.l.bf16 %v827_v3  ;;  %v1185_v14 = vunpack.c.h.bf16 %v761_v8 }
 0x266   :  { %1921 = vmatprep.subr.mxu1 %v1345_v18  ;;  %1851 = vmatpush2.msra.mxu0 %v1216_v19  ;;  %v1313_v18 = vunpack.c.h.bf16 %v825_v2  ;;  %v1184_v19 = vunpack.c.l.bf16 %v761_v8 }
 0x267   :  { %1922 = vmatpush2.msra.mxu1 %v1344_v20  ;;  %1852 = vmatprep.subr.mxu0 %v1213_v24  ;;  %v1312_v20 = vunpack.c.l.bf16 %v825_v2  ;;  %v1181_v24 = vunpack.c.h.bf16 %v759_v15 }
 0x268   :  { %1923 = vmatprep.subr.mxu1 %v1341_v27  ;;  %1853 = vmatpush2.msra.mxu0 %v1212_v28  ;;  %v1309_v27 = vunpack.c.h.bf16 %v823_v16  ;;  %v1180_v28 = vunpack.c.l.bf16 %v759_v15 }
 0x269   :  { %1924 = vmatpush2.msra.mxu1 %v1340_v30  ;;  %1854 = vmatprep.subr.mxu0 %v1209_v33  ;;  %v1308_v30 = vunpack.c.l.bf16 %v823_v16  ;;  %v1177_v33 = vunpack.c.h.bf16 %v757_v22 }
 0x26a   :  { %1925 = vmatprep.subr.mxu1 %v1337_v34  ;;  %1855 = vmatpush2.msra.mxu0 %v1208_v35  ;;  %v1305_v34 = vunpack.c.h.bf16 %v821_v23  ;;  %v1176_v35 = vunpack.c.l.bf16 %v757_v22 }
 0x26b   :  { %1926 = vmatpush2.msra.mxu1 %v1336_v37  ;;  %1856 = vmatprep.subr.mxu0 %v1205_v41  ;;  %v1304_v37 = vunpack.c.l.bf16 %v821_v23  ;;  %v1172_v41 = vunpack.c.l.bf16 %v755_v31 }
 0x26c   :  { %1927 = vmatprep.subr.mxu1 %v1333_v42  ;;  %1857 = vmatpush2.msra.mxu0 %v1204_v43  ;;  %v1300_v42 = vunpack.c.l.bf16 %v819_v32  ;;  %v1362_v43 = vld [vmem:[#allocation17 + $0x8] sm:$0xf] }
 0x26d   :  { %1928 = vmatpush2.msra.mxu1 %v1332_v44  ;;  %1858 = vmatprep.subr.mxu0 %v1201_v47  ;;  %v1367_v45 = vrot.slane %v1362_v43, %v6196_v52  ;;  %v1371_v46 = vrot.slane %v1362_v43, %v6199_v54  ;;  %v1375_v8 = vrot.slane %v1362_v43, %v6204_v59 }
 0x26e   :  { %1929 = vmatprep.subr.mxu1 %v1329_v48  ;;  %1859 = vmatpush2.msra.mxu0 %v1200_v49  ;;  %v1379_v2 = vrot.slane %v1362_v43, %v6207_v63 }
 0x26f   :  { %1930 = vmatpush2.msra.mxu1 %v1328_v53  ;;  %1860 = vmatprep.subr.mxu0 %v1197_v57 }
 0x270   :  { %1931 = vmatprep.subr.mxu1 %v1325_v58  ;;  %1861 = vmatpush2.msra.mxu0 %v1196_v60 }
 0x271   :  { %1932 = vmatpush2.msra.mxu1 %v1324_v61  ;;  %1862 = vmatprep.subr.mxu0 %v1193_v5 }
 0x272   :  { %1933 = vmatprep.subr.mxu1 %v1321_v4  ;;  %1863 = vmatpush2.msra.mxu0 %v1192_v6 }
 0x273   :  { %1934 = vmatpush2.msra.mxu1 %v1320_v7  ;;  %1864 = vmatprep.subr.mxu0 %v1189_v10 }
 0x274   :  { %1935 = vmatprep.subr.mxu1 %v1317_v17  ;;  %1865 = vmatpush2.msra.mxu0 %v1188_v11 }
 0x275   :  { %1936 = vmatpush2.msra.mxu1 %v1316_v12  ;;  %1866 = vmatprep.subr.mxu0 %v1185_v14 }
 0x276   :  { %1937 = vmatprep.subr.mxu1 %v1313_v18  ;;  %1867 = vmatpush2.msra.mxu0 %v1184_v19 }
 0x277   :  { %1938 = vmatpush2.msra.mxu1 %v1312_v20  ;;  %1868 = vmatprep.subr.mxu0 %v1181_v24 }
 0x278   :  { %1939 = vmatprep.subr.mxu1 %v1309_v27  ;;  %1869 = vmatpush2.msra.mxu0 %v1180_v28  ;;  %v1450_v44 = vpop.f32.mrf.mxu0 }
 0x279   :  { %1940 = vmatpush2.msra.mxu1 %v1308_v30  ;;  %1870 = vmatprep.subr.mxu0 %v1177_v33  ;;  %v1451_v49 = vadd.f32 %v1450_v44, %v1367_v45 }
 0x27a   :  { %1941 = vmatprep.subr.mxu1 %v1305_v34  ;;  %1871 = vmatpush2.msra.mxu0 %v1176_v35  ;;  %v1521_v47 = vpop.f32.mrf.mxu1  ;;  %v1452_v48 = vpop.f32.mrf.mxu0 }
 0x27b   :  { %1942 = vmatpush2.msra.mxu1 %v1304_v37  ;;  %1872 = vmatprep.subr.mxu0 %v1173_v39  ;;  %v1453_v53 = vadd.f32 %v1452_v48, %v1371_v46  ;;  %v1522_v56 = vadd.f32 %v1521_v47, %v1451_v49 }
 0x27c   :  { %1943 = vmatprep.subr.mxu1 %v1301_v40  ;;  %1873 = vmatpush2.msra.mxu0 %v1172_v41  ;;  %v1523_v55 = vpop.f32.mrf.mxu1 }
 0x27d   :  { %1874 = vmatprep.mubr.f32.mxu0 %v6231_v29  ;;  %1944 = vmatpush2.msra.mxu1 %v1300_v42  ;;  %v1524_v57 = vadd.f32 %v1523_v55, %v1453_v53 }
 0x27e   :  { %1945 = vmatprep.mubr.f32.mxu1 %v6237_v38  ;;  %1875 = vmatmul.mubr.f32.vlgmr.msra.gmra.mxu0 %v6227_v26 }
 0x27f   :  { %1946 = vmatmul.mubr.f32.vlgmr.msra.gmra.mxu1 %v6235_v36 }
 0x2ba   :  { %v1592_v29 = vpop.f32.mrf.mxu0 }
 0x2bb   :  { %v1593_v58 = vadd.f32 %v1592_v29, %v1522_v56 }
 0x2bc   :  { %v1663_v38 = vpop.f32.mrf.mxu1  ;;  %v1594_v60 = vpop.f32.mrf.mxu0 }
 0x2bd   :  { %v1664_v26 = vadd.f32 %v1663_v38, %v1593_v58  ;;  %v1595_v61 = vadd.f32 %v1594_v60, %v1524_v57 }
 0x2be   :  { %v1665_v36 = vpop.f32.mrf.mxu1 }
 0x2bf   :  { %vm1952_vm9 = vcmp.ge.f32.partialorder %v1664_v26, 0.0  ;;  %v1956_v62 = vmul.f32 0.01, %v1664_v26  ;;  %v1666_v3 = vadd.f32 %v1665_v36, %v1595_v61 }
 0x2c1   :  { %v6257_v5 = vsel %vm1952_vm9, %v1664_v26, %v1956_v62  ;;  %vm1953_vm10 = vcmp.ge.f32.partialorder %v1666_v3, 0.0  ;;  %v1957_v4 = vmul.f32 0.01, %v1666_v3 }
 0x2c3   :  { %v1961_v6 = vsel %vm1953_vm10, %v1666_v3, %v1957_v4 }
 0x2fc   :  { %v1734_v7 = vpop.f32.mrf.mxu0 }
 0x2fd   :  { %v1735_v11 = vadd.f32 %v1734_v7, %v1375_v8 }
 0x2fe   :  { %v1805_v10 = vpop.f32.mrf.mxu1  ;;  %v1736_v17 = vpop.f32.mrf.mxu0 }
 0x2ff   :  { %v1737_v12 = vadd.f32 %v1736_v17, %v1379_v2  ;;  %v1806_v16 = vadd.f32 %v1805_v10, %v1735_v11 }
 0x300   :  { %v1807_v15 = vpop.f32.mrf.mxu1 }
 0x301   :  { %v1808_v19 = vadd.f32 %v1807_v15, %v1737_v12 }
 0x33e   :  { %v1876_v14 = vpop.f32.mrf.mxu0 }
 0x33f   :  { %v1947_v18 = vpop.f32.mrf.mxu1  ;;  %v1877_v20 = vadd.f32 %v1876_v14, %v1806_v16 }
 0x340   :  { %v1878_v22 = vpop.f32.mrf.mxu0 }
 0x341   :  { %v1948_v23 = vadd.f32 %v1947_v18, %v1877_v20  ;;  %v1879_v24 = vadd.f32 %v1878_v22, %v1808_v19  ;;  %v1949_v27 = vpop.f32.mrf.mxu1 }
 0x343   :  { %vm1954_vm11 = vcmp.ge.f32.partialorder %v1948_v23, 0.0  ;;  %v1958_v28 = vmul.f32 0.01, %v1948_v23  ;;  %v1950_v30 = vadd.f32 %v1949_v27, %v1879_v24 }
 0x345   :  { %v6261_v31 = vsel %vm1954_vm11, %v1948_v23, %v1958_v28  ;;  %vm1955_vm12 = vcmp.ge.f32.partialorder %v1950_v30, 0.0  ;;  %v1959_v32 = vmul.f32 0.01, %v1950_v30 }
 0x347   :  { %v1963_v33 = vsel %vm1955_vm12, %v1950_v30, %v1959_v32 }
 0x348   :  { %6023 = dma.done.wait [#allocation13 + $0x2], 8192 }
 0x349   :  { %6024 = vsyncadd [#allocation13 + $0x2], 4294959104  ;;  %2236 = vmatprep.mubr.f32.mxu0 %v1961_v6  ;;  %2307 = vmatprep.mubr.f32.mxu1 %v1963_v33  ;;  %v1983_v34 = vld [vmem:[#allocation4 + $0x78] sm:$0xff]  ;;  %v1982_v37 = vld [vmem:[#allocation4 + $0x70] sm:$0xff] }
 0x34a   :  { %v2015_v35 = vld [vmem:[#allocation4 + $0x178] sm:$0xff]  ;;  %v2063_v39 = vunpack.c.h.bf16 %v1983_v34  ;;  %v2062_v41 = vunpack.c.l.bf16 %v1983_v34  ;;  %v2014_v43 = vld [vmem:[#allocation4 + $0x170] sm:$0xff]  ;;  %v1981_v44 = vld [vmem:[#allocation4 + $0x68] sm:$0xff]  ;;  %v2061_v46 = vunpack.c.h.bf16 %v1982_v37  ;;  %v2060_v48 = vunpack.c.l.bf16 %v1982_v37 }
 0x34b   :  { %v2127_v40 = vunpack.c.h.bf16 %v2015_v35  ;;  %v2126_v42 = vunpack.c.l.bf16 %v2015_v35  ;;  %v2013_v45 = vld [vmem:[#allocation4 + $0x168] sm:$0xff]  ;;  %v2125_v47 = vunpack.c.h.bf16 %v2014_v43  ;;  %v2124_v49 = vunpack.c.l.bf16 %v2014_v43  ;;  %v1980_v53 = vld [vmem:[#allocation4 + $0x60] sm:$0xff]  ;;  %v1979_v38 = vld [vmem:[#allocation4 + $0x58] sm:$0xff] }
 0x34c   :  { %v2012_v55 = vld [vmem:[#allocation4 + $0x160] sm:$0xff]  ;;  %2172 = vmatprep.subr.mxu0 %v2063_v39  ;;  %v2059_v56 = vunpack.c.h.bf16 %v1981_v44  ;;  %v2123_v29 = vunpack.c.h.bf16 %v2013_v45  ;;  %v2058_v57 = vunpack.c.l.bf16 %v1981_v44  ;;  %v2122_v58 = vunpack.c.l.bf16 %v2013_v45  ;;  %v2011_v60 = vld [vmem:[#allocation4 + $0x158] sm:$0xff]  ;;  %v1978_v3 = vld [vmem:[#allocation4 + $0x50] sm:$0xff] }
 0x34d   :  { %2243 = vmatprep.subr.mxu1 %v2127_v40  ;;  %2173 = vmatpush1.msra.mxu0 %v2062_v41  ;;  %v2057_v26 = vunpack.c.h.bf16 %v1980_v53  ;;  %v2121_v61 = vunpack.c.h.bf16 %v2012_v55  ;;  %v2056_v36 = vunpack.c.l.bf16 %v1980_v53  ;;  %v2120_v62 = vunpack.c.l.bf16 %v2012_v55  ;;  %v2010_v4 = vld [vmem:[#allocation4 + $0x150] sm:$0xff]  ;;  %v1977_v10 = vld [vmem:[#allocation4 + $0x48] sm:$0xff]  ;;  %v1976_v14 = vld [vmem:[#allocation4 + $0x40] sm:$0xff] }
 0x34e   :  { %2244 = vmatpush1.msra.mxu1 %v2126_v42  ;;  %2174 = vmatprep.subr.mxu0 %v2061_v46  ;;  %v2055_v6 = vunpack.c.h.bf16 %v1979_v38  ;;  %v2119_v7 = vunpack.c.h.bf16 %v2011_v60  ;;  %v2054_v8 = vunpack.c.l.bf16 %v1979_v38  ;;  %v2118_v2 = vunpack.c.l.bf16 %v2011_v60  ;;  %v2009_v17 = vld [vmem:[#allocation4 + $0x148] sm:$0xff]  ;;  %v2008_v18 = vld [vmem:[#allocation4 + $0x140] sm:$0xff]  ;;  %v1975_v24 = vld [vmem:[#allocation4 + $0x38] sm:$0xff] }
 0x34f   :  { %2245 = vmatprep.subr.mxu1 %v2125_v47  ;;  %2175 = vmatpush1.msra.mxu0 %v2060_v48  ;;  %v2053_v11 = vunpack.c.h.bf16 %v1978_v3  ;;  %v2117_v12 = vunpack.c.h.bf16 %v2010_v4  ;;  %v2052_v15 = vunpack.c.l.bf16 %v1978_v3  ;;  %v2116_v16 = vunpack.c.l.bf16 %v2010_v4  ;;  %v2007_v27 = vld [vmem:[#allocation4 + $0x138] sm:$0xff]  ;;  %v1974_v34 = vld [vmem:[#allocation4 + $0x30] sm:$0xff]  ;;  %v1973_v42 = vld [vmem:[#allocation4 + $0x28] sm:$0xff] }
 0x350   :  { %2246 = vmatpush1.msra.mxu1 %v2124_v49  ;;  %2176 = vmatprep.subr.mxu0 %v2059_v56  ;;  %v2051_v19 = vunpack.c.h.bf16 %v1977_v10  ;;  %v2115_v20 = vunpack.c.h.bf16 %v2009_v17  ;;  %v2050_v22 = vunpack.c.l.bf16 %v1977_v10  ;;  %v2114_v23 = vunpack.c.l.bf16 %v2009_v17  ;;  %v2006_v35 = vld [vmem:[#allocation4 + $0x130] sm:$0xff]  ;;  %v2005_v43 = vld [vmem:[#allocation4 + $0x128] sm:$0xff]  ;;  %v1972_v48 = vld [vmem:[#allocation4 + $0x20] sm:$0xff] }
 0x351   :  { %2247 = vmatprep.subr.mxu1 %v2123_v29  ;;  %2177 = vmatpush1.msra.mxu0 %v2058_v57  ;;  %v2049_v28 = vunpack.c.h.bf16 %v1976_v14  ;;  %v2113_v30 = vunpack.c.h.bf16 %v2008_v18  ;;  %v2048_v32 = vunpack.c.l.bf16 %v1976_v14  ;;  %v2112_v33 = vunpack.c.l.bf16 %v2008_v18  ;;  %v2004_v49 = vld [vmem:[#allocation4 + $0x120] sm:$0xff]  ;;  %v1971_v57 = vld [vmem:[#allocation4 + $0x18] sm:$0xff] }
 0x352   :  { %2248 = vmatpush1.msra.mxu1 %v2122_v58  ;;  %2178 = vmatprep.subr.mxu0 %v2057_v26  ;;  %v2047_v37 = vunpack.c.h.bf16 %v1975_v24  ;;  %v2111_v39 = vunpack.c.h.bf16 %v2007_v27  ;;  %v2046_v40 = vunpack.c.l.bf16 %v1975_v24  ;;  %v2110_v41 = vunpack.c.l.bf16 %v2007_v27  ;;  %v2003_v58 = vld [vmem:[#allocation4 + $0x118] sm:$0xff] }
 0x353   :  { %2249 = vmatprep.subr.mxu1 %v2121_v61  ;;  %2179 = vmatpush1.msra.mxu0 %v2056_v36  ;;  %v2045_v44 = vunpack.c.h.bf16 %v1974_v34  ;;  %v2109_v45 = vunpack.c.h.bf16 %v2006_v35  ;;  %v2044_v46 = vunpack.c.l.bf16 %v1974_v34  ;;  %v2108_v47 = vunpack.c.l.bf16 %v2006_v35  ;;  %v1970_v36 = vld [vmem:[#allocation4 + $0x10] sm:$0xff] }
 0x354   :  { %2250 = vmatpush1.msra.mxu1 %v2120_v62  ;;  %2180 = vmatprep.subr.mxu0 %v2055_v6  ;;  %v2043_v53 = vunpack.c.h.bf16 %v1973_v42  ;;  %v2107_v55 = vunpack.c.h.bf16 %v2005_v43  ;;  %v2042_v56 = vunpack.c.l.bf16 %v1973_v42  ;;  %v2106_v29 = vunpack.c.l.bf16 %v2005_v43  ;;  %v2002_v62 = vld [vmem:[#allocation4 + $0x110] sm:$0xff] }
 0x355   :  { %2251 = vmatprep.subr.mxu1 %v2119_v7  ;;  %2181 = vmatpush1.msra.mxu0 %v2054_v8  ;;  %v2041_v38 = vunpack.c.h.bf16 %v1972_v48  ;;  %v2105_v60 = vunpack.c.h.bf16 %v2004_v49  ;;  %v2040_v26 = vunpack.c.l.bf16 %v1972_v48  ;;  %v2104_v61 = vunpack.c.l.bf16 %v2004_v49  ;;  %v1969_v8 = vld [vmem:[#allocation4 + $0x8] sm:$0xff] }
 0x356   :  { %2252 = vmatpush1.msra.mxu1 %v2118_v2  ;;  %2182 = vmatprep.subr.mxu0 %v2053_v11  ;;  %v2039_v3 = vunpack.c.h.bf16 %v1971_v57  ;;  %v2103_v4 = vunpack.c.h.bf16 %v2003_v58  ;;  %v2038_v6 = vunpack.c.l.bf16 %v1971_v57  ;;  %v2102_v7 = vunpack.c.l.bf16 %v2003_v58  ;;  %v2001_v2 = vld [vmem:[#allocation4 + $0x108] sm:$0xff] }
 0x357   :  { %2253 = vmatprep.subr.mxu1 %v2117_v12  ;;  %2183 = vmatpush1.msra.mxu0 %v2052_v15  ;;  %v2037_v10 = vunpack.c.h.bf16 %v1970_v36  ;;  %v2101_v17 = vunpack.c.h.bf16 %v2002_v62  ;;  %v2036_v11 = vunpack.c.l.bf16 %v1970_v36  ;;  %v2100_v12 = vunpack.c.l.bf16 %v2002_v62  ;;  %v1968_v15 = vld [vmem:[#allocation4] sm:$0xff] }
 0x358   :  { %2254 = vmatpush1.msra.mxu1 %v2116_v16  ;;  %2184 = vmatprep.subr.mxu0 %v2051_v19  ;;  %v2000_v16 = vld [vmem:[#allocation4 + $0x100] sm:$0xff]  ;;  %v2035_v14 = vunpack.c.h.bf16 %v1969_v8  ;;  %v2099_v18 = vunpack.c.h.bf16 %v2001_v2  ;;  %v2034_v19 = vunpack.c.l.bf16 %v1969_v8  ;;  %v2033_v24 = vunpack.c.h.bf16 %v1968_v15 }
 0x359   :  { %2255 = vmatprep.subr.mxu1 %v2115_v20  ;;  %2185 = vmatpush1.msra.mxu0 %v2050_v22  ;;  %v2098_v20 = vunpack.c.l.bf16 %v2001_v2  ;;  %v1999_v22 = vld [vmem:[#allocation4 + $0xf8] sm:$0xff]  ;;  %v2097_v27 = vunpack.c.h.bf16 %v2000_v16 }
 0x35a   :  { %2256 = vmatpush1.msra.mxu1 %v2114_v23  ;;  %2186 = vmatprep.subr.mxu0 %v2049_v28  ;;  %v2031_v23 = vld [vmem:[#allocation4 + $0x1f8] sm:$0xff]  ;;  %v2032_v28 = vunpack.c.l.bf16 %v1968_v15  ;;  %v2095_v34 = vunpack.c.h.bf16 %v1999_v22 }
 0x35b   :  { %2257 = vmatprep.subr.mxu1 %v2113_v30  ;;  %2187 = vmatpush1.msra.mxu0 %v2048_v32  ;;  %v2096_v30 = vunpack.c.l.bf16 %v2000_v16  ;;  %v1998_v32 = vld [vmem:[#allocation4 + $0xf0] sm:$0xff]  ;;  %v2159_v35 = vunpack.c.h.bf16 %v2031_v23 }
 0x35c   :  { %2258 = vmatpush1.msra.mxu1 %v2112_v33  ;;  %2188 = vmatprep.subr.mxu0 %v2047_v37  ;;  %v2030_v33 = vld [vmem:[#allocation4 + $0x1f0] sm:$0xff]  ;;  %v2094_v37 = vunpack.c.l.bf16 %v1999_v22  ;;  %v2093_v42 = vunpack.c.h.bf16 %v1998_v32 }
 0x35d   :  { %2259 = vmatprep.subr.mxu1 %v2111_v39  ;;  %2189 = vmatpush1.msra.mxu0 %v2046_v40  ;;  %v2158_v39 = vunpack.c.l.bf16 %v2031_v23  ;;  %v1997_v40 = vld [vmem:[#allocation4 + $0xe8] sm:$0xff]  ;;  %v2157_v43 = vunpack.c.h.bf16 %v2030_v33 }
 0x35e   :  { %2260 = vmatpush1.msra.mxu1 %v2110_v41  ;;  %2190 = vmatprep.subr.mxu0 %v2045_v44  ;;  %v2029_v41 = vld [vmem:[#allocation4 + $0x1e8] sm:$0xff]  ;;  %v2092_v44 = vunpack.c.l.bf16 %v1998_v32  ;;  %v2091_v48 = vunpack.c.h.bf16 %v1997_v40 }
 0x35f   :  { %2261 = vmatprep.subr.mxu1 %v2109_v45  ;;  %2191 = vmatpush1.msra.mxu0 %v2044_v46  ;;  %v2156_v45 = vunpack.c.l.bf16 %v2030_v33  ;;  %v1996_v46 = vld [vmem:[#allocation4 + $0xe0] sm:$0xff]  ;;  %v2155_v49 = vunpack.c.h.bf16 %v2029_v41 }
 0x360   :  { %2262 = vmatpush1.msra.mxu1 %v2108_v47  ;;  %2192 = vmatprep.subr.mxu0 %v2043_v53  ;;  %v2028_v47 = vld [vmem:[#allocation4 + $0x1e0] sm:$0xff]  ;;  %v2090_v53 = vunpack.c.l.bf16 %v1997_v40  ;;  %v2089_v57 = vunpack.c.h.bf16 %v1996_v46 }
 0x361   :  { %2263 = vmatprep.subr.mxu1 %v2107_v55  ;;  %2193 = vmatpush1.msra.mxu0 %v2042_v56  ;;  %v2154_v55 = vunpack.c.l.bf16 %v2029_v41  ;;  %v1995_v56 = vld [vmem:[#allocation4 + $0xd8] sm:$0xff]  ;;  %v2153_v58 = vunpack.c.h.bf16 %v2028_v47 }
 0x362   :  { %2264 = vmatpush1.msra.mxu1 %v2106_v29  ;;  %2194 = vmatprep.subr.mxu0 %v2041_v38  ;;  %v2027_v29 = vld [vmem:[#allocation4 + $0x1d8] sm:$0xff]  ;;  %v2088_v38 = vunpack.c.l.bf16 %v1996_v46  ;;  %v2087_v36 = vunpack.c.h.bf16 %v1995_v56 }
 0x363   :  { %2265 = vmatprep.subr.mxu1 %v2105_v60  ;;  %2195 = vmatpush1.msra.mxu0 %v2040_v26  ;;  %v2152_v60 = vunpack.c.l.bf16 %v2028_v47  ;;  %v1994_v26 = vld [vmem:[#allocation4 + $0xd0] sm:$0xff]  ;;  %v2151_v62 = vunpack.c.h.bf16 %v2027_v29 }
 0x364   :  { %2266 = vmatpush1.msra.mxu1 %v2104_v61  ;;  %2196 = vmatprep.subr.mxu0 %v2039_v3  ;;  %v2026_v61 = vld [vmem:[#allocation4 + $0x1d0] sm:$0xff]  ;;  %v2086_v3 = vunpack.c.l.bf16 %v1995_v56  ;;  %v2085_v8 = vunpack.c.h.bf16 %v1994_v26 }
 0x365   :  { %2267 = vmatprep.subr.mxu1 %v2103_v4  ;;  %2197 = vmatpush1.msra.mxu0 %v2038_v6  ;;  %v2150_v4 = vunpack.c.l.bf16 %v2027_v29  ;;  %v1993_v6 = vld [vmem:[#allocation4 + $0xc8] sm:$0xff]  ;;  %v2149_v2 = vunpack.c.h.bf16 %v2026_v61 }
 0x366   :  { %2268 = vmatpush1.msra.mxu1 %v2102_v7  ;;  %2198 = vmatprep.subr.mxu0 %v2037_v10  ;;  %v2025_v7 = vld [vmem:[#allocation4 + $0x1c8] sm:$0xff]  ;;  %v2084_v10 = vunpack.c.l.bf16 %v1994_v26  ;;  %v2083_v15 = vunpack.c.h.bf16 %v1993_v6 }
 0x367   :  { %2269 = vmatprep.subr.mxu1 %v2101_v17  ;;  %2199 = vmatpush1.msra.mxu0 %v2036_v11  ;;  %v2148_v17 = vunpack.c.l.bf16 %v2026_v61  ;;  %v1992_v11 = vld [vmem:[#allocation4 + $0xc0] sm:$0xff]  ;;  %v2147_v16 = vunpack.c.h.bf16 %v2025_v7 }
 0x368   :  { %2270 = vmatpush1.msra.mxu1 %v2100_v12  ;;  %2200 = vmatprep.subr.mxu0 %v2035_v14  ;;  %v2024_v12 = vld [vmem:[#allocation4 + $0x1c0] sm:$0xff]  ;;  %v2082_v14 = vunpack.c.l.bf16 %v1993_v6  ;;  %v2081_v22 = vunpack.c.h.bf16 %v1992_v11 }
 0x369   :  { %2271 = vmatprep.subr.mxu1 %v2099_v18  ;;  %2201 = vmatpush1.msra.mxu0 %v2034_v19  ;;  %v2146_v18 = vunpack.c.l.bf16 %v2025_v7  ;;  %v1991_v19 = vld [vmem:[#allocation4 + $0xb8] sm:$0xff]  ;;  %v2145_v23 = vunpack.c.h.bf16 %v2024_v12 }
 0x36a   :  { %2272 = vmatpush1.msra.mxu1 %v2098_v20  ;;  %2202 = vmatprep.subr.mxu0 %v2033_v24  ;;  %v2023_v20 = vld [vmem:[#allocation4 + $0x1b8] sm:$0xff]  ;;  %v2080_v24 = vunpack.c.l.bf16 %v1992_v11  ;;  %v2079_v32 = vunpack.c.h.bf16 %v1991_v19 }
 0x36b   :  { %2273 = vmatprep.subr.mxu1 %v2097_v27  ;;  %2203 = vmatpush1.msra.mxu0 %v2032_v28  ;;  %v2144_v27 = vunpack.c.l.bf16 %v2024_v12  ;;  %v1990_v28 = vld [vmem:[#allocation4 + $0xb0] sm:$0xff]  ;;  %v2143_v33 = vunpack.c.h.bf16 %v2023_v20 }
 0x36c   :  { %2274 = vmatpush1.msra.mxu1 %v2096_v30  ;;  %2204 = vmatprep.subr.mxu0 %v2095_v34  ;;  %v2022_v30 = vld [vmem:[#allocation4 + $0x1b0] sm:$0xff]  ;;  %v2078_v34 = vunpack.c.l.bf16 %v1991_v19  ;;  %v2077_v40 = vunpack.c.h.bf16 %v1990_v28 }
 0x36d   :  { %2275 = vmatprep.subr.mxu1 %v2159_v35  ;;  %2205 = vmatpush2.msra.mxu0 %v2094_v37  ;;  %v2142_v35 = vunpack.c.l.bf16 %v2023_v20  ;;  %v1989_v37 = vld [vmem:[#allocation4 + $0xa8] sm:$0xff]  ;;  %v2141_v41 = vunpack.c.h.bf16 %v2022_v30 }
 0x36e   :  { %2276 = vmatpush2.msra.mxu1 %v2158_v39  ;;  %2206 = vmatprep.subr.mxu0 %v2093_v42  ;;  %v2021_v39 = vld [vmem:[#allocation4 + $0x1a8] sm:$0xff]  ;;  %v2076_v42 = vunpack.c.l.bf16 %v1990_v28  ;;  %v2075_v46 = vunpack.c.h.bf16 %v1989_v37 }
 0x36f   :  { %2277 = vmatprep.subr.mxu1 %v2157_v43  ;;  %2207 = vmatpush2.msra.mxu0 %v2092_v44  ;;  %v2140_v43 = vunpack.c.l.bf16 %v2022_v30  ;;  %v1988_v44 = vld [vmem:[#allocation4 + $0xa0] sm:$0xff]  ;;  %v2139_v47 = vunpack.c.h.bf16 %v2021_v39 }
 0x370   :  { %2278 = vmatpush2.msra.mxu1 %v2156_v45  ;;  %2208 = vmatprep.subr.mxu0 %v2091_v48  ;;  %v2020_v45 = vld [vmem:[#allocation4 + $0x1a0] sm:$0xff]  ;;  %v2074_v48 = vunpack.c.l.bf16 %v1989_v37  ;;  %v2073_v56 = vunpack.c.h.bf16 %v1988_v44 }
 0x371   :  { %2279 = vmatprep.subr.mxu1 %v2155_v49  ;;  %2209 = vmatpush2.msra.mxu0 %v2090_v53  ;;  %v2138_v49 = vunpack.c.l.bf16 %v2021_v39  ;;  %v1987_v53 = vld [vmem:[#allocation4 + $0x98] sm:$0xff]  ;;  %v2137_v29 = vunpack.c.h.bf16 %v2020_v45 }
 0x372   :  { %2280 = vmatpush2.msra.mxu1 %v2154_v55  ;;  %2210 = vmatprep.subr.mxu0 %v2089_v57  ;;  %v2019_v55 = vld [vmem:[#allocation4 + $0x198] sm:$0xff]  ;;  %v2072_v57 = vunpack.c.l.bf16 %v1988_v44  ;;  %v2071_v26 = vunpack.c.h.bf16 %v1987_v53 }
 0x373   :  { %2281 = vmatprep.subr.mxu1 %v2153_v58  ;;  %2211 = vmatpush2.msra.mxu0 %v2088_v38  ;;  %v2136_v58 = vunpack.c.l.bf16 %v2020_v45  ;;  %v1986_v38 = vld [vmem:[#allocation4 + $0x90] sm:$0xff]  ;;  %v2135_v61 = vunpack.c.h.bf16 %v2019_v55 }
 0x374   :  { %2282 = vmatpush2.msra.mxu1 %v2152_v60  ;;  %2212 = vmatprep.subr.mxu0 %v2087_v36  ;;  %v2018_v60 = vld [vmem:[#allocation4 + $0x190] sm:$0xff]  ;;  %v2070_v36 = vunpack.c.l.bf16 %v1987_v53  ;;  %v2069_v6 = vunpack.c.h.bf16 %v1986_v38 }
 0x375   :  { %2283 = vmatprep.subr.mxu1 %v2151_v62  ;;  %2213 = vmatpush2.msra.mxu0 %v2086_v3  ;;  %v2134_v62 = vunpack.c.l.bf16 %v2019_v55  ;;  %v1985_v3 = vld [vmem:[#allocation4 + $0x88] sm:$0xff]  ;;  %v2133_v7 = vunpack.c.h.bf16 %v2018_v60 }
 0x376   :  { %2284 = vmatpush2.msra.mxu1 %v2150_v4  ;;  %2214 = vmatprep.subr.mxu0 %v2085_v8  ;;  %v2017_v4 = vld [vmem:[#allocation4 + $0x188] sm:$0xff]  ;;  %v2068_v8 = vunpack.c.l.bf16 %v1986_v38  ;;  %v2067_v11 = vunpack.c.h.bf16 %v1985_v3 }
 0x377   :  { %2285 = vmatprep.subr.mxu1 %v2149_v2  ;;  %2215 = vmatpush2.msra.mxu0 %v2084_v10  ;;  %v2132_v2 = vunpack.c.l.bf16 %v2018_v60  ;;  %v1984_v10 = vld [vmem:[#allocation4 + $0x80] sm:$0xff]  ;;  %v2131_v12 = vunpack.c.h.bf16 %v2017_v4 }
 0x378   :  { %2286 = vmatpush2.msra.mxu1 %v2148_v17  ;;  %2216 = vmatprep.subr.mxu0 %v2083_v15  ;;  %v2016_v17 = vld [vmem:[#allocation4 + $0x180] sm:$0xff]  ;;  %v2066_v15 = vunpack.c.l.bf16 %v1985_v3  ;;  %v2064_v19 = vunpack.c.l.bf16 %v1984_v10 }
 0x379   :  { %2287 = vmatprep.subr.mxu1 %v2147_v16  ;;  %2217 = vmatpush2.msra.mxu0 %v2082_v14  ;;  %v2130_v16 = vunpack.c.l.bf16 %v2017_v4  ;;  %v2065_v14 = vunpack.c.h.bf16 %v1984_v10  ;;  %v2128_v20 = vunpack.c.l.bf16 %v2016_v17 }
 0x37a   :  { %2288 = vmatpush2.msra.mxu1 %v2146_v18  ;;  %2218 = vmatprep.subr.mxu0 %v2081_v22  ;;  %v2129_v18 = vunpack.c.h.bf16 %v2016_v17  ;;  %v2160_v22 = vld [vmem:[#allocation17 + $0xc] sm:$0x3] }
 0x37b   :  { %2289 = vmatprep.subr.mxu1 %v2145_v23  ;;  %2219 = vmatpush2.msra.mxu0 %v2080_v24  ;;  %v2165_v23 = vrot.slane %v2160_v22, %v6196_v52  ;;  %v2169_v24 = vrot.slane %v2160_v22, %v6199_v54 }
 0x37c   :  { %2290 = vmatpush2.msra.mxu1 %v2144_v27  ;;  %2220 = vmatprep.subr.mxu0 %v2079_v32 }
 0x37d   :  { %2291 = vmatprep.subr.mxu1 %v2143_v33  ;;  %2221 = vmatpush2.msra.mxu0 %v2078_v34 }
 0x37e   :  { %2292 = vmatpush2.msra.mxu1 %v2142_v35  ;;  %2222 = vmatprep.subr.mxu0 %v2077_v40 }
 0x37f   :  { %2293 = vmatprep.subr.mxu1 %v2141_v41  ;;  %2223 = vmatpush2.msra.mxu0 %v2076_v42 }
 0x380   :  { %2294 = vmatpush2.msra.mxu1 %v2140_v43  ;;  %2224 = vmatprep.subr.mxu0 %v2075_v46 }
 0x381   :  { %2295 = vmatprep.subr.mxu1 %v2139_v47  ;;  %2225 = vmatpush2.msra.mxu0 %v2074_v48 }
 0x382   :  { %2296 = vmatpush2.msra.mxu1 %v2138_v49  ;;  %2226 = vmatprep.subr.mxu0 %v2073_v56 }
 0x383   :  { %2297 = vmatprep.subr.mxu1 %v2137_v29  ;;  %2227 = vmatpush2.msra.mxu0 %v2072_v57 }
 0x384   :  { %2298 = vmatpush2.msra.mxu1 %v2136_v58  ;;  %2228 = vmatprep.subr.mxu0 %v2071_v26 }
 0x385   :  { %2299 = vmatprep.subr.mxu1 %v2135_v61  ;;  %2229 = vmatpush2.msra.mxu0 %v2070_v36 }
 0x386   :  { %2300 = vmatpush2.msra.mxu1 %v2134_v62  ;;  %2230 = vmatprep.subr.mxu0 %v2069_v6 }
 0x387   :  { %2301 = vmatprep.subr.mxu1 %v2133_v7  ;;  %2231 = vmatpush2.msra.mxu0 %v2068_v8 }
 0x388   :  { %2302 = vmatpush2.msra.mxu1 %v2132_v2  ;;  %2232 = vmatprep.subr.mxu0 %v2067_v11 }
 0x389   :  { %2303 = vmatprep.subr.mxu1 %v2131_v12  ;;  %2233 = vmatpush2.msra.mxu0 %v2066_v15 }
 0x38a   :  { %2304 = vmatpush2.msra.mxu1 %v2130_v16  ;;  %2234 = vmatprep.subr.mxu0 %v2065_v14 }
 0x38b   :  { %2305 = vmatprep.subr.mxu1 %v2129_v18  ;;  %2235 = vmatpush2.msra.mxu0 %v2064_v19 }
 0x38c   :  { %2306 = vmatpush2.msra.mxu1 %v2128_v20  ;;  %2237 = vmatmul.mubr.f32.vlgmr.msra.gmra.mxu0 %v6257_v5 }
 0x38d   :  { %2308 = vmatmul.mubr.f32.vlgmr.msra.gmra.mxu1 %v6261_v31 }
 0x44c   :  { %v2238_v27 = vpop.f32.mrf.mxu0 }
 0x44d   :  { %v2309_v28 = vpop.f32.mrf.mxu1  ;;  %v2239_v30 = vadd.f32 %v2238_v27, %v2165_v23 }
 0x44e   :  { %v2240_v32 = vpop.f32.mrf.mxu0 }
 0x44f   :  { %v2310_v33 = vadd.f32 %v2309_v28, %v2239_v30  ;;  %v2241_v34 = vadd.f32 %v2240_v32, %v2169_v24  ;;  %v2311_v35 = vpop.f32.mrf.mxu1 }
 0x451   :  { %vm2314_vm13 = vcmp.ge.f32.partialorder %v2310_v33, 0.0  ;;  %v2316_v37 = vmul.f32 0.01, %v2310_v33  ;;  %v2312_v39 = vadd.f32 %v2311_v35, %v2241_v34 }
 0x453   :  { %v6267_v40 = vsel %vm2314_vm13, %v2310_v33, %v2316_v37  ;;  %vm2315_vm14 = vcmp.ge.f32.partialorder %v2312_v39, 0.0  ;;  %v2317_v5 = vmul.f32 0.01, %v2312_v39 }
 0x455   :  { %v2319_v31 = vsel %vm2315_vm14, %v2312_v39, %v2317_v5 }
 0x456   :  { %6025 = dma.done.wait [#allocation13 + $0x3], 2048 }
 0x457   :  { %6026 = vsyncadd [#allocation13 + $0x3], 4294965248  ;;  %2459 = vmatprep.mubr.f32.mxu0 %v2319_v31  ;;  %v5452_v41 = vld [vmem:[#allocation5 + $0x78] sm:$0xff]   ;;  %v5451_v43 = vld [vmem:[#allocation5 + $0x70] sm:$0xff]  }
 0x458   :  { %v5444_v42 = vld [vmem:[#allocation5 + $0x38] sm:$0xff]   ;;  %v5276_v44 = vunpack.c.l.bf16 %v5452_v41  ;;  %v5277_v45 = vunpack.c.h.bf16 %v5452_v41  ;;  %v5443_v47 = vld [vmem:[#allocation5 + $0x30] sm:$0xff]   ;;  %v5273_v49 = vunpack.c.h.bf16 %v5451_v43  ;;  %v5450_v55 = vld [vmem:[#allocation5 + $0x68] sm:$0xff]   ;;  %v5272_v56 = vunpack.c.l.bf16 %v5451_v43 }
 0x459   :  { %v5245_v46 = vunpack.c.h.bf16 %v5444_v42  ;;  %v5244_v48 = vunpack.c.l.bf16 %v5444_v42  ;;  %v5241_v53 = vunpack.c.h.bf16 %v5443_v47  ;;  %v5442_v29 = vld [vmem:[#allocation5 + $0x28] sm:$0xff]   ;;  %v5240_v57 = vunpack.c.l.bf16 %v5443_v47  ;;  %v5449_v60 = vld [vmem:[#allocation5 + $0x60] sm:$0xff]   ;;  %v5448_v4 = vld [vmem:[#allocation5 + $0x58] sm:$0xff]  }
 0x45a   :  { %5489 = vmatprep.subr.mxu0 %v5277_v45  ;;  %v5269_v58 = vunpack.c.h.bf16 %v5450_v55  ;;  %v5237_v38 = vunpack.c.h.bf16 %v5442_v29  ;;  %v5268_v26 = vunpack.c.l.bf16 %v5450_v55  ;;  %v5441_v61 = vld [vmem:[#allocation5 + $0x20] sm:$0xff]   ;;  %v5236_v36 = vunpack.c.l.bf16 %v5442_v29  ;;  %v5440_v7 = vld [vmem:[#allocation5 + $0x18] sm:$0xff]   ;;  %v5447_v17 = vld [vmem:[#allocation5 + $0x50] sm:$0xff]  }
 0x45b   :  { %5490 = vmatpush3.msra.mxu0 %v5245_v46  ;;  %v5265_v62 = vunpack.c.h.bf16 %v5449_v60  ;;  %v5233_v3 = vunpack.c.h.bf16 %v5441_v61  ;;  %v5264_v6 = vunpack.c.l.bf16 %v5449_v60  ;;  %v5232_v8 = vunpack.c.l.bf16 %v5441_v61  ;;  %v5439_v12 = vld [vmem:[#allocation5 + $0x10] sm:$0xff]   ;;  %v5446_v18 = vld [vmem:[#allocation5 + $0x48] sm:$0xff]   ;;  %v5445_v27 = vld [vmem:[#allocation5 + $0x40] sm:$0xff]  }
 0x45c   :  { %5491 = vmatprep.subr.mxu0 %v5276_v44  ;;  %v5261_v2 = vunpack.c.h.bf16 %v5448_v4  ;;  %v5229_v10 = vunpack.c.h.bf16 %v5440_v7  ;;  %v5260_v11 = vunpack.c.l.bf16 %v5448_v4  ;;  %v5228_v15 = vunpack.c.l.bf16 %v5440_v7  ;;  %v5438_v20 = vld [vmem:[#allocation5 + $0x8] sm:$0xff]   ;;  %v5215_v30 = vld [vmem:[#allocation5] sm:$0xff]   ;;  %v5194_v5 = vld [vmem:[#allocation17 + $0xe] ss:$0 sm:$0xff] }
 0x45d   :  { %5492 = vmatpush3.msra.mxu0 %v5244_v48  ;;  %v5257_v16 = vunpack.c.h.bf16 %v5447_v17  ;;  %v5225_v14 = vunpack.c.h.bf16 %v5439_v12  ;;  %v5256_v19 = vunpack.c.l.bf16 %v5447_v17  ;;  %v5224_v22 = vunpack.c.l.bf16 %v5439_v12 }
 0x45e   :  { %5493 = vmatprep.subr.mxu0 %v5273_v49  ;;  %v5253_v23 = vunpack.c.h.bf16 %v5446_v18  ;;  %v5221_v24 = vunpack.c.h.bf16 %v5438_v20  ;;  %v5252_v28 = vunpack.c.l.bf16 %v5446_v18  ;;  %v5220_v32 = vunpack.c.l.bf16 %v5438_v20 }
 0x45f   :  { %5494 = vmatpush3.msra.mxu0 %v5241_v53  ;;  %v5249_v33 = vunpack.c.h.bf16 %v5445_v27  ;;  %v5217_v34 = vunpack.c.h.bf16 %v5215_v30  ;;  %v5248_v35 = vunpack.c.l.bf16 %v5445_v27  ;;  %v5216_v37 = vunpack.c.l.bf16 %v5215_v30 }
 0x460   :  { %5495 = vmatprep.subr.mxu0 %v5272_v56 }
 0x461   :  { %5496 = vmatpush3.msra.mxu0 %v5240_v57 }
 0x462   :  { %5497 = vmatprep.subr.mxu0 %v5269_v58 }
 0x463   :  { %5498 = vmatpush3.msra.mxu0 %v5237_v38 }
 0x464   :  { %5499 = vmatprep.subr.mxu0 %v5268_v26 }
 0x465   :  { %5500 = vmatpush3.msra.mxu0 %v5236_v36 }
 0x466   :  { %5501 = vmatprep.subr.mxu0 %v5265_v62 }
 0x467   :  { %5502 = vmatpush3.msra.mxu0 %v5233_v3 }
 0x468   :  { %5503 = vmatprep.subr.mxu0 %v5264_v6 }
 0x469   :  { %5504 = vmatpush3.msra.mxu0 %v5232_v8 }
 0x46a   :  { %5505 = vmatprep.subr.mxu0 %v5261_v2 }
 0x46b   :  { %5506 = vmatpush3.msra.mxu0 %v5229_v10 }
 0x46c   :  { %5507 = vmatprep.subr.mxu0 %v5260_v11 }
 0x46d   :  { %5508 = vmatpush3.msra.mxu0 %v5228_v15 }
 0x46e   :  { %5509 = vmatprep.subr.mxu0 %v5257_v16 }
 0x46f   :  { %5510 = vmatpush3.msra.mxu0 %v5225_v14 }
 0x470   :  { %5511 = vmatprep.subr.mxu0 %v5256_v19 }
 0x471   :  { %5512 = vmatpush3.msra.mxu0 %v5224_v22 }
 0x472   :  { %5513 = vmatprep.subr.mxu0 %v5253_v23 }
 0x473   :  { %5514 = vmatpush3.msra.mxu0 %v5221_v24 }
 0x474   :  { %5515 = vmatprep.subr.mxu0 %v5252_v28 }
 0x475   :  { %5516 = vmatpush3.msra.mxu0 %v5220_v32 }
 0x476   :  { %5517 = vmatprep.subr.mxu0 %v5249_v33 }
 0x477   :  { %5518 = vmatpush3.msra.mxu0 %v5217_v34 }
 0x478   :  { %5519 = vmatprep.subr.mxu0 %v5248_v35 }
 0x479   :  { %5520 = vmatpush3.msra.mxu0 %v5216_v37 }
 0x47a   :  { %2460 = vmatmul.mubr.f32.vlgmr.msra.gmra.mxu0 %v6267_v40 }
 0x53a   :  { %v5521_v39 = vpop.f32.mrf.mxu0 }
 0x53c   :  { %v5522_v31 = vpop.f32.mrf.mxu0 }
 0x53d   :  { %v5523_v41 = vadd.f32 %v5522_v31, %v5521_v39 }
 0x53f   :  { %v2462_v42 = vadd.f32 %v5523_v41, %v5194_v5 }
 0x541   :  { %vm2465_vm15 = vcmp.ge.f32.partialorder %v2462_v42, 0.0  ;;  %v2466_v43 = vmul.f32 0.01, %v2462_v42 }
 0x543   :  { %v2467_v44 = vsel %vm2465_vm15, %v2462_v42, %v2466_v43 }
 0x544   :  { %6027 = dma.done.wait [#allocation13 + $0x4], 1024 }
 0x545   :  { %6028 = vsyncadd [#allocation13 + $0x4], 4294966272  ;;  %5610 = vmatprep.subr.mxu1 %v6056_v1  ;;  %vm6057_vm1 = vmmov 0   ;;  %v5459_v45 = vld [vmem:[#allocation6 + $0x38] sm:$0xff]   ;;  %v5458_v46 = vld [vmem:[#allocation6 + $0x30] sm:$0xff]   ;;  %v2582_v10 = vand.u32 127, %v238_v50 }
 0x546   :  { %5642 = vmatprep.mubr.msk.f32.mxu1 %vm6057_vm1, %v6056_v1  ;;  %v5308_v47 = vunpack.c.l.bf16 %v5459_v45  ;;  %v5309_v40 = vunpack.c.h.bf16 %v5459_v45  ;;  %v5305_v48 = vunpack.c.h.bf16 %v5458_v46  ;;  %v5457_v49 = vld [vmem:[#allocation6 + $0x28] sm:$0xff]   ;;  %v5304_v53 = vunpack.c.l.bf16 %v5458_v46  ;;  %v5456_v56 = vld [vmem:[#allocation6 + $0x20] sm:$0xff]   ;;  %v5455_v58 = vld [vmem:[#allocation6 + $0x18] sm:$0xff]  }
 0x547   :  { %v5301_v55 = vunpack.c.h.bf16 %v5457_v49  ;;  %v5300_v29 = vunpack.c.l.bf16 %v5457_v49  ;;  %v5297_v57 = vunpack.c.h.bf16 %v5456_v56  ;;  %v5296_v38 = vunpack.c.l.bf16 %v5456_v56  ;;  %v5454_v26 = vld [vmem:[#allocation6 + $0x10] sm:$0xff]   ;;  %v5453_v62 = vld [vmem:[#allocation6 + $0x8] sm:$0xff]   ;;  %v5279_v6 = vld [vmem:[#allocation6] sm:$0xff]  }
 0x548   :  { %5611 = vmatpush3.msra.mxu1 %v5309_v40  ;;  %v5293_v60 = vunpack.c.h.bf16 %v5455_v58  ;;  %v5292_v61 = vunpack.c.l.bf16 %v5455_v58  ;;  %v5289_v36 = vunpack.c.h.bf16 %v5454_v26  ;;  %v5288_v3 = vunpack.c.l.bf16 %v5454_v26  ;;  %v5195_v17 = vld [vmem:[#allocation17 + $0xf] ss:$0 sm:$0xff] }
 0x549   :  { %5612 = vmatprep.subr.mxu1 %v6056_v1  ;;  %v5285_v4 = vunpack.c.h.bf16 %v5453_v62  ;;  %v5284_v7 = vunpack.c.l.bf16 %v5453_v62  ;;  %v5281_v8 = vunpack.c.h.bf16 %v5279_v6  ;;  %v5280_v2 = vunpack.c.l.bf16 %v5279_v6 }
 0x54a   :  { %5613 = vmatpush3.msra.mxu1 %v5308_v47  ;;  %vm2583_vm2 = vcmp.lt.s32.totalorder %v2582_v10, 8 }
 0x54b   :  { %5614 = vmatprep.subr.mxu1 %v6056_v1 }
 0x54c   :  { %5615 = vmatpush3.msra.mxu1 %v5305_v48 }
 0x54d   :  { %5616 = vmatprep.subr.mxu1 %v6056_v1 }
 0x54e   :  { %5617 = vmatpush3.msra.mxu1 %v5304_v53 }
 0x54f   :  { %5618 = vmatprep.subr.mxu1 %v6056_v1 }
 0x550   :  { %5619 = vmatpush3.msra.mxu1 %v5301_v55 }
 0x551   :  { %5620 = vmatprep.subr.mxu1 %v6056_v1 }
 0x552   :  { %5621 = vmatpush3.msra.mxu1 %v5300_v29 }
 0x553   :  { %5622 = vmatprep.subr.mxu1 %v6056_v1 }
 0x554   :  { %5623 = vmatpush3.msra.mxu1 %v5297_v57 }
 0x555   :  { %5624 = vmatprep.subr.mxu1 %v6056_v1 }
 0x556   :  { %5625 = vmatpush3.msra.mxu1 %v5296_v38 }
 0x557   :  { %5626 = vmatprep.subr.mxu1 %v6056_v1 }
 0x558   :  { %5627 = vmatpush3.msra.mxu1 %v5293_v60 }
 0x559   :  { %5628 = vmatprep.subr.mxu1 %v6056_v1 }
 0x55a   :  { %5629 = vmatpush3.msra.mxu1 %v5292_v61 }
 0x55b   :  { %5630 = vmatprep.subr.mxu1 %v6056_v1 }
 0x55c   :  { %5631 = vmatpush3.msra.mxu1 %v5289_v36 }
 0x55d   :  { %5632 = vmatprep.subr.mxu1 %v6056_v1 }
 0x55e   :  { %5633 = vmatpush3.msra.mxu1 %v5288_v3 }
 0x55f   :  { %5634 = vmatprep.subr.mxu1 %v6056_v1 }
 0x560   :  { %5635 = vmatpush3.msra.mxu1 %v5285_v4 }
 0x561   :  { %5636 = vmatprep.subr.mxu1 %v6056_v1 }
 0x562   :  { %5637 = vmatpush3.msra.mxu1 %v5284_v7 }
 0x563   :  { %5638 = vmatprep.subr.mxu1 %v6056_v1 }
 0x564   :  { %5639 = vmatpush3.msra.mxu1 %v5281_v8 }
 0x565   :  { %5640 = vmatprep.subr.mxu1 %v6056_v1 }
 0x566   :  { %5641 = vmatpush3.msra.mxu1 %v5280_v2 }
 0x567   :  { %5643 = vmatmul.mubr.f32.vlgmr.msra.gmra.mxu1 %v2467_v44 }
 0x627   :  { %v2577_v11 = vpop.f32.mrf.mxu1 }
 0x628   :  { %v2578_v12 = vadd.f32 %v5195_v17, %v2577_v11 }
 0x629   :  { %v5644_v15 = vpop.f32.mrf.mxu1 }
 0x62a   :  { %v2584_v16 = vsel %vm2583_vm2, %v2578_v12, -1e+30 }
 0x62b   :  { %2585 = vmax.xlane.f32.xlu0 %v2584_v16 }
 0x6b4   :  { %v2586_v14 = vpop.xlane.xlu0 %2585 }
 0x6b5   :  { %v2587_v18 = vsub.f32 %v2584_v16, %v2586_v14 }
 0x6b7   :  { %v2588_v19 = vmul.f32 1.442695, %v2587_v18 }
 0x6b9   :  { %5731 = vpow2.f32 %v2588_v19 }
 0x6c6   :  { %v5732_v20 = vpop.eup %5731 }
 0x6c7   :  { %v2590_v22 = vsel %vm2583_vm2, %v5732_v20, 0.0 }
 0x6c8   :  { %2591 = vadd.xlane.f32.xlu0 %v2590_v22 }
 0x751   :  { %v2592_v23 = vpop.xlane.xlu0 %2591 }
 0x752   :  { %5733 = vrcp.f32 %v2592_v23 }
 0x75f   :  { %v5734_v24 = vpop.eup %5733 }
 0x760   :  { %v2594_v27 = vmul.f32 %v5734_v24, %v2590_v22 }
 0x762   :  { %2595 = vst [vmem:[#allocation19] sm:$0xff] %v2594_v27 }
 0x763   :  { %6029 = dma.done.wait [#allocation13 + $0x5], 2048 }
 0x764   :  { %6030 = vsyncadd [#allocation13 + $0x5], 4294965248  ;;  %2752 = vmatprep.mubr.f32.mxu0 %v6056_v1  ;;  %2823 = vmatprep.mubr.f32.mxu1 %v6056_v1  ;;  %v2610_v50 = vld [vmem:[#allocation7 + $0x60] sm:$0xff]  ;;  %v2611_v28 = vld [vmem:[#allocation7 + $0x68] sm:$0xff] }
 0x765   :  { %v2606_v30 = vld [vmem:[#allocation7 + $0x40] sm:$0xff]  ;;  %v2639_v32 = vunpack.c.h.bf16 %v2610_v50  ;;  %v2641_v33 = vunpack.c.h.bf16 %v2611_v28  ;;  %v2638_v34 = vunpack.c.l.bf16 %v2610_v50  ;;  %v2640_v35 = vunpack.c.l.bf16 %v2611_v28  ;;  %v2607_v37 = vld [vmem:[#allocation7 + $0x48] sm:$0xff]  ;;  %v2612_v55 = vld [vmem:[#allocation7 + $0x70] sm:$0xff] }
 0x766   :  { %v2602_v39 = vld [vmem:[#allocation7 + $0x20] sm:$0xff]  ;;  %v2603_v5 = vld [vmem:[#allocation7 + $0x28] sm:$0xff]  ;;  %v2631_v31 = vunpack.c.h.bf16 %v2606_v30  ;;  %v2633_v41 = vunpack.c.h.bf16 %v2607_v37  ;;  %v2630_v42 = vunpack.c.l.bf16 %v2606_v30  ;;  %v2632_v43 = vunpack.c.l.bf16 %v2607_v37  ;;  %v2613_v56 = vld [vmem:[#allocation7 + $0x78] sm:$0xff] }
 0x767   :  { %v2598_v44 = vld [vmem:[#allocation7] sm:$0xff]  ;;  %v2599_v45 = vld [vmem:[#allocation7 + $0x8] sm:$0xff]  ;;  %2712 = vmatprep.subr.mxu0 %v2639_v32  ;;  %2783 = vmatprep.subr.mxu1 %v2641_v33  ;;  %v2623_v46 = vunpack.c.h.bf16 %v2602_v39  ;;  %v2625_v47 = vunpack.c.h.bf16 %v2603_v5  ;;  %v2622_v40 = vunpack.c.l.bf16 %v2602_v39  ;;  %v2624_v48 = vunpack.c.l.bf16 %v2603_v5  ;;  %v2608_v58 = vld [vmem:[#allocation7 + $0x50] sm:$0xff] }
 0x768   :  { %2713 = vmatpush1.msra.mxu0 %v2638_v34  ;;  %2784 = vmatpush1.msra.mxu1 %v2640_v35  ;;  %v2615_v49 = vunpack.c.h.bf16 %v2598_v44  ;;  %v2617_v53 = vunpack.c.h.bf16 %v2599_v45  ;;  %v2614_v29 = vunpack.c.l.bf16 %v2598_v44  ;;  %v2616_v57 = vunpack.c.l.bf16 %v2599_v45  ;;  %v2609_v38 = vld [vmem:[#allocation7 + $0x58] sm:$0xff]  ;;  %v2604_v62 = vld [vmem:[#allocation7 + $0x30] sm:$0xff]  ;;  %v2646_v20 = vld [vmem:[%s6433_s13] sm:$0xff] }
 0x769   :  { %2714 = vmatprep.subr.mxu0 %v2631_v31  ;;  %2785 = vmatprep.subr.mxu1 %v2633_v41  ;;  %v2643_v60 = vunpack.c.h.bf16 %v2612_v55  ;;  %v2645_v26 = vunpack.c.h.bf16 %v2613_v56  ;;  %v2642_v61 = vunpack.c.l.bf16 %v2612_v55  ;;  %v2644_v36 = vunpack.c.l.bf16 %v2613_v56  ;;  %v2605_v3 = vld [vmem:[#allocation7 + $0x38] sm:$0xff]  ;;  %v2600_v2 = vld [vmem:[#allocation7 + $0x10] sm:$0xff] }
 0x76a   :  { %2715 = vmatpush1.msra.mxu0 %v2630_v42  ;;  %2786 = vmatpush1.msra.mxu1 %v2632_v43  ;;  %v2635_v4 = vunpack.c.h.bf16 %v2608_v58  ;;  %v2637_v6 = vunpack.c.h.bf16 %v2609_v38  ;;  %v2634_v7 = vunpack.c.l.bf16 %v2608_v58  ;;  %v2636_v8 = vunpack.c.l.bf16 %v2609_v38  ;;  %v2601_v10 = vld [vmem:[#allocation7 + $0x18] sm:$0xff] }
 0x76b   :  { %2716 = vmatprep.subr.mxu0 %v2623_v46  ;;  %2787 = vmatprep.subr.mxu1 %v2625_v47  ;;  %v2627_v17 = vunpack.c.h.bf16 %v2604_v62  ;;  %v2629_v11 = vunpack.c.h.bf16 %v2605_v3  ;;  %v2626_v12 = vunpack.c.l.bf16 %v2604_v62  ;;  %v2628_v15 = vunpack.c.l.bf16 %v2605_v3 }
 0x76c   :  { %2717 = vmatpush1.msra.mxu0 %v2622_v40  ;;  %2788 = vmatpush1.msra.mxu1 %v2624_v48  ;;  %v2619_v16 = vunpack.c.h.bf16 %v2600_v2  ;;  %v2621_v14 = vunpack.c.h.bf16 %v2601_v10  ;;  %v2618_v18 = vunpack.c.l.bf16 %v2600_v2  ;;  %v2620_v19 = vunpack.c.l.bf16 %v2601_v10 }
 0x76d   :  { %2718 = vmatprep.subr.mxu0 %v2615_v49  ;;  %2789 = vmatprep.subr.mxu1 %v2617_v53  ;;  %v2651_v22 = vrot.slane %v2646_v20, %v6196_v52  ;;  %v2659_v23 = vrot.slane %v2646_v20, %v6204_v59  ;;  %v2655_v50 = vrot.slane %v2646_v20, %v6199_v54 }
 0x76e   :  { %2719 = vmatpush1.msra.mxu0 %v2614_v29  ;;  %2790 = vmatpush1.msra.mxu1 %v2616_v57  ;;  %v2663_v28 = vrot.slane %v2646_v20, %v6207_v63  ;;  %v2667_v43 = vrot.slane %v2646_v20, %v256_v9  ;;  %v2675_v44 = vrot.slane %v2646_v20, %v264_v21 }
 0x76f   :  { %5196 = vmatmul.mubr.msk.f32.vlgmr.msra.gmra.mxu0 %vm278_vm0, %v6151_v0  ;;  %5197 = vmatmul.mubr.msk.f32.vlgmr.msra.gmra.mxu1 %vm278_vm0, %v6151_v0  ;;  %v2671_v48 = vrot.slane %v2646_v20, %v260_v13  ;;  %v2679_v49 = vrot.slane %v2646_v20, %v268_v25 }
 0x770   :  { %2854 = vmatprep.subr.mxu0 %v2643_v60  ;;  %2925 = vmatprep.subr.mxu1 %v2645_v26 }
 0x771   :  { %2855 = vmatpush1.msra.mxu0 %v2642_v61  ;;  %2926 = vmatpush1.msra.mxu1 %v2644_v36 }
 0x772   :  { %2856 = vmatprep.subr.mxu0 %v2635_v4  ;;  %2927 = vmatprep.subr.mxu1 %v2637_v6 }
 0x773   :  { %2857 = vmatpush1.msra.mxu0 %v2634_v7  ;;  %2928 = vmatpush1.msra.mxu1 %v2636_v8 }
 0x774   :  { %2858 = vmatprep.subr.mxu0 %v2627_v17  ;;  %2929 = vmatprep.subr.mxu1 %v2629_v11 }
 0x775   :  { %2859 = vmatpush1.msra.mxu0 %v2626_v12  ;;  %2930 = vmatpush1.msra.mxu1 %v2628_v15 }
 0x776   :  { %2860 = vmatprep.subr.mxu0 %v2619_v16  ;;  %2931 = vmatprep.subr.mxu1 %v2621_v14 }
 0x777   :  { %2861 = vmatpush1.msra.mxu0 %v2618_v18  ;;  %2894 = vmatprep.mubr.f32.mxu0 %v6056_v1 }
 0x778   :  { %2932 = vmatpush1.msra.mxu1 %v2620_v19  ;;  %2965 = vmatprep.mubr.f32.mxu1 %v6056_v1 }
 0x779   :  { %5198 = vmatmul.mubr.msk.f32.vlgmr.msra.gmra.mxu0 %vm278_vm0, %v6151_v0  ;;  %5199 = vmatmul.mubr.msk.f32.vlgmr.msra.gmra.mxu1 %vm278_vm0, %v6151_v0 }
 0x82f   :  { %v2754_v24 = vpop.f32.mrf.mxu0  ;;  %v2825_v27 = vpop.f32.mrf.mxu1 }
 0x830   :  { %v2755_v30 = vadd.f32 %v2754_v24, %v2651_v22  ;;  %v2826_v32 = vadd.f32 %v2825_v27, %v2659_v23 }
 0x831   :  { %v2756_v33 = vpop.f32.mrf.mxu0  ;;  %v2827_v34 = vpop.f32.mrf.mxu1 }
 0x832   :  { %vm2972_vm3 = vcmp.ge.f32.partialorder %v2755_v30, 0.0  ;;  %v2980_v0 = vmul.f32 0.01, %v2755_v30  ;;  %vm2974_vm0 = vcmp.ge.f32.partialorder %v2826_v32, 0.0  ;;  %v2982_v35 = vmul.f32 0.01, %v2826_v32 }
 0x833   :  { %v2757_v37 = vadd.f32 %v2756_v33, %v2655_v50  ;;  %v2828_v39 = vadd.f32 %v2827_v34, %v2663_v28 }
 0x834   :  { %v6308_v5 = vsel %vm2972_vm3, %v2755_v30, %v2980_v0  ;;  %v6310_v31 = vsel %vm2974_vm0, %v2826_v32, %v2982_v35 }
 0x835   :  { %vm2973_vm4 = vcmp.ge.f32.partialorder %v2757_v37, 0.0  ;;  %v2981_v41 = vmul.f32 0.01, %v2757_v37  ;;  %vm2975_vm5 = vcmp.ge.f32.partialorder %v2828_v39, 0.0  ;;  %v2983_v42 = vmul.f32 0.01, %v2828_v39 }
 0x837   :  { %v6316_v45 = vsel %vm2973_vm4, %v2757_v37, %v2981_v41  ;;  %v6318_v46 = vsel %vm2975_vm5, %v2828_v39, %v2983_v42 }
 0x839   :  { %v2896_v47 = vpop.f32.mrf.mxu0  ;;  %v2967_v40 = vpop.f32.mrf.mxu1 }
 0x83a   :  { %v2897_v53 = vadd.f32 %v2896_v47, %v2667_v43  ;;  %v2968_v55 = vadd.f32 %v2967_v40, %v2675_v44 }
 0x83b   :  { %v2898_v56 = vpop.f32.mrf.mxu0  ;;  %v2969_v29 = vpop.f32.mrf.mxu1 }
 0x83c   :  { %vm2976_vm6 = vcmp.ge.f32.partialorder %v2897_v53, 0.0  ;;  %v2984_v9 = vmul.f32 0.01, %v2897_v53  ;;  %vm2978_vm7 = vcmp.ge.f32.partialorder %v2968_v55, 0.0  ;;  %v2986_v21 = vmul.f32 0.01, %v2968_v55 }
 0x83d   :  { %v2899_v57 = vadd.f32 %v2898_v56, %v2671_v48  ;;  %v2970_v58 = vadd.f32 %v2969_v29, %v2679_v49 }
 0x83e   :  { %v6324_v38 = vsel %vm2976_vm6, %v2897_v53, %v2984_v9  ;;  %v6326_v60 = vsel %vm2978_vm7, %v2968_v55, %v2986_v21 }
 0x83f   :  { %vm2977_vm8 = vcmp.ge.f32.partialorder %v2899_v57, 0.0  ;;  %v2985_v26 = vmul.f32 0.01, %v2899_v57  ;;  %vm2979_vm9 = vcmp.ge.f32.partialorder %v2970_v58, 0.0  ;;  %v2987_v13 = vmul.f32 0.01, %v2970_v58 }
 0x841   :  { %v6328_v51 = vsel %vm2977_vm8, %v2899_v57, %v2985_v26  ;;  %v6330_v25 = vsel %vm2979_vm9, %v2970_v58, %v2987_v13 }
 0x842   :  { %6031 = dma.done.wait [#allocation13 + $0x6], 32768 }
 0x843   :  { %6032 = vsyncadd [#allocation13 + $0x6], 4294934528  ;;  %3852 = vmatprep.mubr.f32.mxu0 %v6316_v45  ;;  %3923 = vmatprep.mubr.f32.mxu1 %v6318_v46  ;;  %v3028_v61 = vld [vmem:[#allocation8 + $0xf0] sm:$0xff]  ;;  %v3026_v62 = vld [vmem:[#allocation8 + $0xe0] sm:$0xff] }
 0x844   :  { %v3092_v36 = vld [vmem:[#allocation8 + $0x2f0] sm:$0xff]  ;;  %v3315_v3 = vunpack.c.h.bf16 %v3028_v61  ;;  %v3314_v6 = vunpack.c.l.bf16 %v3028_v61  ;;  %v3090_v8 = vld [vmem:[#allocation8 + $0x2e0] sm:$0xff]  ;;  %v3311_v17 = vunpack.c.h.bf16 %v3026_v62  ;;  %v3310_v12 = vunpack.c.l.bf16 %v3026_v62 }
 0x845   :  { %v3443_v4 = vunpack.c.h.bf16 %v3092_v36  ;;  %v3442_v7 = vunpack.c.l.bf16 %v3092_v36  ;;  %v3024_v2 = vld [vmem:[#allocation8 + $0xd0] sm:$0xff]  ;;  %v3439_v11 = vunpack.c.h.bf16 %v3090_v8  ;;  %v3438_v15 = vunpack.c.l.bf16 %v3090_v8  ;;  %v3022_v16 = vld [vmem:[#allocation8 + $0xc0] sm:$0xff] }
 0x846   :  { %v3088_v10 = vld [vmem:[#allocation8 + $0x2d0] sm:$0xff]  ;;  %v3086_v14 = vld [vmem:[#allocation8 + $0x2c0] sm:$0xff]  ;;  %3788 = vmatprep.subr.mxu0 %v3315_v3  ;;  %v3307_v18 = vunpack.c.h.bf16 %v3024_v2  ;;  %v3306_v20 = vunpack.c.l.bf16 %v3024_v2  ;;  %v3303_v27 = vunpack.c.h.bf16 %v3022_v16  ;;  %v3302_v28 = vunpack.c.l.bf16 %v3022_v16 }
 0x847   :  { %3859 = vmatprep.subr.mxu1 %v3443_v4  ;;  %v3435_v19 = vunpack.c.h.bf16 %v3088_v10  ;;  %3789 = vmatpush1.msra.mxu0 %v3314_v6  ;;  %v3434_v22 = vunpack.c.l.bf16 %v3088_v10  ;;  %v3020_v23 = vld [vmem:[#allocation8 + $0xb0] sm:$0xff]  ;;  %v3431_v50 = vunpack.c.h.bf16 %v3086_v14  ;;  %v3430_v30 = vunpack.c.l.bf16 %v3086_v14  ;;  %v3018_v32 = vld [vmem:[#allocation8 + $0xa0] sm:$0xff] }
 0x848   :  { %3860 = vmatpush1.msra.mxu1 %v3442_v7  ;;  %v3084_v24 = vld [vmem:[#allocation8 + $0x2b0] sm:$0xff]  ;;  %3790 = vmatprep.subr.mxu0 %v3311_v17  ;;  %v3082_v33 = vld [vmem:[#allocation8 + $0x2a0] sm:$0xff]  ;;  %v3299_v34 = vunpack.c.h.bf16 %v3020_v23  ;;  %v3298_v35 = vunpack.c.l.bf16 %v3020_v23  ;;  %v3295_v42 = vunpack.c.h.bf16 %v3018_v32  ;;  %v3294_v44 = vunpack.c.l.bf16 %v3018_v32 }
 0x849   :  { %3861 = vmatprep.subr.mxu1 %v3439_v11  ;;  %3791 = vmatpush1.msra.mxu0 %v3310_v12  ;;  %v3427_v0 = vunpack.c.h.bf16 %v3084_v24  ;;  %v3426_v37 = vunpack.c.l.bf16 %v3084_v24  ;;  %v3016_v39 = vld [vmem:[#allocation8 + $0x90] sm:$0xff]  ;;  %v3423_v43 = vunpack.c.h.bf16 %v3082_v33  ;;  %v3422_v47 = vunpack.c.l.bf16 %v3082_v33  ;;  %v3014_v40 = vld [vmem:[#allocation8 + $0x80] sm:$0xff] }
 0x84a   :  { %3862 = vmatpush1.msra.mxu1 %v3438_v15  ;;  %3792 = vmatprep.subr.mxu0 %v3307_v18  ;;  %v3080_v41 = vld [vmem:[#allocation8 + $0x290] sm:$0xff]  ;;  %v3078_v48 = vld [vmem:[#allocation8 + $0x280] sm:$0xff]  ;;  %v3291_v49 = vunpack.c.h.bf16 %v3016_v39  ;;  %v3290_v55 = vunpack.c.l.bf16 %v3016_v39  ;;  %v3287_v21 = vunpack.c.h.bf16 %v3014_v40  ;;  %v3286_v58 = vunpack.c.l.bf16 %v3014_v40 }
 0x84b   :  { %3863 = vmatprep.subr.mxu1 %v3435_v19  ;;  %3793 = vmatpush1.msra.mxu0 %v3306_v20  ;;  %v3419_v53 = vunpack.c.h.bf16 %v3080_v41  ;;  %v3418_v56 = vunpack.c.l.bf16 %v3080_v41  ;;  %v3012_v29 = vld [vmem:[#allocation8 + $0x70] sm:$0xff]  ;;  %v3415_v57 = vunpack.c.h.bf16 %v3078_v48  ;;  %v3414_v26 = vunpack.c.l.bf16 %v3078_v48  ;;  %v3010_v13 = vld [vmem:[#allocation8 + $0x60] sm:$0xff] }
 0x84c   :  { %3864 = vmatpush1.msra.mxu1 %v3434_v22  ;;  %3794 = vmatprep.subr.mxu0 %v3303_v27  ;;  %v3076_v9 = vld [vmem:[#allocation8 + $0x270] sm:$0xff]  ;;  %v3074_v61 = vld [vmem:[#allocation8 + $0x260] sm:$0xff]  ;;  %v3283_v36 = vunpack.c.h.bf16 %v3012_v29  ;;  %v3282_v3 = vunpack.c.l.bf16 %v3012_v29  ;;  %v3279_v8 = vunpack.c.h.bf16 %v3010_v13  ;;  %v3278_v10 = vunpack.c.l.bf16 %v3010_v13 }
 0x84d   :  { %3865 = vmatprep.subr.mxu1 %v3431_v50  ;;  %3795 = vmatpush1.msra.mxu0 %v3302_v28  ;;  %v3411_v62 = vunpack.c.h.bf16 %v3076_v9  ;;  %v3410_v4 = vunpack.c.l.bf16 %v3076_v9  ;;  %v3008_v6 = vld [vmem:[#allocation8 + $0x50] sm:$0xff]  ;;  %v3407_v2 = vunpack.c.h.bf16 %v3074_v61  ;;  %v3406_v17 = vunpack.c.l.bf16 %v3074_v61  ;;  %v3006_v11 = vld [vmem:[#allocation8 + $0x40] sm:$0xff] }
 0x84e   :  { %3866 = vmatpush1.msra.mxu1 %v3430_v30  ;;  %3796 = vmatprep.subr.mxu0 %v3299_v34  ;;  %v3072_v7 = vld [vmem:[#allocation8 + $0x250] sm:$0xff]  ;;  %v3070_v12 = vld [vmem:[#allocation8 + $0x240] sm:$0xff]  ;;  %v3275_v15 = vunpack.c.h.bf16 %v3008_v6  ;;  %v3274_v14 = vunpack.c.l.bf16 %v3008_v6  ;;  %v3271_v22 = vunpack.c.h.bf16 %v3006_v11  ;;  %v3270_v24 = vunpack.c.l.bf16 %v3006_v11 }
 0x84f   :  { %3867 = vmatprep.subr.mxu1 %v3427_v0  ;;  %3797 = vmatpush1.msra.mxu0 %v3298_v35  ;;  %v3403_v16 = vunpack.c.h.bf16 %v3072_v7  ;;  %v3402_v18 = vunpack.c.l.bf16 %v3072_v7  ;;  %v3004_v19 = vld [vmem:[#allocation8 + $0x30] sm:$0xff]  ;;  %v3399_v23 = vunpack.c.h.bf16 %v3070_v12  ;;  %v3398_v27 = vunpack.c.l.bf16 %v3070_v12  ;;  %v3002_v50 = vld [vmem:[#allocation8 + $0x20] sm:$0xff] }
 0x850   :  { %3868 = vmatpush1.msra.mxu1 %v3426_v37  ;;  %3798 = vmatprep.subr.mxu0 %v3295_v42  ;;  %v3068_v20 = vld [vmem:[#allocation8 + $0x230] sm:$0xff]  ;;  %v3066_v28 = vld [vmem:[#allocation8 + $0x220] sm:$0xff]  ;;  %v3267_v30 = vunpack.c.h.bf16 %v3004_v19  ;;  %v3266_v33 = vunpack.c.l.bf16 %v3004_v19  ;;  %v3263_v37 = vunpack.c.h.bf16 %v3002_v50  ;;  %v3262_v41 = vunpack.c.l.bf16 %v3002_v50 }
 0x851   :  { %3869 = vmatprep.subr.mxu1 %v3423_v43  ;;  %3799 = vmatpush1.msra.mxu0 %v3294_v44  ;;  %v3395_v32 = vunpack.c.h.bf16 %v3068_v20  ;;  %v3394_v34 = vunpack.c.l.bf16 %v3068_v20  ;;  %v3000_v0 = vld [vmem:[#allocation8 + $0x10] sm:$0xff]  ;;  %v3391_v39 = vunpack.c.h.bf16 %v3066_v28  ;;  %v3390_v42 = vunpack.c.l.bf16 %v3066_v28  ;;  %v2998_v43 = vld [vmem:[#allocation8] sm:$0xff] }
 0x852   :  { %3870 = vmatpush1.msra.mxu1 %v3422_v47  ;;  %3800 = vmatprep.subr.mxu0 %v3291_v49  ;;  %v3064_v35 = vld [vmem:[#allocation8 + $0x210] sm:$0xff]  ;;  %v3062_v44 = vld [vmem:[#allocation8 + $0x200] sm:$0xff]  ;;  %v3259_v47 = vunpack.c.h.bf16 %v3000_v0  ;;  %v3258_v48 = vunpack.c.l.bf16 %v3000_v0  ;;  %v3254_v9 = vunpack.c.l.bf16 %v2998_v43 }
 0x853   :  { %3871 = vmatprep.subr.mxu1 %v3419_v53  ;;  %3801 = vmatpush1.msra.mxu0 %v3290_v55  ;;  %v3387_v40 = vunpack.c.h.bf16 %v3064_v35  ;;  %v3386_v49 = vunpack.c.l.bf16 %v3064_v35  ;;  %v3060_v53 = vld [vmem:[#allocation8 + $0x1f0] sm:$0xff]  ;;  %v3383_v29 = vunpack.c.h.bf16 %v3062_v44 }
 0x854   :  { %3872 = vmatpush1.msra.mxu1 %v3418_v56  ;;  %3802 = vmatprep.subr.mxu0 %v3287_v21  ;;  %v3124_v55 = vld [vmem:[#allocation8 + $0x3f0] sm:$0xff]  ;;  %v3255_v56 = vunpack.c.h.bf16 %v2998_v43  ;;  %v3382_v21 = vunpack.c.l.bf16 %v3062_v44  ;;  %v3378_v61 = vunpack.c.l.bf16 %v3060_v53 }
 0x855   :  { %3873 = vmatprep.subr.mxu1 %v3415_v57  ;;  %3803 = vmatpush1.msra.mxu0 %v3286_v58  ;;  %v3058_v57 = vld [vmem:[#allocation8 + $0x1e0] sm:$0xff]  ;;  %v3507_v13 = vunpack.c.h.bf16 %v3124_v55 }
 0x856   :  { %3874 = vmatpush1.msra.mxu1 %v3414_v26  ;;  %3804 = vmatprep.subr.mxu0 %v3283_v36  ;;  %v3122_v58 = vld [vmem:[#allocation8 + $0x3e0] sm:$0xff]  ;;  %v3379_v26 = vunpack.c.h.bf16 %v3060_v53  ;;  %v3506_v36 = vunpack.c.l.bf16 %v3124_v55  ;;  %v3374_v7 = vunpack.c.l.bf16 %v3058_v57 }
 0x857   :  { %3875 = vmatprep.subr.mxu1 %v3411_v62  ;;  %3805 = vmatpush1.msra.mxu0 %v3282_v3  ;;  %v3056_v62 = vld [vmem:[#allocation8 + $0x1d0] sm:$0xff]  ;;  %v3503_v6 = vunpack.c.h.bf16 %v3122_v58 }
 0x858   :  { %3876 = vmatpush1.msra.mxu1 %v3410_v4  ;;  %3806 = vmatprep.subr.mxu0 %v3279_v8  ;;  %v3120_v3 = vld [vmem:[#allocation8 + $0x3d0] sm:$0xff]  ;;  %v3375_v4 = vunpack.c.h.bf16 %v3058_v57  ;;  %v3502_v8 = vunpack.c.l.bf16 %v3122_v58  ;;  %v3370_v12 = vunpack.c.l.bf16 %v3056_v62 }
 0x859   :  { %3877 = vmatprep.subr.mxu1 %v3407_v2  ;;  %3807 = vmatpush1.msra.mxu0 %v3278_v10  ;;  %v3054_v2 = vld [vmem:[#allocation8 + $0x1c0] sm:$0xff]  ;;  %v3499_v11 = vunpack.c.h.bf16 %v3120_v3 }
 0x85a   :  { %3878 = vmatpush1.msra.mxu1 %v3406_v17  ;;  %3808 = vmatprep.subr.mxu0 %v3275_v15  ;;  %v3118_v10 = vld [vmem:[#allocation8 + $0x3c0] sm:$0xff]  ;;  %v3371_v17 = vunpack.c.h.bf16 %v3056_v62  ;;  %v3498_v15 = vunpack.c.l.bf16 %v3120_v3  ;;  %v3366_v20 = vunpack.c.l.bf16 %v3054_v2 }
 0x85b   :  { %3879 = vmatprep.subr.mxu1 %v3403_v16  ;;  %3809 = vmatpush1.msra.mxu0 %v3274_v14  ;;  %v3052_v16 = vld [vmem:[#allocation8 + $0x1b0] sm:$0xff]  ;;  %v3495_v19 = vunpack.c.h.bf16 %v3118_v10 }
 0x85c   :  { %3880 = vmatpush1.msra.mxu1 %v3402_v18  ;;  %3810 = vmatprep.subr.mxu0 %v3271_v22  ;;  %v3116_v14 = vld [vmem:[#allocation8 + $0x3b0] sm:$0xff]  ;;  %v3367_v18 = vunpack.c.h.bf16 %v3054_v2  ;;  %v3494_v22 = vunpack.c.l.bf16 %v3118_v10  ;;  %v3362_v28 = vunpack.c.l.bf16 %v3052_v16 }
 0x85d   :  { %3881 = vmatprep.subr.mxu1 %v3399_v23  ;;  %3811 = vmatpush1.msra.mxu0 %v3270_v24  ;;  %v3050_v23 = vld [vmem:[#allocation8 + $0x1a0] sm:$0xff]  ;;  %v3491_v50 = vunpack.c.h.bf16 %v3116_v14 }
 0x85e   :  { %3882 = vmatpush1.msra.mxu1 %v3398_v27  ;;  %3812 = vmatprep.subr.mxu0 %v3267_v30  ;;  %v3114_v24 = vld [vmem:[#allocation8 + $0x3a0] sm:$0xff]  ;;  %v3363_v27 = vunpack.c.h.bf16 %v3052_v16  ;;  %v3490_v30 = vunpack.c.l.bf16 %v3116_v14  ;;  %v3358_v35 = vunpack.c.l.bf16 %v3050_v23 }
 0x85f   :  { %3883 = vmatprep.subr.mxu1 %v3395_v32  ;;  %3813 = vmatpush1.msra.mxu0 %v3266_v33  ;;  %v3048_v32 = vld [vmem:[#allocation8 + $0x190] sm:$0xff]  ;;  %v3487_v0 = vunpack.c.h.bf16 %v3114_v24 }
 0x860   :  { %3884 = vmatpush1.msra.mxu1 %v3394_v34  ;;  %3814 = vmatprep.subr.mxu0 %v3263_v37  ;;  %v3112_v33 = vld [vmem:[#allocation8 + $0x390] sm:$0xff]  ;;  %v3359_v34 = vunpack.c.h.bf16 %v3050_v23  ;;  %v3486_v37 = vunpack.c.l.bf16 %v3114_v24  ;;  %v3354_v44 = vunpack.c.l.bf16 %v3048_v32 }
 0x861   :  { %3885 = vmatprep.subr.mxu1 %v3391_v39  ;;  %3815 = vmatpush1.msra.mxu0 %v3262_v41  ;;  %v3046_v39 = vld [vmem:[#allocation8 + $0x180] sm:$0xff]  ;;  %v3483_v43 = vunpack.c.h.bf16 %v3112_v33 }
 0x862   :  { %3886 = vmatpush1.msra.mxu1 %v3390_v42  ;;  %3816 = vmatprep.subr.mxu0 %v3259_v47  ;;  %v3110_v41 = vld [vmem:[#allocation8 + $0x380] sm:$0xff]  ;;  %v3355_v42 = vunpack.c.h.bf16 %v3048_v32  ;;  %v3482_v47 = vunpack.c.l.bf16 %v3112_v33  ;;  %v3350_v55 = vunpack.c.l.bf16 %v3046_v39 }
 0x863   :  { %3887 = vmatprep.subr.mxu1 %v3387_v40  ;;  %3817 = vmatpush1.msra.mxu0 %v3258_v48  ;;  %v3044_v40 = vld [vmem:[#allocation8 + $0x170] sm:$0xff]  ;;  %v3479_v53 = vunpack.c.h.bf16 %v3110_v41 }
 0x864   :  { %3888 = vmatpush1.msra.mxu1 %v3386_v49  ;;  %3818 = vmatprep.subr.mxu0 %v3255_v56  ;;  %v3108_v48 = vld [vmem:[#allocation8 + $0x370] sm:$0xff]  ;;  %v3351_v49 = vunpack.c.h.bf16 %v3046_v39  ;;  %v3478_v56 = vunpack.c.l.bf16 %v3110_v41  ;;  %v3346_v58 = vunpack.c.l.bf16 %v3044_v40 }
 0x865   :  { %3889 = vmatprep.subr.mxu1 %v3383_v29  ;;  %3819 = vmatpush1.msra.mxu0 %v3254_v9  ;;  %v3042_v29 = vld [vmem:[#allocation8 + $0x160] sm:$0xff]  ;;  %v3475_v57 = vunpack.c.h.bf16 %v3108_v48 }
 0x866   :  { %3890 = vmatpush1.msra.mxu1 %v3382_v21  ;;  %3820 = vmatprep.subr.mxu0 %v3379_v26  ;;  %v3106_v9 = vld [vmem:[#allocation8 + $0x360] sm:$0xff]  ;;  %v3347_v21 = vunpack.c.h.bf16 %v3044_v40  ;;  %v3474_v26 = vunpack.c.l.bf16 %v3108_v48  ;;  %v3342_v3 = vunpack.c.l.bf16 %v3042_v29  ;;  %v3220_v40 = vld [vmem:[#allocation8 + $0x6f0] sm:$0xff] }
 0x867   :  { %3891 = vmatprep.subr.mxu1 %v3507_v13  ;;  %3821 = vmatpush2.msra.mxu0 %v3378_v61  ;;  %v3040_v13 = vld [vmem:[#allocation8 + $0x150] sm:$0xff]  ;;  %v3471_v62 = vunpack.c.h.bf16 %v3106_v9 }
 0x868   :  { %3892 = vmatpush2.msra.mxu1 %v3506_v36  ;;  %3822 = vmatprep.subr.mxu0 %v3375_v4  ;;  %v3104_v61 = vld [vmem:[#allocation8 + $0x350] sm:$0xff]  ;;  %v3343_v36 = vunpack.c.h.bf16 %v3042_v29  ;;  %v3470_v4 = vunpack.c.l.bf16 %v3106_v9  ;;  %v3338_v10 = vunpack.c.l.bf16 %v3040_v13  ;;  %v3699_v29 = vunpack.c.h.bf16 %v3220_v40 }
 0x869   :  { %3893 = vmatprep.subr.mxu1 %v3503_v6  ;;  %3823 = vmatpush2.msra.mxu0 %v3374_v7  ;;  %v3038_v6 = vld [vmem:[#allocation8 + $0x140] sm:$0xff]  ;;  %v3467_v2 = vunpack.c.h.bf16 %v3104_v61 }
 0x86a   :  { %3894 = vmatpush2.msra.mxu1 %v3502_v8  ;;  %3824 = vmatprep.subr.mxu0 %v3371_v17  ;;  %v3102_v7 = vld [vmem:[#allocation8 + $0x340] sm:$0xff]  ;;  %v3339_v8 = vunpack.c.h.bf16 %v3040_v13  ;;  %v3466_v17 = vunpack.c.l.bf16 %v3104_v61  ;;  %v3334_v14 = vunpack.c.l.bf16 %v3038_v6 }
 0x86b   :  { %3895 = vmatprep.subr.mxu1 %v3499_v11  ;;  %3825 = vmatpush2.msra.mxu0 %v3370_v12  ;;  %v3036_v11 = vld [vmem:[#allocation8 + $0x130] sm:$0xff]  ;;  %v3463_v16 = vunpack.c.h.bf16 %v3102_v7 }
 0x86c   :  { %3896 = vmatpush2.msra.mxu1 %v3498_v15  ;;  %3826 = vmatprep.subr.mxu0 %v3367_v18  ;;  %v3100_v12 = vld [vmem:[#allocation8 + $0x330] sm:$0xff]  ;;  %v3335_v15 = vunpack.c.h.bf16 %v3038_v6  ;;  %v3462_v18 = vunpack.c.l.bf16 %v3102_v7  ;;  %v3330_v24 = vunpack.c.l.bf16 %v3036_v11 }
 0x86d   :  { %3897 = vmatprep.subr.mxu1 %v3495_v19  ;;  %3827 = vmatpush2.msra.mxu0 %v3366_v20  ;;  %v3034_v19 = vld [vmem:[#allocation8 + $0x120] sm:$0xff]  ;;  %v3459_v23 = vunpack.c.h.bf16 %v3100_v12 }
 0x86e   :  { %3898 = vmatpush2.msra.mxu1 %v3494_v22  ;;  %3828 = vmatprep.subr.mxu0 %v3363_v27  ;;  %v3098_v20 = vld [vmem:[#allocation8 + $0x320] sm:$0xff]  ;;  %v3331_v22 = vunpack.c.h.bf16 %v3036_v11  ;;  %v3458_v27 = vunpack.c.l.bf16 %v3100_v12  ;;  %v3326_v33 = vunpack.c.l.bf16 %v3034_v19 }
 0x86f   :  { %3899 = vmatprep.subr.mxu1 %v3491_v50  ;;  %3829 = vmatpush2.msra.mxu0 %v3362_v28  ;;  %v3032_v50 = vld [vmem:[#allocation8 + $0x110] sm:$0xff]  ;;  %v3455_v32 = vunpack.c.h.bf16 %v3098_v20 }
 0x870   :  { %3900 = vmatpush2.msra.mxu1 %v3490_v30  ;;  %3830 = vmatprep.subr.mxu0 %v3359_v34  ;;  %v3096_v28 = vld [vmem:[#allocation8 + $0x310] sm:$0xff]  ;;  %v3327_v30 = vunpack.c.h.bf16 %v3034_v19  ;;  %v3454_v34 = vunpack.c.l.bf16 %v3098_v20  ;;  %v3322_v41 = vunpack.c.l.bf16 %v3032_v50 }
 0x871   :  { %3901 = vmatprep.subr.mxu1 %v3487_v0  ;;  %3831 = vmatpush2.msra.mxu0 %v3358_v35  ;;  %v3030_v0 = vld [vmem:[#allocation8 + $0x100] sm:$0xff]  ;;  %v3451_v39 = vunpack.c.h.bf16 %v3096_v28 }
 0x872   :  { %3902 = vmatpush2.msra.mxu1 %v3486_v37  ;;  %3832 = vmatprep.subr.mxu0 %v3355_v42  ;;  %v3094_v35 = vld [vmem:[#allocation8 + $0x300] sm:$0xff]  ;;  %v3323_v37 = vunpack.c.h.bf16 %v3032_v50  ;;  %v3450_v42 = vunpack.c.l.bf16 %v3096_v28  ;;  %v3318_v48 = vunpack.c.l.bf16 %v3030_v0 }
 0x873   :  { %3903 = vmatprep.subr.mxu1 %v3483_v43  ;;  %3833 = vmatpush2.msra.mxu0 %v3354_v44  ;;  %v3156_v43 = vld [vmem:[#allocation8 + $0x4f0] sm:$0xff]  ;;  %v3319_v44 = vunpack.c.h.bf16 %v3030_v0 }
 0x874   :  { %3904 = vmatpush2.msra.mxu1 %v3482_v47  ;;  %3834 = vmatprep.subr.mxu0 %v3351_v49  ;;  %v3447_v47 = vunpack.c.h.bf16 %v3094_v35  ;;  %v3446_v49 = vunpack.c.l.bf16 %v3094_v35  ;;  %v3570_v9 = vunpack.c.l.bf16 %v3156_v43 }
 0x875   :  { %3905 = vmatprep.subr.mxu1 %v3479_v53  ;;  %3835 = vmatpush2.msra.mxu0 %v3350_v55  ;;  %v3571_v53 = vunpack.c.h.bf16 %v3156_v43  ;;  %v3154_v55 = vld [vmem:[#allocation8 + $0x4e0] sm:$0xff] }
 0x876   :  { %3906 = vmatpush2.msra.mxu1 %v3478_v56  ;;  %3836 = vmatprep.subr.mxu0 %v3347_v21  ;;  %v3218_v56 = vld [vmem:[#allocation8 + $0x6e0] sm:$0xff]  ;;  %v3698_v21 = vunpack.c.l.bf16 %v3220_v40  ;;  %v3566_v61 = vunpack.c.l.bf16 %v3154_v55 }
 0x877   :  { %3907 = vmatprep.subr.mxu1 %v3475_v57  ;;  %3837 = vmatpush2.msra.mxu0 %v3346_v58  ;;  %v3152_v57 = vld [vmem:[#allocation8 + $0x4d0] sm:$0xff]  ;;  %v3695_v13 = vunpack.c.h.bf16 %v3218_v56  ;;  %v3138_v40 = vld [vmem:[#allocation8 + $0x460] sm:$0xff] }
 0x878   :  { %3908 = vmatpush2.msra.mxu1 %v3474_v26  ;;  %3838 = vmatprep.subr.mxu0 %v3343_v36  ;;  %v3216_v58 = vld [vmem:[#allocation8 + $0x6d0] sm:$0xff]  ;;  %v3567_v26 = vunpack.c.h.bf16 %v3154_v55  ;;  %v3694_v36 = vunpack.c.l.bf16 %v3218_v56  ;;  %v3562_v7 = vunpack.c.l.bf16 %v3152_v57 }
 0x879   :  { %3909 = vmatprep.subr.mxu1 %v3471_v62  ;;  %3839 = vmatpush2.msra.mxu0 %v3342_v3  ;;  %v3150_v62 = vld [vmem:[#allocation8 + $0x4c0] sm:$0xff]  ;;  %v3691_v6 = vunpack.c.h.bf16 %v3216_v58 }
 0x87a   :  { %3910 = vmatpush2.msra.mxu1 %v3470_v4  ;;  %3840 = vmatprep.subr.mxu0 %v3339_v8  ;;  %v3214_v3 = vld [vmem:[#allocation8 + $0x6c0] sm:$0xff]  ;;  %v3563_v4 = vunpack.c.h.bf16 %v3152_v57  ;;  %v3690_v8 = vunpack.c.l.bf16 %v3216_v58  ;;  %v3558_v12 = vunpack.c.l.bf16 %v3150_v62  ;;  %v3534_v58 = vunpack.c.l.bf16 %v3138_v40 }
 0x87b   :  { %3911 = vmatprep.subr.mxu1 %v3467_v2  ;;  %3841 = vmatpush2.msra.mxu0 %v3338_v10  ;;  %v3148_v2 = vld [vmem:[#allocation8 + $0x4b0] sm:$0xff]  ;;  %v3687_v11 = vunpack.c.h.bf16 %v3214_v3 }
 0x87c   :  { %3912 = vmatpush2.msra.mxu1 %v3466_v17  ;;  %3842 = vmatprep.subr.mxu0 %v3335_v15  ;;  %v3212_v10 = vld [vmem:[#allocation8 + $0x6b0] sm:$0xff]  ;;  %v3559_v17 = vunpack.c.h.bf16 %v3150_v62  ;;  %v3686_v15 = vunpack.c.l.bf16 %v3214_v3  ;;  %v3554_v20 = vunpack.c.l.bf16 %v3148_v2 }
 0x87d   :  { %3913 = vmatprep.subr.mxu1 %v3463_v16  ;;  %3843 = vmatpush2.msra.mxu0 %v3334_v14  ;;  %v3146_v16 = vld [vmem:[#allocation8 + $0x4a0] sm:$0xff]  ;;  %v3683_v19 = vunpack.c.h.bf16 %v3212_v10 }
 0x87e   :  { %3914 = vmatpush2.msra.mxu1 %v3462_v18  ;;  %3844 = vmatprep.subr.mxu0 %v3331_v22  ;;  %v3210_v14 = vld [vmem:[#allocation8 + $0x6a0] sm:$0xff]  ;;  %v3555_v18 = vunpack.c.h.bf16 %v3148_v2  ;;  %v3682_v22 = vunpack.c.l.bf16 %v3212_v10  ;;  %v3550_v28 = vunpack.c.l.bf16 %v3146_v16 }
 0x87f   :  { %3915 = vmatprep.subr.mxu1 %v3459_v23  ;;  %3845 = vmatpush2.msra.mxu0 %v3330_v24  ;;  %v3144_v23 = vld [vmem:[#allocation8 + $0x490] sm:$0xff]  ;;  %v3679_v50 = vunpack.c.h.bf16 %v3210_v14 }
 0x880   :  { %3916 = vmatpush2.msra.mxu1 %v3458_v27  ;;  %3846 = vmatprep.subr.mxu0 %v3327_v30  ;;  %v3208_v24 = vld [vmem:[#allocation8 + $0x690] sm:$0xff]  ;;  %v3551_v27 = vunpack.c.h.bf16 %v3146_v16  ;;  %v3678_v30 = vunpack.c.l.bf16 %v3210_v14  ;;  %v3546_v35 = vunpack.c.l.bf16 %v3144_v23 }
 0x881   :  { %3917 = vmatprep.subr.mxu1 %v3455_v32  ;;  %3847 = vmatpush2.msra.mxu0 %v3326_v33  ;;  %v3142_v32 = vld [vmem:[#allocation8 + $0x480] sm:$0xff]  ;;  %v3675_v0 = vunpack.c.h.bf16 %v3208_v24 }
 0x882   :  { %3918 = vmatpush2.msra.mxu1 %v3454_v34  ;;  %3848 = vmatprep.subr.mxu0 %v3323_v37  ;;  %v3206_v33 = vld [vmem:[#allocation8 + $0x680] sm:$0xff]  ;;  %v3547_v34 = vunpack.c.h.bf16 %v3144_v23  ;;  %v3674_v37 = vunpack.c.l.bf16 %v3208_v24 }
 0x883   :  { %3919 = vmatprep.subr.mxu1 %v3451_v39  ;;  %3849 = vmatpush2.msra.mxu0 %v3322_v41  ;;  %v3140_v39 = vld [vmem:[#allocation8 + $0x470] sm:$0xff]  ;;  %v3671_v43 = vunpack.c.h.bf16 %v3206_v33 }
 0x884   :  { %3920 = vmatpush2.msra.mxu1 %v3450_v42  ;;  %3850 = vmatprep.subr.mxu0 %v3319_v44  ;;  %v3204_v41 = vld [vmem:[#allocation8 + $0x670] sm:$0xff]  ;;  %v3543_v42 = vunpack.c.h.bf16 %v3142_v32  ;;  %v3542_v44 = vunpack.c.l.bf16 %v3142_v32  ;;  %v3538_v55 = vunpack.c.l.bf16 %v3140_v39 }
 0x885   :  { %3921 = vmatprep.subr.mxu1 %v3447_v47  ;;  %3851 = vmatpush2.msra.mxu0 %v3318_v48  ;;  %v3670_v47 = vunpack.c.l.bf16 %v3206_v33  ;;  %v3202_v48 = vld [vmem:[#allocation8 + $0x660] sm:$0xff]  ;;  %v3666_v56 = vunpack.c.l.bf16 %v3204_v41 }
 0x886   :  { %3922 = vmatpush2.msra.mxu1 %v3446_v49  ;;  %3853 = vmatmul.mubr.f32.vlgmr.msra.gmra.mxu0 %v6308_v5  ;;  %v3539_v49 = vunpack.c.h.bf16 %v3140_v39  ;;  %v3663_v57 = vunpack.c.h.bf16 %v3202_v48 }
 0x887   :  { %3930 = vmatprep.subr.mxu0 %v3571_v53  ;;  %4001 = vmatprep.subr.mxu1 %v3699_v29  ;;  %v3667_v53 = vunpack.c.h.bf16 %v3204_v41  ;;  %v3136_v29 = vld [vmem:[#allocation8 + $0x450] sm:$0xff] }
 0x888   :  { %3924 = vmatmul.mubr.f32.vlgmr.msra.gmra.mxu1 %v6310_v31  ;;  %3931 = vmatpush1.msra.mxu0 %v3570_v9  ;;  %v3200_v9 = vld [vmem:[#allocation8 + $0x650] sm:$0xff]  ;;  %v3530_v3 = vunpack.c.l.bf16 %v3136_v29 }
 0x889   :  { %4002 = vmatpush1.msra.mxu1 %v3698_v21  ;;  %3932 = vmatprep.subr.mxu0 %v3567_v26  ;;  %v3535_v21 = vunpack.c.h.bf16 %v3138_v40  ;;  %v3662_v26 = vunpack.c.l.bf16 %v3202_v48  ;;  %v3659_v62 = vunpack.c.h.bf16 %v3200_v9 }
 0x88a   :  { %4003 = vmatprep.subr.mxu1 %v3695_v13  ;;  %3933 = vmatpush1.msra.mxu0 %v3566_v61  ;;  %v3134_v13 = vld [vmem:[#allocation8 + $0x440] sm:$0xff] }
 0x88b   :  { %4004 = vmatpush1.msra.mxu1 %v3694_v36  ;;  %3934 = vmatprep.subr.mxu0 %v3563_v4  ;;  %v3198_v61 = vld [vmem:[#allocation8 + $0x640] sm:$0xff]  ;;  %v3531_v36 = vunpack.c.h.bf16 %v3136_v29  ;;  %v3658_v4 = vunpack.c.l.bf16 %v3200_v9  ;;  %v3526_v10 = vunpack.c.l.bf16 %v3134_v13 }
 0x88c   :  { %4005 = vmatprep.subr.mxu1 %v3691_v6  ;;  %3935 = vmatpush1.msra.mxu0 %v3562_v7  ;;  %v3132_v6 = vld [vmem:[#allocation8 + $0x430] sm:$0xff]  ;;  %v3655_v2 = vunpack.c.h.bf16 %v3198_v61 }
 0x88d   :  { %4006 = vmatpush1.msra.mxu1 %v3690_v8  ;;  %3936 = vmatprep.subr.mxu0 %v3559_v17  ;;  %v3196_v7 = vld [vmem:[#allocation8 + $0x630] sm:$0xff]  ;;  %v3527_v8 = vunpack.c.h.bf16 %v3134_v13  ;;  %v3654_v17 = vunpack.c.l.bf16 %v3198_v61  ;;  %v3522_v14 = vunpack.c.l.bf16 %v3132_v6 }
 0x88e   :  { %4007 = vmatprep.subr.mxu1 %v3687_v11  ;;  %3937 = vmatpush1.msra.mxu0 %v3558_v12  ;;  %v3130_v11 = vld [vmem:[#allocation8 + $0x420] sm:$0xff]  ;;  %v3651_v16 = vunpack.c.h.bf16 %v3196_v7 }
 0x88f   :  { %4008 = vmatpush1.msra.mxu1 %v3686_v15  ;;  %3938 = vmatprep.subr.mxu0 %v3555_v18  ;;  %v3194_v12 = vld [vmem:[#allocation8 + $0x620] sm:$0xff]  ;;  %v3523_v15 = vunpack.c.h.bf16 %v3132_v6  ;;  %v3650_v18 = vunpack.c.l.bf16 %v3196_v7  ;;  %v3518_v24 = vunpack.c.l.bf16 %v3130_v11 }
 0x890   :  { %4009 = vmatprep.subr.mxu1 %v3683_v19  ;;  %3939 = vmatpush1.msra.mxu0 %v3554_v20  ;;  %v3128_v19 = vld [vmem:[#allocation8 + $0x410] sm:$0xff]  ;;  %v3647_v23 = vunpack.c.h.bf16 %v3194_v12 }
 0x891   :  { %4010 = vmatpush1.msra.mxu1 %v3682_v22  ;;  %3940 = vmatprep.subr.mxu0 %v3551_v27  ;;  %v3192_v20 = vld [vmem:[#allocation8 + $0x610] sm:$0xff]  ;;  %v3519_v22 = vunpack.c.h.bf16 %v3130_v11  ;;  %v3646_v27 = vunpack.c.l.bf16 %v3194_v12  ;;  %v3514_v33 = vunpack.c.l.bf16 %v3128_v19 }
 0x892   :  { %4011 = vmatprep.subr.mxu1 %v3679_v50  ;;  %3941 = vmatpush1.msra.mxu0 %v3550_v28  ;;  %v3126_v50 = vld [vmem:[#allocation8 + $0x400] sm:$0xff]  ;;  %v3643_v32 = vunpack.c.h.bf16 %v3192_v20 }
 0x893   :  { %4012 = vmatpush1.msra.mxu1 %v3678_v30  ;;  %3942 = vmatprep.subr.mxu0 %v3547_v34  ;;  %v3190_v28 = vld [vmem:[#allocation8 + $0x600] sm:$0xff]  ;;  %v3515_v30 = vunpack.c.h.bf16 %v3128_v19  ;;  %v3642_v34 = vunpack.c.l.bf16 %v3192_v20  ;;  %v3510_v41 = vunpack.c.l.bf16 %v3126_v50 }
 0x894   :  { %4013 = vmatprep.subr.mxu1 %v3675_v0  ;;  %3943 = vmatpush1.msra.mxu0 %v3546_v35  ;;  %v3188_v0 = vld [vmem:[#allocation8 + $0x5f0] sm:$0xff]  ;;  %v3639_v39 = vunpack.c.h.bf16 %v3190_v28 }
 0x895   :  { %4014 = vmatpush1.msra.mxu1 %v3674_v37  ;;  %3944 = vmatprep.subr.mxu0 %v3543_v42  ;;  %v3252_v35 = vld [vmem:[#allocation8 + $0x7f0] sm:$0xff]  ;;  %v3511_v37 = vunpack.c.h.bf16 %v3126_v50  ;;  %v3638_v42 = vunpack.c.l.bf16 %v3190_v28  ;;  %v3634_v48 = vunpack.c.l.bf16 %v3188_v0 }
 0x896   :  { %4015 = vmatprep.subr.mxu1 %v3671_v43  ;;  %3945 = vmatpush1.msra.mxu0 %v3542_v44  ;;  %v3186_v43 = vld [vmem:[#allocation8 + $0x5e0] sm:$0xff]  ;;  %v3763_v40 = vunpack.c.h.bf16 %v3252_v35 }
 0x897   :  { %4016 = vmatpush1.msra.mxu1 %v3670_v47  ;;  %3946 = vmatprep.subr.mxu0 %v3539_v49  ;;  %v3250_v44 = vld [vmem:[#allocation8 + $0x7e0] sm:$0xff]  ;;  %v3635_v47 = vunpack.c.h.bf16 %v3188_v0  ;;  %v3762_v49 = vunpack.c.l.bf16 %v3252_v35  ;;  %v3630_v9 = vunpack.c.l.bf16 %v3186_v43 }
 0x898   :  { %4017 = vmatprep.subr.mxu1 %v3667_v53  ;;  %3947 = vmatpush1.msra.mxu0 %v3538_v55  ;;  %v3184_v53 = vld [vmem:[#allocation8 + $0x5d0] sm:$0xff]  ;;  %v3759_v29 = vunpack.c.h.bf16 %v3250_v44 }
 0x899   :  { %4018 = vmatpush1.msra.mxu1 %v3666_v56  ;;  %3948 = vmatprep.subr.mxu0 %v3535_v21  ;;  %v3248_v55 = vld [vmem:[#allocation8 + $0x7d0] sm:$0xff]  ;;  %v3631_v56 = vunpack.c.h.bf16 %v3186_v43  ;;  %v3758_v21 = vunpack.c.l.bf16 %v3250_v44  ;;  %v3626_v61 = vunpack.c.l.bf16 %v3184_v53 }
 0x89a   :  { %4019 = vmatprep.subr.mxu1 %v3663_v57  ;;  %3949 = vmatpush1.msra.mxu0 %v3534_v58  ;;  %v3182_v57 = vld [vmem:[#allocation8 + $0x5c0] sm:$0xff]  ;;  %v3755_v13 = vunpack.c.h.bf16 %v3248_v55 }
 0x89b   :  { %4020 = vmatpush1.msra.mxu1 %v3662_v26  ;;  %3950 = vmatprep.subr.mxu0 %v3531_v36  ;;  %v3246_v58 = vld [vmem:[#allocation8 + $0x7c0] sm:$0xff]  ;;  %v3627_v26 = vunpack.c.h.bf16 %v3184_v53  ;;  %v3754_v36 = vunpack.c.l.bf16 %v3248_v55  ;;  %v3622_v7 = vunpack.c.l.bf16 %v3182_v57 }
 0x89c   :  { %4021 = vmatprep.subr.mxu1 %v3659_v62  ;;  %3951 = vmatpush1.msra.mxu0 %v3530_v3  ;;  %v3180_v62 = vld [vmem:[#allocation8 + $0x5b0] sm:$0xff]  ;;  %v3751_v6 = vunpack.c.h.bf16 %v3246_v58 }
 0x89d   :  { %4022 = vmatpush1.msra.mxu1 %v3658_v4  ;;  %3952 = vmatprep.subr.mxu0 %v3527_v8  ;;  %v3244_v3 = vld [vmem:[#allocation8 + $0x7b0] sm:$0xff]  ;;  %v3623_v4 = vunpack.c.h.bf16 %v3182_v57  ;;  %v3750_v8 = vunpack.c.l.bf16 %v3246_v58  ;;  %v3618_v12 = vunpack.c.l.bf16 %v3180_v62 }
 0x89e   :  { %4023 = vmatprep.subr.mxu1 %v3655_v2  ;;  %3953 = vmatpush1.msra.mxu0 %v3526_v10  ;;  %v3178_v2 = vld [vmem:[#allocation8 + $0x5a0] sm:$0xff]  ;;  %v3747_v11 = vunpack.c.h.bf16 %v3244_v3 }
 0x89f   :  { %4024 = vmatpush1.msra.mxu1 %v3654_v17  ;;  %3954 = vmatprep.subr.mxu0 %v3523_v15  ;;  %v3242_v10 = vld [vmem:[#allocation8 + $0x7a0] sm:$0xff]  ;;  %v3619_v17 = vunpack.c.h.bf16 %v3180_v62  ;;  %v3746_v15 = vunpack.c.l.bf16 %v3244_v3  ;;  %v3614_v20 = vunpack.c.l.bf16 %v3178_v2 }
 0x8a0   :  { %4025 = vmatprep.subr.mxu1 %v3651_v16  ;;  %3955 = vmatpush1.msra.mxu0 %v3522_v14  ;;  %v3176_v16 = vld [vmem:[#allocation8 + $0x590] sm:$0xff]  ;;  %v3743_v19 = vunpack.c.h.bf16 %v3242_v10 }
 0x8a1   :  { %4026 = vmatpush1.msra.mxu1 %v3650_v18  ;;  %3956 = vmatprep.subr.mxu0 %v3519_v22  ;;  %v3240_v14 = vld [vmem:[#allocation8 + $0x790] sm:$0xff]  ;;  %v3615_v18 = vunpack.c.h.bf16 %v3178_v2  ;;  %v3742_v22 = vunpack.c.l.bf16 %v3242_v10  ;;  %v3610_v28 = vunpack.c.l.bf16 %v3176_v16 }
 0x8a2   :  { %4027 = vmatprep.subr.mxu1 %v3647_v23  ;;  %3957 = vmatpush1.msra.mxu0 %v3518_v24  ;;  %v3174_v23 = vld [vmem:[#allocation8 + $0x580] sm:$0xff]  ;;  %v3739_v50 = vunpack.c.h.bf16 %v3240_v14 }
 0x8a3   :  { %4028 = vmatpush1.msra.mxu1 %v3646_v27  ;;  %3958 = vmatprep.subr.mxu0 %v3515_v30  ;;  %v3238_v24 = vld [vmem:[#allocation8 + $0x780] sm:$0xff]  ;;  %v3611_v27 = vunpack.c.h.bf16 %v3176_v16  ;;  %v3738_v30 = vunpack.c.l.bf16 %v3240_v14  ;;  %v3606_v35 = vunpack.c.l.bf16 %v3174_v23 }
 0x8a4   :  { %4029 = vmatprep.subr.mxu1 %v3643_v32  ;;  %3959 = vmatpush1.msra.mxu0 %v3514_v33  ;;  %v3172_v32 = vld [vmem:[#allocation8 + $0x570] sm:$0xff]  ;;  %v3735_v0 = vunpack.c.h.bf16 %v3238_v24 }
 0x8a5   :  { %4030 = vmatpush1.msra.mxu1 %v3642_v34  ;;  %3960 = vmatprep.subr.mxu0 %v3511_v37  ;;  %v3236_v33 = vld [vmem:[#allocation8 + $0x770] sm:$0xff]  ;;  %v3607_v34 = vunpack.c.h.bf16 %v3174_v23  ;;  %v3734_v37 = vunpack.c.l.bf16 %v3238_v24  ;;  %v3602_v44 = vunpack.c.l.bf16 %v3172_v32 }
 0x8a6   :  { %4031 = vmatprep.subr.mxu1 %v3639_v39  ;;  %3961 = vmatpush1.msra.mxu0 %v3510_v41  ;;  %v3170_v39 = vld [vmem:[#allocation8 + $0x560] sm:$0xff]  ;;  %v3731_v43 = vunpack.c.h.bf16 %v3236_v33 }
 0x8a7   :  { %4032 = vmatpush1.msra.mxu1 %v3638_v42  ;;  %3962 = vmatprep.subr.mxu0 %v3635_v47  ;;  %v3234_v41 = vld [vmem:[#allocation8 + $0x760] sm:$0xff]  ;;  %v3603_v42 = vunpack.c.h.bf16 %v3172_v32  ;;  %v3730_v47 = vunpack.c.l.bf16 %v3236_v33  ;;  %v3598_v55 = vunpack.c.l.bf16 %v3170_v39  ;;  %v3093_v33 = vld [vmem:[#allocation8 + $0x2f8] sm:$0xff] }
 0x8a8   :  { %4033 = vmatprep.subr.mxu1 %v3763_v40  ;;  %3963 = vmatpush2.msra.mxu0 %v3634_v48  ;;  %v3168_v40 = vld [vmem:[#allocation8 + $0x550] sm:$0xff]  ;;  %v3727_v53 = vunpack.c.h.bf16 %v3234_v41 }
 0x8a9   :  { %4034 = vmatpush2.msra.mxu1 %v3762_v49  ;;  %3964 = vmatprep.subr.mxu0 %v3631_v56  ;;  %v3232_v48 = vld [vmem:[#allocation8 + $0x750] sm:$0xff]  ;;  %v3599_v49 = vunpack.c.h.bf16 %v3170_v39  ;;  %v3726_v56 = vunpack.c.l.bf16 %v3234_v41  ;;  %v3594_v58 = vunpack.c.l.bf16 %v3168_v40  ;;  %v3445_v39 = vunpack.c.h.bf16 %v3093_v33 }
 0x8aa   :  { %4035 = vmatprep.subr.mxu1 %v3759_v29  ;;  %3965 = vmatpush2.msra.mxu0 %v3630_v9  ;;  %v3166_v29 = vld [vmem:[#allocation8 + $0x540] sm:$0xff]  ;;  %v3723_v57 = vunpack.c.h.bf16 %v3232_v48 }
 0x8ab   :  { %4036 = vmatpush2.msra.mxu1 %v3758_v21  ;;  %3966 = vmatprep.subr.mxu0 %v3627_v26  ;;  %v3230_v9 = vld [vmem:[#allocation8 + $0x740] sm:$0xff]  ;;  %v3595_v21 = vunpack.c.h.bf16 %v3168_v40  ;;  %v3722_v26 = vunpack.c.l.bf16 %v3232_v48  ;;  %v3590_v3 = vunpack.c.l.bf16 %v3166_v29 }
 0x8ac   :  { %4037 = vmatprep.subr.mxu1 %v3755_v13  ;;  %3967 = vmatpush2.msra.mxu0 %v3626_v61  ;;  %v3164_v13 = vld [vmem:[#allocation8 + $0x530] sm:$0xff]  ;;  %v3719_v62 = vunpack.c.h.bf16 %v3230_v9 }
 0x8ad   :  { %4038 = vmatpush2.msra.mxu1 %v3754_v36  ;;  %3968 = vmatprep.subr.mxu0 %v3623_v4  ;;  %v3228_v61 = vld [vmem:[#allocation8 + $0x730] sm:$0xff]  ;;  %v3591_v36 = vunpack.c.h.bf16 %v3166_v29  ;;  %v3718_v4 = vunpack.c.l.bf16 %v3230_v9  ;;  %v3586_v10 = vunpack.c.l.bf16 %v3164_v13 }
 0x8ae   :  { %4039 = vmatprep.subr.mxu1 %v3751_v6  ;;  %3969 = vmatpush2.msra.mxu0 %v3622_v7  ;;  %v3162_v6 = vld [vmem:[#allocation8 + $0x520] sm:$0xff]  ;;  %v3715_v2 = vunpack.c.h.bf16 %v3228_v61 }
 0x8af   :  { %4040 = vmatpush2.msra.mxu1 %v3750_v8  ;;  %3970 = vmatprep.subr.mxu0 %v3619_v17  ;;  %v3226_v7 = vld [vmem:[#allocation8 + $0x720] sm:$0xff]  ;;  %v3587_v8 = vunpack.c.h.bf16 %v3164_v13  ;;  %v3714_v17 = vunpack.c.l.bf16 %v3228_v61  ;;  %v3582_v14 = vunpack.c.l.bf16 %v3162_v6 }
 0x8b0   :  { %4041 = vmatprep.subr.mxu1 %v3747_v11  ;;  %3971 = vmatpush2.msra.mxu0 %v3618_v12  ;;  %v3160_v11 = vld [vmem:[#allocation8 + $0x510] sm:$0xff]  ;;  %v3711_v16 = vunpack.c.h.bf16 %v3226_v7 }
 0x8b1   :  { %4042 = vmatpush2.msra.mxu1 %v3746_v15  ;;  %3972 = vmatprep.subr.mxu0 %v3615_v18  ;;  %v3224_v12 = vld [vmem:[#allocation8 + $0x710] sm:$0xff]  ;;  %v3583_v15 = vunpack.c.h.bf16 %v3162_v6  ;;  %v3710_v18 = vunpack.c.l.bf16 %v3226_v7  ;;  %v3578_v24 = vunpack.c.l.bf16 %v3160_v11 }
 0x8b2   :  { %4043 = vmatprep.subr.mxu1 %v3743_v19  ;;  %3973 = vmatpush2.msra.mxu0 %v3614_v20  ;;  %v3158_v19 = vld [vmem:[#allocation8 + $0x500] sm:$0xff]  ;;  %v3707_v23 = vunpack.c.h.bf16 %v3224_v12 }
 0x8b3   :  { %4044 = vmatpush2.msra.mxu1 %v3742_v22  ;;  %3974 = vmatprep.subr.mxu0 %v3611_v27  ;;  %v3222_v20 = vld [vmem:[#allocation8 + $0x700] sm:$0xff]  ;;  %v3579_v22 = vunpack.c.h.bf16 %v3160_v11  ;;  %v3706_v27 = vunpack.c.l.bf16 %v3224_v12  ;;  %v3574_v32 = vunpack.c.l.bf16 %v3158_v19 }
 0x8b4   :  { %4045 = vmatprep.subr.mxu1 %v3739_v50  ;;  %3975 = vmatpush2.msra.mxu0 %v3610_v28  ;;  %v3575_v50 = vunpack.c.h.bf16 %v3158_v19  ;;  %v3703_v28 = vunpack.c.h.bf16 %v3222_v20 }
 0x8b5   :  { %4046 = vmatpush2.msra.mxu1 %v3738_v30  ;;  %3976 = vmatprep.subr.mxu0 %v3607_v34  ;;  %v3029_v30 = vld [vmem:[#allocation8 + $0xf8] sm:$0xff]  ;;  %v3702_v34 = vunpack.c.l.bf16 %v3222_v20 }
 0x8b6   :  { %4047 = vmatprep.subr.mxu1 %v3735_v0  ;;  %3977 = vmatpush2.msra.mxu0 %v3606_v35  ;;  %v3317_v0 = vunpack.c.h.bf16 %v3029_v30  ;;  %v3027_v35 = vld [vmem:[#allocation8 + $0xe8] sm:$0xff]  ;;  %v3316_v41 = vunpack.c.l.bf16 %v3029_v30 }
 0x8b7   :  { %4048 = vmatpush2.msra.mxu1 %v3734_v37  ;;  %3978 = vmatprep.subr.mxu0 %v3603_v42  ;;  %v3091_v37 = vld [vmem:[#allocation8 + $0x2e8] sm:$0xff]  ;;  %v3444_v42 = vunpack.c.l.bf16 %v3093_v33  ;;  %v3312_v48 = vunpack.c.l.bf16 %v3027_v35 }
 0x8b8   :  { %4049 = vmatprep.subr.mxu1 %v3731_v43  ;;  %3979 = vmatpush2.msra.mxu0 %v3602_v44  ;;  %v3025_v43 = vld [vmem:[#allocation8 + $0xd8] sm:$0xff]  ;;  %v3441_v40 = vunpack.c.h.bf16 %v3091_v37  ;;  %v3075_v33 = vld [vmem:[#allocation8 + $0x268] sm:$0xff] }
 0x8b9   :  { %4050 = vmatpush2.msra.mxu1 %v3730_v47  ;;  %3980 = vmatprep.subr.mxu0 %v3599_v49  ;;  %v3089_v44 = vld [vmem:[#allocation8 + $0x2d8] sm:$0xff]  ;;  %v3313_v47 = vunpack.c.h.bf16 %v3027_v35  ;;  %v3440_v49 = vunpack.c.l.bf16 %v3091_v37  ;;  %v3308_v9 = vunpack.c.l.bf16 %v3025_v43 }
 0x8ba   :  { %4051 = vmatprep.subr.mxu1 %v3727_v53  ;;  %3981 = vmatpush2.msra.mxu0 %v3598_v55  ;;  %v3023_v53 = vld [vmem:[#allocation8 + $0xc8] sm:$0xff]  ;;  %v3437_v29 = vunpack.c.h.bf16 %v3089_v44 }
 0x8bb   :  { %4052 = vmatpush2.msra.mxu1 %v3726_v56  ;;  %3982 = vmatprep.subr.mxu0 %v3595_v21  ;;  %v3087_v55 = vld [vmem:[#allocation8 + $0x2c8] sm:$0xff]  ;;  %v3309_v56 = vunpack.c.h.bf16 %v3025_v43  ;;  %v3436_v21 = vunpack.c.l.bf16 %v3089_v44  ;;  %v3304_v61 = vunpack.c.l.bf16 %v3023_v53  ;;  %v3409_v43 = vunpack.c.h.bf16 %v3075_v33 }
 0x8bc   :  { %4053 = vmatprep.subr.mxu1 %v3723_v57  ;;  %3983 = vmatpush2.msra.mxu0 %v3594_v58  ;;  %v3021_v57 = vld [vmem:[#allocation8 + $0xb8] sm:$0xff]  ;;  %v3433_v13 = vunpack.c.h.bf16 %v3087_v55 }
 0x8bd   :  { %4054 = vmatpush2.msra.mxu1 %v3722_v26  ;;  %3984 = vmatprep.subr.mxu0 %v3591_v36  ;;  %v3085_v58 = vld [vmem:[#allocation8 + $0x2b8] sm:$0xff]  ;;  %v3305_v26 = vunpack.c.h.bf16 %v3023_v53  ;;  %v3432_v36 = vunpack.c.l.bf16 %v3087_v55  ;;  %v3300_v7 = vunpack.c.l.bf16 %v3021_v57 }
 0x8be   :  { %4055 = vmatprep.subr.mxu1 %v3719_v62  ;;  %3985 = vmatpush2.msra.mxu0 %v3590_v3  ;;  %v3019_v62 = vld [vmem:[#allocation8 + $0xa8] sm:$0xff]  ;;  %v3429_v6 = vunpack.c.h.bf16 %v3085_v58 }
 0x8bf   :  { %4056 = vmatpush2.msra.mxu1 %v3718_v4  ;;  %3986 = vmatprep.subr.mxu0 %v3587_v8  ;;  %v3083_v3 = vld [vmem:[#allocation8 + $0x2a8] sm:$0xff]  ;;  %v3301_v4 = vunpack.c.h.bf16 %v3021_v57  ;;  %v3428_v8 = vunpack.c.l.bf16 %v3085_v58  ;;  %v3296_v12 = vunpack.c.l.bf16 %v3019_v62 }
 0x8c0   :  { %4057 = vmatprep.subr.mxu1 %v3715_v2  ;;  %3987 = vmatpush2.msra.mxu0 %v3586_v10  ;;  %v3017_v2 = vld [vmem:[#allocation8 + $0x98] sm:$0xff]  ;;  %v3425_v11 = vunpack.c.h.bf16 %v3083_v3 }
 0x8c1   :  { %4058 = vmatpush2.msra.mxu1 %v3714_v17  ;;  %3988 = vmatprep.subr.mxu0 %v3583_v15  ;;  %v3081_v10 = vld [vmem:[#allocation8 + $0x298] sm:$0xff]  ;;  %v3297_v17 = vunpack.c.h.bf16 %v3019_v62  ;;  %v3424_v15 = vunpack.c.l.bf16 %v3083_v3  ;;  %v3292_v20 = vunpack.c.l.bf16 %v3017_v2 }
 0x8c2   :  { %4059 = vmatprep.subr.mxu1 %v3711_v16  ;;  %3989 = vmatpush2.msra.mxu0 %v3582_v14  ;;  %v3015_v16 = vld [vmem:[#allocation8 + $0x88] sm:$0xff]  ;;  %v3421_v19 = vunpack.c.h.bf16 %v3081_v10 }
 0x8c3   :  { %4060 = vmatpush2.msra.mxu1 %v3710_v18  ;;  %3990 = vmatprep.subr.mxu0 %v3579_v22  ;;  %v3079_v14 = vld [vmem:[#allocation8 + $0x288] sm:$0xff]  ;;  %v3293_v18 = vunpack.c.h.bf16 %v3017_v2  ;;  %v3420_v22 = vunpack.c.l.bf16 %v3081_v10 }
 0x8c4   :  { %4061 = vmatprep.subr.mxu1 %v3707_v23  ;;  %3991 = vmatpush2.msra.mxu0 %v3578_v24  ;;  %v3013_v23 = vld [vmem:[#allocation8 + $0x78] sm:$0xff]  ;;  %v3416_v30 = vunpack.c.l.bf16 %v3079_v14 }
 0x8c5   :  { %4062 = vmatpush2.msra.mxu1 %v3706_v27  ;;  %3992 = vmatprep.subr.mxu0 %v3575_v50  ;;  %v3077_v24 = vld [vmem:[#allocation8 + $0x278] sm:$0xff]  ;;  %v3289_v27 = vunpack.c.h.bf16 %v3015_v16  ;;  %v3417_v50 = vunpack.c.h.bf16 %v3079_v14  ;;  %v3284_v35 = vunpack.c.l.bf16 %v3013_v23 }
 0x8c6   :  { %4063 = vmatprep.subr.mxu1 %v3703_v28  ;;  %3993 = vmatpush2.msra.mxu0 %v3574_v32  ;;  %v3288_v28 = vunpack.c.l.bf16 %v3015_v16  ;;  %v3011_v32 = vld [vmem:[#allocation8 + $0x68] sm:$0xff]  ;;  %v3412_v37 = vunpack.c.l.bf16 %v3077_v24 }
 0x8c7   :  { %3994 = vmatprep.mubr.f32.mxu0 %v6328_v51  ;;  %4064 = vmatpush2.msra.mxu1 %v3702_v34  ;;  %v3285_v34 = vunpack.c.h.bf16 %v3013_v23  ;;  %v3280_v44 = vunpack.c.l.bf16 %v3011_v32 }
 0x8c8   :  { %3995 = vmatmul.mubr.f32.vlgmr.msra.gmra.mxu0 %v6324_v38  ;;  %4065 = vmatprep.mubr.f32.mxu1 %v6330_v25 }
 0x8c9   :  { %4072 = vmatprep.subr.mxu0 %v3317_v0  ;;  %4143 = vmatprep.subr.mxu1 %v3445_v39  ;;  %v3413_v0 = vunpack.c.h.bf16 %v3077_v24  ;;  %v3009_v39 = vld [vmem:[#allocation8 + $0x58] sm:$0xff] }
 0x8ca   :  { %4066 = vmatmul.mubr.f32.vlgmr.msra.gmra.mxu1 %v6326_v60  ;;  %4073 = vmatpush1.msra.mxu0 %v3316_v41  ;;  %v3073_v41 = vld [vmem:[#allocation8 + $0x258] sm:$0xff]  ;;  %v3276_v55 = vunpack.c.l.bf16 %v3009_v39 }
 0x8cb   :  { %4144 = vmatpush1.msra.mxu1 %v3444_v42  ;;  %4074 = vmatprep.subr.mxu0 %v3313_v47  ;;  %v3281_v42 = vunpack.c.h.bf16 %v3011_v32  ;;  %v3408_v47 = vunpack.c.l.bf16 %v3075_v33  ;;  %v3405_v53 = vunpack.c.h.bf16 %v3073_v41 }
 0x8cc   :  { %4145 = vmatprep.subr.mxu1 %v3441_v40  ;;  %4075 = vmatpush1.msra.mxu0 %v3312_v48  ;;  %v3007_v40 = vld [vmem:[#allocation8 + $0x48] sm:$0xff] }
 0x8cd   :  { %4146 = vmatpush1.msra.mxu1 %v3440_v49  ;;  %4076 = vmatprep.subr.mxu0 %v3309_v56  ;;  %v3071_v48 = vld [vmem:[#allocation8 + $0x248] sm:$0xff]  ;;  %v3277_v49 = vunpack.c.h.bf16 %v3009_v39  ;;  %v3404_v56 = vunpack.c.l.bf16 %v3073_v41  ;;  %v3272_v58 = vunpack.c.l.bf16 %v3007_v40 }
 0x8ce   :  { %4147 = vmatprep.subr.mxu1 %v3437_v29  ;;  %4077 = vmatpush1.msra.mxu0 %v3308_v9  ;;  %v3005_v29 = vld [vmem:[#allocation8 + $0x38] sm:$0xff]  ;;  %v3401_v57 = vunpack.c.h.bf16 %v3071_v48 }
 0x8cf   :  { %4148 = vmatpush1.msra.mxu1 %v3436_v21  ;;  %4078 = vmatprep.subr.mxu0 %v3305_v26  ;;  %v3069_v9 = vld [vmem:[#allocation8 + $0x238] sm:$0xff]  ;;  %v3273_v21 = vunpack.c.h.bf16 %v3007_v40  ;;  %v3400_v26 = vunpack.c.l.bf16 %v3071_v48  ;;  %v3268_v3 = vunpack.c.l.bf16 %v3005_v29 }
 0x8d0   :  { %4149 = vmatprep.subr.mxu1 %v3433_v13  ;;  %4079 = vmatpush1.msra.mxu0 %v3304_v61  ;;  %v3003_v13 = vld [vmem:[#allocation8 + $0x28] sm:$0xff]  ;;  %v3397_v62 = vunpack.c.h.bf16 %v3069_v9 }
 0x8d1   :  { %4150 = vmatpush1.msra.mxu1 %v3432_v36  ;;  %4080 = vmatprep.subr.mxu0 %v3301_v4  ;;  %v3067_v61 = vld [vmem:[#allocation8 + $0x228] sm:$0xff]  ;;  %v3269_v36 = vunpack.c.h.bf16 %v3005_v29  ;;  %v3396_v4 = vunpack.c.l.bf16 %v3069_v9  ;;  %v3264_v10 = vunpack.c.l.bf16 %v3003_v13 }
 0x8d2   :  { %4151 = vmatprep.subr.mxu1 %v3429_v6  ;;  %4081 = vmatpush1.msra.mxu0 %v3300_v7  ;;  %v3001_v6 = vld [vmem:[#allocation8 + $0x18] sm:$0xff]  ;;  %v3393_v2 = vunpack.c.h.bf16 %v3067_v61 }
 0x8d3   :  { %4152 = vmatpush1.msra.mxu1 %v3428_v8  ;;  %4082 = vmatprep.subr.mxu0 %v3297_v17  ;;  %v3065_v7 = vld [vmem:[#allocation8 + $0x218] sm:$0xff]  ;;  %v3265_v8 = vunpack.c.h.bf16 %v3003_v13  ;;  %v3392_v17 = vunpack.c.l.bf16 %v3067_v61  ;;  %v3260_v14 = vunpack.c.l.bf16 %v3001_v6 }
 0x8d4   :  { %4153 = vmatprep.subr.mxu1 %v3425_v11  ;;  %4083 = vmatpush1.msra.mxu0 %v3296_v12  ;;  %v2999_v11 = vld [vmem:[#allocation8 + $0x8] sm:$0xff]  ;;  %v3389_v16 = vunpack.c.h.bf16 %v3065_v7 }
 0x8d5   :  { %4154 = vmatpush1.msra.mxu1 %v3424_v15  ;;  %4084 = vmatprep.subr.mxu0 %v3293_v18  ;;  %v3063_v12 = vld [vmem:[#allocation8 + $0x208] sm:$0xff]  ;;  %v3261_v15 = vunpack.c.h.bf16 %v3001_v6  ;;  %v3388_v18 = vunpack.c.l.bf16 %v3065_v7  ;;  %v3256_v24 = vunpack.c.l.bf16 %v2999_v11 }
 0x8d6   :  { %4155 = vmatprep.subr.mxu1 %v3421_v19  ;;  %4085 = vmatpush1.msra.mxu0 %v3292_v20  ;;  %v3061_v19 = vld [vmem:[#allocation8 + $0x1f8] sm:$0xff]  ;;  %v3385_v23 = vunpack.c.h.bf16 %v3063_v12 }
 0x8d7   :  { %4156 = vmatpush1.msra.mxu1 %v3420_v22  ;;  %4086 = vmatprep.subr.mxu0 %v3289_v27  ;;  %v3125_v20 = vld [vmem:[#allocation8 + $0x3f8] sm:$0xff]  ;;  %v3257_v22 = vunpack.c.h.bf16 %v2999_v11  ;;  %v3384_v27 = vunpack.c.l.bf16 %v3063_v12  ;;  %v3380_v33 = vunpack.c.l.bf16 %v3061_v19 }
 0x8d8   :  { %4157 = vmatprep.subr.mxu1 %v3417_v50  ;;  %4087 = vmatpush1.msra.mxu0 %v3288_v28  ;;  %v3059_v50 = vld [vmem:[#allocation8 + $0x1e8] sm:$0xff]  ;;  %v3509_v32 = vunpack.c.h.bf16 %v3125_v20 }
 0x8d9   :  { %4158 = vmatpush1.msra.mxu1 %v3416_v30  ;;  %4088 = vmatprep.subr.mxu0 %v3285_v34  ;;  %v3123_v28 = vld [vmem:[#allocation8 + $0x3e8] sm:$0xff]  ;;  %v3381_v30 = vunpack.c.h.bf16 %v3061_v19  ;;  %v3508_v34 = vunpack.c.l.bf16 %v3125_v20  ;;  %v3376_v41 = vunpack.c.l.bf16 %v3059_v50 }
 0x8da   :  { %4159 = vmatprep.subr.mxu1 %v3413_v0  ;;  %4089 = vmatpush1.msra.mxu0 %v3284_v35  ;;  %v3057_v0 = vld [vmem:[#allocation8 + $0x1d8] sm:$0xff]  ;;  %v3505_v39 = vunpack.c.h.bf16 %v3123_v28 }
 0x8db   :  { %4160 = vmatpush1.msra.mxu1 %v3412_v37  ;;  %4090 = vmatprep.subr.mxu0 %v3281_v42  ;;  %v3121_v35 = vld [vmem:[#allocation8 + $0x3d8] sm:$0xff]  ;;  %v3377_v37 = vunpack.c.h.bf16 %v3059_v50  ;;  %v3504_v42 = vunpack.c.l.bf16 %v3123_v28  ;;  %v3372_v48 = vunpack.c.l.bf16 %v3057_v0 }
 0x8dc   :  { %4161 = vmatprep.subr.mxu1 %v3409_v43  ;;  %4091 = vmatpush1.msra.mxu0 %v3280_v44  ;;  %v3055_v43 = vld [vmem:[#allocation8 + $0x1c8] sm:$0xff]  ;;  %v3501_v40 = vunpack.c.h.bf16 %v3121_v35 }
 0x8dd   :  { %4162 = vmatpush1.msra.mxu1 %v3408_v47  ;;  %4092 = vmatprep.subr.mxu0 %v3277_v49  ;;  %v3119_v44 = vld [vmem:[#allocation8 + $0x3c8] sm:$0xff]  ;;  %v3373_v47 = vunpack.c.h.bf16 %v3057_v0  ;;  %v3500_v49 = vunpack.c.l.bf16 %v3121_v35  ;;  %v3368_v9 = vunpack.c.l.bf16 %v3055_v43 }
 0x8de   :  { %4163 = vmatprep.subr.mxu1 %v3405_v53  ;;  %4093 = vmatpush1.msra.mxu0 %v3276_v55  ;;  %v3053_v53 = vld [vmem:[#allocation8 + $0x1b8] sm:$0xff]  ;;  %v3497_v29 = vunpack.c.h.bf16 %v3119_v44 }
 0x8df   :  { %4164 = vmatpush1.msra.mxu1 %v3404_v56  ;;  %4094 = vmatprep.subr.mxu0 %v3273_v21  ;;  %v3117_v55 = vld [vmem:[#allocation8 + $0x3b8] sm:$0xff]  ;;  %v3369_v56 = vunpack.c.h.bf16 %v3055_v43  ;;  %v3496_v21 = vunpack.c.l.bf16 %v3119_v44  ;;  %v3364_v61 = vunpack.c.l.bf16 %v3053_v53 }
 0x8e0   :  { %4165 = vmatprep.subr.mxu1 %v3401_v57  ;;  %4095 = vmatpush1.msra.mxu0 %v3272_v58  ;;  %v3051_v57 = vld [vmem:[#allocation8 + $0x1a8] sm:$0xff]  ;;  %v3493_v13 = vunpack.c.h.bf16 %v3117_v55 }
 0x8e1   :  { %4166 = vmatpush1.msra.mxu1 %v3400_v26  ;;  %4096 = vmatprep.subr.mxu0 %v3269_v36  ;;  %v3115_v58 = vld [vmem:[#allocation8 + $0x3a8] sm:$0xff]  ;;  %v3365_v26 = vunpack.c.h.bf16 %v3053_v53  ;;  %v3492_v36 = vunpack.c.l.bf16 %v3117_v55  ;;  %v3360_v7 = vunpack.c.l.bf16 %v3051_v57 }
 0x8e2   :  { %4167 = vmatprep.subr.mxu1 %v3397_v62  ;;  %4097 = vmatpush1.msra.mxu0 %v3268_v3  ;;  %v3049_v62 = vld [vmem:[#allocation8 + $0x198] sm:$0xff]  ;;  %v3489_v6 = vunpack.c.h.bf16 %v3115_v58 }
 0x8e3   :  { %4168 = vmatpush1.msra.mxu1 %v3396_v4  ;;  %4098 = vmatprep.subr.mxu0 %v3265_v8  ;;  %v3113_v3 = vld [vmem:[#allocation8 + $0x398] sm:$0xff]  ;;  %v3361_v4 = vunpack.c.h.bf16 %v3051_v57  ;;  %v3488_v8 = vunpack.c.l.bf16 %v3115_v58  ;;  %v3356_v12 = vunpack.c.l.bf16 %v3049_v62 }
 0x8e4   :  { %4169 = vmatprep.subr.mxu1 %v3393_v2  ;;  %4099 = vmatpush1.msra.mxu0 %v3264_v10  ;;  %v3047_v2 = vld [vmem:[#allocation8 + $0x188] sm:$0xff]  ;;  %v3485_v11 = vunpack.c.h.bf16 %v3113_v3 }
 0x8e5   :  { %4170 = vmatpush1.msra.mxu1 %v3392_v17  ;;  %4100 = vmatprep.subr.mxu0 %v3261_v15  ;;  %v3111_v10 = vld [vmem:[#allocation8 + $0x388] sm:$0xff]  ;;  %v3357_v17 = vunpack.c.h.bf16 %v3049_v62  ;;  %v3484_v15 = vunpack.c.l.bf16 %v3113_v3  ;;  %v3352_v20 = vunpack.c.l.bf16 %v3047_v2 }
 0x8e6   :  { %4171 = vmatprep.subr.mxu1 %v3389_v16  ;;  %4101 = vmatpush1.msra.mxu0 %v3260_v14  ;;  %v3045_v16 = vld [vmem:[#allocation8 + $0x178] sm:$0xff]  ;;  %v3481_v19 = vunpack.c.h.bf16 %v3111_v10 }
 0x8e7   :  { %4172 = vmatpush1.msra.mxu1 %v3388_v18  ;;  %4102 = vmatprep.subr.mxu0 %v3257_v22  ;;  %v3109_v14 = vld [vmem:[#allocation8 + $0x378] sm:$0xff]  ;;  %v3353_v18 = vunpack.c.h.bf16 %v3047_v2  ;;  %v3480_v22 = vunpack.c.l.bf16 %v3111_v10  ;;  %v3348_v28 = vunpack.c.l.bf16 %v3045_v16 }
 0x8e8   :  { %4173 = vmatprep.subr.mxu1 %v3385_v23  ;;  %4103 = vmatpush1.msra.mxu0 %v3256_v24  ;;  %v3043_v23 = vld [vmem:[#allocation8 + $0x168] sm:$0xff]  ;;  %v3477_v50 = vunpack.c.h.bf16 %v3109_v14 }
 0x8e9   :  { %4174 = vmatpush1.msra.mxu1 %v3384_v27  ;;  %4104 = vmatprep.subr.mxu0 %v3381_v30  ;;  %v3107_v24 = vld [vmem:[#allocation8 + $0x368] sm:$0xff]  ;;  %v3349_v27 = vunpack.c.h.bf16 %v3045_v16  ;;  %v3476_v30 = vunpack.c.l.bf16 %v3109_v14  ;;  %v3344_v35 = vunpack.c.l.bf16 %v3043_v23  ;;  %v3221_v14 = vld [vmem:[#allocation8 + $0x6f8] sm:$0xff] }
 0x8ea   :  { %4175 = vmatprep.subr.mxu1 %v3509_v32  ;;  %4105 = vmatpush2.msra.mxu0 %v3380_v33  ;;  %v3041_v32 = vld [vmem:[#allocation8 + $0x158] sm:$0xff]  ;;  %v3473_v0 = vunpack.c.h.bf16 %v3107_v24 }
 0x8eb   :  { %4176 = vmatpush2.msra.mxu1 %v3508_v34  ;;  %4106 = vmatprep.subr.mxu0 %v3377_v37  ;;  %v3105_v33 = vld [vmem:[#allocation8 + $0x358] sm:$0xff]  ;;  %v3345_v34 = vunpack.c.h.bf16 %v3043_v23  ;;  %v3472_v37 = vunpack.c.l.bf16 %v3107_v24  ;;  %v3340_v44 = vunpack.c.l.bf16 %v3041_v32  ;;  %v3701_v23 = vunpack.c.h.bf16 %v3221_v14 }
 0x8ec   :  { %4177 = vmatprep.subr.mxu1 %v3505_v39  ;;  %4107 = vmatpush2.msra.mxu0 %v3376_v41  ;;  %v3039_v39 = vld [vmem:[#allocation8 + $0x148] sm:$0xff]  ;;  %v3469_v43 = vunpack.c.h.bf16 %v3105_v33 }
 0x8ed   :  { %4178 = vmatpush2.msra.mxu1 %v3504_v42  ;;  %4108 = vmatprep.subr.mxu0 %v3373_v47  ;;  %v3103_v41 = vld [vmem:[#allocation8 + $0x348] sm:$0xff]  ;;  %v3341_v42 = vunpack.c.h.bf16 %v3041_v32  ;;  %v3468_v47 = vunpack.c.l.bf16 %v3105_v33  ;;  %v3336_v55 = vunpack.c.l.bf16 %v3039_v39 }
 0x8ee   :  { %4179 = vmatprep.subr.mxu1 %v3501_v40  ;;  %4109 = vmatpush2.msra.mxu0 %v3372_v48  ;;  %v3037_v40 = vld [vmem:[#allocation8 + $0x138] sm:$0xff]  ;;  %v3465_v53 = vunpack.c.h.bf16 %v3103_v41 }
 0x8ef   :  { %4180 = vmatpush2.msra.mxu1 %v3500_v49  ;;  %4110 = vmatprep.subr.mxu0 %v3369_v56  ;;  %v3101_v48 = vld [vmem:[#allocation8 + $0x338] sm:$0xff]  ;;  %v3337_v49 = vunpack.c.h.bf16 %v3039_v39  ;;  %v3464_v56 = vunpack.c.l.bf16 %v3103_v41  ;;  %v3332_v58 = vunpack.c.l.bf16 %v3037_v40 }
 0x8f0   :  { %4181 = vmatprep.subr.mxu1 %v3497_v29  ;;  %4111 = vmatpush2.msra.mxu0 %v3368_v9  ;;  %v3035_v29 = vld [vmem:[#allocation8 + $0x128] sm:$0xff]  ;;  %v3461_v57 = vunpack.c.h.bf16 %v3101_v48 }
 0x8f1   :  { %4182 = vmatpush2.msra.mxu1 %v3496_v21  ;;  %4112 = vmatprep.subr.mxu0 %v3365_v26  ;;  %v3099_v9 = vld [vmem:[#allocation8 + $0x328] sm:$0xff]  ;;  %v3333_v21 = vunpack.c.h.bf16 %v3037_v40  ;;  %v3460_v26 = vunpack.c.l.bf16 %v3101_v48  ;;  %v3328_v3 = vunpack.c.l.bf16 %v3035_v29 }
 0x8f2   :  { %4183 = vmatprep.subr.mxu1 %v3493_v13  ;;  %4113 = vmatpush2.msra.mxu0 %v3364_v61  ;;  %v3033_v13 = vld [vmem:[#allocation8 + $0x118] sm:$0xff]  ;;  %v3457_v62 = vunpack.c.h.bf16 %v3099_v9  ;;  %v3147_v40 = vld [vmem:[#allocation8 + $0x4a8] sm:$0xff] }
 0x8f3   :  { %4184 = vmatpush2.msra.mxu1 %v3492_v36  ;;  %4114 = vmatprep.subr.mxu0 %v3361_v4  ;;  %v3097_v61 = vld [vmem:[#allocation8 + $0x318] sm:$0xff]  ;;  %v3329_v36 = vunpack.c.h.bf16 %v3035_v29  ;;  %v3456_v4 = vunpack.c.l.bf16 %v3099_v9  ;;  %v3324_v10 = vunpack.c.l.bf16 %v3033_v13  ;;  %v3211_v48 = vld [vmem:[#allocation8 + $0x6a8] sm:$0xff]  ;;  %v3553_v9 = vunpack.c.h.bf16 %v3147_v40 }
 0x8f4   :  { %4185 = vmatprep.subr.mxu1 %v3489_v6  ;;  %4115 = vmatpush2.msra.mxu0 %v3360_v7  ;;  %v3031_v6 = vld [vmem:[#allocation8 + $0x108] sm:$0xff]  ;;  %v3453_v2 = vunpack.c.h.bf16 %v3097_v61  ;;  %v3209_v29 = vld [vmem:[#allocation8 + $0x698] sm:$0xff] }
 0x8f5   :  { %4186 = vmatpush2.msra.mxu1 %v3488_v8  ;;  %4116 = vmatprep.subr.mxu0 %v3357_v17  ;;  %v3095_v7 = vld [vmem:[#allocation8 + $0x308] sm:$0xff]  ;;  %v3325_v8 = vunpack.c.h.bf16 %v3033_v13  ;;  %v3452_v17 = vunpack.c.l.bf16 %v3097_v61  ;;  %v3320_v16 = vunpack.c.l.bf16 %v3031_v6 }
 0x8f6   :  { %4187 = vmatprep.subr.mxu1 %v3485_v11  ;;  %4117 = vmatpush2.msra.mxu0 %v3356_v12  ;;  %v3321_v11 = vunpack.c.h.bf16 %v3031_v6  ;;  %v3449_v12 = vunpack.c.h.bf16 %v3095_v7  ;;  %v3207_v13 = vld [vmem:[#allocation8 + $0x688] sm:$0xff]  ;;  %v3205_v6 = vld [vmem:[#allocation8 + $0x678] sm:$0xff] }
 0x8f7   :  { %4188 = vmatpush2.msra.mxu1 %v3484_v15  ;;  %4118 = vmatprep.subr.mxu0 %v3353_v18  ;;  %v3157_v15 = vld [vmem:[#allocation8 + $0x4f8] sm:$0xff]  ;;  %v3448_v18 = vunpack.c.l.bf16 %v3095_v7 }
 0x8f8   :  { %4189 = vmatprep.subr.mxu1 %v3481_v19  ;;  %4119 = vmatpush2.msra.mxu0 %v3352_v20  ;;  %v3573_v19 = vunpack.c.h.bf16 %v3157_v15  ;;  %v3155_v20 = vld [vmem:[#allocation8 + $0x4e8] sm:$0xff]  ;;  %v3572_v24 = vunpack.c.l.bf16 %v3157_v15  ;;  %v3669_v15 = vunpack.c.h.bf16 %v3205_v6 }
 0x8f9   :  { %4190 = vmatpush2.msra.mxu1 %v3480_v22  ;;  %4120 = vmatprep.subr.mxu0 %v3349_v27  ;;  %v3219_v22 = vld [vmem:[#allocation8 + $0x6e8] sm:$0xff]  ;;  %v3700_v27 = vunpack.c.l.bf16 %v3221_v14  ;;  %v3568_v33 = vunpack.c.l.bf16 %v3155_v20  ;;  %v3668_v14 = vunpack.c.l.bf16 %v3205_v6 }
 0x8fa   :  { %4191 = vmatprep.subr.mxu1 %v3477_v50  ;;  %4121 = vmatpush2.msra.mxu0 %v3348_v28  ;;  %v3153_v50 = vld [vmem:[#allocation8 + $0x4d8] sm:$0xff]  ;;  %v3697_v32 = vunpack.c.h.bf16 %v3219_v22 }
 0x8fb   :  { %4192 = vmatpush2.msra.mxu1 %v3476_v30  ;;  %4122 = vmatprep.subr.mxu0 %v3345_v34  ;;  %v3217_v28 = vld [vmem:[#allocation8 + $0x6d8] sm:$0xff]  ;;  %v3569_v30 = vunpack.c.h.bf16 %v3155_v20  ;;  %v3696_v34 = vunpack.c.l.bf16 %v3219_v22  ;;  %v3564_v39 = vunpack.c.l.bf16 %v3153_v50 }
 0x8fc   :  { %4193 = vmatprep.subr.mxu1 %v3473_v0  ;;  %4123 = vmatpush2.msra.mxu0 %v3344_v35  ;;  %v3151_v0 = vld [vmem:[#allocation8 + $0x4c8] sm:$0xff]  ;;  %v3692_v41 = vunpack.c.l.bf16 %v3217_v28 }
 0x8fd   :  { %4194 = vmatpush2.msra.mxu1 %v3472_v37  ;;  %4124 = vmatprep.subr.mxu0 %v3341_v42  ;;  %v3215_v35 = vld [vmem:[#allocation8 + $0x6c8] sm:$0xff]  ;;  %v3693_v37 = vunpack.c.h.bf16 %v3217_v28  ;;  %v3149_v42 = vld [vmem:[#allocation8 + $0x4b8] sm:$0xff] }
 0x8fe   :  { %4195 = vmatprep.subr.mxu1 %v3469_v43  ;;  %4125 = vmatpush2.msra.mxu0 %v3340_v44  ;;  %v3561_v43 = vunpack.c.h.bf16 %v3151_v0  ;;  %v3560_v44 = vunpack.c.l.bf16 %v3151_v0  ;;  %v3197_v0 = vld [vmem:[#allocation8 + $0x638] sm:$0xff] }
 0x8ff   :  { %4196 = vmatpush2.msra.mxu1 %v3468_v47  ;;  %4126 = vmatprep.subr.mxu0 %v3337_v49  ;;  %v3688_v47 = vunpack.c.l.bf16 %v3215_v35 }
 0x900   :  { %4197 = vmatprep.subr.mxu1 %v3465_v53  ;;  %4127 = vmatpush2.msra.mxu0 %v3336_v55  ;;  %v3556_v53 = vunpack.c.l.bf16 %v3149_v42 }
 0x901   :  { %4198 = vmatpush2.msra.mxu1 %v3464_v56  ;;  %4128 = vmatprep.subr.mxu0 %v3333_v21  ;;  %v3145_v56 = vld [vmem:[#allocation8 + $0x498] sm:$0xff]  ;;  %v3681_v21 = vunpack.c.h.bf16 %v3211_v48 }
 0x902   :  { %4199 = vmatprep.subr.mxu1 %v3461_v57  ;;  %4129 = vmatpush2.msra.mxu0 %v3332_v58  ;;  %v3552_v57 = vunpack.c.l.bf16 %v3147_v40  ;;  %v3680_v58 = vunpack.c.l.bf16 %v3211_v48  ;;  %v3549_v61 = vunpack.c.h.bf16 %v3145_v56  ;;  %v3193_v40 = vld [vmem:[#allocation8 + $0x618] sm:$0xff] }
 0x903   :  { %4200 = vmatpush2.msra.mxu1 %v3460_v26  ;;  %4130 = vmatprep.subr.mxu0 %v3329_v36  ;;  %v3143_v26 = vld [vmem:[#allocation8 + $0x488] sm:$0xff]  ;;  %v3677_v36 = vunpack.c.h.bf16 %v3209_v29 }
 0x904   :  { %4201 = vmatprep.subr.mxu1 %v3457_v62  ;;  %4131 = vmatpush2.msra.mxu0 %v3328_v3  ;;  %v3548_v62 = vunpack.c.l.bf16 %v3145_v56  ;;  %v3676_v3 = vunpack.c.l.bf16 %v3209_v29  ;;  %v3545_v7 = vunpack.c.h.bf16 %v3143_v26  ;;  %v3191_v56 = vld [vmem:[#allocation8 + $0x608] sm:$0xff] }
 0x905   :  { %4202 = vmatpush2.msra.mxu1 %v3456_v4  ;;  %4132 = vmatprep.subr.mxu0 %v3325_v8  ;;  %v3141_v4 = vld [vmem:[#allocation8 + $0x478] sm:$0xff]  ;;  %v3673_v8 = vunpack.c.h.bf16 %v3207_v13 }
 0x906   :  { %4203 = vmatprep.subr.mxu1 %v3453_v2  ;;  %4133 = vmatpush2.msra.mxu0 %v3324_v10  ;;  %v3544_v2 = vunpack.c.l.bf16 %v3143_v26  ;;  %v3672_v10 = vunpack.c.l.bf16 %v3207_v13  ;;  %v3253_v26 = vld [vmem:[#allocation8 + $0x7f8] sm:$0xff] }
 0x907   :  { %4204 = vmatpush2.msra.mxu1 %v3452_v17  ;;  %4134 = vmatprep.subr.mxu0 %v3321_v11  ;;  %v3139_v17 = vld [vmem:[#allocation8 + $0x468] sm:$0xff] }
 0x908   :  { %4205 = vmatprep.subr.mxu1 %v3449_v12  ;;  %4135 = vmatpush2.msra.mxu0 %v3320_v16  ;;  %v3203_v11 = vld [vmem:[#allocation8 + $0x668] sm:$0xff]  ;;  %v3541_v12 = vunpack.c.h.bf16 %v3141_v4  ;;  %v3540_v16 = vunpack.c.l.bf16 %v3141_v4  ;;  %v3537_v20 = vunpack.c.h.bf16 %v3139_v17 }
 0x909   :  { %4136 = vmatprep.mubr.f32.mxu0 %v6316_v45  ;;  %4206 = vmatpush2.msra.mxu1 %v3448_v18  ;;  %v3565_v45 = vunpack.c.h.bf16 %v3153_v50  ;;  %v3137_v18 = vld [vmem:[#allocation8 + $0x458] sm:$0xff]  ;;  %v3665_v22 = vunpack.c.h.bf16 %v3203_v11  ;;  %v3199_v50 = vld [vmem:[#allocation8 + $0x648] sm:$0xff] }
 0x90a   :  { %4137 = vmatmul.mubr.f32.vlgmr.msra.gmra.mxu0 %v6308_v5  ;;  %4207 = vmatprep.mubr.f32.mxu1 %v6318_v46  ;;  %v3213_v5 = vld [vmem:[#allocation8 + $0x6b8] sm:$0xff]  ;;  %v3689_v46 = vunpack.c.h.bf16 %v3215_v35  ;;  %v3533_v28 = vunpack.c.h.bf16 %v3137_v18  ;;  %v3251_v4 = vld [vmem:[#allocation8 + $0x7e8] sm:$0xff] }
 0x90b   :  { %4214 = vmatprep.subr.mxu0 %v3573_v19  ;;  %4285 = vmatprep.subr.mxu1 %v3701_v23  ;;  %v3685_v49 = vunpack.c.h.bf16 %v3213_v5  ;;  %v3684_v55 = vunpack.c.l.bf16 %v3213_v5  ;;  %v3201_v19 = vld [vmem:[#allocation8 + $0x658] sm:$0xff]  ;;  %v3536_v23 = vunpack.c.l.bf16 %v3139_v17 }
 0x90c   :  { %4208 = vmatmul.mubr.f32.vlgmr.msra.gmra.mxu1 %v6310_v31  ;;  %4215 = vmatpush1.msra.mxu0 %v3572_v24  ;;  %v3557_v31 = vunpack.c.h.bf16 %v3149_v42  ;;  %v3664_v24 = vunpack.c.l.bf16 %v3203_v11  ;;  %v3195_v42 = vld [vmem:[#allocation8 + $0x628] sm:$0xff]  ;;  %v3249_v17 = vld [vmem:[#allocation8 + $0x7d8] sm:$0xff] }
 0x90d   :  { %4286 = vmatpush1.msra.mxu1 %v3700_v27  ;;  %4216 = vmatprep.subr.mxu0 %v3569_v30  ;;  %v3135_v27 = vld [vmem:[#allocation8 + $0x448] sm:$0xff]  ;;  %v3661_v30 = vunpack.c.h.bf16 %v3201_v19 }
 0x90e   :  { %4287 = vmatprep.subr.mxu1 %v3697_v32  ;;  %4217 = vmatpush1.msra.mxu0 %v3568_v33  ;;  %v3532_v32 = vunpack.c.l.bf16 %v3137_v18  ;;  %v3660_v33 = vunpack.c.l.bf16 %v3201_v19  ;;  %v3529_v35 = vunpack.c.h.bf16 %v3135_v27  ;;  %v3247_v18 = vld [vmem:[#allocation8 + $0x7c8] sm:$0xff] }
 0x90f   :  { %4288 = vmatpush1.msra.mxu1 %v3696_v34  ;;  %4218 = vmatprep.subr.mxu0 %v3565_v45  ;;  %v3133_v34 = vld [vmem:[#allocation8 + $0x438] sm:$0xff]  ;;  %v3657_v45 = vunpack.c.h.bf16 %v3199_v50 }
 0x910   :  { %4289 = vmatprep.subr.mxu1 %v3693_v37  ;;  %4219 = vmatpush1.msra.mxu0 %v3564_v39  ;;  %v3528_v37 = vunpack.c.l.bf16 %v3135_v27  ;;  %v3656_v39 = vunpack.c.l.bf16 %v3199_v50  ;;  %v3525_v5 = vunpack.c.h.bf16 %v3133_v34  ;;  %v3245_v27 = vld [vmem:[#allocation8 + $0x7b8] sm:$0xff] }
 0x911   :  { %4290 = vmatpush1.msra.mxu1 %v3692_v41  ;;  %4220 = vmatprep.subr.mxu0 %v3561_v43  ;;  %v3131_v41 = vld [vmem:[#allocation8 + $0x428] sm:$0xff]  ;;  %v3653_v43 = vunpack.c.h.bf16 %v3197_v0 }
 0x912   :  { %4291 = vmatprep.subr.mxu1 %v3689_v46  ;;  %4221 = vmatpush1.msra.mxu0 %v3560_v44  ;;  %v3524_v46 = vunpack.c.l.bf16 %v3133_v34  ;;  %v3652_v44 = vunpack.c.l.bf16 %v3197_v0  ;;  %v3521_v48 = vunpack.c.h.bf16 %v3131_v41  ;;  %v3243_v34 = vld [vmem:[#allocation8 + $0x7a8] sm:$0xff] }
 0x913   :  { %4292 = vmatpush1.msra.mxu1 %v3688_v47  ;;  %4222 = vmatprep.subr.mxu0 %v3557_v31  ;;  %v3129_v47 = vld [vmem:[#allocation8 + $0x418] sm:$0xff]  ;;  %v3649_v31 = vunpack.c.h.bf16 %v3195_v42 }
 0x914   :  { %4293 = vmatprep.subr.mxu1 %v3685_v49  ;;  %4223 = vmatpush1.msra.mxu0 %v3556_v53  ;;  %v3520_v49 = vunpack.c.l.bf16 %v3131_v41  ;;  %v3648_v53 = vunpack.c.l.bf16 %v3195_v42  ;;  %v3517_v29 = vunpack.c.h.bf16 %v3129_v47  ;;  %v3241_v41 = vld [vmem:[#allocation8 + $0x798] sm:$0xff] }
 0x915   :  { %4294 = vmatpush1.msra.mxu1 %v3684_v55  ;;  %4224 = vmatprep.subr.mxu0 %v3553_v9  ;;  %v3127_v55 = vld [vmem:[#allocation8 + $0x408] sm:$0xff]  ;;  %v3645_v9 = vunpack.c.h.bf16 %v3193_v40 }
 0x916   :  { %4295 = vmatprep.subr.mxu1 %v3681_v21  ;;  %4225 = vmatpush1.msra.mxu0 %v3552_v57  ;;  %v3516_v21 = vunpack.c.l.bf16 %v3129_v47  ;;  %v3644_v57 = vunpack.c.l.bf16 %v3193_v40  ;;  %v3513_v13 = vunpack.c.h.bf16 %v3127_v55  ;;  %v3239_v47 = vld [vmem:[#allocation8 + $0x788] sm:$0xff] }
 0x917   :  { %4296 = vmatpush1.msra.mxu1 %v3680_v58  ;;  %4226 = vmatprep.subr.mxu0 %v3549_v61  ;;  %v3189_v58 = vld [vmem:[#allocation8 + $0x5f8] sm:$0xff]  ;;  %v3641_v61 = vunpack.c.h.bf16 %v3191_v56 }
 0x918   :  { %4297 = vmatprep.subr.mxu1 %v3677_v36  ;;  %4227 = vmatpush1.msra.mxu0 %v3548_v62  ;;  %v3512_v36 = vunpack.c.l.bf16 %v3127_v55  ;;  %v3640_v62 = vunpack.c.l.bf16 %v3191_v56  ;;  %v3637_v6 = vunpack.c.h.bf16 %v3189_v58  ;;  %v3237_v55 = vld [vmem:[#allocation8 + $0x778] sm:$0xff] }
 0x919   :  { %4298 = vmatpush1.msra.mxu1 %v3676_v3  ;;  %4228 = vmatprep.subr.mxu0 %v3545_v7  ;;  %v3187_v3 = vld [vmem:[#allocation8 + $0x5e8] sm:$0xff]  ;;  %v3765_v7 = vunpack.c.h.bf16 %v3253_v26 }
 0x91a   :  { %4299 = vmatprep.subr.mxu1 %v3673_v8  ;;  %4229 = vmatpush1.msra.mxu0 %v3544_v2  ;;  %v3636_v8 = vunpack.c.l.bf16 %v3189_v58  ;;  %v3764_v2 = vunpack.c.l.bf16 %v3253_v26  ;;  %v3633_v11 = vunpack.c.h.bf16 %v3187_v3  ;;  %v3235_v58 = vld [vmem:[#allocation8 + $0x768] sm:$0xff] }
 0x91b   :  { %4300 = vmatpush1.msra.mxu1 %v3672_v10  ;;  %4230 = vmatprep.subr.mxu0 %v3541_v12  ;;  %v3185_v10 = vld [vmem:[#allocation8 + $0x5d8] sm:$0xff]  ;;  %v3761_v12 = vunpack.c.h.bf16 %v3251_v4 }
 0x91c   :  { %4301 = vmatprep.subr.mxu1 %v3669_v15  ;;  %4231 = vmatpush1.msra.mxu0 %v3540_v16  ;;  %v3632_v15 = vunpack.c.l.bf16 %v3187_v3  ;;  %v3760_v16 = vunpack.c.l.bf16 %v3251_v4  ;;  %v3629_v19 = vunpack.c.h.bf16 %v3185_v10  ;;  %v3233_v3 = vld [vmem:[#allocation8 + $0x758] sm:$0xff] }
 0x91d   :  { %4302 = vmatpush1.msra.mxu1 %v3668_v14  ;;  %4232 = vmatprep.subr.mxu0 %v3537_v20  ;;  %v3183_v14 = vld [vmem:[#allocation8 + $0x5c8] sm:$0xff]  ;;  %v3757_v20 = vunpack.c.h.bf16 %v3249_v17 }
 0x91e   :  { %4303 = vmatprep.subr.mxu1 %v3665_v22  ;;  %4233 = vmatpush1.msra.mxu0 %v3536_v23  ;;  %v3628_v22 = vunpack.c.l.bf16 %v3185_v10  ;;  %v3756_v23 = vunpack.c.l.bf16 %v3249_v17  ;;  %v3625_v50 = vunpack.c.h.bf16 %v3183_v14  ;;  %v3231_v10 = vld [vmem:[#allocation8 + $0x748] sm:$0xff] }
 0x91f   :  { %4304 = vmatpush1.msra.mxu1 %v3664_v24  ;;  %4234 = vmatprep.subr.mxu0 %v3533_v28  ;;  %v3181_v24 = vld [vmem:[#allocation8 + $0x5b8] sm:$0xff]  ;;  %v3753_v28 = vunpack.c.h.bf16 %v3247_v18 }
 0x920   :  { %4305 = vmatprep.subr.mxu1 %v3661_v30  ;;  %4235 = vmatpush1.msra.mxu0 %v3532_v32  ;;  %v3624_v30 = vunpack.c.l.bf16 %v3183_v14  ;;  %v3752_v32 = vunpack.c.l.bf16 %v3247_v18  ;;  %v3621_v0 = vunpack.c.h.bf16 %v3181_v24  ;;  %v3229_v14 = vld [vmem:[#allocation8 + $0x738] sm:$0xff] }
 0x921   :  { %4306 = vmatpush1.msra.mxu1 %v3660_v33  ;;  %4236 = vmatprep.subr.mxu0 %v3529_v35  ;;  %v3179_v33 = vld [vmem:[#allocation8 + $0x5a8] sm:$0xff]  ;;  %v3749_v35 = vunpack.c.h.bf16 %v3245_v27 }
 0x922   :  { %4307 = vmatprep.subr.mxu1 %v3657_v45  ;;  %4237 = vmatpush1.msra.mxu0 %v3528_v37  ;;  %v3620_v45 = vunpack.c.l.bf16 %v3181_v24  ;;  %v3748_v37 = vunpack.c.l.bf16 %v3245_v27  ;;  %v3617_v42 = vunpack.c.h.bf16 %v3179_v33  ;;  %v3227_v24 = vld [vmem:[#allocation8 + $0x728] sm:$0xff] }
 0x923   :  { %4308 = vmatpush1.msra.mxu1 %v3656_v39  ;;  %4238 = vmatprep.subr.mxu0 %v3525_v5  ;;  %v3177_v39 = vld [vmem:[#allocation8 + $0x598] sm:$0xff]  ;;  %v3745_v5 = vunpack.c.h.bf16 %v3243_v34 }
 0x924   :  { %4309 = vmatprep.subr.mxu1 %v3653_v43  ;;  %4239 = vmatpush1.msra.mxu0 %v3524_v46  ;;  %v3616_v43 = vunpack.c.l.bf16 %v3179_v33  ;;  %v3744_v46 = vunpack.c.l.bf16 %v3243_v34  ;;  %v3613_v40 = vunpack.c.h.bf16 %v3177_v39  ;;  %v3225_v33 = vld [vmem:[#allocation8 + $0x718] sm:$0xff] }
 0x925   :  { %4310 = vmatpush1.msra.mxu1 %v3652_v44  ;;  %4240 = vmatprep.subr.mxu0 %v3521_v48  ;;  %v3175_v44 = vld [vmem:[#allocation8 + $0x588] sm:$0xff]  ;;  %v3741_v48 = vunpack.c.h.bf16 %v3241_v41 }
 0x926   :  { %4311 = vmatprep.subr.mxu1 %v3649_v31  ;;  %4241 = vmatpush1.msra.mxu0 %v3520_v49  ;;  %v3612_v31 = vunpack.c.l.bf16 %v3177_v39  ;;  %v3740_v49 = vunpack.c.l.bf16 %v3241_v41  ;;  %v3609_v56 = vunpack.c.h.bf16 %v3175_v44  ;;  %v3223_v39 = vld [vmem:[#allocation8 + $0x708] sm:$0xff] }
 0x927   :  { %4312 = vmatpush1.msra.mxu1 %v3648_v53  ;;  %4242 = vmatprep.subr.mxu0 %v3517_v29  ;;  %v3173_v53 = vld [vmem:[#allocation8 + $0x578] sm:$0xff]  ;;  %v3737_v29 = vunpack.c.h.bf16 %v3239_v47 }
 0x928   :  { %4313 = vmatprep.subr.mxu1 %v3645_v9  ;;  %4243 = vmatpush1.msra.mxu0 %v3516_v21  ;;  %v3608_v9 = vunpack.c.l.bf16 %v3175_v44  ;;  %v3736_v21 = vunpack.c.l.bf16 %v3239_v47  ;;  %v3605_v26 = vunpack.c.h.bf16 %v3173_v53  ;;  %v3705_v44 = vunpack.c.h.bf16 %v3223_v39 }
 0x929   :  { %4314 = vmatpush1.msra.mxu1 %v3644_v57  ;;  %4244 = vmatprep.subr.mxu0 %v3513_v13  ;;  %v3171_v57 = vld [vmem:[#allocation8 + $0x568] sm:$0xff]  ;;  %v3733_v13 = vunpack.c.h.bf16 %v3237_v55 }
 0x92a   :  { %4315 = vmatprep.subr.mxu1 %v3641_v61  ;;  %4245 = vmatpush1.msra.mxu0 %v3512_v36  ;;  %v3604_v61 = vunpack.c.l.bf16 %v3173_v53  ;;  %v3732_v36 = vunpack.c.l.bf16 %v3237_v55  ;;  %v3601_v4 = vunpack.c.h.bf16 %v3171_v57 }
 0x92b   :  { %4316 = vmatpush1.msra.mxu1 %v3640_v62  ;;  %4246 = vmatprep.subr.mxu0 %v3637_v6  ;;  %v3169_v62 = vld [vmem:[#allocation8 + $0x558] sm:$0xff]  ;;  %v3729_v6 = vunpack.c.h.bf16 %v3235_v58 }
 0x92c   :  { %4317 = vmatprep.subr.mxu1 %v3765_v7  ;;  %4247 = vmatpush2.msra.mxu0 %v3636_v8  ;;  %v3600_v7 = vunpack.c.l.bf16 %v3171_v57  ;;  %v3728_v8 = vunpack.c.l.bf16 %v3235_v58  ;;  %v3597_v17 = vunpack.c.h.bf16 %v3169_v62 }
 0x92d   :  { %4318 = vmatpush2.msra.mxu1 %v3764_v2  ;;  %4248 = vmatprep.subr.mxu0 %v3633_v11  ;;  %v3167_v2 = vld [vmem:[#allocation8 + $0x548] sm:$0xff]  ;;  %v3725_v11 = vunpack.c.h.bf16 %v3233_v3 }
 0x92e   :  { %4319 = vmatprep.subr.mxu1 %v3761_v12  ;;  %4249 = vmatpush2.msra.mxu0 %v3632_v15  ;;  %v3596_v12 = vunpack.c.l.bf16 %v3169_v62  ;;  %v3724_v15 = vunpack.c.l.bf16 %v3233_v3  ;;  %v3593_v18 = vunpack.c.h.bf16 %v3167_v2 }
 0x92f   :  { %4320 = vmatpush2.msra.mxu1 %v3760_v16  ;;  %4250 = vmatprep.subr.mxu0 %v3629_v19  ;;  %v3165_v16 = vld [vmem:[#allocation8 + $0x538] sm:$0xff]  ;;  %v3721_v19 = vunpack.c.h.bf16 %v3231_v10 }
 0x930   :  { %4321 = vmatprep.subr.mxu1 %v3757_v20  ;;  %4251 = vmatpush2.msra.mxu0 %v3628_v22  ;;  %v3592_v20 = vunpack.c.l.bf16 %v3167_v2  ;;  %v3720_v22 = vunpack.c.l.bf16 %v3231_v10  ;;  %v3589_v27 = vunpack.c.h.bf16 %v3165_v16 }
 0x931   :  { %4322 = vmatpush2.msra.mxu1 %v3756_v23  ;;  %4252 = vmatprep.subr.mxu0 %v3625_v50  ;;  %v3163_v23 = vld [vmem:[#allocation8 + $0x528] sm:$0xff]  ;;  %v3717_v50 = vunpack.c.h.bf16 %v3229_v14 }
 0x932   :  { %4323 = vmatprep.subr.mxu1 %v3753_v28  ;;  %4253 = vmatpush2.msra.mxu0 %v3624_v30  ;;  %v3588_v28 = vunpack.c.l.bf16 %v3165_v16  ;;  %v3716_v30 = vunpack.c.l.bf16 %v3229_v14  ;;  %v3585_v34 = vunpack.c.h.bf16 %v3163_v23 }
 0x933   :  { %4324 = vmatpush2.msra.mxu1 %v3752_v32  ;;  %4254 = vmatprep.subr.mxu0 %v3621_v0  ;;  %v3161_v32 = vld [vmem:[#allocation8 + $0x518] sm:$0xff]  ;;  %v3713_v0 = vunpack.c.h.bf16 %v3227_v24 }
 0x934   :  { %4325 = vmatprep.subr.mxu1 %v3749_v35  ;;  %4255 = vmatpush2.msra.mxu0 %v3620_v45  ;;  %v3584_v35 = vunpack.c.l.bf16 %v3163_v23  ;;  %v3712_v45 = vunpack.c.l.bf16 %v3227_v24  ;;  %v3581_v41 = vunpack.c.h.bf16 %v3161_v32 }
 0x935   :  { %4326 = vmatpush2.msra.mxu1 %v3748_v37  ;;  %4256 = vmatprep.subr.mxu0 %v3617_v42  ;;  %v3159_v37 = vld [vmem:[#allocation8 + $0x508] sm:$0xff]  ;;  %v3709_v42 = vunpack.c.h.bf16 %v3225_v33 }
 0x936   :  { %4327 = vmatprep.subr.mxu1 %v3745_v5  ;;  %4257 = vmatpush2.msra.mxu0 %v3616_v43  ;;  %v3580_v5 = vunpack.c.l.bf16 %v3161_v32  ;;  %v3708_v43 = vunpack.c.l.bf16 %v3225_v33  ;;  %v3576_v47 = vunpack.c.l.bf16 %v3159_v37 }
 0x937   :  { %4328 = vmatpush2.msra.mxu1 %v3744_v46  ;;  %4258 = vmatprep.subr.mxu0 %v3613_v40  ;;  %v3577_v46 = vunpack.c.h.bf16 %v3159_v37  ;;  %v3704_v40 = vunpack.c.l.bf16 %v3223_v39 }
 0x938   :  { %4329 = vmatprep.subr.mxu1 %v3741_v48  ;;  %4259 = vmatpush2.msra.mxu0 %v3612_v31  ;;  %v3766_v48 = vld [vmem:[%s6433_s13 + $0x8] sm:$0xf] }
 0x939   :  { %4330 = vmatpush2.msra.mxu1 %v3740_v49  ;;  %4260 = vmatprep.subr.mxu0 %v3609_v56  ;;  %v3771_v49 = vrot.slane %v3766_v48, %v6196_v52  ;;  %v3775_v53 = vrot.slane %v3766_v48, %v6199_v54  ;;  %v3783_v2 = vrot.slane %v3766_v48, %v6207_v63 }
 0x93a   :  { %4331 = vmatprep.subr.mxu1 %v3737_v29  ;;  %4261 = vmatpush2.msra.mxu0 %v3608_v9 }
 0x93b   :  { %4332 = vmatpush2.msra.mxu1 %v3736_v21  ;;  %4262 = vmatprep.subr.mxu0 %v3605_v26 }
 0x93c   :  { %4333 = vmatprep.subr.mxu1 %v3733_v13  ;;  %4263 = vmatpush2.msra.mxu0 %v3604_v61 }
 0x93d   :  { %4334 = vmatpush2.msra.mxu1 %v3732_v36  ;;  %4264 = vmatprep.subr.mxu0 %v3601_v4 }
 0x93e   :  { %4335 = vmatprep.subr.mxu1 %v3729_v6  ;;  %4265 = vmatpush2.msra.mxu0 %v3600_v7 }
 0x93f   :  { %4336 = vmatpush2.msra.mxu1 %v3728_v8  ;;  %4266 = vmatprep.subr.mxu0 %v3597_v17  ;;  %v3779_v8 = vrot.slane %v3766_v48, %v6204_v59 }
 0x940   :  { %4337 = vmatprep.subr.mxu1 %v3725_v11  ;;  %4267 = vmatpush2.msra.mxu0 %v3596_v12 }
 0x941   :  { %4338 = vmatpush2.msra.mxu1 %v3724_v15  ;;  %4268 = vmatprep.subr.mxu0 %v3593_v18 }
 0x942   :  { %4339 = vmatprep.subr.mxu1 %v3721_v19  ;;  %4269 = vmatpush2.msra.mxu0 %v3592_v20 }
 0x943   :  { %4340 = vmatpush2.msra.mxu1 %v3720_v22  ;;  %4270 = vmatprep.subr.mxu0 %v3589_v27 }
 0x944   :  { %4341 = vmatprep.subr.mxu1 %v3717_v50  ;;  %4271 = vmatpush2.msra.mxu0 %v3588_v28 }
 0x945   :  { %4342 = vmatpush2.msra.mxu1 %v3716_v30  ;;  %4272 = vmatprep.subr.mxu0 %v3585_v34 }
 0x946   :  { %4343 = vmatprep.subr.mxu1 %v3713_v0  ;;  %4273 = vmatpush2.msra.mxu0 %v3584_v35  ;;  %v3854_v31 = vpop.f32.mrf.mxu0 }
 0x947   :  { %4344 = vmatpush2.msra.mxu1 %v3712_v45  ;;  %4274 = vmatprep.subr.mxu0 %v3581_v41  ;;  %v3855_v29 = vadd.f32 %v3854_v31, %v3771_v49 }
 0x948   :  { %4345 = vmatprep.subr.mxu1 %v3709_v42  ;;  %4275 = vmatpush2.msra.mxu0 %v3580_v5  ;;  %v3925_v55 = vpop.f32.mrf.mxu1  ;;  %v3856_v56 = vpop.f32.mrf.mxu0 }
 0x949   :  { %4346 = vmatpush2.msra.mxu1 %v3708_v43  ;;  %4276 = vmatprep.subr.mxu0 %v3577_v46  ;;  %v3926_v21 = vadd.f32 %v3925_v55, %v3855_v29 }
 0x94a   :  { %4347 = vmatprep.subr.mxu1 %v3705_v44  ;;  %4277 = vmatpush2.msra.mxu0 %v3576_v47  ;;  %v3927_v9 = vpop.f32.mrf.mxu1 }
 0x94b   :  { %4278 = vmatprep.mubr.f32.mxu0 %v6328_v51  ;;  %4348 = vmatpush2.msra.mxu1 %v3704_v40  ;;  %v3857_v51 = vadd.f32 %v3856_v56, %v3775_v53 }
 0x94c   :  { %4349 = vmatprep.mubr.f32.mxu1 %v6330_v25  ;;  %4279 = vmatmul.mubr.f32.vlgmr.msra.gmra.mxu0 %v6324_v38 }
 0x94d   :  { %4350 = vmatmul.mubr.f32.vlgmr.msra.gmra.mxu1 %v6326_v60  ;;  %v3928_v57 = vadd.f32 %v3927_v9, %v3857_v51 }
 0x988   :  { %v3996_v25 = vpop.f32.mrf.mxu0 }
 0x989   :  { %v3997_v38 = vadd.f32 %v3996_v25, %v3926_v21 }
 0x98a   :  { %v4067_v58 = vpop.f32.mrf.mxu1  ;;  %v3998_v60 = vpop.f32.mrf.mxu0 }
 0x98b   :  { %v4068_v26 = vadd.f32 %v4067_v58, %v3997_v38  ;;  %v3999_v13 = vadd.f32 %v3998_v60, %v3928_v57 }
 0x98c   :  { %v4069_v61 = vpop.f32.mrf.mxu1 }
 0x98d   :  { %vm4356_vm10 = vcmp.ge.f32.partialorder %v4068_v26, 0.0  ;;  %v4360_v36 = vmul.f32 0.01, %v4068_v26  ;;  %v4070_v62 = vadd.f32 %v4069_v61, %v3999_v13 }
 0x98f   :  { %v6353_v3 = vsel %vm4356_vm10, %v4068_v26, %v4360_v36  ;;  %vm4357_vm11 = vcmp.ge.f32.partialorder %v4070_v62, 0.0  ;;  %v4361_v4 = vmul.f32 0.01, %v4070_v62 }
 0x991   :  { %v4365_v6 = vsel %vm4357_vm11, %v4070_v62, %v4361_v4 }
 0x9ca   :  { %v4138_v7 = vpop.f32.mrf.mxu0 }
 0x9cb   :  { %v4139_v11 = vadd.f32 %v4138_v7, %v3779_v8 }
 0x9cc   :  { %v4209_v10 = vpop.f32.mrf.mxu1  ;;  %v4140_v17 = vpop.f32.mrf.mxu0 }
 0x9cd   :  { %v4141_v12 = vadd.f32 %v4140_v17, %v3783_v2  ;;  %v4210_v16 = vadd.f32 %v4209_v10, %v4139_v11 }
 0x9ce   :  { %v4211_v15 = vpop.f32.mrf.mxu1 }
 0x9cf   :  { %v4212_v19 = vadd.f32 %v4211_v15, %v4141_v12 }
 0xa0c   :  { %v4280_v14 = vpop.f32.mrf.mxu0 }
 0xa0d   :  { %v4351_v18 = vpop.f32.mrf.mxu1  ;;  %v4281_v20 = vadd.f32 %v4280_v14, %v4210_v16 }
 0xa0e   :  { %v4282_v22 = vpop.f32.mrf.mxu0 }
 0xa0f   :  { %v4352_v23 = vadd.f32 %v4351_v18, %v4281_v20  ;;  %v4283_v24 = vadd.f32 %v4282_v22, %v4212_v19  ;;  %v4353_v27 = vpop.f32.mrf.mxu1 }
 0xa11   :  { %vm4358_vm12 = vcmp.ge.f32.partialorder %v4352_v23, 0.0  ;;  %v4362_v50 = vmul.f32 0.01, %v4352_v23  ;;  %v4354_v28 = vadd.f32 %v4353_v27, %v4283_v24 }
 0xa13   :  { %v6357_v59 = vsel %vm4358_vm12, %v4352_v23, %v4362_v50  ;;  %vm4359_vm13 = vcmp.ge.f32.partialorder %v4354_v28, 0.0  ;;  %v4363_v63 = vmul.f32 0.01, %v4354_v28 }
 0xa15   :  { %v4367_v30 = vsel %vm4359_vm13, %v4354_v28, %v4363_v63 }
 0xa16   :  { %6033 = dma.done.wait [#allocation13 + $0x7], 8192 }
 0xa17   :  { %6034 = vsyncadd [#allocation13 + $0x7], 4294959104  ;;  %4638 = vmatprep.mubr.f32.mxu0 %v4365_v6  ;;  %4709 = vmatprep.mubr.f32.mxu1 %v4367_v30  ;;  %v4385_v32 = vld [vmem:[#allocation9 + $0x78] sm:$0xff]  ;;  %v4384_v34 = vld [vmem:[#allocation9 + $0x70] sm:$0xff] }
 0xa18   :  { %v4417_v33 = vld [vmem:[#allocation9 + $0x178] sm:$0xff]  ;;  %v4465_v0 = vunpack.c.h.bf16 %v4385_v32  ;;  %v4464_v45 = vunpack.c.l.bf16 %v4385_v32  ;;  %v4416_v39 = vld [vmem:[#allocation9 + $0x170] sm:$0xff]  ;;  %v4383_v41 = vld [vmem:[#allocation9 + $0x68] sm:$0xff]  ;;  %v4463_v5 = vunpack.c.h.bf16 %v4384_v34  ;;  %v4462_v46 = vunpack.c.l.bf16 %v4384_v34 }
 0xa19   :  { %v4529_v35 = vunpack.c.h.bf16 %v4417_v33  ;;  %v4528_v37 = vunpack.c.l.bf16 %v4417_v33  ;;  %v4415_v42 = vld [vmem:[#allocation9 + $0x168] sm:$0xff]  ;;  %v4527_v43 = vunpack.c.h.bf16 %v4416_v39  ;;  %v4526_v44 = vunpack.c.l.bf16 %v4416_v39  ;;  %v4382_v47 = vld [vmem:[#allocation9 + $0x60] sm:$0xff]  ;;  %v4381_v55 = vld [vmem:[#allocation9 + $0x58] sm:$0xff] }
 0xa1a   :  { %v4414_v40 = vld [vmem:[#allocation9 + $0x160] sm:$0xff]  ;;  %4574 = vmatprep.subr.mxu0 %v4465_v0  ;;  %v4461_v48 = vunpack.c.h.bf16 %v4383_v41  ;;  %v4525_v31 = vunpack.c.h.bf16 %v4415_v42  ;;  %v4460_v49 = vunpack.c.l.bf16 %v4383_v41  ;;  %v4524_v53 = vunpack.c.l.bf16 %v4415_v42  ;;  %v4413_v56 = vld [vmem:[#allocation9 + $0x158] sm:$0xff]  ;;  %v4380_v25 = vld [vmem:[#allocation9 + $0x50] sm:$0xff] }
 0xa1b   :  { %4645 = vmatprep.subr.mxu1 %v4529_v35  ;;  %4575 = vmatpush1.msra.mxu0 %v4464_v45  ;;  %v4459_v29 = vunpack.c.h.bf16 %v4382_v47  ;;  %v4523_v51 = vunpack.c.h.bf16 %v4414_v40  ;;  %v4458_v9 = vunpack.c.l.bf16 %v4382_v47  ;;  %v4522_v21 = vunpack.c.l.bf16 %v4414_v40  ;;  %v4412_v57 = vld [vmem:[#allocation9 + $0x150] sm:$0xff]  ;;  %v4379_v13 = vld [vmem:[#allocation9 + $0x48] sm:$0xff]  ;;  %v4378_v7 = vld [vmem:[#allocation9 + $0x40] sm:$0xff] }
 0xa1c   :  { %4646 = vmatpush1.msra.mxu1 %v4528_v37  ;;  %4576 = vmatprep.subr.mxu0 %v4463_v5  ;;  %v4457_v38 = vunpack.c.h.bf16 %v4381_v55  ;;  %v4521_v58 = vunpack.c.h.bf16 %v4413_v56  ;;  %v4456_v60 = vunpack.c.l.bf16 %v4381_v55  ;;  %v4520_v26 = vunpack.c.l.bf16 %v4413_v56  ;;  %v4411_v61 = vld [vmem:[#allocation9 + $0x148] sm:$0xff]  ;;  %v4410_v8 = vld [vmem:[#allocation9 + $0x140] sm:$0xff]  ;;  %v4377_v12 = vld [vmem:[#allocation9 + $0x38] sm:$0xff] }
 0xa1d   :  { %4647 = vmatprep.subr.mxu1 %v4527_v43  ;;  %4577 = vmatpush1.msra.mxu0 %v4462_v46  ;;  %v4455_v36 = vunpack.c.h.bf16 %v4380_v25  ;;  %v4519_v62 = vunpack.c.h.bf16 %v4412_v57  ;;  %v4454_v4 = vunpack.c.l.bf16 %v4380_v25  ;;  %v4518_v6 = vunpack.c.l.bf16 %v4412_v57  ;;  %v4409_v15 = vld [vmem:[#allocation9 + $0x138] sm:$0xff]  ;;  %v4376_v20 = vld [vmem:[#allocation9 + $0x30] sm:$0xff]  ;;  %v4375_v28 = vld [vmem:[#allocation9 + $0x28] sm:$0xff] }
 0xa1e   :  { %4648 = vmatpush1.msra.mxu1 %v4526_v44  ;;  %4578 = vmatprep.subr.mxu0 %v4461_v48  ;;  %v4453_v2 = vunpack.c.h.bf16 %v4379_v13  ;;  %v4517_v10 = vunpack.c.h.bf16 %v4411_v61  ;;  %v4452_v17 = vunpack.c.l.bf16 %v4379_v13  ;;  %v4516_v11 = vunpack.c.l.bf16 %v4411_v61  ;;  %v4408_v22 = vld [vmem:[#allocation9 + $0x130] sm:$0xff]  ;;  %v4407_v63 = vld [vmem:[#allocation9 + $0x128] sm:$0xff]  ;;  %v4374_v0 = vld [vmem:[#allocation9 + $0x20] sm:$0xff] }
 0xa1f   :  { %4649 = vmatprep.subr.mxu1 %v4525_v31  ;;  %4579 = vmatpush1.msra.mxu0 %v4460_v49  ;;  %v4451_v16 = vunpack.c.h.bf16 %v4378_v7  ;;  %v4515_v14 = vunpack.c.h.bf16 %v4410_v8  ;;  %v4450_v18 = vunpack.c.l.bf16 %v4378_v7  ;;  %v4514_v19 = vunpack.c.l.bf16 %v4410_v8  ;;  %v4406_v35 = vld [vmem:[#allocation9 + $0x120] sm:$0xff]  ;;  %v4373_v42 = vld [vmem:[#allocation9 + $0x18] sm:$0xff]  ;;  %v4372_v40 = vld [vmem:[#allocation9 + $0x10] sm:$0xff] }
 0xa20   :  { %4650 = vmatpush1.msra.mxu1 %v4524_v53  ;;  %4580 = vmatprep.subr.mxu0 %v4459_v29  ;;  %v4449_v23 = vunpack.c.h.bf16 %v4377_v12  ;;  %v4513_v24 = vunpack.c.h.bf16 %v4409_v15  ;;  %v4448_v27 = vunpack.c.l.bf16 %v4377_v12  ;;  %v4512_v50 = vunpack.c.l.bf16 %v4409_v15  ;;  %v4405_v5 = vld [vmem:[#allocation9 + $0x118] sm:$0xff]  ;;  %v4404_v48 = vld [vmem:[#allocation9 + $0x110] sm:$0xff]  ;;  %v4371_v56 = vld [vmem:[#allocation9 + $0x8] sm:$0xff] }
 0xa21   :  { %4651 = vmatprep.subr.mxu1 %v4523_v51  ;;  %4581 = vmatpush1.msra.mxu0 %v4458_v9  ;;  %v4447_v30 = vunpack.c.h.bf16 %v4376_v20  ;;  %v4511_v32 = vunpack.c.h.bf16 %v4408_v22  ;;  %v4446_v33 = vunpack.c.l.bf16 %v4376_v20  ;;  %v4510_v34 = vunpack.c.l.bf16 %v4408_v22  ;;  %v4403_v29 = vld [vmem:[#allocation9 + $0x108] sm:$0xff]  ;;  %v4370_v57 = vld [vmem:[#allocation9] sm:$0xff]  ;;  %v4401_v61 = vld [vmem:[#allocation9 + $0xf8] sm:$0xff] }
 0xa22   :  { %4652 = vmatpush1.msra.mxu1 %v4522_v21  ;;  %4582 = vmatprep.subr.mxu0 %v4457_v38  ;;  %v4445_v45 = vunpack.c.h.bf16 %v4375_v28  ;;  %v4509_v37 = vunpack.c.h.bf16 %v4407_v63  ;;  %v4444_v39 = vunpack.c.l.bf16 %v4375_v28  ;;  %v4508_v41 = vunpack.c.l.bf16 %v4407_v63  ;;  %v4402_v38 = vld [vmem:[#allocation9 + $0x100] sm:$0xff]  ;;  %v4400_v8 = vld [vmem:[#allocation9 + $0xf0] sm:$0xff]  ;;  %v4399_v15 = vld [vmem:[#allocation9 + $0xe8] sm:$0xff] }
 0xa23   :  { %4653 = vmatprep.subr.mxu1 %v4521_v58  ;;  %4583 = vmatpush1.msra.mxu0 %v4456_v60  ;;  %v4443_v43 = vunpack.c.h.bf16 %v4374_v0  ;;  %v4507_v46 = vunpack.c.h.bf16 %v4406_v35  ;;  %v4442_v44 = vunpack.c.l.bf16 %v4374_v0  ;;  %v4506_v47 = vunpack.c.l.bf16 %v4406_v35  ;;  %v4398_v22 = vld [vmem:[#allocation9 + $0xe0] sm:$0xff]  ;;  %v4397_v63 = vld [vmem:[#allocation9 + $0xd8] sm:$0xff]  ;;  %v4396_v35 = vld [vmem:[#allocation9 + $0xd0] sm:$0xff] }
 0xa24   :  { %4654 = vmatpush1.msra.mxu1 %v4520_v26  ;;  %4584 = vmatprep.subr.mxu0 %v4455_v36  ;;  %v4441_v31 = vunpack.c.h.bf16 %v4373_v42  ;;  %v4505_v49 = vunpack.c.h.bf16 %v4405_v5  ;;  %v4440_v53 = vunpack.c.l.bf16 %v4373_v42  ;;  %v4504_v55 = vunpack.c.l.bf16 %v4405_v5  ;;  %v4433_v36 = vld [vmem:[#allocation9 + $0x1f8] sm:$0xff]  ;;  %v4395_v5 = vld [vmem:[#allocation9 + $0xc8] sm:$0xff] }
 0xa25   :  { %4655 = vmatprep.subr.mxu1 %v4519_v62  ;;  %4585 = vmatpush1.msra.mxu0 %v4454_v4  ;;  %v4439_v51 = vunpack.c.h.bf16 %v4372_v40  ;;  %v4503_v9 = vunpack.c.h.bf16 %v4404_v48  ;;  %v4438_v21 = vunpack.c.l.bf16 %v4372_v40  ;;  %v4502_v25 = vunpack.c.l.bf16 %v4404_v48  ;;  %v4394_v48 = vld [vmem:[#allocation9 + $0xc0] sm:$0xff] }
 0xa26   :  { %4656 = vmatpush1.msra.mxu1 %v4518_v6  ;;  %4586 = vmatprep.subr.mxu0 %v4453_v2  ;;  %v4437_v58 = vunpack.c.h.bf16 %v4371_v56  ;;  %v4501_v60 = vunpack.c.h.bf16 %v4403_v29  ;;  %v4436_v26 = vunpack.c.l.bf16 %v4371_v56  ;;  %v4500_v13 = vunpack.c.l.bf16 %v4403_v29  ;;  %v4432_v2 = vld [vmem:[#allocation9 + $0x1f0] sm:$0xff]  ;;  %v4393_v29 = vld [vmem:[#allocation9 + $0xb8] sm:$0xff] }
 0xa27   :  { %4657 = vmatprep.subr.mxu1 %v4517_v10  ;;  %4587 = vmatpush1.msra.mxu0 %v4452_v17  ;;  %v4435_v62 = vunpack.c.h.bf16 %v4370_v57  ;;  %v4499_v4 = vunpack.c.h.bf16 %v4402_v38  ;;  %v4434_v6 = vunpack.c.l.bf16 %v4370_v57  ;;  %v4498_v7 = vunpack.c.l.bf16 %v4402_v38  ;;  %v4392_v38 = vld [vmem:[#allocation9 + $0xb0] sm:$0xff] }
 0xa28   :  { %4658 = vmatpush1.msra.mxu1 %v4516_v11  ;;  %4588 = vmatprep.subr.mxu0 %v4451_v16  ;;  %v4497_v10 = vunpack.c.h.bf16 %v4401_v61  ;;  %v4561_v17 = vunpack.c.h.bf16 %v4433_v36  ;;  %v4496_v11 = vunpack.c.l.bf16 %v4401_v61  ;;  %v4560_v12 = vunpack.c.l.bf16 %v4433_v36  ;;  %v4431_v16 = vld [vmem:[#allocation9 + $0x1e8] sm:$0xff] }
 0xa29   :  { %4659 = vmatprep.subr.mxu1 %v4515_v14  ;;  %4589 = vmatpush1.msra.mxu0 %v4450_v18  ;;  %v4495_v14 = vunpack.c.h.bf16 %v4400_v8  ;;  %v4559_v18 = vunpack.c.h.bf16 %v4432_v2  ;;  %v4558_v20 = vunpack.c.l.bf16 %v4432_v2  ;;  %v4556_v28 = vunpack.c.l.bf16 %v4431_v16  ;;  %v4391_v36 = vld [vmem:[#allocation9 + $0xa8] sm:$0xff]  ;;  %v4390_v2 = vld [vmem:[#allocation9 + $0xa0] sm:$0xff] }
 0xa2a   :  { %4660 = vmatpush1.msra.mxu1 %v4514_v19  ;;  %4590 = vmatprep.subr.mxu0 %v4449_v23  ;;  %v4494_v19 = vunpack.c.l.bf16 %v4400_v8  ;;  %v4430_v23 = vld [vmem:[#allocation9 + $0x1e0] sm:$0xff] }
 0xa2b   :  { %4661 = vmatprep.subr.mxu1 %v4513_v24  ;;  %4591 = vmatpush1.msra.mxu0 %v4448_v27  ;;  %v4493_v24 = vunpack.c.h.bf16 %v4399_v15  ;;  %v4557_v27 = vunpack.c.h.bf16 %v4431_v16  ;;  %v4554_v0 = vunpack.c.l.bf16 %v4430_v23  ;;  %v4389_v16 = vld [vmem:[#allocation9 + $0x98] sm:$0xff] }
 0xa2c   :  { %4662 = vmatpush1.msra.mxu1 %v4512_v50  ;;  %4592 = vmatprep.subr.mxu0 %v4447_v30  ;;  %v4492_v50 = vunpack.c.l.bf16 %v4399_v15  ;;  %v4429_v30 = vld [vmem:[#allocation9 + $0x1d8] sm:$0xff] }
 0xa2d   :  { %4663 = vmatprep.subr.mxu1 %v4511_v32  ;;  %4593 = vmatpush1.msra.mxu0 %v4446_v33  ;;  %v4491_v32 = vunpack.c.h.bf16 %v4398_v22  ;;  %v4555_v33 = vunpack.c.h.bf16 %v4430_v23  ;;  %v4552_v42 = vunpack.c.l.bf16 %v4429_v30  ;;  %v4388_v23 = vld [vmem:[#allocation9 + $0x90] sm:$0xff] }
 0xa2e   :  { %4664 = vmatpush1.msra.mxu1 %v4510_v34  ;;  %4594 = vmatprep.subr.mxu0 %v4445_v45  ;;  %v4490_v34 = vunpack.c.l.bf16 %v4398_v22  ;;  %v4428_v45 = vld [vmem:[#allocation9 + $0x1d0] sm:$0xff] }
 0xa2f   :  { %4665 = vmatprep.subr.mxu1 %v4509_v37  ;;  %4595 = vmatpush1.msra.mxu0 %v4444_v39  ;;  %v4489_v37 = vunpack.c.h.bf16 %v4397_v63  ;;  %v4553_v39 = vunpack.c.h.bf16 %v4429_v30  ;;  %v4550_v40 = vunpack.c.l.bf16 %v4428_v45  ;;  %v4387_v30 = vld [vmem:[#allocation9 + $0x88] sm:$0xff] }
 0xa30   :  { %4666 = vmatpush1.msra.mxu1 %v4508_v41  ;;  %4596 = vmatprep.subr.mxu0 %v4443_v43  ;;  %v4488_v41 = vunpack.c.l.bf16 %v4397_v63  ;;  %v4427_v43 = vld [vmem:[#allocation9 + $0x1c8] sm:$0xff] }
 0xa31   :  { %4667 = vmatprep.subr.mxu1 %v4507_v46  ;;  %4597 = vmatpush1.msra.mxu0 %v4442_v44  ;;  %v4487_v46 = vunpack.c.h.bf16 %v4396_v35  ;;  %v4551_v44 = vunpack.c.h.bf16 %v4428_v45  ;;  %v4548_v56 = vunpack.c.l.bf16 %v4427_v43  ;;  %v4386_v45 = vld [vmem:[#allocation9 + $0x80] sm:$0xff] }
 0xa32   :  { %4668 = vmatpush1.msra.mxu1 %v4506_v47  ;;  %4598 = vmatprep.subr.mxu0 %v4441_v31  ;;  %v4486_v47 = vunpack.c.l.bf16 %v4396_v35  ;;  %v4426_v31 = vld [vmem:[#allocation9 + $0x1c0] sm:$0xff] }
 0xa33   :  { %4669 = vmatprep.subr.mxu1 %v4505_v49  ;;  %4599 = vmatpush1.msra.mxu0 %v4440_v53  ;;  %v4485_v49 = vunpack.c.h.bf16 %v4395_v5  ;;  %v4549_v53 = vunpack.c.h.bf16 %v4427_v43  ;;  %v4546_v57 = vunpack.c.l.bf16 %v4426_v31  ;;  %v4467_v43 = vunpack.c.h.bf16 %v4386_v45 }
 0xa34   :  { %4670 = vmatpush1.msra.mxu1 %v4504_v55  ;;  %4600 = vmatprep.subr.mxu0 %v4439_v51  ;;  %v4484_v55 = vunpack.c.l.bf16 %v4395_v5  ;;  %v4425_v51 = vld [vmem:[#allocation9 + $0x1b8] sm:$0xff] }
 0xa35   :  { %4671 = vmatprep.subr.mxu1 %v4503_v9  ;;  %4601 = vmatpush1.msra.mxu0 %v4438_v21  ;;  %v4483_v9 = vunpack.c.h.bf16 %v4394_v48  ;;  %v4547_v21 = vunpack.c.h.bf16 %v4426_v31  ;;  %v4544_v61 = vunpack.c.l.bf16 %v4425_v51 }
 0xa36   :  { %4672 = vmatpush1.msra.mxu1 %v4502_v25  ;;  %4602 = vmatprep.subr.mxu0 %v4437_v58  ;;  %v4482_v25 = vunpack.c.l.bf16 %v4394_v48  ;;  %v4424_v58 = vld [vmem:[#allocation9 + $0x1b0] sm:$0xff] }
 0xa37   :  { %4673 = vmatprep.subr.mxu1 %v4501_v60  ;;  %4603 = vmatpush1.msra.mxu0 %v4436_v26  ;;  %v4481_v60 = vunpack.c.h.bf16 %v4393_v29  ;;  %v4545_v26 = vunpack.c.h.bf16 %v4425_v51  ;;  %v4542_v8 = vunpack.c.l.bf16 %v4424_v58 }
 0xa38   :  { %4674 = vmatpush1.msra.mxu1 %v4500_v13  ;;  %4604 = vmatprep.subr.mxu0 %v4435_v62  ;;  %v4480_v13 = vunpack.c.l.bf16 %v4393_v29  ;;  %v4423_v62 = vld [vmem:[#allocation9 + $0x1a8] sm:$0xff] }
 0xa39   :  { %4675 = vmatprep.subr.mxu1 %v4499_v4  ;;  %4605 = vmatpush1.msra.mxu0 %v4434_v6  ;;  %v4479_v4 = vunpack.c.h.bf16 %v4392_v38  ;;  %v4543_v6 = vunpack.c.h.bf16 %v4424_v58  ;;  %v4540_v15 = vunpack.c.l.bf16 %v4423_v62 }
 0xa3a   :  { %4676 = vmatpush1.msra.mxu1 %v4498_v7  ;;  %4606 = vmatprep.subr.mxu0 %v4497_v10  ;;  %v4478_v7 = vunpack.c.l.bf16 %v4392_v38  ;;  %v4422_v10 = vld [vmem:[#allocation9 + $0x1a0] sm:$0xff] }
 0xa3b   :  { %4677 = vmatprep.subr.mxu1 %v4561_v17  ;;  %4607 = vmatpush2.msra.mxu0 %v4496_v11  ;;  %v4477_v17 = vunpack.c.h.bf16 %v4391_v36  ;;  %v4541_v11 = vunpack.c.h.bf16 %v4423_v62  ;;  %v4538_v22 = vunpack.c.l.bf16 %v4422_v10 }
 0xa3c   :  { %4678 = vmatpush2.msra.mxu1 %v4560_v12  ;;  %4608 = vmatprep.subr.mxu0 %v4495_v14  ;;  %v4476_v12 = vunpack.c.l.bf16 %v4391_v36  ;;  %v4421_v14 = vld [vmem:[#allocation9 + $0x198] sm:$0xff] }
 0xa3d   :  { %4679 = vmatprep.subr.mxu1 %v4559_v18  ;;  %4609 = vmatpush2.msra.mxu0 %v4494_v19  ;;  %v4475_v18 = vunpack.c.h.bf16 %v4390_v2  ;;  %v4539_v19 = vunpack.c.h.bf16 %v4422_v10  ;;  %v4536_v63 = vunpack.c.l.bf16 %v4421_v14 }
 0xa3e   :  { %4680 = vmatpush2.msra.mxu1 %v4558_v20  ;;  %4610 = vmatprep.subr.mxu0 %v4493_v24  ;;  %v4474_v20 = vunpack.c.l.bf16 %v4390_v2  ;;  %v4420_v24 = vld [vmem:[#allocation9 + $0x190] sm:$0xff] }
 0xa3f   :  { %4681 = vmatprep.subr.mxu1 %v4557_v27  ;;  %4611 = vmatpush2.msra.mxu0 %v4492_v50  ;;  %v4473_v27 = vunpack.c.h.bf16 %v4389_v16  ;;  %v4537_v50 = vunpack.c.h.bf16 %v4421_v14  ;;  %v4534_v35 = vunpack.c.l.bf16 %v4420_v24 }
 0xa40   :  { %4682 = vmatpush2.msra.mxu1 %v4556_v28  ;;  %4612 = vmatprep.subr.mxu0 %v4491_v32  ;;  %v4472_v28 = vunpack.c.l.bf16 %v4389_v16  ;;  %v4419_v32 = vld [vmem:[#allocation9 + $0x188] sm:$0xff] }
 0xa41   :  { %4683 = vmatprep.subr.mxu1 %v4555_v33  ;;  %4613 = vmatpush2.msra.mxu0 %v4490_v34  ;;  %v4471_v33 = vunpack.c.h.bf16 %v4388_v23  ;;  %v4535_v34 = vunpack.c.h.bf16 %v4420_v24  ;;  %v4532_v5 = vunpack.c.l.bf16 %v4419_v32 }
 0xa42   :  { %4684 = vmatpush2.msra.mxu1 %v4554_v0  ;;  %4614 = vmatprep.subr.mxu0 %v4489_v37  ;;  %v4470_v0 = vunpack.c.l.bf16 %v4388_v23  ;;  %v4418_v37 = vld [vmem:[#allocation9 + $0x180] sm:$0xff] }
 0xa43   :  { %4685 = vmatprep.subr.mxu1 %v4553_v39  ;;  %4615 = vmatpush2.msra.mxu0 %v4488_v41  ;;  %v4469_v39 = vunpack.c.h.bf16 %v4387_v30  ;;  %v4533_v41 = vunpack.c.h.bf16 %v4419_v32 }
 0xa44   :  { %4686 = vmatpush2.msra.mxu1 %v4552_v42  ;;  %4616 = vmatprep.subr.mxu0 %v4487_v46  ;;  %v4468_v42 = vunpack.c.l.bf16 %v4387_v30  ;;  %v4531_v46 = vunpack.c.h.bf16 %v4418_v37 }
 0xa45   :  { %4687 = vmatprep.subr.mxu1 %v4551_v44  ;;  %4617 = vmatpush2.msra.mxu0 %v4486_v47  ;;  %v4466_v44 = vunpack.c.l.bf16 %v4386_v45  ;;  %v4530_v47 = vunpack.c.l.bf16 %v4418_v37 }
 0xa46   :  { %4688 = vmatpush2.msra.mxu1 %v4550_v40  ;;  %4618 = vmatprep.subr.mxu0 %v4485_v49  ;;  %v4562_v40 = vld [vmem:[%s6433_s13 + $0xc] sm:$0x3] }
 0xa47   :  { %4689 = vmatprep.subr.mxu1 %v4549_v53  ;;  %4619 = vmatpush2.msra.mxu0 %v4484_v55  ;;  %v4567_v48 = vrot.slane %v4562_v40, %v6196_v52  ;;  %v4571_v31 = vrot.slane %v4562_v40, %v6199_v54 }
 0xa48   :  { %4690 = vmatpush2.msra.mxu1 %v4548_v56  ;;  %4620 = vmatprep.subr.mxu0 %v4483_v9 }
 0xa49   :  { %4691 = vmatprep.subr.mxu1 %v4547_v21  ;;  %4621 = vmatpush2.msra.mxu0 %v4482_v25 }
 0xa4a   :  { %4692 = vmatpush2.msra.mxu1 %v4546_v57  ;;  %4622 = vmatprep.subr.mxu0 %v4481_v60 }
 0xa4b   :  { %4693 = vmatprep.subr.mxu1 %v4545_v26  ;;  %4623 = vmatpush2.msra.mxu0 %v4480_v13 }
 0xa4c   :  { %4694 = vmatpush2.msra.mxu1 %v4544_v61  ;;  %4624 = vmatprep.subr.mxu0 %v4479_v4 }
 0xa4d   :  { %4695 = vmatprep.subr.mxu1 %v4543_v6  ;;  %4625 = vmatpush2.msra.mxu0 %v4478_v7 }
 0xa4e   :  { %4696 = vmatpush2.msra.mxu1 %v4542_v8  ;;  %4626 = vmatprep.subr.mxu0 %v4477_v17 }
 0xa4f   :  { %4697 = vmatprep.subr.mxu1 %v4541_v11  ;;  %4627 = vmatpush2.msra.mxu0 %v4476_v12 }
 0xa50   :  { %4698 = vmatpush2.msra.mxu1 %v4540_v15  ;;  %4628 = vmatprep.subr.mxu0 %v4475_v18 }
 0xa51   :  { %4699 = vmatprep.subr.mxu1 %v4539_v19  ;;  %4629 = vmatpush2.msra.mxu0 %v4474_v20 }
 0xa52   :  { %4700 = vmatpush2.msra.mxu1 %v4538_v22  ;;  %4630 = vmatprep.subr.mxu0 %v4473_v27 }
 0xa53   :  { %4701 = vmatprep.subr.mxu1 %v4537_v50  ;;  %4631 = vmatpush2.msra.mxu0 %v4472_v28 }
 0xa54   :  { %4702 = vmatpush2.msra.mxu1 %v4536_v63  ;;  %4632 = vmatprep.subr.mxu0 %v4471_v33 }
 0xa55   :  { %4703 = vmatprep.subr.mxu1 %v4535_v34  ;;  %4633 = vmatpush2.msra.mxu0 %v4470_v0 }
 0xa56   :  { %4704 = vmatpush2.msra.mxu1 %v4534_v35  ;;  %4634 = vmatprep.subr.mxu0 %v4469_v39 }
 0xa57   :  { %4705 = vmatprep.subr.mxu1 %v4533_v41  ;;  %4635 = vmatpush2.msra.mxu0 %v4468_v42 }
 0xa58   :  { %4706 = vmatpush2.msra.mxu1 %v4532_v5  ;;  %4636 = vmatprep.subr.mxu0 %v4467_v43 }
 0xa59   :  { %4707 = vmatprep.subr.mxu1 %v4531_v46  ;;  %4637 = vmatpush2.msra.mxu0 %v4466_v44 }
 0xa5a   :  { %4708 = vmatpush2.msra.mxu1 %v4530_v47  ;;  %4639 = vmatmul.mubr.f32.vlgmr.msra.gmra.mxu0 %v6353_v3 }
 0xa5b   :  { %4710 = vmatmul.mubr.f32.vlgmr.msra.gmra.mxu1 %v6357_v59 }
 0xb1a   :  { %v4640_v49 = vpop.f32.mrf.mxu0 }
 0xb1b   :  { %v4711_v53 = vpop.f32.mrf.mxu1  ;;  %v4641_v55 = vadd.f32 %v4640_v49, %v4567_v48 }
 0xb1c   :  { %v4642_v56 = vpop.f32.mrf.mxu0 }
 0xb1d   :  { %v4712_v29 = vadd.f32 %v4711_v53, %v4641_v55  ;;  %v4643_v51 = vadd.f32 %v4642_v56, %v4571_v31  ;;  %v4713_v9 = vpop.f32.mrf.mxu1 }
 0xb1f   :  { %vm4716_vm14 = vcmp.ge.f32.partialorder %v4712_v29, 0.0  ;;  %v4718_v21 = vmul.f32 0.01, %v4712_v29  ;;  %v4714_v3 = vadd.f32 %v4713_v9, %v4643_v51 }
 0xb21   :  { %v6366_v25 = vsel %vm4716_vm14, %v4712_v29, %v4718_v21  ;;  %vm4717_vm15 = vcmp.ge.f32.partialorder %v4714_v3, 0.0  ;;  %v4719_v59 = vmul.f32 0.01, %v4714_v3 }
 0xb23   :  { %v4721_v57 = vsel %vm4717_vm15, %v4714_v3, %v4719_v59 }
 0xb24   :  { %6035 = dma.done.wait [#allocation13 + $0x8], 2048 }
 0xb25   :  { %6036 = vsyncadd [#allocation13 + $0x8], 4294965248  ;;  %4859 = vmatprep.mubr.f32.mxu0 %v4721_v57  ;;  %v5474_v52 = vld [vmem:[#allocation10 + $0x78] sm:$0xff]   ;;  %v5473_v38 = vld [vmem:[#allocation10 + $0x70] sm:$0xff]  }
 0xb26   :  { %v5466_v54 = vld [vmem:[#allocation10 + $0x38] sm:$0xff]   ;;  %v5372_v58 = vunpack.c.l.bf16 %v5474_v52  ;;  %v5373_v60 = vunpack.c.h.bf16 %v5474_v52  ;;  %v5465_v13 = vld [vmem:[#allocation10 + $0x30] sm:$0xff]   ;;  %v5369_v36 = vunpack.c.h.bf16 %v5473_v38  ;;  %v5472_v4 = vld [vmem:[#allocation10 + $0x68] sm:$0xff]   ;;  %v5368_v6 = vunpack.c.l.bf16 %v5473_v38 }
 0xb27   :  { %v5341_v26 = vunpack.c.h.bf16 %v5466_v54  ;;  %v5340_v61 = vunpack.c.l.bf16 %v5466_v54  ;;  %v5337_v62 = vunpack.c.h.bf16 %v5465_v13  ;;  %v5464_v7 = vld [vmem:[#allocation10 + $0x28] sm:$0xff]   ;;  %v5336_v8 = vunpack.c.l.bf16 %v5465_v13  ;;  %v5471_v17 = vld [vmem:[#allocation10 + $0x60] sm:$0xff]   ;;  %v5470_v18 = vld [vmem:[#allocation10 + $0x58] sm:$0xff]  }
 0xb28   :  { %5541 = vmatprep.subr.mxu0 %v5373_v60  ;;  %v5365_v2 = vunpack.c.h.bf16 %v5472_v4  ;;  %v5333_v10 = vunpack.c.h.bf16 %v5464_v7  ;;  %v5364_v11 = vunpack.c.l.bf16 %v5472_v4  ;;  %v5463_v12 = vld [vmem:[#allocation10 + $0x20] sm:$0xff]   ;;  %v5332_v15 = vunpack.c.l.bf16 %v5464_v7  ;;  %v5462_v20 = vld [vmem:[#allocation10 + $0x18] sm:$0xff]   ;;  %v5469_v27 = vld [vmem:[#allocation10 + $0x50] sm:$0xff]  }
 0xb29   :  { %5542 = vmatpush3.msra.mxu0 %v5341_v26  ;;  %v5361_v16 = vunpack.c.h.bf16 %v5471_v17  ;;  %v5329_v14 = vunpack.c.h.bf16 %v5463_v12  ;;  %v5360_v19 = vunpack.c.l.bf16 %v5471_v17  ;;  %v5328_v22 = vunpack.c.l.bf16 %v5463_v12  ;;  %v5461_v28 = vld [vmem:[#allocation10 + $0x10] sm:$0xff]   ;;  %v5468_v33 = vld [vmem:[#allocation10 + $0x48] sm:$0xff]   ;;  %v5467_v39 = vld [vmem:[#allocation10 + $0x40] sm:$0xff]  }
 0xb2a   :  { %5543 = vmatprep.subr.mxu0 %v5372_v58  ;;  %v5357_v23 = vunpack.c.h.bf16 %v5470_v18  ;;  %v5325_v24 = vunpack.c.h.bf16 %v5462_v20  ;;  %v5356_v50 = vunpack.c.l.bf16 %v5470_v18  ;;  %v5324_v63 = vunpack.c.l.bf16 %v5462_v20  ;;  %v5460_v0 = vld [vmem:[#allocation10 + $0x8] sm:$0xff]   ;;  %v5311_v42 = vld [vmem:[#allocation10] sm:$0xff]   ;;  %v5200_v48 = vld [vmem:[%s6433_s13 + $0xe] ss:$0 sm:$0xff] }
 0xb2b   :  { %5544 = vmatpush3.msra.mxu0 %v5340_v61  ;;  %v5353_v30 = vunpack.c.h.bf16 %v5469_v27  ;;  %v5321_v32 = vunpack.c.h.bf16 %v5461_v28  ;;  %v5352_v34 = vunpack.c.l.bf16 %v5469_v27  ;;  %v5320_v35 = vunpack.c.l.bf16 %v5461_v28 }
 0xb2c   :  { %5545 = vmatprep.subr.mxu0 %v5369_v36  ;;  %v5349_v45 = vunpack.c.h.bf16 %v5468_v33  ;;  %v5317_v37 = vunpack.c.h.bf16 %v5460_v0  ;;  %v5348_v41 = vunpack.c.l.bf16 %v5468_v33  ;;  %v5316_v5 = vunpack.c.l.bf16 %v5460_v0 }
 0xb2d   :  { %5546 = vmatpush3.msra.mxu0 %v5337_v62  ;;  %v5345_v43 = vunpack.c.h.bf16 %v5467_v39  ;;  %v5313_v46 = vunpack.c.h.bf16 %v5311_v42  ;;  %v5344_v44 = vunpack.c.l.bf16 %v5467_v39  ;;  %v5312_v47 = vunpack.c.l.bf16 %v5311_v42 }
 0xb2e   :  { %5547 = vmatprep.subr.mxu0 %v5368_v6 }
 0xb2f   :  { %5548 = vmatpush3.msra.mxu0 %v5336_v8 }
 0xb30   :  { %5549 = vmatprep.subr.mxu0 %v5365_v2 }
 0xb31   :  { %5550 = vmatpush3.msra.mxu0 %v5333_v10 }
 0xb32   :  { %5551 = vmatprep.subr.mxu0 %v5364_v11 }
 0xb33   :  { %5552 = vmatpush3.msra.mxu0 %v5332_v15 }
 0xb34   :  { %5553 = vmatprep.subr.mxu0 %v5361_v16 }
 0xb35   :  { %5554 = vmatpush3.msra.mxu0 %v5329_v14 }
 0xb36   :  { %5555 = vmatprep.subr.mxu0 %v5360_v19 }
 0xb37   :  { %5556 = vmatpush3.msra.mxu0 %v5328_v22 }
 0xb38   :  { %5557 = vmatprep.subr.mxu0 %v5357_v23 }
 0xb39   :  { %5558 = vmatpush3.msra.mxu0 %v5325_v24 }
 0xb3a   :  { %5559 = vmatprep.subr.mxu0 %v5356_v50 }
 0xb3b   :  { %5560 = vmatpush3.msra.mxu0 %v5324_v63 }
 0xb3c   :  { %5561 = vmatprep.subr.mxu0 %v5353_v30 }
 0xb3d   :  { %5562 = vmatpush3.msra.mxu0 %v5321_v32 }
 0xb3e   :  { %5563 = vmatprep.subr.mxu0 %v5352_v34 }
 0xb3f   :  { %5564 = vmatpush3.msra.mxu0 %v5320_v35 }
 0xb40   :  { %5565 = vmatprep.subr.mxu0 %v5349_v45 }
 0xb41   :  { %5566 = vmatpush3.msra.mxu0 %v5317_v37 }
 0xb42   :  { %5567 = vmatprep.subr.mxu0 %v5348_v41 }
 0xb43   :  { %5568 = vmatpush3.msra.mxu0 %v5316_v5 }
 0xb44   :  { %5569 = vmatprep.subr.mxu0 %v5345_v43 }
 0xb45   :  { %5570 = vmatpush3.msra.mxu0 %v5313_v46 }
 0xb46   :  { %5571 = vmatprep.subr.mxu0 %v5344_v44 }
 0xb47   :  { %5572 = vmatpush3.msra.mxu0 %v5312_v47 }
 0xb48   :  { %4860 = vmatmul.mubr.f32.vlgmr.msra.gmra.mxu0 %v6366_v25 }
 0xc08   :  { %v5573_v40 = vpop.f32.mrf.mxu0 }
 0xc0a   :  { %v5574_v31 = vpop.f32.mrf.mxu0 }
 0xc0b   :  { %v5575_v49 = vadd.f32 %v5574_v31, %v5573_v40 }
 0xc0d   :  { %v4862_v53 = vadd.f32 %v5575_v49, %v5200_v48 }
 0xc0f   :  { %vm4865_vm2 = vcmp.ge.f32.partialorder %v4862_v53, 0.0  ;;  %v4866_v55 = vmul.f32 0.01, %v4862_v53 }
 0xc11   :  { %v4867_v56 = vsel %vm4865_vm2, %v4862_v53, %v4866_v55 }
 0xc12   :  { %6037 = dma.done.wait [#allocation13 + $0x9], 1024 }
 0xc13   :  { %6038 = vsyncadd [#allocation13 + $0x9], 4294966272  ;;  %5645 = vmatprep.subr.mxu1 %v6056_v1  ;;  %5677 = vmatprep.mubr.msk.f32.mxu1 %vm6057_vm1, %v6056_v1  ;;  %v5481_v29 = vld [vmem:[#allocation11 + $0x38] sm:$0xff]   ;;  %v5480_v51 = vld [vmem:[#allocation11 + $0x30] sm:$0xff]  }
 0xc14   :  { %v5404_v9 = vunpack.c.l.bf16 %v5481_v29  ;;  %v5405_v21 = vunpack.c.h.bf16 %v5481_v29  ;;  %v5401_v3 = vunpack.c.h.bf16 %v5480_v51  ;;  %v5479_v25 = vld [vmem:[#allocation11 + $0x28] sm:$0xff]   ;;  %v5400_v59 = vunpack.c.l.bf16 %v5480_v51  ;;  %v5478_v52 = vld [vmem:[#allocation11 + $0x20] sm:$0xff]   ;;  %v5477_v58 = vld [vmem:[#allocation11 + $0x18] sm:$0xff]  }
 0xc15   :  { %v5397_v57 = vunpack.c.h.bf16 %v5479_v25  ;;  %v5396_v54 = vunpack.c.l.bf16 %v5479_v25  ;;  %v5393_v38 = vunpack.c.h.bf16 %v5478_v52  ;;  %v5392_v60 = vunpack.c.l.bf16 %v5478_v52  ;;  %v5476_v13 = vld [vmem:[#allocation11 + $0x10] sm:$0xff]   ;;  %v5475_v62 = vld [vmem:[#allocation11 + $0x8] sm:$0xff]   ;;  %v5375_v7 = vld [vmem:[#allocation11] sm:$0xff]  }
 0xc16   :  { %5646 = vmatpush3.msra.mxu1 %v5405_v21  ;;  %v5389_v26 = vunpack.c.h.bf16 %v5477_v58  ;;  %v5388_v61 = vunpack.c.l.bf16 %v5477_v58  ;;  %v5385_v36 = vunpack.c.h.bf16 %v5476_v13  ;;  %v5384_v4 = vunpack.c.l.bf16 %v5476_v13  ;;  %v5201_v17 = vld [vmem:[%s6433_s13 + $0xf] ss:$0 sm:$0xff] }
 0xc17   :  { %5647 = vmatprep.subr.mxu1 %v6056_v1  ;;  %v5381_v6 = vunpack.c.h.bf16 %v5475_v62  ;;  %v5380_v8 = vunpack.c.l.bf16 %v5475_v62  ;;  %v5377_v2 = vunpack.c.h.bf16 %v5375_v7  ;;  %v5376_v10 = vunpack.c.l.bf16 %v5375_v7 }
 0xc18   :  { %5648 = vmatpush3.msra.mxu1 %v5404_v9 }
 0xc19   :  { %5649 = vmatprep.subr.mxu1 %v6056_v1 }
 0xc1a   :  { %5650 = vmatpush3.msra.mxu1 %v5401_v3 }
 0xc1b   :  { %5651 = vmatprep.subr.mxu1 %v6056_v1 }
 0xc1c   :  { %5652 = vmatpush3.msra.mxu1 %v5400_v59 }
 0xc1d   :  { %5653 = vmatprep.subr.mxu1 %v6056_v1 }
 0xc1e   :  { %5654 = vmatpush3.msra.mxu1 %v5397_v57 }
 0xc1f   :  { %5655 = vmatprep.subr.mxu1 %v6056_v1 }
 0xc20   :  { %5656 = vmatpush3.msra.mxu1 %v5396_v54 }
 0xc21   :  { %5657 = vmatprep.subr.mxu1 %v6056_v1 }
 0xc22   :  { %5658 = vmatpush3.msra.mxu1 %v5393_v38 }
 0xc23   :  { %5659 = vmatprep.subr.mxu1 %v6056_v1 }
 0xc24   :  { %5660 = vmatpush3.msra.mxu1 %v5392_v60 }
 0xc25   :  { %5661 = vmatprep.subr.mxu1 %v6056_v1 }
 0xc26   :  { %5662 = vmatpush3.msra.mxu1 %v5389_v26 }
 0xc27   :  { %5663 = vmatprep.subr.mxu1 %v6056_v1 }
 0xc28   :  { %5664 = vmatpush3.msra.mxu1 %v5388_v61 }
 0xc29   :  { %5665 = vmatprep.subr.mxu1 %v6056_v1 }
 0xc2a   :  { %5666 = vmatpush3.msra.mxu1 %v5385_v36 }
 0xc2b   :  { %5667 = vmatprep.subr.mxu1 %v6056_v1 }
 0xc2c   :  { %5668 = vmatpush3.msra.mxu1 %v5384_v4 }
 0xc2d   :  { %5669 = vmatprep.subr.mxu1 %v6056_v1 }
 0xc2e   :  { %5670 = vmatpush3.msra.mxu1 %v5381_v6 }
 0xc2f   :  { %5671 = vmatprep.subr.mxu1 %v6056_v1 }
 0xc30   :  { %5672 = vmatpush3.msra.mxu1 %v5380_v8 }
 0xc31   :  { %5673 = vmatprep.subr.mxu1 %v6056_v1 }
 0xc32   :  { %5674 = vmatpush3.msra.mxu1 %v5377_v2 }
 0xc33   :  { %5675 = vmatprep.subr.mxu1 %v6056_v1 }
 0xc34   :  { %5676 = vmatpush3.msra.mxu1 %v5376_v10 }
 0xc35   :  { %5678 = vmatmul.mubr.f32.vlgmr.msra.gmra.mxu1 %v4867_v56 }
 0xcf5   :  { %v4975_v11 = vpop.f32.mrf.mxu1 }
 0xcf6   :  { %v4976_v12 = vadd.f32 %v5201_v17, %v4975_v11 }
 0xcf7   :  { %v5679_v15 = vpop.f32.mrf.mxu1 }
 0xcf8   :  { %vm4979_vm3 = vcmp.ge.f32.partialorder %v4976_v12, 0.0  ;;  %v4980_v16 = vmul.f32 0.01, %v4976_v12 }
 0xcfa   :  { %v4981_v14 = vsel %vm4979_vm3, %v4976_v12, %v4980_v16 }
 0xcfb   :  { %6039 = dma.done.wait [#allocation13 + $0xa], 1024 }
 0xcfc   :  { %6040 = vsyncadd [#allocation13 + $0xa], 4294966272  ;;  %5680 = vmatprep.subr.mxu0 %v6056_v1  ;;  %5712 = vmatprep.mubr.msk.f32.mxu0 %vm6057_vm1, %v6056_v1  ;;  %v5488_v18 = vld [vmem:[#allocation12 + $0x38] sm:$0xff]   ;;  %v5487_v19 = vld [vmem:[#allocation12 + $0x30] sm:$0xff]   ;;  %s6058_s25 = smov [#allocation19]  }
 0xcfd   :  { %v5436_v20 = vunpack.c.l.bf16 %v5488_v18  ;;  %v5437_v22 = vunpack.c.h.bf16 %v5488_v18  ;;  %v5433_v23 = vunpack.c.h.bf16 %v5487_v19  ;;  %v5486_v24 = vld [vmem:[#allocation12 + $0x28] sm:$0xff]   ;;  %v5432_v27 = vunpack.c.l.bf16 %v5487_v19  ;;  %v5485_v28 = vld [vmem:[#allocation12 + $0x20] sm:$0xff]   ;;  %v5484_v32 = vld [vmem:[#allocation12 + $0x18] sm:$0xff]   ;;  %s5100_s7 = sshll.u32 %s6058_s25, 4  ;;  %s5101_s7 = int_to_ptr.vmem [resolvable:$true] %s5100_s7 }
 0xcfe   :  { %v5429_v50 = vunpack.c.h.bf16 %v5486_v24  ;;  %v5428_v63 = vunpack.c.l.bf16 %v5486_v24  ;;  %v5425_v30 = vunpack.c.h.bf16 %v5485_v28  ;;  %v5424_v33 = vunpack.c.l.bf16 %v5485_v28  ;;  %v5483_v0 = vld [vmem:[#allocation12 + $0x10] sm:$0xff]   ;;  %v5482_v37 = vld [vmem:[#allocation12 + $0x8] sm:$0xff]   ;;  %v5407_v42 = vld [vmem:[#allocation12] sm:$0xff]   ;;  %s5995_s26 = scalar_lea.vmem %s5101_s7, 128  ;;  %p6000_p10 = scmp.lt.s32.totalorder %s5101_s7, %s5101_s7 }
 0xcff   :  { %5681 = vmatpush3.msra.mxu0 %v5437_v22  ;;  %v5421_v34 = vunpack.c.h.bf16 %v5484_v32  ;;  %v5420_v35 = vunpack.c.l.bf16 %v5484_v32  ;;  %v5417_v45 = vunpack.c.h.bf16 %v5483_v0  ;;  %v5416_v39 = vunpack.c.l.bf16 %v5483_v0  ;;  %p5996_p9 = scmp.ne.s32.totalorder %s5101_s7, %s5995_s26  ;;  %p6001_p11 = scmp.lt.s32.totalorder %s5995_s26, %s5995_s26 }
 0xd00   :  { %5682 = vmatprep.subr.mxu0 %v6056_v1  ;;  %v5413_v41 = vunpack.c.h.bf16 %v5482_v37  ;;  %v5412_v5 = vunpack.c.l.bf16 %v5482_v37  ;;  %v5409_v43 = vunpack.c.h.bf16 %v5407_v42  ;;  %v5408_v46 = vunpack.c.l.bf16 %v5407_v42 }
 0xd01   :  { %5683 = vmatpush3.msra.mxu0 %v5436_v20  ;;  %p6002_p12 = por %p6001_p11, %p6000_p10 }
 0xd02   :  { %5684 = vmatprep.subr.mxu0 %v6056_v1 }
 0xd03   :  { %5685 = vmatpush3.msra.mxu0 %v5433_v23  ;;  %p6003_p13 = pnand %p6002_p12, %p5996_p9 }
 0xd04   :  { %5686 = vmatprep.subr.mxu0 %v6056_v1 }
 0xd05   :  { %5687 = vmatpush3.msra.mxu0 %v5432_v27 }
 0xd06   :  { %5688 = vmatprep.subr.mxu0 %v6056_v1 }
 0xd07   :  { %5689 = vmatpush3.msra.mxu0 %v5429_v50 }
 0xd08   :  { %5690 = vmatprep.subr.mxu0 %v6056_v1 }
 0xd09   :  { %5691 = vmatpush3.msra.mxu0 %v5428_v63 }
 0xd0a   :  { %5692 = vmatprep.subr.mxu0 %v6056_v1 }
 0xd0b   :  { %5693 = vmatpush3.msra.mxu0 %v5425_v30 }
 0xd0c   :  { %5694 = vmatprep.subr.mxu0 %v6056_v1 }
 0xd0d   :  { %5695 = vmatpush3.msra.mxu0 %v5424_v33 }
 0xd0e   :  { %5696 = vmatprep.subr.mxu0 %v6056_v1 }
 0xd0f   :  { %5697 = vmatpush3.msra.mxu0 %v5421_v34 }
 0xd10   :  { %5698 = vmatprep.subr.mxu0 %v6056_v1 }
 0xd11   :  { %5699 = vmatpush3.msra.mxu0 %v5420_v35 }
 0xd12   :  { %5700 = vmatprep.subr.mxu0 %v6056_v1 }
 0xd13   :  { %5701 = vmatpush3.msra.mxu0 %v5417_v45 }
 0xd14   :  { %5702 = vmatprep.subr.mxu0 %v6056_v1 }
 0xd15   :  { %5703 = vmatpush3.msra.mxu0 %v5416_v39 }
 0xd16   :  { %5704 = vmatprep.subr.mxu0 %v6056_v1 }
 0xd17   :  { %5705 = vmatpush3.msra.mxu0 %v5413_v41 }
 0xd18   :  { %5706 = vmatprep.subr.mxu0 %v6056_v1 }
 0xd19   :  { %5707 = vmatpush3.msra.mxu0 %v5412_v5 }
 0xd1a   :  { %5708 = vmatprep.subr.mxu0 %v6056_v1 }
 0xd1b   :  { %5709 = vmatpush3.msra.mxu0 %v5409_v43 }
 0xd1c   :  { %5710 = vmatprep.subr.mxu0 %v6056_v1 }
 0xd1d   :  { %5711 = vmatpush3.msra.mxu0 %v5408_v46 }
 0xd1e   :  { %5713 = vmatmul.mubr.f32.vlgmr.msra.gmra.mxu0 %v4981_v14 }
 0xd1f   :  { %6006 = shalt.err (!%p6003_p13)
}
 0xd20   :  { %5103 = dma.vmem_to_hbm [thread:$0]  %s5101_s7, 128, %s6434_s14, [#allocation16]   ;;  %v5202_v1 = vld [vmem:[%s6433_s13 + $0x10] ss:$0 sm:$0xff] }
 0xdde   :  { %v5089_v44 = vpop.f32.mrf.mxu0 }
 0xddf   :  { %v5090_v47 = vadd.f32 %v5202_v1, %v5089_v44 }
 0xde0   :  { %v5714_v40 = vpop.f32.mrf.mxu0 }
 0xde1   :  { %5093 = vst [vmem:[%s6435_s15] sm:$0xff] %v5090_v47 }
 0xde2   :  { %6041 = dma.done.wait [#allocation16], 128  }
 0xde3   :  { %6042 = vsyncadd [#allocation16], 4294967168 }
 0xde4   :  { %5111 = vsyncpa [#allocation15], 1 }
 0xde5   :  { %5112 = vsyncpa [#allocation18], 1 }
 0xde6   :  { %5113 = vsyncpa [#allocation16], 1 }
 0xde7   :  { %5114 = vsyncmov [#allocation13] }
 0xdea   :  { %s5115_s16 = vpop.sfrf %5114 }
 0xdeb   :  { %p5203_p0 = scmp.ne.s32.totalorder %s5115_s16, 0 }
 0xded   :  { %5119 = shalt.err (%p5203_p0)  }
 0xdee   :  { %5121 = vsyncmov [#allocation13 + $0x1] }
 0xdf1   :  { %s5122_s14 = vpop.sfrf %5121 }
 0xdf2   :  { %p5204_p1 = scmp.ne.s32.totalorder %s5122_s14, 0 }
 0xdf4   :  { %5126 = shalt.err (%p5204_p1)  }
 0xdf5   :  { %5128 = vsyncmov [#allocation13 + $0x2] }
 0xdf8   :  { %s5129_s13 = vpop.sfrf %5128 }
 0xdf9   :  { %p5205_p2 = scmp.ne.s32.totalorder %s5129_s13, 0 }
 0xdfb   :  { %5133 = shalt.err (%p5205_p2)  }
 0xdfc   :  { %5135 = vsyncmov [#allocation13 + $0x3] }
 0xdff   :  { %s5136_s0 = vpop.sfrf %5135 }
 0xe00   :  { %p5206_p3 = scmp.ne.s32.totalorder %s5136_s0, 0 }
 0xe02   :  { %5140 = shalt.err (%p5206_p3)  }
 0xe03   :  { %5142 = vsyncmov [#allocation13 + $0x4] }
 0xe06   :  { %s5143_s15 = vpop.sfrf %5142 }
 0xe07   :  { %p5207_p4 = scmp.ne.s32.totalorder %s5143_s15, 0 }
 0xe09   :  { %5147 = shalt.err (%p5207_p4)  }
 0xe0a   :  { %5149 = vsyncmov [#allocation13 + $0x5] }
 0xe0d   :  { %s5150_s9 = vpop.sfrf %5149 }
 0xe0e   :  { %p5208_p5 = scmp.ne.s32.totalorder %s5150_s9, 0 }
 0xe10   :  { %5154 = shalt.err (%p5208_p5)  }
 0xe11   :  { %5156 = vsyncmov [#allocation13 + $0x6] }
 0xe14   :  { %s5157_s17 = vpop.sfrf %5156 }
 0xe15   :  { %p5209_p6 = scmp.ne.s32.totalorder %s5157_s17, 0 }
 0xe17   :  { %5161 = shalt.err (%p5209_p6)  }
 0xe18   :  { %5163 = vsyncmov [#allocation13 + $0x7] }
 0xe1b   :  { %s5164_s3 = vpop.sfrf %5163 }
 0xe1c   :  { %p5210_p7 = scmp.ne.s32.totalorder %s5164_s3, 0 }
 0xe1e   :  { %5168 = shalt.err (%p5210_p7)  }
 0xe1f   :  { %5170 = vsyncmov [#allocation13 + $0x8] }
 0xe22   :  { %s5171_s18 = vpop.sfrf %5170 }
 0xe23   :  { %p5211_p8 = scmp.ne.s32.totalorder %s5171_s18, 0 }
 0xe25   :  { %5175 = shalt.err (%p5211_p8)  }
 0xe26   :  { %5177 = vsyncmov [#allocation13 + $0x9] }
 0xe29   :  { %s5178_s6 = vpop.sfrf %5177 }
 0xe2a   :  { %p5212_p9 = scmp.ne.s32.totalorder %s5178_s6, 0 }
 0xe2c   :  { %5182 = shalt.err (%p5212_p9)  }
 0xe2d   :  { %5184 = vsyncmov [#allocation13 + $0xa] }
 0xe30   :  { %s5185_s10 = vpop.sfrf %5184 }
 0xe31   :  { %p5213_p10 = scmp.ne.s32.totalorder %s5185_s10, 0 }
 0xe33   :  { %5189 = shalt.err (%p5213_p10)  }

</bundles_post_ra>
